<compile_context>
chip_gen: v6e
topology: v6e:2x2x1
jax: 0.10.0
libtpu: 0.0.40
codegen_flags: <defaults>
</compile_context>

<pallas_src>
import functools

import jax
import jax.numpy as jnp
from jax import lax
from jax.experimental import pallas as pl
from jax.experimental.pallas import tpu as pltpu

HID = 500          # hidden width hardcoded in the PyTorch module
HID_PAD = 512      # lane-dense padding of the hidden width
N_OUT = 2049       # fc_final output width hardcoded in the PyTorch module

# fc_final tiling: NB grid steps of NT weight columns each, SUB columns per in-kernel
# sub-tile (keeps the (P1*M, SUB) f32 intermediate comfortably inside the vreg file).
NB = 3
NT = 768
SUB = 384
N_WPAD = NB * NT   # 2304 = 18*128 ; wff/bff are zero-padded out to this width

assert NT % SUB == 0 and SUB % 128 == 0
assert (NB - 1) * NT + (NT // SUB - 1) * SUB < N_OUT <= N_WPAD


def _round_up(x, m):
    return ((x + m - 1) // m) * m


# ---------------------------------------------------------------------------
# The single fused Pallas kernel
# ---------------------------------------------------------------------------
def _fused_kernel(xA_ref, xP_ref,
                  wcA_ref, bcA_ref, wfA_ref, bfA_ref,
                  wcP_ref, bcP_ref, wfP_ref, bfP_ref,
                  wff_ref, bff_ref, wr_ref, cst_ref,
                  o_ref, h_ref,
                  *, ma, p1, nt, sub, nb, n_out):
    j = pl.program_id(0)

    # Step 0: both conv+fc branches.  The (P1*ma, 512) bf16 feature stack stays in VMEM
    # scratch for the remaining grid steps (never touches HBM).
    @pl.when(j == 0)
    def _():
        hA = jnp.dot(xA_ref[...], wcA_ref[...], preferred_element_type=jnp.float32)
        hA = jnp.maximum(hA + bcA_ref[...], 0.0).astype(jnp.bfloat16)
        a = jnp.dot(hA, wfA_ref[...], preferred_element_type=jnp.float32)
        h_ref[0:ma, :] = jnp.maximum(a + bfA_ref[...], 0.0).astype(jnp.bfloat16)

        hP = jnp.dot(xP_ref[...], wcP_ref[...], preferred_element_type=jnp.float32)
        hP = jnp.maximum(hP + bcP_ref[...], 0.0).astype(jnp.bfloat16)
        phi = jnp.dot(hP, wfP_ref[...], preferred_element_type=jnp.float32)
        h_ref[ma:, :] = jnp.maximum(phi + bfP_ref[...], 0.0).astype(jnp.bfloat16)

    # Every step: fc_final on NT columns of wff (one combined (P1*ma, 512) matmul per
    # SUB-wide sub-tile), ReLU, wr-weighted reduce over the (P+1) axis, + final bias.
    h = h_ref[...]                                         # (p1*ma, 512) bf16
    cst = cst_ref[0]
    nsub = nt // sub
    tail = n_out - ((nb - 1) * nt + (nsub - 1) * sub)      # valid cols of the last sub-tile

    for s in range(nsub):
        w_s = wff_ref[:, s * sub:(s + 1) * sub]            # (512, sub) bf16
        b_s = bff_ref[:, s * sub:(s + 1) * sub]            # (1, sub) f32
        y = jnp.dot(h, w_s, preferred_element_type=jnp.float32)
        y = jnp.maximum(y + b_s, 0.0)                      # (p1*ma, sub)
        acc = wr_ref[0] * y[0:ma, :]
        for p in range(1, p1):
            acc = acc + wr_ref[p] * y[p * ma:(p + 1) * ma, :]
        acc = acc + cst                                    # (ma, sub)

        c = pl.multiple_of(j * nt + s * sub, 128)
        if s < nsub - 1:
            o_ref[:, pl.ds(c, sub)] = acc
        else:
            # Last sub-tile of the LAST grid step only covers `tail` valid columns of the
            # un-padded 2049-wide output (never store past column N_OUT).
            @pl.when(j < nb - 1)
            def _():
                o_ref[:, pl.ds(c, sub)] = acc

            @pl.when(j == nb - 1)
            def _():
                o_ref[:, pl.ds(c, tail)] = acc[:, :tail]


def _fused_forward_call(patchesA, patchesP, kp, *, ma_pad, p1):
    K = patchesA.shape[1]

    kern = functools.partial(_fused_kernel, ma=ma_pad, p1=p1,
                             nt=NT, sub=SUB, nb=NB, n_out=N_OUT)

    flops = 2 * (ma_pad * K * HID_PAD + ma_pad * HID_PAD * HID_PAD
                 + (p1 - 1) * ma_pad * K * HID_PAD
                 + (p1 - 1) * ma_pad * HID_PAD * HID_PAD
                 + p1 * ma_pad * HID_PAD * N_WPAD)
    bytes_accessed = (
        (patchesA.size + patchesP.size) * 2
        + (kp["wcA"].size + kp["wfA"].size + kp["wcP"].size + kp["wfP"].size
           + kp["wff"].size) * 2
        + (kp["bcA"].size + kp["bfA"].size + kp["bcP"].size + kp["bfP"].size
           + kp["bff"].size) * 4
        + ma_pad * N_OUT * 4)

    return pl.pallas_call(
        kern,
        out_shape=jax.ShapeDtypeStruct((ma_pad, N_OUT), jnp.float32),
        grid_spec=pltpu.PrefetchScalarGridSpec(
            num_scalar_prefetch=0,
            grid=(NB,),
            in_specs=[
                pl.BlockSpec((ma_pad, K), lambda j: (0, 0)),             # patchesA (bf16)
                pl.BlockSpec(((p1 - 1) * ma_pad, K), lambda j: (0, 0)),  # patchesP (bf16)
                pl.BlockSpec((K, HID_PAD), lambda j: (0, 0)),            # wcA
                pl.BlockSpec((1, HID_PAD), lambda j: (0, 0)),            # bcA
                pl.BlockSpec((HID_PAD, HID_PAD), lambda j: (0, 0)),      # wfA
                pl.BlockSpec((1, HID_PAD), lambda j: (0, 0)),            # bfA
                pl.BlockSpec((K, HID_PAD), lambda j: (0, 0)),            # wcP
                pl.BlockSpec((1, HID_PAD), lambda j: (0, 0)),            # bcP
                pl.BlockSpec((HID_PAD, HID_PAD), lambda j: (0, 0)),      # wfP
                pl.BlockSpec((1, HID_PAD), lambda j: (0, 0)),            # bfP
                pl.BlockSpec((HID_PAD, NT), lambda j: (0, j)),           # wff (pipelined)
                pl.BlockSpec((1, NT), lambda j: (0, j)),                 # bff (pipelined)
                pl.BlockSpec(memory_space=pltpu.MemorySpace.SMEM),       # wr  (P+1,)
                pl.BlockSpec(memory_space=pltpu.MemorySpace.SMEM),       # const (1,)
            ],
            out_specs=pl.BlockSpec((ma_pad, N_OUT), lambda j: (0, 0)),   # resident output
            scratch_shapes=[pltpu.VMEM((p1 * ma_pad, HID_PAD), jnp.bfloat16)],
        ),
        compiler_params=pltpu.CompilerParams(dimension_semantics=("arbitrary",)),
        cost_estimate=pl.CostEstimate(flops=int(flops), transcendentals=0,
                                      bytes_accessed=int(bytes_accessed)),
    )(patchesA, patchesP,
      kp["wcA"], kp["bcA"], kp["wfA"], kp["bfA"],
      kp["wcP"], kp["bcP"], kp["wfP"], kp["bfP"],
      kp["wff"], kp["bff"], kp["wr"], kp["const"])


# ---------------------------------------------------------------------------
# Parameters (deterministic init, PyTorch layouts)
# ---------------------------------------------------------------------------
def init_params(key, F, P, cf):
    Kh = 2 * cf + 1
    ks = jax.random.split(key, 6)

    def w(k, shape, fan_in):
        return jax.random.normal(k, shape, jnp.float32) / jnp.sqrt(jnp.float32(fan_in))

    return {
        "bias": jnp.asarray(0.25, jnp.float32),     # BiasLayer.bias  (scalar)
        "scale": jnp.asarray(1.5, jnp.float32),     # BiasLayer.scale (scalar)
        "conv_A_w": w(ks[0], (HID, F, Kh, 2), F * Kh * 2),       # Conv2d weight
        "conv_A_b": jnp.full((HID,), 0.01, jnp.float32),
        "fc_A_w": w(ks[1], (HID, HID), HID),                     # Linear(out,in)
        "fc_A_b": jnp.full((HID,), 0.01, jnp.float32),
        "conv_phi_w": w(ks[2], (HID, F, Kh, 1, 2), F * Kh * 2),  # Conv3d weight
        "conv_phi_b": jnp.full((HID,), 0.01, jnp.float32),
        "fc_phi_w": w(ks[3], (HID, HID), HID),
        "fc_phi_b": jnp.full((HID,), 0.01, jnp.float32),
        "fc_final_w": w(ks[4], (N_OUT, HID), HID),
        "fc_final_b": jnp.full((N_OUT,), 0.01, jnp.float32),
        "reshape_w": w(ks[5], (1, P + 1), P + 1),                # Linear(P+1, 1)
        "reshape_b": jnp.full((1,), 0.02, jnp.float32),
    }


def _pad2(w, rows, cols):
    return jnp.pad(w, ((0, rows - w.shape[0]), (0, cols - w.shape[1])))


def prepare_kernel_params(params, F, cf):
    """(in,out) transposes, first-BiasLayer fold into conv_A, lane-dense zero padding
    (500->512, 2049->2304), bf16 matmul weights, (1,width) f32 biases."""
    Kh = 2 * cf + 1
    K = F * Kh * 2
    bias = params["bias"].astype(jnp.float32)
    scale = params["scale"].astype(jnp.float32)

    # conv_A with BiasLayer fold: conv((x-b)/s) == x @ (W/s) + (bc - (b/s)*sum_K W)
    wcA = jnp.transpose(params["conv_A_w"].reshape(HID, K))              # (K, HID)
    bcA = params["conv_A_b"] - (bias / scale) * jnp.sum(wcA, axis=0)
    wcA = wcA / scale

    wcP = jnp.transpose(params["conv_phi_w"].reshape(HID, K))            # (K, HID)

    def bvec(b, width):
        return jnp.pad(b, (0, width - b.shape[0])).reshape(1, width).astype(jnp.float32)

    return dict(
        wcA=_pad2(wcA, K, HID_PAD).astype(jnp.bfloat16),
        bcA=bvec(bcA, HID_PAD),
        wfA=_pad2(jnp.transpose(params["fc_A_w"]), HID_PAD, HID_PAD).astype(jnp.bfloat16),
        bfA=bvec(params["fc_A_b"], HID_PAD),
        wcP=_pad2(wcP, K, HID_PAD).astype(jnp.bfloat16),
        bcP=bvec(params["conv_phi_b"], HID_PAD),
        wfP=_pad2(jnp.transpose(params["fc_phi_w"]), HID_PAD, HID_PAD).astype(jnp.bfloat16),
        bfP=bvec(params["fc_phi_b"], HID_PAD),
        wff=_pad2(jnp.transpose(params["fc_final_w"]), HID_PAD, N_WPAD).astype(jnp.bfloat16),
        bff=bvec(params["fc_final_b"], N_WPAD),
        wr=params["reshape_w"].reshape(-1).astype(jnp.float32),           # (P+1,)
        const=(params["reshape_b"] + bias).astype(jnp.float32),           # (1,) final +bias
    )


# ---------------------------------------------------------------------------
# Forward pass (matches AmplitudeEstimator2.forward)
# ---------------------------------------------------------------------------
def amplitude_estimator2_forward(params, amplitude, phase_features, *, context_frames):
    B, C, T, F = amplitude.shape
    assert C == 2, "conv kernels have width 2 over the channel axis (stereo input)"
    P = phase_features.shape[3]
    cf = context_frames
    Kh = 2 * cf + 1
    K = F * Kh * C
    MA = B * T
    MA_pad = _round_up(MA, 8)
    P1 = P + 1

    kp = prepare_kernel_params(params, F, cf)
    idx = jnp.arange(T)[:, None] + jnp.arange(Kh)[None, :]               # (T, Kh)

    # TODO(synk): for large T, move the Kh im2col (halo of cf frames) into the kernel via
    # an overlapping T-axis BlockSpec instead of materializing patches in HBM.

    # conv_A im2col (first BiasLayer already folded into wcA/bcA); bf16 halves patch DMA.
    xA = jnp.transpose(amplitude, (0, 3, 2, 1))                          # (B,F,T,C)
    xA = jnp.pad(xA, ((0, 0), (0, 0), (cf, cf), (0, 0)), mode="reflect")
    winA = xA[:, :, idx, :]                                              # (B,F,T,Kh,C)
    patchesA = jnp.transpose(winA, (0, 2, 1, 3, 4)).reshape(MA, K)
    patchesA = jnp.pad(patchesA, ((0, MA_pad - MA), (0, 0))).astype(jnp.bfloat16)

    # conv_phi im2col (zero padding on T), rows ordered p-major so the kernel can stack
    # (A, phi_0..phi_{P-1}) with contiguous VMEM scratch writes.
    xP = jnp.transpose(phase_features, (0, 4, 2, 3, 1))                  # (B,F,T,P,C)
    xP = jnp.pad(xP, ((0, 0), (0, 0), (cf, cf), (0, 0), (0, 0)))
    winP = xP[:, :, idx, :, :]                                           # (B,F,T,Kh,P,C)
    patchesP = jnp.transpose(winP, (4, 0, 2, 1, 3, 5)).reshape(P, MA, K)
    patchesP = jnp.pad(patchesP, ((0, 0), (0, MA_pad - MA), (0, 0)))
    patchesP = patchesP.reshape(P * MA_pad, K).astype(jnp.bfloat16)

    out = _fused_forward_call(patchesA, patchesP, kp, ma_pad=MA_pad, p1=P1)
    return out[:MA].reshape(B, 1, T, N_OUT)


# ---------------------------------------------------------------------------
# Pure-JAX f32 reference (independent path via lax.conv, for a tolerance check)
# ---------------------------------------------------------------------------
def reference_forward(params, amplitude, phase_features, *, context_frames):
    B, C, T, F = amplitude.shape
    P = phase_features.shape[3]
    cf = context_frames
    bias, scale = params["bias"], params["scale"]

    # conv_A branch
    A0 = (amplitude - bias) / scale
    xA = jnp.transpose(A0, (0, 3, 2, 1))                                  # (B,F,T,C)
    xA = jnp.pad(xA, ((0, 0), (0, 0), (cf, cf), (0, 0)), mode="reflect")
    yA = lax.conv_general_dilated(xA, params["conv_A_w"], (1, 1), "VALID",
                                  dimension_numbers=("NCHW", "OIHW", "NCHW"))
    yA = jax.nn.relu(yA + params["conv_A_b"][None, :, None, None])        # (B,500,T,1)
    A = jnp.transpose(yA[:, :, :, 0], (0, 2, 1))                          # (B,T,500)
    A = jax.nn.relu(jnp.einsum("bti,oi->bto", A, params["fc_A_w"]) + params["fc_A_b"])

    # conv_phi branch (kernel size 1 along P -> fold P into the batch, reuse 2D conv)
    xP = jnp.transpose(phase_features, (0, 3, 4, 2, 1)).reshape(B * P, F, T, C)
    xP = jnp.pad(xP, ((0, 0), (0, 0), (cf, cf), (0, 0)))
    wphi = params["conv_phi_w"][:, :, :, 0, :]                            # (500,F,Kh,2)
    yP = lax.conv_general_dilated(xP, wphi, (1, 1), "VALID",
                                  dimension_numbers=("NCHW", "OIHW", "NCHW"))
    yP = jax.nn.relu(yP + params["conv_phi_b"][None, :, None, None])      # (B*P,500,T,1)
    phi = jnp.transpose(yP[:, :, :, 0].reshape(B, P, HID, T), (0, 3, 1, 2))  # (B,T,P,500)
    phi = jax.nn.relu(jnp.einsum("btpi,oi->btpo", phi, params["fc_phi_w"])
                      + params["fc_phi_b"])

    feat = jnp.concatenate([A[:, :, None, :], phi], axis=2)               # (B,T,P+1,500)
    feat = jax.nn.relu(jnp.einsum("btpi,oi->btpo", feat, params["fc_final_w"])
                       + params["fc_final_b"])                            # (B,T,P+1,2049)
    out = jnp.einsum("btpn,p->btn", feat, params["reshape_w"][0]) + params["reshape_b"][0]
    out = out + bias
    return out[:, None, :, :]                                             # (B,1,T,2049)


# ---------------------------------------------------------------------------
if __name__ == "__main__":
    # Small shapes consistent with the module: n_fft=254 -> F=128 freq bins,
    # stereo (C=2), T=8 frames, phase_features_dim P=3, context_frames=2.
    B, C, T, P = 2, 2, 8, 3
    n_fft = 254
    F = n_fft // 2 + 1          # 128
    context_frames = 2

    key = jax.random.PRNGKey(0)
    kparam, kamp, kphase = jax.random.split(key, 3)
    params = init_params(kparam, F, P, context_frames)

    amplitude = jax.random.uniform(kamp, (B, C, T, F), jnp.float32)
    phase_features = jax.random.uniform(kphase, (B, C, T, P, F), jnp.float32,
                                        minval=-1.0, maxval=1.0)

    fwd = jax.jit(functools.partial(amplitude_estimator2_forward,
                                    context_frames=context_frames))
    out = jax.block_until_ready(fwd(params, amplitude, phase_features))
    assert out.shape == (B, 1, T, N_OUT), out.shape
    assert bool(jnp.isfinite(out).all())

    # Loose tolerance check vs. a pure-JAX reference (bf16 weights inside the kernel).
    ref = jax.block_until_ready(
        jax.jit(functools.partial(reference_forward, context_frames=context_frames))(
            params, amplitude, phase_features))
    max_err = float(jnp.max(jnp.abs(out - ref)))
    assert max_err < 0.1 * (1.0 + float(jnp.max(jnp.abs(ref)))), max_err

    print("KERNEL_OK")
</pallas_src>

<mosaic_0001>
module attributes {stable_mosaic.version = 11 : i64} {
  func.func @_fused_kernel(%arg0: i32, %arg1: memref<16x1280xbf16, #tpu.memory_space<vmem>>, %arg2: memref<48x1280xbf16, #tpu.memory_space<vmem>>, %arg3: memref<1280x512xbf16, #tpu.memory_space<vmem>>, %arg4: memref<1x512xf32, #tpu.memory_space<vmem>>, %arg5: memref<512x512xbf16, #tpu.memory_space<vmem>>, %arg6: memref<1x512xf32, #tpu.memory_space<vmem>>, %arg7: memref<1280x512xbf16, #tpu.memory_space<vmem>>, %arg8: memref<1x512xf32, #tpu.memory_space<vmem>>, %arg9: memref<512x512xbf16, #tpu.memory_space<vmem>>, %arg10: memref<1x512xf32, #tpu.memory_space<vmem>>, %arg11: memref<512x768xbf16, #tpu.memory_space<vmem>>, %arg12: memref<1x768xf32, #tpu.memory_space<vmem>>, %arg13: memref<4xf32, #tpu.memory_space<smem>>, %arg14: memref<1xf32, #tpu.memory_space<smem>>, %arg15: memref<16x2049xf32, #tpu.memory_space<vmem>>, %arg16: memref<64x512xbf16, #tpu.memory_space<vmem>>) attributes {dimension_semantics = [#tpu.dimension_semantics<arbitrary>], iteration_bounds = array<i64: 3>, scalar_prefetch = 0 : i64, scratch_operands = 1 : i64, tpu.core_type = #tpu.core_type<tc>, window_params = [{pipeline_mode = #tpu.pipeline_mode<synchronous>, transform_indices = @transform_0, window_bounds = array<i64: 16, 1280>}, {pipeline_mode = #tpu.pipeline_mode<synchronous>, transform_indices = @transform_1, window_bounds = array<i64: 48, 1280>}, {pipeline_mode = #tpu.pipeline_mode<synchronous>, transform_indices = @transform_2, window_bounds = array<i64: 1280, 512>}, {pipeline_mode = #tpu.pipeline_mode<synchronous>, transform_indices = @transform_3, window_bounds = array<i64: 1, 512>}, {pipeline_mode = #tpu.pipeline_mode<synchronous>, transform_indices = @transform_4, window_bounds = array<i64: 512, 512>}, {pipeline_mode = #tpu.pipeline_mode<synchronous>, transform_indices = @transform_5, window_bounds = array<i64: 1, 512>}, {pipeline_mode = #tpu.pipeline_mode<synchronous>, transform_indices = @transform_6, window_bounds = array<i64: 1280, 512>}, {pipeline_mode = #tpu.pipeline_mode<synchronous>, transform_indices = @transform_7, window_bounds = array<i64: 1, 512>}, {pipeline_mode = #tpu.pipeline_mode<synchronous>, transform_indices = @transform_8, window_bounds = array<i64: 512, 512>}, {pipeline_mode = #tpu.pipeline_mode<synchronous>, transform_indices = @transform_9, window_bounds = array<i64: 1, 512>}, {transform_indices = @transform_10, window_bounds = array<i64: 512, 768>}, {transform_indices = @transform_11, window_bounds = array<i64: 1, 768>}, {transform_indices = @transform_12, window_bounds = array<i64: 4>}, {transform_indices = @transform_13, window_bounds = array<i64: 1>}, {pipeline_mode = #tpu.pipeline_mode<synchronous>, transform_indices = @transform_14, window_bounds = array<i64: 16, 2049>}]} {
    %c0_i32 = arith.constant 0 : i32
    %0 = arith.cmpi eq, %arg0, %c0_i32 : i32
    %1 = arith.extui %0 : i1 to i32
    %c0_i32_0 = arith.constant 0 : i32
    %2 = arith.cmpi ne, %1, %c0_i32_0 : i32
    scf.if %2 {
      %c0_24 = arith.constant 0 : index
      %c0_25 = arith.constant 0 : index
      %75 = vector.load %arg1[%c0_24, %c0_25] : memref<16x1280xbf16, #tpu.memory_space<vmem>>, vector<16x1280xbf16>
      %c0_26 = arith.constant 0 : index
      %c0_27 = arith.constant 0 : index
      %76 = vector.load %arg3[%c0_26, %c0_27] : memref<1280x512xbf16, #tpu.memory_space<vmem>>, vector<1280x512xbf16>
      %cst_28 = arith.constant dense<0.000000e+00> : vector<16x512xf32>
      %77 = tpu.matmul %75, %76, %cst_28 {dimension_numbers = #tpu.dot_dimension_numbers<[1], [0], [0], [1], [0, 0, 1, 1], [], []>} : vector<16x1280xbf16>, vector<1280x512xbf16>, vector<16x512xf32> -> vector<16x512xf32>
      %c0_29 = arith.constant 0 : index
      %c0_30 = arith.constant 0 : index
      %78 = vector.load %arg4[%c0_29, %c0_30] : memref<1x512xf32, #tpu.memory_space<vmem>>, vector<1x512xf32>
      %79 = vector.broadcast %78 : vector<1x512xf32> to vector<16x512xf32>
      %80 = arith.addf %77, %79 : vector<16x512xf32>
      %cst_31 = arith.constant 0.000000e+00 : f32
      %81 = vector.broadcast %cst_31 : f32 to vector<16x512xf32>
      %82 = arith.maximumf %80, %81 : vector<16x512xf32>
      %83 = arith.truncf %82 : vector<16x512xf32> to vector<16x512xbf16>
      %c0_32 = arith.constant 0 : index
      %c0_33 = arith.constant 0 : index
      %84 = vector.load %arg5[%c0_32, %c0_33] : memref<512x512xbf16, #tpu.memory_space<vmem>>, vector<512x512xbf16>
      %cst_34 = arith.constant dense<0.000000e+00> : vector<16x512xf32>
      %85 = tpu.matmul %83, %84, %cst_34 {dimension_numbers = #tpu.dot_dimension_numbers<[1], [0], [0], [1], [0, 0, 1, 1], [], []>} : vector<16x512xbf16>, vector<512x512xbf16>, vector<16x512xf32> -> vector<16x512xf32>
      %c0_35 = arith.constant 0 : index
      %c0_36 = arith.constant 0 : index
      %86 = vector.load %arg6[%c0_35, %c0_36] : memref<1x512xf32, #tpu.memory_space<vmem>>, vector<1x512xf32>
      %87 = vector.broadcast %86 : vector<1x512xf32> to vector<16x512xf32>
      %88 = arith.addf %85, %87 : vector<16x512xf32>
      %cst_37 = arith.constant 0.000000e+00 : f32
      %89 = vector.broadcast %cst_37 : f32 to vector<16x512xf32>
      %90 = arith.maximumf %88, %89 : vector<16x512xf32>
      %91 = arith.truncf %90 : vector<16x512xf32> to vector<16x512xbf16>
      %c0_38 = arith.constant 0 : index
      %c0_39 = arith.constant 0 : index
      %92 = vector.load %arg16[%c0_38, %c0_39] : memref<64x512xbf16, #tpu.memory_space<vmem>>, vector<16x512xbf16>
      tpu.vector_store %arg16[%c0_38, %c0_39], %91 {strides = array<i32>} : memref<64x512xbf16, #tpu.memory_space<vmem>>, vector<16x512xbf16>,
      %c0_40 = arith.constant 0 : index
      %c0_41 = arith.constant 0 : index
      %93 = vector.load %arg2[%c0_40, %c0_41] : memref<48x1280xbf16, #tpu.memory_space<vmem>>, vector<48x1280xbf16>
      %c0_42 = arith.constant 0 : index
      %c0_43 = arith.constant 0 : index
      %94 = vector.load %arg7[%c0_42, %c0_43] : memref<1280x512xbf16, #tpu.memory_space<vmem>>, vector<1280x512xbf16>
      %cst_44 = arith.constant dense<0.000000e+00> : vector<48x512xf32>
      %95 = tpu.matmul %93, %94, %cst_44 {dimension_numbers = #tpu.dot_dimension_numbers<[1], [0], [0], [1], [0, 0, 1, 1], [], []>} : vector<48x1280xbf16>, vector<1280x512xbf16>, vector<48x512xf32> -> vector<48x512xf32>
      %c0_45 = arith.constant 0 : index
      %c0_46 = arith.constant 0 : index
      %96 = vector.load %arg8[%c0_45, %c0_46] : memref<1x512xf32, #tpu.memory_space<vmem>>, vector<1x512xf32>
      %97 = vector.broadcast %96 : vector<1x512xf32> to vector<48x512xf32>
      %98 = arith.addf %95, %97 : vector<48x512xf32>
      %cst_47 = arith.constant 0.000000e+00 : f32
      %99 = vector.broadcast %cst_47 : f32 to vector<48x512xf32>
      %100 = arith.maximumf %98, %99 : vector<48x512xf32>
      %101 = arith.truncf %100 : vector<48x512xf32> to vector<48x512xbf16>
      %c0_48 = arith.constant 0 : index
      %c0_49 = arith.constant 0 : index
      %102 = vector.load %arg9[%c0_48, %c0_49] : memref<512x512xbf16, #tpu.memory_space<vmem>>, vector<512x512xbf16>
      %cst_50 = arith.constant dense<0.000000e+00> : vector<48x512xf32>
      %103 = tpu.matmul %101, %102, %cst_50 {dimension_numbers = #tpu.dot_dimension_numbers<[1], [0], [0], [1], [0, 0, 1, 1], [], []>} : vector<48x512xbf16>, vector<512x512xbf16>, vector<48x512xf32> -> vector<48x512xf32>
      %c0_51 = arith.constant 0 : index
      %c0_52 = arith.constant 0 : index
      %104 = vector.load %arg10[%c0_51, %c0_52] : memref<1x512xf32, #tpu.memory_space<vmem>>, vector<1x512xf32>
      %105 = vector.broadcast %104 : vector<1x512xf32> to vector<48x512xf32>
      %106 = arith.addf %103, %105 : vector<48x512xf32>
      %cst_53 = arith.constant 0.000000e+00 : f32
      %107 = vector.broadcast %cst_53 : f32 to vector<48x512xf32>
      %108 = arith.maximumf %106, %107 : vector<48x512xf32>
      %109 = arith.truncf %108 : vector<48x512xf32> to vector<48x512xbf16>
      %c16 = arith.constant 16 : index
      %c0_54 = arith.constant 0 : index
      %110 = vector.load %arg16[%c16, %c0_54] : memref<64x512xbf16, #tpu.memory_space<vmem>>, vector<48x512xbf16>
      tpu.vector_store %arg16[%c16, %c0_54], %109 {strides = array<i32>} : memref<64x512xbf16, #tpu.memory_space<vmem>>, vector<48x512xbf16>,
    } else {
    }
    %c0 = arith.constant 0 : index
    %c0_1 = arith.constant 0 : index
    %3 = vector.load %arg16[%c0, %c0_1] : memref<64x512xbf16, #tpu.memory_space<vmem>>, vector<64x512xbf16>
    %c0_2 = arith.constant 0 : index
    %4 = memref.load %arg14[%c0_2] : memref<1xf32, #tpu.memory_space<smem>>
    %c0_3 = arith.constant 0 : index
    %c0_4 = arith.constant 0 : index
    %5 = vector.load %arg11[%c0_3, %c0_4] : memref<512x768xbf16, #tpu.memory_space<vmem>>, vector<512x384xbf16>
    %c0_5 = arith.constant 0 : index
    %c0_6 = arith.constant 0 : index
    %6 = vector.load %arg12[%c0_5, %c0_6] : memref<1x768xf32, #tpu.memory_space<vmem>>, vector<1x384xf32>
    %cst = arith.constant dense<0.000000e+00> : vector<64x384xf32>
    %7 = tpu.matmul %3, %5, %cst {dimension_numbers = #tpu.dot_dimension_numbers<[1], [0], [0], [1], [0, 0, 1, 1], [], []>} : vector<64x512xbf16>, vector<512x384xbf16>, vector<64x384xf32> -> vector<64x384xf32>
    %8 = vector.broadcast %6 : vector<1x384xf32> to vector<64x384xf32>
    %9 = arith.addf %7, %8 : vector<64x384xf32>
    %cst_7 = arith.constant 0.000000e+00 : f32
    %10 = vector.broadcast %cst_7 : f32 to vector<64x384xf32>
    %11 = arith.maximumf %9, %10 : vector<64x384xf32>
    %c0_8 = arith.constant 0 : index
    %12 = memref.load %arg13[%c0_8] : memref<4xf32, #tpu.memory_space<smem>>
    %13 = vector.extract_strided_slice %11 {offsets = [0, 0], sizes = [16, 384], strides = [1, 1]} : vector<64x384xf32> to vector<16x384xf32>
    %14 = vector.broadcast %12 : f32 to vector<16x384xf32>
    %15 = arith.mulf %14, %13 : vector<16x384xf32>
    %c1 = arith.constant 1 : index
    %16 = memref.load %arg13[%c1] : memref<4xf32, #tpu.memory_space<smem>>
    %17 = vector.extract_strided_slice %11 {offsets = [16, 0], sizes = [16, 384], strides = [1, 1]} : vector<64x384xf32> to vector<16x384xf32>
    %18 = vector.broadcast %16 : f32 to vector<16x384xf32>
    %19 = arith.mulf %18, %17 : vector<16x384xf32>
    %20 = arith.addf %15, %19 : vector<16x384xf32>
    %c2 = arith.constant 2 : index
    %21 = memref.load %arg13[%c2] : memref<4xf32, #tpu.memory_space<smem>>
    %22 = vector.extract_strided_slice %11 {offsets = [32, 0], sizes = [16, 384], strides = [1, 1]} : vector<64x384xf32> to vector<16x384xf32>
    %23 = vector.broadcast %21 : f32 to vector<16x384xf32>
    %24 = arith.mulf %23, %22 : vector<16x384xf32>
    %25 = arith.addf %20, %24 : vector<16x384xf32>
    %c3 = arith.constant 3 : index
    %26 = memref.load %arg13[%c3] : memref<4xf32, #tpu.memory_space<smem>>
    %27 = vector.extract_strided_slice %11 {offsets = [48, 0], sizes = [16, 384], strides = [1, 1]} : vector<64x384xf32> to vector<16x384xf32>
    %28 = vector.broadcast %26 : f32 to vector<16x384xf32>
    %29 = arith.mulf %28, %27 : vector<16x384xf32>
    %30 = arith.addf %25, %29 : vector<16x384xf32>
    %31 = vector.broadcast %4 : f32 to vector<16x384xf32>
    %32 = arith.addf %30, %31 : vector<16x384xf32>
    %c768_i32 = arith.constant 768 : i32
    %33 = arith.muli %arg0, %c768_i32 : i32
    %c0_i32_9 = arith.constant 0 : i32
    %34 = arith.addi %33, %c0_i32_9 : i32
    %35 = tpu.assume_multiple %34, 128 : i32
    %c0_10 = arith.constant 0 : index
    %36 = arith.index_cast %35 : i32 to index
    %37 = vector.load %arg15[%c0_10, %36] : memref<16x2049xf32, #tpu.memory_space<vmem>>, vector<16x384xf32>
    tpu.vector_store %arg15[%c0_10, %36], %32 {strides = array<i32>} : memref<16x2049xf32, #tpu.memory_space<vmem>>, vector<16x384xf32>,
    %c0_11 = arith.constant 0 : index
    %c384 = arith.constant 384 : index
    %38 = vector.load %arg11[%c0_11, %c384] : memref<512x768xbf16, #tpu.memory_space<vmem>>, vector<512x384xbf16>
    %c0_12 = arith.constant 0 : index
    %c384_13 = arith.constant 384 : index
    %39 = vector.load %arg12[%c0_12, %c384_13] : memref<1x768xf32, #tpu.memory_space<vmem>>, vector<1x384xf32>
    %cst_14 = arith.constant dense<0.000000e+00> : vector<64x384xf32>
    %40 = tpu.matmul %3, %38, %cst_14 {dimension_numbers = #tpu.dot_dimension_numbers<[1], [0], [0], [1], [0, 0, 1, 1], [], []>} : vector<64x512xbf16>, vector<512x384xbf16>, vector<64x384xf32> -> vector<64x384xf32>
    %41 = vector.broadcast %39 : vector<1x384xf32> to vector<64x384xf32>
    %42 = arith.addf %40, %41 : vector<64x384xf32>
    %cst_15 = arith.constant 0.000000e+00 : f32
    %43 = vector.broadcast %cst_15 : f32 to vector<64x384xf32>
    %44 = arith.maximumf %42, %43 : vector<64x384xf32>
    %c0_16 = arith.constant 0 : index
    %45 = memref.load %arg13[%c0_16] : memref<4xf32, #tpu.memory_space<smem>>
    %46 = vector.extract_strided_slice %44 {offsets = [0, 0], sizes = [16, 384], strides = [1, 1]} : vector<64x384xf32> to vector<16x384xf32>
    %47 = vector.broadcast %45 : f32 to vector<16x384xf32>
    %48 = arith.mulf %47, %46 : vector<16x384xf32>
    %c1_17 = arith.constant 1 : index
    %49 = memref.load %arg13[%c1_17] : memref<4xf32, #tpu.memory_space<smem>>
    %50 = vector.extract_strided_slice %44 {offsets = [16, 0], sizes = [16, 384], strides = [1, 1]} : vector<64x384xf32> to vector<16x384xf32>
    %51 = vector.broadcast %49 : f32 to vector<16x384xf32>
    %52 = arith.mulf %51, %50 : vector<16x384xf32>
    %53 = arith.addf %48, %52 : vector<16x384xf32>
    %c2_18 = arith.constant 2 : index
    %54 = memref.load %arg13[%c2_18] : memref<4xf32, #tpu.memory_space<smem>>
    %55 = vector.extract_strided_slice %44 {offsets = [32, 0], sizes = [16, 384], strides = [1, 1]} : vector<64x384xf32> to vector<16x384xf32>
    %56 = vector.broadcast %54 : f32 to vector<16x384xf32>
    %57 = arith.mulf %56, %55 : vector<16x384xf32>
    %58 = arith.addf %53, %57 : vector<16x384xf32>
    %c3_19 = arith.constant 3 : index
    %59 = memref.load %arg13[%c3_19] : memref<4xf32, #tpu.memory_space<smem>>
    %60 = vector.extract_strided_slice %44 {offsets = [48, 0], sizes = [16, 384], strides = [1, 1]} : vector<64x384xf32> to vector<16x384xf32>
    %61 = vector.broadcast %59 : f32 to vector<16x384xf32>
    %62 = arith.mulf %61, %60 : vector<16x384xf32>
    %63 = arith.addf %58, %62 : vector<16x384xf32>
    %64 = vector.broadcast %4 : f32 to vector<16x384xf32>
    %65 = arith.addf %63, %64 : vector<16x384xf32>
    %c768_i32_20 = arith.constant 768 : i32
    %66 = arith.muli %arg0, %c768_i32_20 : i32
    %c384_i32 = arith.constant 384 : i32
    %67 = arith.addi %66, %c384_i32 : i32
    %68 = tpu.assume_multiple %67, 128 : i32
    %c2_i32 = arith.constant 2 : i32
    %69 = arith.cmpi slt, %arg0, %c2_i32 : i32
    %70 = arith.extui %69 : i1 to i32
    %c0_i32_21 = arith.constant 0 : i32
    %71 = arith.cmpi ne, %70, %c0_i32_21 : i32
    scf.if %71 {
      %c0_24 = arith.constant 0 : index
      %75 = arith.index_cast %68 : i32 to index
      %76 = vector.load %arg15[%c0_24, %75] : memref<16x2049xf32, #tpu.memory_space<vmem>>, vector<16x384xf32>
      tpu.vector_store %arg15[%c0_24, %75], %65 {strides = array<i32>} : memref<16x2049xf32, #tpu.memory_space<vmem>>, vector<16x384xf32>,
    } else {
    }
    %c2_i32_22 = arith.constant 2 : i32
    %72 = arith.cmpi eq, %arg0, %c2_i32_22 : i32
    %73 = arith.extui %72 : i1 to i32
    %c0_i32_23 = arith.constant 0 : i32
    %74 = arith.cmpi ne, %73, %c0_i32_23 : i32
    scf.if %74 {
      %75 = vector.extract_strided_slice %65 {offsets = [0, 0], sizes = [16, 129], strides = [1, 1]} : vector<16x384xf32> to vector<16x129xf32>
      %c0_24 = arith.constant 0 : index
      %76 = arith.index_cast %68 : i32 to index
      %77 = vector.load %arg15[%c0_24, %76] : memref<16x2049xf32, #tpu.memory_space<vmem>>, vector<16x129xf32>
      tpu.vector_store %arg15[%c0_24, %76], %75 {strides = array<i32>} : memref<16x2049xf32, #tpu.memory_space<vmem>>, vector<16x129xf32>,
    } else {
    }
    return
  }
  func.func @transform_0(%arg0: i32) -> (i32, i32) {
    %c0_i32 = arith.constant 0 : i32
    %c0_i32_0 = arith.constant 0 : i32
    %c0_i32_1 = arith.constant 0 : i32
    return %c0_i32, %c0_i32_0 : i32, i32
  }
  func.func @transform_1(%arg0: i32) -> (i32, i32) {
    %c0_i32 = arith.constant 0 : i32
    %c0_i32_0 = arith.constant 0 : i32
    %c0_i32_1 = arith.constant 0 : i32
    return %c0_i32, %c0_i32_0 : i32, i32
  }
  func.func @transform_2(%arg0: i32) -> (i32, i32) {
    %c0_i32 = arith.constant 0 : i32
    %c0_i32_0 = arith.constant 0 : i32
    %c0_i32_1 = arith.constant 0 : i32
    return %c0_i32, %c0_i32_0 : i32, i32
  }
  func.func @transform_3(%arg0: i32) -> (i32, i32) {
    %c0_i32 = arith.constant 0 : i32
    %c0_i32_0 = arith.constant 0 : i32
    %c0_i32_1 = arith.constant 0 : i32
    return %c0_i32, %c0_i32_0 : i32, i32
  }
  func.func @transform_4(%arg0: i32) -> (i32, i32) {
    %c0_i32 = arith.constant 0 : i32
    %c0_i32_0 = arith.constant 0 : i32
    %c0_i32_1 = arith.constant 0 : i32
    return %c0_i32, %c0_i32_0 : i32, i32
  }
  func.func @transform_5(%arg0: i32) -> (i32, i32) {
    %c0_i32 = arith.constant 0 : i32
    %c0_i32_0 = arith.constant 0 : i32
    %c0_i32_1 = arith.constant 0 : i32
    return %c0_i32, %c0_i32_0 : i32, i32
  }
  func.func @transform_6(%arg0: i32) -> (i32, i32) {
    %c0_i32 = arith.constant 0 : i32
    %c0_i32_0 = arith.constant 0 : i32
    %c0_i32_1 = arith.constant 0 : i32
    return %c0_i32, %c0_i32_0 : i32, i32
  }
  func.func @transform_7(%arg0: i32) -> (i32, i32) {
    %c0_i32 = arith.constant 0 : i32
    %c0_i32_0 = arith.constant 0 : i32
    %c0_i32_1 = arith.constant 0 : i32
    return %c0_i32, %c0_i32_0 : i32, i32
  }
  func.func @transform_8(%arg0: i32) -> (i32, i32) {
    %c0_i32 = arith.constant 0 : i32
    %c0_i32_0 = arith.constant 0 : i32
    %c0_i32_1 = arith.constant 0 : i32
    return %c0_i32, %c0_i32_0 : i32, i32
  }
  func.func @transform_9(%arg0: i32) -> (i32, i32) {
    %c0_i32 = arith.constant 0 : i32
    %c0_i32_0 = arith.constant 0 : i32
    %c0_i32_1 = arith.constant 0 : i32
    return %c0_i32, %c0_i32_0 : i32, i32
  }
  func.func @transform_10(%arg0: i32) -> (i32, i32) {
    %c0_i32 = arith.constant 0 : i32
    %c0_i32_0 = arith.constant 0 : i32
    return %c0_i32, %arg0 : i32, i32
  }
  func.func @transform_11(%arg0: i32) -> (i32, i32) {
    %c0_i32 = arith.constant 0 : i32
    %c0_i32_0 = arith.constant 0 : i32
    return %c0_i32, %arg0 : i32, i32
  }
  func.func @transform_12(%arg0: i32) -> i32 {
    %c0_i32 = arith.constant 0 : i32
    %c0_i32_0 = arith.constant 0 : i32
    return %c0_i32 : i32
  }
  func.func @transform_13(%arg0: i32) -> i32 {
    %c0_i32 = arith.constant 0 : i32
    %c0_i32_0 = arith.constant 0 : i32
    return %c0_i32 : i32
  }
  func.func @transform_14(%arg0: i32) -> (i32, i32) {
    %c0_i32 = arith.constant 0 : i32
    %c0_i32_0 = arith.constant 0 : i32
    %c0_i32_1 = arith.constant 0 : i32
    return %c0_i32, %c0_i32_0 : i32, i32
  }
}

</mosaic_0001>

<bundles_post_ra>
// kernel: amplitude_estimator2_forward.1
= control target key start
LH: loop header
LB: loop body
LE: loop exit
PB: predicated region body
PF: predicated region fallthrough
CT: control target
= control target key end

     0   :  { %s17961_s0 = inlined_call_operand.vmem [shape: bf16[16,1280], index: 0, kind: input, shape index: {}]   ;;  %s17962_s1 = inlined_call_operand.vmem [shape: bf16[48,1280], index: 1, kind: input, shape index: {}]   ;;  %s17963_s2 = inlined_call_operand.vmem [shape: bf16[1280,512], index: 2, kind: input, shape index: {}]   ;;  %s17964_s3 = inlined_call_operand.vmem [shape: f32[1,512], index: 3, kind: input, shape index: {}]   ;;  %s17965_s4 = inlined_call_operand.vmem [shape: bf16[512,512], index: 4, kind: input, shape index: {}]   ;;  %s17966_s5 = inlined_call_operand.vmem [shape: f32[1,512], index: 5, kind: input, shape index: {}]   ;;  %s17967_s6 = inlined_call_operand.vmem [shape: bf16[1280,512], index: 6, kind: input, shape index: {}]   ;;  %s17968_s7 = inlined_call_operand.vmem [shape: f32[1,512], index: 7, kind: input, shape index: {}]   ;;  %s17969_s8 = inlined_call_operand.vmem [shape: bf16[512,512], index: 8, kind: input, shape index: {}]   ;;  %s17970_s9 = inlined_call_operand.vmem [shape: f32[1,512], index: 9, kind: input, shape index: {}]   ;;  %s17971_s10 = inlined_call_operand.vmem [shape: bf16[512,2304], index: 10, kind: input, shape index: {}]   ;;  %s17972_s11 = inlined_call_operand.vmem [shape: f32[1,2304], index: 11, kind: input, shape index: {}]   ;;  %s17973_s12 = inlined_call_operand.vmem [shape: f32[4], index: 12, kind: input, shape index: {}]   ;;  %s17974_s13 = inlined_call_operand.<no memory space> [shape: f32[1], index: 13, kind: input, shape index: {}]   ;;  %s17975_s14 = inlined_call_operand.hbm [shape: f32[16,2049], index: 14, kind: output, shape index: {}]  }
   0x1   :  { %19 = sst [smem:[#allocation3]] %s17974_s13 }
   0x2   :  { %20 = vsyncpa [#allocation7], 0 }
   0x3   :  { %21 = vsyncpa [#allocation6], 0  ;;  %s13785_s15 = smov 0   ;;  %s13787_s16 = smov 0  }
   0x4   :  { %s13789_s17 = smov 0  }
   0x5 LB: > { %s13801_s13 = sadd.s32 4294967295, %s13701_s17   ;;  %s13804_s18 = sadd.s32 1, %s13701_s17   ;;  %s13701_s17 = sphi %s13789_s17, %s17987_s17   ;;  %s13697_s16 = sphi %s13787_s16, %s17986_s16   ;;  %s13693_s15 = sphi %s13785_s15, %s17985_s15  }
   0x6   : > { %s241_s19 = ssub.s32 %s13701_s17, %s13804_s18  ;;  %s244_s20 = sadd.s32 1, %s13697_s16 }
   0x7   : > { %p242_p0 = scmp.eq.s32.totalorder %s241_s19, 0  ;;  %p251_p1 = scmp.ne.s32.totalorder %s13697_s16, %s13693_s15 }
   0x8   : > { %p252_p2 = scmp.eq.s32.totalorder %s13701_s17, 0  ;;  %p10521_p3 = scmp.ge.s32.totalorder %s13701_s17, 1 }
   0x9   : > { %s13814_s21 = scalar_select %p242_p0, %s13697_s16, %s244_s20  }
   0xa   : > { %p13816_p4 = por %p252_p2, %p251_p1  ;;  %p357_p5 = scmp.lt.s32.totalorder %s13701_s17, 4 }
   0xb   : > { %p11894_p7 = scmp.eq.s32.totalorder %s13801_s13, 0  ;;  %s400_s26 = sshll.u32 %s17973_s12, 4  ;;  %s401_s26 = int_to_ptr.vmem [resolvable:$true] %s400_s26 }
   0xc   : > { %p13823_p8 = pnand %p10521_p3, %p357_p5  ;;  %s13632_s27 = scalar_lea.vmem %s401_s26, 16 }
   0xd   : > { %p13633_p11 = scmp.ne.s32.totalorder %s401_s26, %s13632_s27  ;;  %p13640_p1 = scmp.lt.s32.totalorder %s401_s26, %s401_s26 }
   0xe   : > { %p11890_p9 = pneg %p13823_p8  ;;  %p13641_p2 = scmp.lt.s32.totalorder %s13632_s27, %s13632_s27 }
  0x10   : > { %p11891_p10 = pnand %p11894_p7, %p11890_p9  ;;  %p13642_p3 = por %p13641_p2, %p13640_p1 }
  0x12   : > { %p13634_p12 = pneg %p11891_p10 }
  0x14   : > { %p13635_p13 = pnand %p13634_p12, %p13633_p11 }
  0x16   : > { %p13636_p0 = pneg %p13635_p13 }
  0x18   : > { %p13643_p5 = pnand %p13642_p3, %p13636_p0 }
  0x1a   : > { %13646 = shalt.err (!%p13643_p5)
}
  0x1b   : > { %s13703_s28 = smov [#allocation5]   ;;  %p10523_p6 = scmp.ge.s32.totalorder %s13701_s17, 3 }
  0x1c   : > { %11893 = dma.vmem_to_smem (!%p11891_p10), %s401_s26, 16, %s13703_s28, [#allocation7]  }
  0x1d   : > { %410 = sbr.rel (%p10523_p6) target bundleno = 135 (0x87), region = 64 }
  0x22   : > { %413 = sbr.rel (!%p13816_p4) target bundleno = 135 (0x87), region = 68  ;;  %s415_s29 = sand.u32 (%p13816_p4), 1, %s13697_s16  }
  0x23   : > { %s11703_s30 = smul.u32 (%p13816_p4), 24, %s13701_s17 }
  0x24   : > { %s11880_s19 = smul.u32 (%p13816_p4), 1536, %s415_s29 }
  0x25   : > { %s13842_s25 = scalar_lea.vmem (%p13816_p4), %s17971_s10, %s11703_s30 }
  0x26   : > { %v433_v0 = vld [vmem:[%s13842_s25] sm:$0xff] (%p13816_p4)  ;;  %v435_v1 = vld [vmem:[%s13842_s25 + $0x8] sm:$0xff] (%p13816_p4)  ;;  %v437_v2 = vld [vmem:[%s13842_s25 + $0x10] sm:$0xff] (%p13816_p4)  ;;  %s13847_s22 = scalar_lea.vmem (%p13816_p4), [#allocation4], %s11880_s19 }
  0x27   : > { %434 = vst [vmem:[%s13847_s22] sm:$0xff] %v433_v0  ;;  %436 = vst [vmem:[%s13847_s22 + $0x8] sm:$0xff] %v435_v1  ;;  %v439_v3 = vld [vmem:[%s13842_s25 + $0x48] sm:$0xff]  ;;  %v441_v4 = vld [vmem:[%s13842_s25 + $0x50] sm:$0xff] }
  0x28   : > { %438 = vst [vmem:[%s13847_s22 + $0x10] sm:$0xff] %v437_v2  ;;  %v443_v5 = vld [vmem:[%s13842_s25 + $0x58] sm:$0xff]  ;;  %440 = vst [vmem:[%s13847_s22 + $0x18] sm:$0xff] %v439_v3  ;;  %v445_v6 = vld [vmem:[%s13842_s25 + $0x90] sm:$0xff] }
  0x29   : > { %442 = vst [vmem:[%s13847_s22 + $0x20] sm:$0xff] %v441_v4  ;;  %444 = vst [vmem:[%s13847_s22 + $0x28] sm:$0xff] %v443_v5  ;;  %v447_v7 = vld [vmem:[%s13842_s25 + $0x98] sm:$0xff]  ;;  %v449_v8 = vld [vmem:[%s13842_s25 + $0xa0] sm:$0xff] }
  0x2a   : > { %446 = vst [vmem:[%s13847_s22 + $0x30] sm:$0xff] %v445_v6  ;;  %448 = vst [vmem:[%s13847_s22 + $0x38] sm:$0xff] %v447_v7  ;;  %v451_v9 = vld [vmem:[%s13842_s25 + $0xd8] sm:$0xff]  ;;  %v453_v10 = vld [vmem:[%s13842_s25 + $0xe0] sm:$0xff] }
  0x2b   : > { %450 = vst [vmem:[%s13847_s22 + $0x40] sm:$0xff] %v449_v8  ;;  %v455_v11 = vld [vmem:[%s13842_s25 + $0xe8] sm:$0xff]  ;;  %452 = vst [vmem:[%s13847_s22 + $0x48] sm:$0xff] %v451_v9  ;;  %v457_v12 = vld [vmem:[%s13842_s25 + $0x120] sm:$0xff] }
  0x2c   : > { %454 = vst [vmem:[%s13847_s22 + $0x50] sm:$0xff] %v453_v10  ;;  %456 = vst [vmem:[%s13847_s22 + $0x58] sm:$0xff] %v455_v11  ;;  %v459_v13 = vld [vmem:[%s13842_s25 + $0x128] sm:$0xff]  ;;  %v461_v14 = vld [vmem:[%s13842_s25 + $0x130] sm:$0xff] }
  0x2d   : > { %458 = vst [vmem:[%s13847_s22 + $0x60] sm:$0xff] %v457_v12  ;;  %460 = vst [vmem:[%s13847_s22 + $0x68] sm:$0xff] %v459_v13  ;;  %v463_v15 = vld [vmem:[%s13842_s25 + $0x168] sm:$0xff]  ;;  %v465_v16 = vld [vmem:[%s13842_s25 + $0x170] sm:$0xff] }
  0x2e   : > { %462 = vst [vmem:[%s13847_s22 + $0x70] sm:$0xff] %v461_v14  ;;  %v467_v17 = vld [vmem:[%s13842_s25 + $0x178] sm:$0xff]  ;;  %464 = vst [vmem:[%s13847_s22 + $0x78] sm:$0xff] %v463_v15  ;;  %v469_v18 = vld [vmem:[%s13842_s25 + $0x1b0] sm:$0xff] }
  0x2f   : > { %466 = vst [vmem:[%s13847_s22 + $0x80] sm:$0xff] %v465_v16  ;;  %468 = vst [vmem:[%s13847_s22 + $0x88] sm:$0xff] %v467_v17  ;;  %v471_v19 = vld [vmem:[%s13842_s25 + $0x1b8] sm:$0xff]  ;;  %v473_v20 = vld [vmem:[%s13842_s25 + $0x1c0] sm:$0xff] }
  0x30   : > { %470 = vst [vmem:[%s13847_s22 + $0x90] sm:$0xff] %v469_v18  ;;  %472 = vst [vmem:[%s13847_s22 + $0x98] sm:$0xff] %v471_v19  ;;  %v475_v21 = vld [vmem:[%s13842_s25 + $0x1f8] sm:$0xff]  ;;  %v477_v22 = vld [vmem:[%s13842_s25 + $0x200] sm:$0xff] }
  0x31   : > { %474 = vst [vmem:[%s13847_s22 + $0xa0] sm:$0xff] %v473_v20  ;;  %v479_v23 = vld [vmem:[%s13842_s25 + $0x208] sm:$0xff]  ;;  %476 = vst [vmem:[%s13847_s22 + $0xa8] sm:$0xff] %v475_v21  ;;  %v481_v24 = vld [vmem:[%s13842_s25 + $0x240] sm:$0xff] }
  0x32   : > { %478 = vst [vmem:[%s13847_s22 + $0xb0] sm:$0xff] %v477_v22  ;;  %480 = vst [vmem:[%s13847_s22 + $0xb8] sm:$0xff] %v479_v23  ;;  %v483_v25 = vld [vmem:[%s13842_s25 + $0x248] sm:$0xff]  ;;  %v485_v26 = vld [vmem:[%s13842_s25 + $0x250] sm:$0xff] }
  0x33   : > { %482 = vst [vmem:[%s13847_s22 + $0xc0] sm:$0xff] %v481_v24  ;;  %484 = vst [vmem:[%s13847_s22 + $0xc8] sm:$0xff] %v483_v25  ;;  %v487_v27 = vld [vmem:[%s13842_s25 + $0x288] sm:$0xff]  ;;  %v489_v28 = vld [vmem:[%s13842_s25 + $0x290] sm:$0xff] }
  0x34   : > { %486 = vst [vmem:[%s13847_s22 + $0xd0] sm:$0xff] %v485_v26  ;;  %v491_v29 = vld [vmem:[%s13842_s25 + $0x298] sm:$0xff]  ;;  %488 = vst [vmem:[%s13847_s22 + $0xd8] sm:$0xff] %v487_v27  ;;  %v493_v30 = vld [vmem:[%s13842_s25 + $0x2d0] sm:$0xff] }
  0x35   : > { %490 = vst [vmem:[%s13847_s22 + $0xe0] sm:$0xff] %v489_v28  ;;  %492 = vst [vmem:[%s13847_s22 + $0xe8] sm:$0xff] %v491_v29  ;;  %v495_v31 = vld [vmem:[%s13842_s25 + $0x2d8] sm:$0xff]  ;;  %v497_v32 = vld [vmem:[%s13842_s25 + $0x2e0] sm:$0xff] }
  0x36   : > { %494 = vst [vmem:[%s13847_s22 + $0xf0] sm:$0xff] %v493_v30  ;;  %496 = vst [vmem:[%s13847_s22 + $0xf8] sm:$0xff] %v495_v31  ;;  %v499_v33 = vld [vmem:[%s13842_s25 + $0x318] sm:$0xff]  ;;  %v501_v34 = vld [vmem:[%s13842_s25 + $0x320] sm:$0xff] }
  0x37   : > { %498 = vst [vmem:[%s13847_s22 + $0x100] sm:$0xff] %v497_v32  ;;  %v503_v35 = vld [vmem:[%s13842_s25 + $0x328] sm:$0xff]  ;;  %500 = vst [vmem:[%s13847_s22 + $0x108] sm:$0xff] %v499_v33  ;;  %v505_v36 = vld [vmem:[%s13842_s25 + $0x360] sm:$0xff] }
  0x38   : > { %502 = vst [vmem:[%s13847_s22 + $0x110] sm:$0xff] %v501_v34  ;;  %504 = vst [vmem:[%s13847_s22 + $0x118] sm:$0xff] %v503_v35  ;;  %v507_v37 = vld [vmem:[%s13842_s25 + $0x368] sm:$0xff]  ;;  %v509_v38 = vld [vmem:[%s13842_s25 + $0x370] sm:$0xff] }
  0x39   : > { %506 = vst [vmem:[%s13847_s22 + $0x120] sm:$0xff] %v505_v36  ;;  %508 = vst [vmem:[%s13847_s22 + $0x128] sm:$0xff] %v507_v37  ;;  %v511_v39 = vld [vmem:[%s13842_s25 + $0x3a8] sm:$0xff]  ;;  %v513_v40 = vld [vmem:[%s13842_s25 + $0x3b0] sm:$0xff] }
  0x3a   : > { %510 = vst [vmem:[%s13847_s22 + $0x130] sm:$0xff] %v509_v38  ;;  %v515_v41 = vld [vmem:[%s13842_s25 + $0x3b8] sm:$0xff]  ;;  %512 = vst [vmem:[%s13847_s22 + $0x138] sm:$0xff] %v511_v39  ;;  %v517_v42 = vld [vmem:[%s13842_s25 + $0x3f0] sm:$0xff] }
  0x3b   : > { %514 = vst [vmem:[%s13847_s22 + $0x140] sm:$0xff] %v513_v40  ;;  %516 = vst [vmem:[%s13847_s22 + $0x148] sm:$0xff] %v515_v41  ;;  %v519_v43 = vld [vmem:[%s13842_s25 + $0x3f8] sm:$0xff]  ;;  %v521_v44 = vld [vmem:[%s13842_s25 + $0x400] sm:$0xff] }
  0x3c   : > { %518 = vst [vmem:[%s13847_s22 + $0x150] sm:$0xff] %v517_v42  ;;  %520 = vst [vmem:[%s13847_s22 + $0x158] sm:$0xff] %v519_v43  ;;  %v523_v45 = vld [vmem:[%s13842_s25 + $0x438] sm:$0xff]  ;;  %v525_v46 = vld [vmem:[%s13842_s25 + $0x440] sm:$0xff] }
  0x3d   : > { %522 = vst [vmem:[%s13847_s22 + $0x160] sm:$0xff] %v521_v44  ;;  %v527_v47 = vld [vmem:[%s13842_s25 + $0x448] sm:$0xff]  ;;  %524 = vst [vmem:[%s13847_s22 + $0x168] sm:$0xff] %v523_v45  ;;  %v529_v48 = vld [vmem:[%s13842_s25 + $0x480] sm:$0xff] }
  0x3e   : > { %526 = vst [vmem:[%s13847_s22 + $0x170] sm:$0xff] %v525_v46  ;;  %528 = vst [vmem:[%s13847_s22 + $0x178] sm:$0xff] %v527_v47  ;;  %v531_v49 = vld [vmem:[%s13842_s25 + $0x488] sm:$0xff]  ;;  %v533_v50 = vld [vmem:[%s13842_s25 + $0x490] sm:$0xff] }
  0x3f   : > { %530 = vst [vmem:[%s13847_s22 + $0x180] sm:$0xff] %v529_v48  ;;  %532 = vst [vmem:[%s13847_s22 + $0x188] sm:$0xff] %v531_v49  ;;  %v535_v51 = vld [vmem:[%s13842_s25 + $0x4c8] sm:$0xff]  ;;  %v537_v52 = vld [vmem:[%s13842_s25 + $0x4d0] sm:$0xff] }
  0x40   : > { %534 = vst [vmem:[%s13847_s22 + $0x190] sm:$0xff] %v533_v50  ;;  %v539_v53 = vld [vmem:[%s13842_s25 + $0x4d8] sm:$0xff]  ;;  %536 = vst [vmem:[%s13847_s22 + $0x198] sm:$0xff] %v535_v51  ;;  %v541_v54 = vld [vmem:[%s13842_s25 + $0x510] sm:$0xff] }
  0x41   : > { %538 = vst [vmem:[%s13847_s22 + $0x1a0] sm:$0xff] %v537_v52  ;;  %540 = vst [vmem:[%s13847_s22 + $0x1a8] sm:$0xff] %v539_v53  ;;  %v543_v55 = vld [vmem:[%s13842_s25 + $0x518] sm:$0xff]  ;;  %v545_v56 = vld [vmem:[%s13842_s25 + $0x520] sm:$0xff] }
  0x42   : > { %542 = vst [vmem:[%s13847_s22 + $0x1b0] sm:$0xff] %v541_v54  ;;  %544 = vst [vmem:[%s13847_s22 + $0x1b8] sm:$0xff] %v543_v55  ;;  %v547_v57 = vld [vmem:[%s13842_s25 + $0x558] sm:$0xff]  ;;  %v549_v58 = vld [vmem:[%s13842_s25 + $0x560] sm:$0xff] }
  0x43   : > { %546 = vst [vmem:[%s13847_s22 + $0x1c0] sm:$0xff] %v545_v56  ;;  %v551_v59 = vld [vmem:[%s13842_s25 + $0x568] sm:$0xff]  ;;  %548 = vst [vmem:[%s13847_s22 + $0x1c8] sm:$0xff] %v547_v57  ;;  %v553_v60 = vld [vmem:[%s13842_s25 + $0x5a0] sm:$0xff] }
  0x44   : > { %550 = vst [vmem:[%s13847_s22 + $0x1d0] sm:$0xff] %v549_v58  ;;  %552 = vst [vmem:[%s13847_s22 + $0x1d8] sm:$0xff] %v551_v59  ;;  %v555_v61 = vld [vmem:[%s13842_s25 + $0x5a8] sm:$0xff]  ;;  %v557_v62 = vld [vmem:[%s13842_s25 + $0x5b0] sm:$0xff] }
  0x45   : > { %554 = vst [vmem:[%s13847_s22 + $0x1e0] sm:$0xff] %v553_v60  ;;  %556 = vst [vmem:[%s13847_s22 + $0x1e8] sm:$0xff] %v555_v61  ;;  %v559_v63 = vld [vmem:[%s13842_s25 + $0x5e8] sm:$0xff]  ;;  %v561_v0 = vld [vmem:[%s13842_s25 + $0x5f0] sm:$0xff] }
  0x46   : > { %558 = vst [vmem:[%s13847_s22 + $0x1f0] sm:$0xff] %v557_v62  ;;  %v563_v1 = vld [vmem:[%s13842_s25 + $0x5f8] sm:$0xff]  ;;  %560 = vst [vmem:[%s13847_s22 + $0x1f8] sm:$0xff] %v559_v63  ;;  %v565_v2 = vld [vmem:[%s13842_s25 + $0x630] sm:$0xff] }
  0x47   : > { %562 = vst [vmem:[%s13847_s22 + $0x200] sm:$0xff] %v561_v0  ;;  %564 = vst [vmem:[%s13847_s22 + $0x208] sm:$0xff] %v563_v1  ;;  %v567_v3 = vld [vmem:[%s13842_s25 + $0x638] sm:$0xff]  ;;  %v569_v4 = vld [vmem:[%s13842_s25 + $0x640] sm:$0xff] }
  0x48   : > { %566 = vst [vmem:[%s13847_s22 + $0x210] sm:$0xff] %v565_v2  ;;  %568 = vst [vmem:[%s13847_s22 + $0x218] sm:$0xff] %v567_v3  ;;  %v571_v5 = vld [vmem:[%s13842_s25 + $0x678] sm:$0xff]  ;;  %v573_v6 = vld [vmem:[%s13842_s25 + $0x680] sm:$0xff] }
  0x49   : > { %570 = vst [vmem:[%s13847_s22 + $0x220] sm:$0xff] %v569_v4  ;;  %v575_v7 = vld [vmem:[%s13842_s25 + $0x688] sm:$0xff]  ;;  %572 = vst [vmem:[%s13847_s22 + $0x228] sm:$0xff] %v571_v5  ;;  %v577_v8 = vld [vmem:[%s13842_s25 + $0x6c0] sm:$0xff] }
  0x4a   : > { %574 = vst [vmem:[%s13847_s22 + $0x230] sm:$0xff] %v573_v6  ;;  %576 = vst [vmem:[%s13847_s22 + $0x238] sm:$0xff] %v575_v7  ;;  %v579_v9 = vld [vmem:[%s13842_s25 + $0x6c8] sm:$0xff]  ;;  %v581_v10 = vld [vmem:[%s13842_s25 + $0x6d0] sm:$0xff] }
  0x4b   : > { %578 = vst [vmem:[%s13847_s22 + $0x240] sm:$0xff] %v577_v8  ;;  %580 = vst [vmem:[%s13847_s22 + $0x248] sm:$0xff] %v579_v9  ;;  %v583_v11 = vld [vmem:[%s13842_s25 + $0x708] sm:$0xff]  ;;  %v585_v12 = vld [vmem:[%s13842_s25 + $0x710] sm:$0xff] }
  0x4c   : > { %582 = vst [vmem:[%s13847_s22 + $0x250] sm:$0xff] %v581_v10  ;;  %v587_v13 = vld [vmem:[%s13842_s25 + $0x718] sm:$0xff]  ;;  %584 = vst [vmem:[%s13847_s22 + $0x258] sm:$0xff] %v583_v11  ;;  %v589_v14 = vld [vmem:[%s13842_s25 + $0x750] sm:$0xff] }
  0x4d   : > { %586 = vst [vmem:[%s13847_s22 + $0x260] sm:$0xff] %v585_v12  ;;  %588 = vst [vmem:[%s13847_s22 + $0x268] sm:$0xff] %v587_v13  ;;  %v591_v15 = vld [vmem:[%s13842_s25 + $0x758] sm:$0xff]  ;;  %v593_v16 = vld [vmem:[%s13842_s25 + $0x760] sm:$0xff] }
  0x4e   : > { %590 = vst [vmem:[%s13847_s22 + $0x270] sm:$0xff] %v589_v14  ;;  %592 = vst [vmem:[%s13847_s22 + $0x278] sm:$0xff] %v591_v15  ;;  %v595_v17 = vld [vmem:[%s13842_s25 + $0x798] sm:$0xff]  ;;  %v597_v18 = vld [vmem:[%s13842_s25 + $0x7a0] sm:$0xff] }
  0x4f   : > { %594 = vst [vmem:[%s13847_s22 + $0x280] sm:$0xff] %v593_v16  ;;  %v599_v19 = vld [vmem:[%s13842_s25 + $0x7a8] sm:$0xff]  ;;  %596 = vst [vmem:[%s13847_s22 + $0x288] sm:$0xff] %v595_v17  ;;  %v601_v20 = vld [vmem:[%s13842_s25 + $0x7e0] sm:$0xff] }
  0x50   : > { %598 = vst [vmem:[%s13847_s22 + $0x290] sm:$0xff] %v597_v18  ;;  %600 = vst [vmem:[%s13847_s22 + $0x298] sm:$0xff] %v599_v19  ;;  %v603_v21 = vld [vmem:[%s13842_s25 + $0x7e8] sm:$0xff]  ;;  %v605_v22 = vld [vmem:[%s13842_s25 + $0x7f0] sm:$0xff] }
  0x51   : > { %602 = vst [vmem:[%s13847_s22 + $0x2a0] sm:$0xff] %v601_v20  ;;  %604 = vst [vmem:[%s13847_s22 + $0x2a8] sm:$0xff] %v603_v21  ;;  %v607_v23 = vld [vmem:[%s13842_s25 + $0x828] sm:$0xff]  ;;  %v609_v24 = vld [vmem:[%s13842_s25 + $0x830] sm:$0xff] }
  0x52   : > { %606 = vst [vmem:[%s13847_s22 + $0x2b0] sm:$0xff] %v605_v22  ;;  %v611_v25 = vld [vmem:[%s13842_s25 + $0x838] sm:$0xff]  ;;  %608 = vst [vmem:[%s13847_s22 + $0x2b8] sm:$0xff] %v607_v23  ;;  %v613_v26 = vld [vmem:[%s13842_s25 + $0x870] sm:$0xff] }
  0x53   : > { %610 = vst [vmem:[%s13847_s22 + $0x2c0] sm:$0xff] %v609_v24  ;;  %612 = vst [vmem:[%s13847_s22 + $0x2c8] sm:$0xff] %v611_v25  ;;  %v615_v27 = vld [vmem:[%s13842_s25 + $0x878] sm:$0xff]  ;;  %v617_v28 = vld [vmem:[%s13842_s25 + $0x880] sm:$0xff] }
  0x54   : > { %614 = vst [vmem:[%s13847_s22 + $0x2d0] sm:$0xff] %v613_v26  ;;  %616 = vst [vmem:[%s13847_s22 + $0x2d8] sm:$0xff] %v615_v27  ;;  %v619_v29 = vld [vmem:[%s13842_s25 + $0x8b8] sm:$0xff]  ;;  %v621_v30 = vld [vmem:[%s13842_s25 + $0x8c0] sm:$0xff] }
  0x55   : > { %618 = vst [vmem:[%s13847_s22 + $0x2e0] sm:$0xff] %v617_v28  ;;  %v623_v31 = vld [vmem:[%s13842_s25 + $0x8c8] sm:$0xff]  ;;  %620 = vst [vmem:[%s13847_s22 + $0x2e8] sm:$0xff] %v619_v29  ;;  %v625_v32 = vld [vmem:[%s13842_s25 + $0x900] sm:$0xff] }
  0x56   : > { %622 = vst [vmem:[%s13847_s22 + $0x2f0] sm:$0xff] %v621_v30  ;;  %624 = vst [vmem:[%s13847_s22 + $0x2f8] sm:$0xff] %v623_v31  ;;  %v627_v33 = vld [vmem:[%s13842_s25 + $0x908] sm:$0xff]  ;;  %v629_v34 = vld [vmem:[%s13842_s25 + $0x910] sm:$0xff] }
  0x57   : > { %626 = vst [vmem:[%s13847_s22 + $0x300] sm:$0xff] %v625_v32  ;;  %628 = vst [vmem:[%s13847_s22 + $0x308] sm:$0xff] %v627_v33  ;;  %v631_v35 = vld [vmem:[%s13842_s25 + $0x948] sm:$0xff]  ;;  %v633_v36 = vld [vmem:[%s13842_s25 + $0x950] sm:$0xff] }
  0x58   : > { %630 = vst [vmem:[%s13847_s22 + $0x310] sm:$0xff] %v629_v34  ;;  %v635_v37 = vld [vmem:[%s13842_s25 + $0x958] sm:$0xff]  ;;  %632 = vst [vmem:[%s13847_s22 + $0x318] sm:$0xff] %v631_v35  ;;  %v637_v38 = vld [vmem:[%s13842_s25 + $0x990] sm:$0xff] }
  0x59   : > { %634 = vst [vmem:[%s13847_s22 + $0x320] sm:$0xff] %v633_v36  ;;  %636 = vst [vmem:[%s13847_s22 + $0x328] sm:$0xff] %v635_v37  ;;  %v639_v39 = vld [vmem:[%s13842_s25 + $0x998] sm:$0xff]  ;;  %v641_v40 = vld [vmem:[%s13842_s25 + $0x9a0] sm:$0xff] }
  0x5a   : > { %638 = vst [vmem:[%s13847_s22 + $0x330] sm:$0xff] %v637_v38  ;;  %640 = vst [vmem:[%s13847_s22 + $0x338] sm:$0xff] %v639_v39  ;;  %v643_v41 = vld [vmem:[%s13842_s25 + $0x9d8] sm:$0xff]  ;;  %v645_v42 = vld [vmem:[%s13842_s25 + $0x9e0] sm:$0xff] }
  0x5b   : > { %642 = vst [vmem:[%s13847_s22 + $0x340] sm:$0xff] %v641_v40  ;;  %v647_v43 = vld [vmem:[%s13842_s25 + $0x9e8] sm:$0xff]  ;;  %644 = vst [vmem:[%s13847_s22 + $0x348] sm:$0xff] %v643_v41  ;;  %v649_v44 = vld [vmem:[%s13842_s25 + $0xa20] sm:$0xff] }
  0x5c   : > { %646 = vst [vmem:[%s13847_s22 + $0x350] sm:$0xff] %v645_v42  ;;  %648 = vst [vmem:[%s13847_s22 + $0x358] sm:$0xff] %v647_v43  ;;  %v651_v45 = vld [vmem:[%s13842_s25 + $0xa28] sm:$0xff]  ;;  %v653_v46 = vld [vmem:[%s13842_s25 + $0xa30] sm:$0xff] }
  0x5d   : > { %650 = vst [vmem:[%s13847_s22 + $0x360] sm:$0xff] %v649_v44  ;;  %652 = vst [vmem:[%s13847_s22 + $0x368] sm:$0xff] %v651_v45  ;;  %v655_v47 = vld [vmem:[%s13842_s25 + $0xa68] sm:$0xff]  ;;  %v657_v48 = vld [vmem:[%s13842_s25 + $0xa70] sm:$0xff] }
  0x5e   : > { %654 = vst [vmem:[%s13847_s22 + $0x370] sm:$0xff] %v653_v46  ;;  %v659_v49 = vld [vmem:[%s13842_s25 + $0xa78] sm:$0xff]  ;;  %656 = vst [vmem:[%s13847_s22 + $0x378] sm:$0xff] %v655_v47  ;;  %v661_v50 = vld [vmem:[%s13842_s25 + $0xab0] sm:$0xff] }
  0x5f   : > { %658 = vst [vmem:[%s13847_s22 + $0x380] sm:$0xff] %v657_v48  ;;  %660 = vst [vmem:[%s13847_s22 + $0x388] sm:$0xff] %v659_v49  ;;  %v663_v51 = vld [vmem:[%s13842_s25 + $0xab8] sm:$0xff]  ;;  %v665_v52 = vld [vmem:[%s13842_s25 + $0xac0] sm:$0xff] }
  0x60   : > { %662 = vst [vmem:[%s13847_s22 + $0x390] sm:$0xff] %v661_v50  ;;  %664 = vst [vmem:[%s13847_s22 + $0x398] sm:$0xff] %v663_v51  ;;  %v667_v53 = vld [vmem:[%s13842_s25 + $0xaf8] sm:$0xff]  ;;  %v669_v54 = vld [vmem:[%s13842_s25 + $0xb00] sm:$0xff] }
  0x61   : > { %666 = vst [vmem:[%s13847_s22 + $0x3a0] sm:$0xff] %v665_v52  ;;  %v671_v55 = vld [vmem:[%s13842_s25 + $0xb08] sm:$0xff]  ;;  %668 = vst [vmem:[%s13847_s22 + $0x3a8] sm:$0xff] %v667_v53  ;;  %v673_v56 = vld [vmem:[%s13842_s25 + $0xb40] sm:$0xff] }
  0x62   : > { %670 = vst [vmem:[%s13847_s22 + $0x3b0] sm:$0xff] %v669_v54  ;;  %672 = vst [vmem:[%s13847_s22 + $0x3b8] sm:$0xff] %v671_v55  ;;  %v675_v57 = vld [vmem:[%s13842_s25 + $0xb48] sm:$0xff]  ;;  %v677_v58 = vld [vmem:[%s13842_s25 + $0xb50] sm:$0xff] }
  0x63   : > { %674 = vst [vmem:[%s13847_s22 + $0x3c0] sm:$0xff] %v673_v56  ;;  %676 = vst [vmem:[%s13847_s22 + $0x3c8] sm:$0xff] %v675_v57  ;;  %v679_v59 = vld [vmem:[%s13842_s25 + $0xb88] sm:$0xff]  ;;  %v681_v60 = vld [vmem:[%s13842_s25 + $0xb90] sm:$0xff] }
  0x64   : > { %678 = vst [vmem:[%s13847_s22 + $0x3d0] sm:$0xff] %v677_v58  ;;  %v683_v61 = vld [vmem:[%s13842_s25 + $0xb98] sm:$0xff]  ;;  %680 = vst [vmem:[%s13847_s22 + $0x3d8] sm:$0xff] %v679_v59  ;;  %v685_v62 = vld [vmem:[%s13842_s25 + $0xbd0] sm:$0xff] }
  0x65   : > { %682 = vst [vmem:[%s13847_s22 + $0x3e0] sm:$0xff] %v681_v60  ;;  %684 = vst [vmem:[%s13847_s22 + $0x3e8] sm:$0xff] %v683_v61  ;;  %v687_v63 = vld [vmem:[%s13842_s25 + $0xbd8] sm:$0xff]  ;;  %v689_v0 = vld [vmem:[%s13842_s25 + $0xbe0] sm:$0xff] }
  0x66   : > { %686 = vst [vmem:[%s13847_s22 + $0x3f0] sm:$0xff] %v685_v62  ;;  %688 = vst [vmem:[%s13847_s22 + $0x3f8] sm:$0xff] %v687_v63  ;;  %v691_v1 = vld [vmem:[%s13842_s25 + $0xc18] sm:$0xff]  ;;  %v693_v2 = vld [vmem:[%s13842_s25 + $0xc20] sm:$0xff] }
  0x67   : > { %690 = vst [vmem:[%s13847_s22 + $0x400] sm:$0xff] %v689_v0  ;;  %v695_v3 = vld [vmem:[%s13842_s25 + $0xc28] sm:$0xff]  ;;  %692 = vst [vmem:[%s13847_s22 + $0x408] sm:$0xff] %v691_v1  ;;  %v697_v4 = vld [vmem:[%s13842_s25 + $0xc60] sm:$0xff] }
  0x68   : > { %694 = vst [vmem:[%s13847_s22 + $0x410] sm:$0xff] %v693_v2  ;;  %696 = vst [vmem:[%s13847_s22 + $0x418] sm:$0xff] %v695_v3  ;;  %v699_v5 = vld [vmem:[%s13842_s25 + $0xc68] sm:$0xff]  ;;  %v701_v6 = vld [vmem:[%s13842_s25 + $0xc70] sm:$0xff] }
  0x69   : > { %698 = vst [vmem:[%s13847_s22 + $0x420] sm:$0xff] %v697_v4  ;;  %700 = vst [vmem:[%s13847_s22 + $0x428] sm:$0xff] %v699_v5  ;;  %v703_v7 = vld [vmem:[%s13842_s25 + $0xca8] sm:$0xff]  ;;  %v705_v8 = vld [vmem:[%s13842_s25 + $0xcb0] sm:$0xff] }
  0x6a   : > { %702 = vst [vmem:[%s13847_s22 + $0x430] sm:$0xff] %v701_v6  ;;  %v707_v9 = vld [vmem:[%s13842_s25 + $0xcb8] sm:$0xff]  ;;  %704 = vst [vmem:[%s13847_s22 + $0x438] sm:$0xff] %v703_v7  ;;  %v709_v10 = vld [vmem:[%s13842_s25 + $0xcf0] sm:$0xff] }
  0x6b   : > { %706 = vst [vmem:[%s13847_s22 + $0x440] sm:$0xff] %v705_v8  ;;  %708 = vst [vmem:[%s13847_s22 + $0x448] sm:$0xff] %v707_v9  ;;  %v711_v11 = vld [vmem:[%s13842_s25 + $0xcf8] sm:$0xff]  ;;  %v713_v12 = vld [vmem:[%s13842_s25 + $0xd00] sm:$0xff] }
  0x6c   : > { %710 = vst [vmem:[%s13847_s22 + $0x450] sm:$0xff] %v709_v10  ;;  %712 = vst [vmem:[%s13847_s22 + $0x458] sm:$0xff] %v711_v11  ;;  %v715_v13 = vld [vmem:[%s13842_s25 + $0xd38] sm:$0xff]  ;;  %v717_v14 = vld [vmem:[%s13842_s25 + $0xd40] sm:$0xff] }
  0x6d   : > { %714 = vst [vmem:[%s13847_s22 + $0x460] sm:$0xff] %v713_v12  ;;  %v719_v15 = vld [vmem:[%s13842_s25 + $0xd48] sm:$0xff]  ;;  %716 = vst [vmem:[%s13847_s22 + $0x468] sm:$0xff] %v715_v13  ;;  %v721_v16 = vld [vmem:[%s13842_s25 + $0xd80] sm:$0xff] }
  0x6e   : > { %718 = vst [vmem:[%s13847_s22 + $0x470] sm:$0xff] %v717_v14  ;;  %720 = vst [vmem:[%s13847_s22 + $0x478] sm:$0xff] %v719_v15  ;;  %v723_v17 = vld [vmem:[%s13842_s25 + $0xd88] sm:$0xff]  ;;  %v725_v18 = vld [vmem:[%s13842_s25 + $0xd90] sm:$0xff] }
  0x6f   : > { %722 = vst [vmem:[%s13847_s22 + $0x480] sm:$0xff] %v721_v16  ;;  %724 = vst [vmem:[%s13847_s22 + $0x488] sm:$0xff] %v723_v17  ;;  %v727_v19 = vld [vmem:[%s13842_s25 + $0xdc8] sm:$0xff]  ;;  %v729_v20 = vld [vmem:[%s13842_s25 + $0xdd0] sm:$0xff] }
  0x70   : > { %726 = vst [vmem:[%s13847_s22 + $0x490] sm:$0xff] %v725_v18  ;;  %v731_v21 = vld [vmem:[%s13842_s25 + $0xdd8] sm:$0xff]  ;;  %728 = vst [vmem:[%s13847_s22 + $0x498] sm:$0xff] %v727_v19  ;;  %v733_v22 = vld [vmem:[%s13842_s25 + $0xe10] sm:$0xff] }
  0x71   : > { %730 = vst [vmem:[%s13847_s22 + $0x4a0] sm:$0xff] %v729_v20  ;;  %732 = vst [vmem:[%s13847_s22 + $0x4a8] sm:$0xff] %v731_v21  ;;  %v735_v23 = vld [vmem:[%s13842_s25 + $0xe18] sm:$0xff]  ;;  %v737_v24 = vld [vmem:[%s13842_s25 + $0xe20] sm:$0xff] }
  0x72   : > { %734 = vst [vmem:[%s13847_s22 + $0x4b0] sm:$0xff] %v733_v22  ;;  %736 = vst [vmem:[%s13847_s22 + $0x4b8] sm:$0xff] %v735_v23  ;;  %v739_v25 = vld [vmem:[%s13842_s25 + $0xe58] sm:$0xff]  ;;  %v741_v26 = vld [vmem:[%s13842_s25 + $0xe60] sm:$0xff] }
  0x73   : > { %738 = vst [vmem:[%s13847_s22 + $0x4c0] sm:$0xff] %v737_v24  ;;  %v743_v27 = vld [vmem:[%s13842_s25 + $0xe68] sm:$0xff]  ;;  %740 = vst [vmem:[%s13847_s22 + $0x4c8] sm:$0xff] %v739_v25  ;;  %v745_v28 = vld [vmem:[%s13842_s25 + $0xea0] sm:$0xff] }
  0x74   : > { %742 = vst [vmem:[%s13847_s22 + $0x4d0] sm:$0xff] %v741_v26  ;;  %744 = vst [vmem:[%s13847_s22 + $0x4d8] sm:$0xff] %v743_v27  ;;  %v747_v29 = vld [vmem:[%s13842_s25 + $0xea8] sm:$0xff]  ;;  %v749_v30 = vld [vmem:[%s13842_s25 + $0xeb0] sm:$0xff] }
  0x75   : > { %746 = vst [vmem:[%s13847_s22 + $0x4e0] sm:$0xff] %v745_v28  ;;  %748 = vst [vmem:[%s13847_s22 + $0x4e8] sm:$0xff] %v747_v29  ;;  %v751_v31 = vld [vmem:[%s13842_s25 + $0xee8] sm:$0xff]  ;;  %v753_v32 = vld [vmem:[%s13842_s25 + $0xef0] sm:$0xff] }
  0x76   : > { %750 = vst [vmem:[%s13847_s22 + $0x4f0] sm:$0xff] %v749_v30  ;;  %v755_v33 = vld [vmem:[%s13842_s25 + $0xef8] sm:$0xff]  ;;  %752 = vst [vmem:[%s13847_s22 + $0x4f8] sm:$0xff] %v751_v31  ;;  %v757_v34 = vld [vmem:[%s13842_s25 + $0xf30] sm:$0xff] }
  0x77   : > { %754 = vst [vmem:[%s13847_s22 + $0x500] sm:$0xff] %v753_v32  ;;  %756 = vst [vmem:[%s13847_s22 + $0x508] sm:$0xff] %v755_v33  ;;  %v759_v35 = vld [vmem:[%s13842_s25 + $0xf38] sm:$0xff]  ;;  %v761_v36 = vld [vmem:[%s13842_s25 + $0xf40] sm:$0xff] }
  0x78   : > { %758 = vst [vmem:[%s13847_s22 + $0x510] sm:$0xff] %v757_v34  ;;  %760 = vst [vmem:[%s13847_s22 + $0x518] sm:$0xff] %v759_v35  ;;  %v763_v37 = vld [vmem:[%s13842_s25 + $0xf78] sm:$0xff]  ;;  %v765_v38 = vld [vmem:[%s13842_s25 + $0xf80] sm:$0xff] }
  0x79   : > { %762 = vst [vmem:[%s13847_s22 + $0x520] sm:$0xff] %v761_v36  ;;  %v767_v39 = vld [vmem:[%s13842_s25 + $0xf88] sm:$0xff]  ;;  %764 = vst [vmem:[%s13847_s22 + $0x528] sm:$0xff] %v763_v37  ;;  %v769_v40 = vld [vmem:[%s13842_s25 + $0xfc0] sm:$0xff] }
  0x7a   : > { %766 = vst [vmem:[%s13847_s22 + $0x530] sm:$0xff] %v765_v38  ;;  %768 = vst [vmem:[%s13847_s22 + $0x538] sm:$0xff] %v767_v39  ;;  %v771_v41 = vld [vmem:[%s13842_s25 + $0xfc8] sm:$0xff]  ;;  %v773_v42 = vld [vmem:[%s13842_s25 + $0xfd0] sm:$0xff] }
  0x7b   : > { %770 = vst [vmem:[%s13847_s22 + $0x540] sm:$0xff] %v769_v40  ;;  %772 = vst [vmem:[%s13847_s22 + $0x548] sm:$0xff] %v771_v41  ;;  %v775_v43 = vld [vmem:[%s13842_s25 + $0x1008] sm:$0xff]  ;;  %v777_v44 = vld [vmem:[%s13842_s25 + $0x1010] sm:$0xff] }
  0x7c   : > { %774 = vst [vmem:[%s13847_s22 + $0x550] sm:$0xff] %v773_v42  ;;  %v779_v45 = vld [vmem:[%s13842_s25 + $0x1018] sm:$0xff]  ;;  %776 = vst [vmem:[%s13847_s22 + $0x558] sm:$0xff] %v775_v43  ;;  %v781_v46 = vld [vmem:[%s13842_s25 + $0x1050] sm:$0xff] }
  0x7d   : > { %778 = vst [vmem:[%s13847_s22 + $0x560] sm:$0xff] %v777_v44  ;;  %780 = vst [vmem:[%s13847_s22 + $0x568] sm:$0xff] %v779_v45  ;;  %v783_v47 = vld [vmem:[%s13842_s25 + $0x1058] sm:$0xff]  ;;  %v785_v48 = vld [vmem:[%s13842_s25 + $0x1060] sm:$0xff] }
  0x7e   : > { %782 = vst [vmem:[%s13847_s22 + $0x570] sm:$0xff] %v781_v46  ;;  %784 = vst [vmem:[%s13847_s22 + $0x578] sm:$0xff] %v783_v47  ;;  %v787_v49 = vld [vmem:[%s13842_s25 + $0x1098] sm:$0xff]  ;;  %v789_v50 = vld [vmem:[%s13842_s25 + $0x10a0] sm:$0xff] }
  0x7f   : > { %786 = vst [vmem:[%s13847_s22 + $0x580] sm:$0xff] %v785_v48  ;;  %v791_v51 = vld [vmem:[%s13842_s25 + $0x10a8] sm:$0xff]  ;;  %788 = vst [vmem:[%s13847_s22 + $0x588] sm:$0xff] %v787_v49  ;;  %v793_v52 = vld [vmem:[%s13842_s25 + $0x10e0] sm:$0xff] }
  0x80   : > { %790 = vst [vmem:[%s13847_s22 + $0x590] sm:$0xff] %v789_v50  ;;  %792 = vst [vmem:[%s13847_s22 + $0x598] sm:$0xff] %v791_v51  ;;  %v795_v53 = vld [vmem:[%s13842_s25 + $0x10e8] sm:$0xff]  ;;  %v797_v54 = vld [vmem:[%s13842_s25 + $0x10f0] sm:$0xff] }
  0x81   : > { %794 = vst [vmem:[%s13847_s22 + $0x5a0] sm:$0xff] %v793_v52  ;;  %796 = vst [vmem:[%s13847_s22 + $0x5a8] sm:$0xff] %v795_v53  ;;  %v799_v55 = vld [vmem:[%s13842_s25 + $0x1128] sm:$0xff]  ;;  %v801_v56 = vld [vmem:[%s13842_s25 + $0x1130] sm:$0xff] }
  0x82   : > { %798 = vst [vmem:[%s13847_s22 + $0x5b0] sm:$0xff] %v797_v54  ;;  %v803_v57 = vld [vmem:[%s13842_s25 + $0x1138] sm:$0xff]  ;;  %800 = vst [vmem:[%s13847_s22 + $0x5b8] sm:$0xff] %v799_v55  ;;  %v805_v58 = vld [vmem:[%s13842_s25 + $0x1170] sm:$0xff] }
  0x83   : > { %802 = vst [vmem:[%s13847_s22 + $0x5c0] sm:$0xff] %v801_v56  ;;  %804 = vst [vmem:[%s13847_s22 + $0x5c8] sm:$0xff] %v803_v57  ;;  %v807_v59 = vld [vmem:[%s13842_s25 + $0x1178] sm:$0xff]  ;;  %v809_v60 = vld [vmem:[%s13842_s25 + $0x1180] sm:$0xff] }
  0x84   : > { %806 = vst [vmem:[%s13847_s22 + $0x5d0] sm:$0xff] %v805_v58  ;;  %808 = vst [vmem:[%s13847_s22 + $0x5d8] sm:$0xff] %v807_v59  ;;  %v811_v61 = vld [vmem:[%s13842_s25 + $0x11b8] sm:$0xff]  ;;  %v813_v62 = vld [vmem:[%s13842_s25 + $0x11c0] sm:$0xff] }
  0x85   : > { %810 = vst [vmem:[%s13847_s22 + $0x5e0] sm:$0xff] %v809_v60  ;;  %v815_v63 = vld [vmem:[%s13842_s25 + $0x11c8] sm:$0xff]  ;;  %812 = vst [vmem:[%s13847_s22 + $0x5e8] sm:$0xff] %v811_v61 }
  0x86   : > { %814 = vst [vmem:[%s13847_s22 + $0x5f0] sm:$0xff] %v813_v62  ;;  %816 = vst [vmem:[%s13847_s22 + $0x5f8] sm:$0xff] %v815_v63 }
  0x87 PF: > { %833 = sbr.rel (%p13823_p8) target bundleno = 2012 (0x7dc), region = 95  ;;  %s836_s17 = sand.u32 (!%p13823_p8), 1, %s13693_s15  }
  0x88   : > { %s11881_s26 = smul.u32 (!%p13823_p8), 1536, %s836_s17 }
  0x8a   : > { %s14233_s27 = scalar_lea.vmem (!%p13823_p8), [#allocation4], %s11881_s26 }
  0x8c   : > { %13684 = dma.done.wait (%p11894_p7), [#allocation7], 16  }
  0x8d   : > { %13686 = vsyncadd (%p11894_p7), [#allocation7], 4294967280 }
  0x8e   : > { %846 = sfence }
  0x8f   : > { %s886_s28 = smul.u32 6, %s13801_s13  ;;  %p17980_p6 = scmp.ne.s32.totalorder %s13801_s13, 0 }
  0x91   : > { %p887_p4 = scmp.lt.s32.totalorder %s886_s28, 17  ;;  %895 = sbr.rel (%p17980_p6) target bundleno = 1555 (0x613), region = 107 }
  0x93   : > { %s17989_s28 = smov (!%p887_p4, %s886_s28), 17 }
  0x94   : > { %s14243_s23 = scalar_lea.vmem %s17972_s11, %s17989_s28 }
  0x96   : > { %v11926_v0 = vld [vmem:[%s17963_s2 + $0xe4] ss:$16 sps:$4 sm:$0xff]   ;;  %v11930_v2 = vld [vmem:[%s17963_s2 + $0xe0] ss:$16 sps:$4 sm:$0xff]  }
  0x97   : > { %v11928_v1 = vld [vmem:[%s17963_s2 + $0x2e4] ss:$16 sps:$4 sm:$0xff]   ;;  %2898 = vmatprep.subr.bf16.mxu0 %v11926_v0  ;;  %v11931_v3 = vld [vmem:[%s17963_s2 + $0x2e0] ss:$16 sps:$4 sm:$0xff]  }
  0x98   : > { %2941 = vmatprep.subr.bf16.mxu1 %v11928_v1  ;;  %v11932_v4 = vld [vmem:[%s17963_s2 + $0xc4] ss:$16 sps:$4 sm:$0xff]   ;;  %2899 = vmatpush1.bf16.msra.mxu0 %v11930_v2  ;;  %v11936_v6 = vld [vmem:[%s17963_s2 + $0xc0] ss:$16 sps:$4 sm:$0xff]  }
  0x99   : > { %2942 = vmatpush1.bf16.msra.mxu1 %v11931_v3  ;;  %v11934_v5 = vld [vmem:[%s17963_s2 + $0x2c4] ss:$16 sps:$4 sm:$0xff]   ;;  %2900 = vmatprep.subr.bf16.mxu0 %v11932_v4  ;;  %v11937_v7 = vld [vmem:[%s17963_s2 + $0x2c0] ss:$16 sps:$4 sm:$0xff]  }
  0x9a   : > { %2943 = vmatprep.subr.bf16.mxu1 %v11934_v5  ;;  %v11938_v8 = vld [vmem:[%s17963_s2 + $0xa4] ss:$16 sps:$4 sm:$0xff]   ;;  %v11942_v10 = vld [vmem:[%s17963_s2 + $0xa0] ss:$16 sps:$4 sm:$0xff]  }
  0x9b   : > { %v11940_v9 = vld [vmem:[%s17963_s2 + $0x2a4] ss:$16 sps:$4 sm:$0xff]   ;;  %v11943_v11 = vld [vmem:[%s17963_s2 + $0x2a0] ss:$16 sps:$4 sm:$0xff]  }
  0x9c   : > { %2901 = vmatpush1.bf16.msra.mxu0 %v11936_v6  ;;  %v11944_v12 = vld [vmem:[%s17963_s2 + $0x84] ss:$16 sps:$4 sm:$0xff]   ;;  %v11948_v14 = vld [vmem:[%s17963_s2 + $0x80] ss:$16 sps:$4 sm:$0xff]  }
  0x9d   : > { %2944 = vmatpush1.bf16.msra.mxu1 %v11937_v7  ;;  %2902 = vmatprep.subr.bf16.mxu0 %v11938_v8  ;;  %v11946_v13 = vld [vmem:[%s17963_s2 + $0x284] ss:$16 sps:$4 sm:$0xff]   ;;  %v11949_v15 = vld [vmem:[%s17963_s2 + $0x280] ss:$16 sps:$4 sm:$0xff]  }
  0x9e   : > { %2945 = vmatprep.subr.bf16.mxu1 %v11940_v9  ;;  %v11950_v16 = vld [vmem:[%s17963_s2 + $0x64] ss:$16 sps:$4 sm:$0xff]   ;;  %v11954_v18 = vld [vmem:[%s17963_s2 + $0x60] ss:$16 sps:$4 sm:$0xff]  }
  0x9f   : > { %v11952_v17 = vld [vmem:[%s17963_s2 + $0x264] ss:$16 sps:$4 sm:$0xff]   ;;  %v11955_v19 = vld [vmem:[%s17963_s2 + $0x260] ss:$16 sps:$4 sm:$0xff]  }
  0xa0   : > { %2903 = vmatpush1.bf16.msra.mxu0 %v11942_v10  ;;  %v11956_v20 = vld [vmem:[%s17963_s2 + $0x44] ss:$16 sps:$4 sm:$0xff]   ;;  %v11960_v22 = vld [vmem:[%s17963_s2 + $0x40] ss:$16 sps:$4 sm:$0xff]  }
  0xa1   : > { %2946 = vmatpush1.bf16.msra.mxu1 %v11943_v11  ;;  %2904 = vmatprep.subr.bf16.mxu0 %v11944_v12  ;;  %v11958_v21 = vld [vmem:[%s17963_s2 + $0x244] ss:$16 sps:$4 sm:$0xff]   ;;  %v11961_v23 = vld [vmem:[%s17963_s2 + $0x240] ss:$16 sps:$4 sm:$0xff]  }
  0xa2   : > { %2947 = vmatprep.subr.bf16.mxu1 %v11946_v13  ;;  %v11962_v24 = vld [vmem:[%s17963_s2 + $0x24] ss:$16 sps:$4 sm:$0xff]   ;;  %v11966_v26 = vld [vmem:[%s17963_s2 + $0x20] ss:$16 sps:$4 sm:$0xff]  }
  0xa3   : > { %v11964_v25 = vld [vmem:[%s17963_s2 + $0x224] ss:$16 sps:$4 sm:$0xff]   ;;  %v11967_v27 = vld [vmem:[%s17963_s2 + $0x220] ss:$16 sps:$4 sm:$0xff]  }
  0xa4   : > { %2905 = vmatpush1.bf16.msra.mxu0 %v11948_v14  ;;  %v11968_v28 = vld [vmem:[%s17963_s2 + $0x4] ss:$16 sps:$4 sm:$0xff]   ;;  %v11972_v30 = vld [vmem:[%s17963_s2] ss:$16 sps:$4 sm:$0xff]  }
  0xa5   : > { %2948 = vmatpush1.bf16.msra.mxu1 %v11949_v15  ;;  %2906 = vmatprep.subr.bf16.mxu0 %v11950_v16  ;;  %v11970_v29 = vld [vmem:[%s17963_s2 + $0x204] ss:$16 sps:$4 sm:$0xff]   ;;  %v11973_v31 = vld [vmem:[%s17963_s2 + $0x200] ss:$16 sps:$4 sm:$0xff]  }
  0xa6   : > { %2949 = vmatprep.subr.bf16.mxu1 %v11952_v17  ;;  %v11974_v32 = vld [vmem:[%s17963_s2 + $0x1e4] ss:$16 sps:$4 sm:$0xff]   ;;  %v11978_v34 = vld [vmem:[%s17963_s2 + $0x1e0] ss:$16 sps:$4 sm:$0xff]  }
  0xa7   : > { %v11976_v33 = vld [vmem:[%s17963_s2 + $0x3e4] ss:$16 sps:$4 sm:$0xff]   ;;  %v11979_v35 = vld [vmem:[%s17963_s2 + $0x3e0] ss:$16 sps:$4 sm:$0xff]  }
  0xa8   : > { %2907 = vmatpush1.bf16.msra.mxu0 %v11954_v18  ;;  %v11980_v36 = vld [vmem:[%s17963_s2 + $0x1c4] ss:$16 sps:$4 sm:$0xff]   ;;  %v11984_v38 = vld [vmem:[%s17963_s2 + $0x1c0] ss:$16 sps:$4 sm:$0xff]  }
  0xa9   : > { %2950 = vmatpush1.bf16.msra.mxu1 %v11955_v19  ;;  %2908 = vmatprep.subr.bf16.mxu0 %v11956_v20  ;;  %v11982_v37 = vld [vmem:[%s17963_s2 + $0x3c4] ss:$16 sps:$4 sm:$0xff]   ;;  %v11985_v39 = vld [vmem:[%s17963_s2 + $0x3c0] ss:$16 sps:$4 sm:$0xff]  }
  0xaa   : > { %2951 = vmatprep.subr.bf16.mxu1 %v11958_v21  ;;  %v11986_v40 = vld [vmem:[%s17963_s2 + $0x1a4] ss:$16 sps:$4 sm:$0xff]   ;;  %v11990_v42 = vld [vmem:[%s17963_s2 + $0x1a0] ss:$16 sps:$4 sm:$0xff]  }
  0xab   : > { %v11988_v41 = vld [vmem:[%s17963_s2 + $0x3a4] ss:$16 sps:$4 sm:$0xff]   ;;  %v11991_v43 = vld [vmem:[%s17963_s2 + $0x3a0] ss:$16 sps:$4 sm:$0xff]  }
  0xac   : > { %2909 = vmatpush1.bf16.msra.mxu0 %v11960_v22  ;;  %v11992_v44 = vld [vmem:[%s17963_s2 + $0x184] ss:$16 sps:$4 sm:$0xff]   ;;  %v11996_v46 = vld [vmem:[%s17963_s2 + $0x180] ss:$16 sps:$4 sm:$0xff]  }
  0xad   : > { %2952 = vmatpush1.bf16.msra.mxu1 %v11961_v23  ;;  %2910 = vmatprep.subr.bf16.mxu0 %v11962_v24  ;;  %v11994_v45 = vld [vmem:[%s17963_s2 + $0x384] ss:$16 sps:$4 sm:$0xff]   ;;  %v11997_v47 = vld [vmem:[%s17963_s2 + $0x380] ss:$16 sps:$4 sm:$0xff]  }
  0xae   : > { %2953 = vmatprep.subr.bf16.mxu1 %v11964_v25  ;;  %v11998_v48 = vld [vmem:[%s17963_s2 + $0x164] ss:$16 sps:$4 sm:$0xff]   ;;  %v12002_v52 = vld [vmem:[%s17963_s2 + $0x160] ss:$16 sps:$4 sm:$0xff]  }
  0xaf   : > { %v14397_v49 = vld [vmem:[%s17961_s0 + $0x4] ss:$40 sps:$4 sm:$0xff]   ;;  %v12003_v53 = vld [vmem:[%s17963_s2 + $0x360] ss:$16 sps:$4 sm:$0xff]  }
  0xb0   : > { %2911 = vmatpush1.bf16.msra.mxu0 %v11966_v26  ;;  %v12000_v50 = vld [vmem:[%s17963_s2 + $0x364] ss:$16 sps:$4 sm:$0xff]   ;;  %2930 = vmatprep.mubr.bf16.mxu0 %v14397_v49  ;;  %v12008_v56 = vld [vmem:[%s17963_s2 + $0x140] ss:$16 sps:$4 sm:$0xff]  }
  0xb1   : > { %2954 = vmatpush1.bf16.msra.mxu1 %v11967_v27  ;;  %2912 = vmatprep.subr.bf16.mxu0 %v11968_v28  ;;  %v12027_v51 = vld [vmem:[%s17961_s0 + $0xc] ss:$40 sps:$4 sm:$0xff]   ;;  %v12009_v57 = vld [vmem:[%s17963_s2 + $0x340] ss:$16 sps:$4 sm:$0xff]  }
  0xb2   : > { %2955 = vmatprep.subr.bf16.mxu1 %v11970_v29  ;;  %2973 = vmatprep.mubr.bf16.mxu1 %v12027_v51  ;;  %v12004_v54 = vld [vmem:[%s17963_s2 + $0x144] ss:$16 sps:$4 sm:$0xff]   ;;  %v12014_v60 = vld [vmem:[%s17963_s2 + $0x120] ss:$16 sps:$4 sm:$0xff]  }
  0xb3   : > { %v12006_v55 = vld [vmem:[%s17963_s2 + $0x344] ss:$16 sps:$4 sm:$0xff]   ;;  %v12015_v61 = vld [vmem:[%s17963_s2 + $0x320] ss:$16 sps:$4 sm:$0xff]  }
  0xb4   : > { %2913 = vmatpush1.bf16.msra.mxu0 %v11972_v30  ;;  %v12010_v58 = vld [vmem:[%s17963_s2 + $0x124] ss:$16 sps:$4 sm:$0xff]   ;;  %v12020_v0 = vld [vmem:[%s17963_s2 + $0x100] ss:$16 sps:$4 sm:$0xff]  }
  0xb5   : > { %2956 = vmatpush1.bf16.msra.mxu1 %v11973_v31  ;;  %2914 = vmatprep.subr.bf16.mxu0 %v11974_v32  ;;  %v12012_v59 = vld [vmem:[%s17963_s2 + $0x324] ss:$16 sps:$4 sm:$0xff]   ;;  %v12021_v1 = vld [vmem:[%s17963_s2 + $0x300] ss:$16 sps:$4 sm:$0xff]  }
  0xb6   : > { %2957 = vmatprep.subr.bf16.mxu1 %v11976_v33  ;;  %v12016_v62 = vld [vmem:[%s17963_s2 + $0x104] ss:$16 sps:$4 sm:$0xff]   ;;  %v14457_v4 = vld [vmem:[%s17961_s0] ss:$40 sps:$4 sm:$0xff]  }
  0xb7   : > { %v12018_v63 = vld [vmem:[%s17963_s2 + $0x304] ss:$16 sps:$4 sm:$0xff]   ;;  %v12025_v5 = vld [vmem:[%s17961_s0 + $0x8] ss:$40 sps:$4 sm:$0xff]  }
  0xb8   : > { %2915 = vmatpush2.bf16.msra.mxu0 %v11978_v34  ;;  %v12030_v2 = vld [vmem:[%s17963_s2 + $0x4e4] ss:$16 sps:$4 sm:$0xff]   ;;  %v12028_v6 = vld [vmem:[%s17963_s2 + $0x4e0] ss:$16 sps:$4 sm:$0xff]  }
  0xb9   : > { %2958 = vmatpush2.bf16.msra.mxu1 %v11979_v35  ;;  %2916 = vmatprep.subr.bf16.mxu0 %v11980_v36  ;;  %v12033_v3 = vld [vmem:[%s17963_s2 + $0x6e4] ss:$16 sps:$4 sm:$0xff]   ;;  %v12031_v7 = vld [vmem:[%s17963_s2 + $0x6e0] ss:$16 sps:$4 sm:$0xff]  }
  0xba   : > { %2959 = vmatprep.subr.bf16.mxu1 %v11982_v37  ;;  %v12036_v8 = vld [vmem:[%s17963_s2 + $0x4c4] ss:$16 sps:$4 sm:$0xff]   ;;  %v12034_v10 = vld [vmem:[%s17963_s2 + $0x4c0] ss:$16 sps:$4 sm:$0xff]  }
  0xbb   : > { %v12039_v9 = vld [vmem:[%s17963_s2 + $0x6c4] ss:$16 sps:$4 sm:$0xff]   ;;  %v12037_v11 = vld [vmem:[%s17963_s2 + $0x6c0] ss:$16 sps:$4 sm:$0xff]  }
  0xbc   : > { %2917 = vmatpush2.bf16.msra.mxu0 %v11984_v38  ;;  %v12042_v12 = vld [vmem:[%s17963_s2 + $0x4a4] ss:$16 sps:$4 sm:$0xff]   ;;  %v12040_v14 = vld [vmem:[%s17963_s2 + $0x4a0] ss:$16 sps:$4 sm:$0xff]  }
  0xbd   : > { %2960 = vmatpush2.bf16.msra.mxu1 %v11985_v39  ;;  %2918 = vmatprep.subr.bf16.mxu0 %v11986_v40  ;;  %v12045_v13 = vld [vmem:[%s17963_s2 + $0x6a4] ss:$16 sps:$4 sm:$0xff]   ;;  %v12043_v15 = vld [vmem:[%s17963_s2 + $0x6a0] ss:$16 sps:$4 sm:$0xff]  }
  0xbe   : > { %2961 = vmatprep.subr.bf16.mxu1 %v11988_v41  ;;  %v12048_v16 = vld [vmem:[%s17963_s2 + $0x484] ss:$16 sps:$4 sm:$0xff]   ;;  %v12046_v18 = vld [vmem:[%s17963_s2 + $0x480] ss:$16 sps:$4 sm:$0xff]  }
  0xbf   : > { %v12051_v17 = vld [vmem:[%s17963_s2 + $0x684] ss:$16 sps:$4 sm:$0xff]   ;;  %v12049_v19 = vld [vmem:[%s17963_s2 + $0x680] ss:$16 sps:$4 sm:$0xff]  }
  0xc0   : > { %2919 = vmatpush2.bf16.msra.mxu0 %v11990_v42  ;;  %v12054_v20 = vld [vmem:[%s17963_s2 + $0x464] ss:$16 sps:$4 sm:$0xff]   ;;  %v12052_v22 = vld [vmem:[%s17963_s2 + $0x460] ss:$16 sps:$4 sm:$0xff]  }
  0xc1   : > { %2962 = vmatpush2.bf16.msra.mxu1 %v11991_v43  ;;  %2920 = vmatprep.subr.bf16.mxu0 %v11992_v44  ;;  %v12057_v21 = vld [vmem:[%s17963_s2 + $0x664] ss:$16 sps:$4 sm:$0xff]   ;;  %v12055_v23 = vld [vmem:[%s17963_s2 + $0x660] ss:$16 sps:$4 sm:$0xff]  }
  0xc2   : > { %2963 = vmatprep.subr.bf16.mxu1 %v11994_v45  ;;  %v12060_v24 = vld [vmem:[%s17963_s2 + $0x444] ss:$16 sps:$4 sm:$0xff]   ;;  %v12058_v26 = vld [vmem:[%s17963_s2 + $0x440] ss:$16 sps:$4 sm:$0xff]  }
  0xc3   : > { %v12063_v25 = vld [vmem:[%s17963_s2 + $0x644] ss:$16 sps:$4 sm:$0xff]   ;;  %v12061_v27 = vld [vmem:[%s17963_s2 + $0x640] ss:$16 sps:$4 sm:$0xff]  }
  0xc4   : > { %2921 = vmatpush2.bf16.msra.mxu0 %v11996_v46  ;;  %v12066_v28 = vld [vmem:[%s17963_s2 + $0x424] ss:$16 sps:$4 sm:$0xff]   ;;  %v12064_v30 = vld [vmem:[%s17963_s2 + $0x420] ss:$16 sps:$4 sm:$0xff]  }
  0xc5   : > { %2964 = vmatpush2.bf16.msra.mxu1 %v11997_v47  ;;  %2922 = vmatprep.subr.bf16.mxu0 %v11998_v48  ;;  %v12069_v29 = vld [vmem:[%s17963_s2 + $0x624] ss:$16 sps:$4 sm:$0xff]   ;;  %v12067_v31 = vld [vmem:[%s17963_s2 + $0x620] ss:$16 sps:$4 sm:$0xff]  }
  0xc6   : > { %2965 = vmatprep.subr.bf16.mxu1 %v12000_v50  ;;  %v12072_v32 = vld [vmem:[%s17963_s2 + $0x404] ss:$16 sps:$4 sm:$0xff]   ;;  %v12070_v36 = vld [vmem:[%s17963_s2 + $0x400] ss:$16 sps:$4 sm:$0xff]  }
  0xc7   : > { %v12075_v33 = vld [vmem:[%s17963_s2 + $0x604] ss:$16 sps:$4 sm:$0xff]   ;;  %v12073_v37 = vld [vmem:[%s17963_s2 + $0x600] ss:$16 sps:$4 sm:$0xff]  }
  0xc8   : > { %2923 = vmatpush2.bf16.msra.mxu0 %v12002_v52  ;;  %v14550_v34 = vld [vmem:[%s17961_s0 + $0x14] ss:$40 sps:$4 sm:$0xff]   ;;  %v12076_v40 = vld [vmem:[%s17963_s2 + $0x5e0] ss:$16 sps:$4 sm:$0xff]  }
  0xc9   : > { %2966 = vmatpush2.bf16.msra.mxu1 %v12003_v53  ;;  %2924 = vmatprep.subr.bf16.mxu0 %v12004_v54  ;;  %v12129_v35 = vld [vmem:[%s17961_s0 + $0x1c] ss:$40 sps:$4 sm:$0xff]   ;;  %v12079_v41 = vld [vmem:[%s17963_s2 + $0x7e0] ss:$16 sps:$4 sm:$0xff]  }
  0xca   : > { %2967 = vmatprep.subr.bf16.mxu1 %v12006_v55  ;;  %v12078_v38 = vld [vmem:[%s17963_s2 + $0x5e4] ss:$16 sps:$4 sm:$0xff]   ;;  %v12082_v44 = vld [vmem:[%s17963_s2 + $0x5c0] ss:$16 sps:$4 sm:$0xff]  }
  0xcb   : > { %v12081_v39 = vld [vmem:[%s17963_s2 + $0x7e4] ss:$16 sps:$4 sm:$0xff]   ;;  %v12085_v45 = vld [vmem:[%s17963_s2 + $0x7c0] ss:$16 sps:$4 sm:$0xff]  }
  0xcc   : > { %2925 = vmatpush2.bf16.msra.mxu0 %v12008_v56  ;;  %v12084_v42 = vld [vmem:[%s17963_s2 + $0x5c4] ss:$16 sps:$4 sm:$0xff]   ;;  %v12088_v48 = vld [vmem:[%s17963_s2 + $0x5a0] ss:$16 sps:$4 sm:$0xff]  }
  0xcd   : > { %2968 = vmatpush2.bf16.msra.mxu1 %v12009_v57  ;;  %2926 = vmatprep.subr.bf16.mxu0 %v12010_v58  ;;  %v12087_v43 = vld [vmem:[%s17963_s2 + $0x7c4] ss:$16 sps:$4 sm:$0xff]   ;;  %v12091_v50 = vld [vmem:[%s17963_s2 + $0x7a0] ss:$16 sps:$4 sm:$0xff]  }
  0xce   : > { %2969 = vmatprep.subr.bf16.mxu1 %v12012_v59  ;;  %v12090_v46 = vld [vmem:[%s17963_s2 + $0x5a4] ss:$16 sps:$4 sm:$0xff]   ;;  %v12094_v53 = vld [vmem:[%s17963_s2 + $0x580] ss:$16 sps:$4 sm:$0xff]  }
  0xcf   : > { %v12093_v47 = vld [vmem:[%s17963_s2 + $0x7a4] ss:$16 sps:$4 sm:$0xff]   ;;  %v12097_v54 = vld [vmem:[%s17963_s2 + $0x780] ss:$16 sps:$4 sm:$0xff]  }
  0xd0   : > { %2927 = vmatpush2.bf16.msra.mxu0 %v12014_v60  ;;  %v12096_v51 = vld [vmem:[%s17963_s2 + $0x584] ss:$16 sps:$4 sm:$0xff]   ;;  %v12100_v57 = vld [vmem:[%s17963_s2 + $0x560] ss:$16 sps:$4 sm:$0xff]  }
  0xd1   : > { %2970 = vmatpush2.bf16.msra.mxu1 %v12015_v61  ;;  %2928 = vmatprep.subr.bf16.mxu0 %v12016_v62  ;;  %v12099_v52 = vld [vmem:[%s17963_s2 + $0x784] ss:$16 sps:$4 sm:$0xff]   ;;  %v12103_v58 = vld [vmem:[%s17963_s2 + $0x760] ss:$16 sps:$4 sm:$0xff]  }
  0xd2   : > { %2971 = vmatprep.subr.bf16.mxu1 %v12018_v63  ;;  %v12102_v55 = vld [vmem:[%s17963_s2 + $0x564] ss:$16 sps:$4 sm:$0xff]   ;;  %v12106_v61 = vld [vmem:[%s17963_s2 + $0x540] ss:$16 sps:$4 sm:$0xff]  }
  0xd3   : > { %v12105_v56 = vld [vmem:[%s17963_s2 + $0x764] ss:$16 sps:$4 sm:$0xff]   ;;  %v12109_v62 = vld [vmem:[%s17963_s2 + $0x740] ss:$16 sps:$4 sm:$0xff]  }
  0xd4   : > { %2929 = vmatpush2.bf16.msra.mxu0 %v12020_v0  ;;  %v12108_v59 = vld [vmem:[%s17963_s2 + $0x544] ss:$16 sps:$4 sm:$0xff]  }
  0xd5   : > { %2972 = vmatpush2.bf16.msra.mxu1 %v12021_v1  ;;  %2984 = vmatprep.subr.bf16.mxu0 %v12030_v2  ;;  %v12111_v60 = vld [vmem:[%s17963_s2 + $0x744] ss:$16 sps:$4 sm:$0xff]   ;;  %v12112_v1 = vld [vmem:[%s17963_s2 + $0x520] ss:$16 sps:$4 sm:$0xff]  }
  0xd6   : > { %3027 = vmatprep.subr.bf16.mxu1 %v12033_v3  ;;  %v12114_v63 = vld [vmem:[%s17963_s2 + $0x524] ss:$16 sps:$4 sm:$0xff]   ;;  %v12115_v2 = vld [vmem:[%s17963_s2 + $0x720] ss:$16 sps:$4 sm:$0xff]  }
  0xd7   : > { %2931 = vmatmul.mubr.bf16.vlgmr.msra.gmra.mxu0 %v14457_v4  ;;  %v12117_v0 = vld [vmem:[%s17963_s2 + $0x724] ss:$16 sps:$4 sm:$0xff]  }
  0xd8   : > { %2974 = vmatmul.mubr.bf16.vlgmr.msra.gmra.mxu1 %v12025_v5  ;;  %2985 = vmatpush1.bf16.msra.mxu0 %v12028_v6  ;;  %v12120_v3 = vld [vmem:[%s17963_s2 + $0x504] ss:$16 sps:$4 sm:$0xff]   ;;  %v12118_v6 = vld [vmem:[%s17963_s2 + $0x500] ss:$16 sps:$4 sm:$0xff]  }
  0xd9   : > { %3028 = vmatpush1.bf16.msra.mxu1 %v12031_v7  ;;  %2986 = vmatprep.subr.bf16.mxu0 %v12036_v8  ;;  %v12123_v5 = vld [vmem:[%s17963_s2 + $0x704] ss:$16 sps:$4 sm:$0xff]   ;;  %v12121_v7 = vld [vmem:[%s17963_s2 + $0x700] ss:$16 sps:$4 sm:$0xff]  }
  0xda   : > { %3029 = vmatprep.subr.bf16.mxu1 %v12039_v9  ;;  %3016 = vmatprep.mubr.bf16.mxu0 %v14550_v34  ;;  %v12132_v8 = vld [vmem:[%s17963_s2 + $0x8e4] ss:$16 sps:$4 sm:$0xff]   ;;  %v12135_v9 = vld [vmem:[%s17963_s2 + $0xec] ss:$16 sps:$4 sm:$0xff]  }
  0xdb   : > { %3059 = vmatprep.mubr.bf16.mxu1 %v12129_v35  ;;  %v12168_v35 = vld [vmem:[%s17963_s2 + $0x824] ss:$16 sps:$4 sm:$0xff]  }
  0xdc   : > { %2987 = vmatpush1.bf16.msra.mxu0 %v12034_v10  ;;  %v14667_v10 = vld [vmem:[%s17961_s0 + $0x10] ss:$40 sps:$4 sm:$0xff]  }
  0xdd   : > { %3030 = vmatpush1.bf16.msra.mxu1 %v12037_v11  ;;  %2988 = vmatprep.subr.bf16.mxu0 %v12042_v12  ;;  %v12127_v11 = vld [vmem:[%s17961_s0 + $0x18] ss:$40 sps:$4 sm:$0xff]  }
  0xde   : > { %3031 = vmatprep.subr.bf16.mxu1 %v12045_v13  ;;  %v12130_v12 = vld [vmem:[%s17963_s2 + $0x8e0] ss:$16 sps:$4 sm:$0xff]   ;;  %v12133_v13 = vld [vmem:[%s17963_s2 + $0xe8] ss:$16 sps:$4 sm:$0xff]  }
  0xe0   : > { %2989 = vmatpush1.bf16.msra.mxu0 %v12040_v14  ;;  %v12138_v14 = vld [vmem:[%s17963_s2 + $0x8c4] ss:$16 sps:$4 sm:$0xff]  }
  0xe1   : > { %3032 = vmatpush1.bf16.msra.mxu1 %v12043_v15  ;;  %2990 = vmatprep.subr.bf16.mxu0 %v12048_v16  ;;  %v12141_v15 = vld [vmem:[%s17963_s2 + $0xcc] ss:$16 sps:$4 sm:$0xff]   ;;  %v12136_v16 = vld [vmem:[%s17963_s2 + $0x8c0] ss:$16 sps:$4 sm:$0xff]  }
  0xe2   : > { %3033 = vmatprep.subr.bf16.mxu1 %v12051_v17  ;;  %v12139_v17 = vld [vmem:[%s17963_s2 + $0xc8] ss:$16 sps:$4 sm:$0xff]  }
  0xe4   : > { %2991 = vmatpush1.bf16.msra.mxu0 %v12046_v18  ;;  %v12144_v18 = vld [vmem:[%s17963_s2 + $0x8a4] ss:$16 sps:$4 sm:$0xff]  }
  0xe5   : > { %3034 = vmatpush1.bf16.msra.mxu1 %v12049_v19  ;;  %2992 = vmatprep.subr.bf16.mxu0 %v12054_v20  ;;  %v12147_v19 = vld [vmem:[%s17963_s2 + $0xac] ss:$16 sps:$4 sm:$0xff]  }
  0xe6   : > { %3035 = vmatprep.subr.bf16.mxu1 %v12057_v21  ;;  %v14700_v20 = vld [vmem:[%s17961_s0 + $0x24] ss:$40 sps:$4 sm:$0xff]   ;;  %v12142_v21 = vld [vmem:[%s17963_s2 + $0x8a0] ss:$16 sps:$4 sm:$0xff]  }
  0xe8   : > { %2993 = vmatpush1.bf16.msra.mxu0 %v12052_v22  ;;  %v12145_v22 = vld [vmem:[%s17963_s2 + $0xa8] ss:$16 sps:$4 sm:$0xff]  }
  0xe9   : > { %3036 = vmatpush1.bf16.msra.mxu1 %v12055_v23  ;;  %2994 = vmatprep.subr.bf16.mxu0 %v12060_v24  ;;  %v12150_v23 = vld [vmem:[%s17963_s2 + $0x884] ss:$16 sps:$4 sm:$0xff]   ;;  %v12148_v24 = vld [vmem:[%s17963_s2 + $0x880] ss:$16 sps:$4 sm:$0xff]  }
  0xea   : > { %3037 = vmatprep.subr.bf16.mxu1 %v12063_v25  ;;  %v12151_v25 = vld [vmem:[%s17963_s2 + $0x88] ss:$16 sps:$4 sm:$0xff]  }
  0xec   : > { %2995 = vmatpush1.bf16.msra.mxu0 %v12058_v26  ;;  %v12156_v26 = vld [vmem:[%s17963_s2 + $0x864] ss:$16 sps:$4 sm:$0xff]  }
  0xed   : > { %3038 = vmatpush1.bf16.msra.mxu1 %v12061_v27  ;;  %2996 = vmatprep.subr.bf16.mxu0 %v12066_v28  ;;  %v12159_v27 = vld [vmem:[%s17963_s2 + $0x6c] ss:$16 sps:$4 sm:$0xff]   ;;  %v12154_v28 = vld [vmem:[%s17963_s2 + $0x860] ss:$16 sps:$4 sm:$0xff]  }
  0xee   : > { %3039 = vmatprep.subr.bf16.mxu1 %v12069_v29  ;;  %v12157_v29 = vld [vmem:[%s17963_s2 + $0x68] ss:$16 sps:$4 sm:$0xff]  }
  0xf0   : > { %2997 = vmatpush1.bf16.msra.mxu0 %v12064_v30  ;;  %v12162_v30 = vld [vmem:[%s17963_s2 + $0x844] ss:$16 sps:$4 sm:$0xff]  }
  0xf1   : > { %3040 = vmatpush1.bf16.msra.mxu1 %v12067_v31  ;;  %2998 = vmatprep.subr.bf16.mxu0 %v12072_v32  ;;  %v12165_v31 = vld [vmem:[%s17963_s2 + $0x4c] ss:$16 sps:$4 sm:$0xff]   ;;  %v12160_v32 = vld [vmem:[%s17963_s2 + $0x840] ss:$16 sps:$4 sm:$0xff]  }
  0xf2   : > { %3041 = vmatprep.subr.bf16.mxu1 %v12075_v33  ;;  %v12163_v33 = vld [vmem:[%s17963_s2 + $0x48] ss:$16 sps:$4 sm:$0xff]  }
  0xf4   : > { %2999 = vmatpush1.bf16.msra.mxu0 %v12070_v36  ;;  %v12171_v36 = vld [vmem:[%s17963_s2 + $0x2c] ss:$16 sps:$4 sm:$0xff]  }
  0xf5   : > { %3042 = vmatpush1.bf16.msra.mxu1 %v12073_v37  ;;  %3000 = vmatprep.subr.bf16.mxu0 %v12078_v38  ;;  %v12166_v37 = vld [vmem:[%s17963_s2 + $0x820] ss:$16 sps:$4 sm:$0xff]   ;;  %v12169_v38 = vld [vmem:[%s17963_s2 + $0x28] ss:$16 sps:$4 sm:$0xff]  }
  0xf6   : > { %3043 = vmatprep.subr.bf16.mxu1 %v12081_v39  ;;  %v12174_v39 = vld [vmem:[%s17963_s2 + $0x804] ss:$16 sps:$4 sm:$0xff]  }
  0xf8   : > { %3001 = vmatpush2.bf16.msra.mxu0 %v12076_v40  ;;  %v12177_v40 = vld [vmem:[%s17963_s2 + $0xc] ss:$16 sps:$4 sm:$0xff]  }
  0xf9   : > { %3044 = vmatpush2.bf16.msra.mxu1 %v12079_v41  ;;  %3002 = vmatprep.subr.bf16.mxu0 %v12084_v42  ;;  %v12172_v41 = vld [vmem:[%s17963_s2 + $0x800] ss:$16 sps:$4 sm:$0xff]   ;;  %v12175_v42 = vld [vmem:[%s17963_s2 + $0x8] ss:$16 sps:$4 sm:$0xff]  }
  0xfa   : > { %3045 = vmatprep.subr.bf16.mxu1 %v12087_v43  ;;  %v12180_v43 = vld [vmem:[%s17963_s2 + $0x9e4] ss:$16 sps:$4 sm:$0xff]  }
  0xfc   : > { %3003 = vmatpush2.bf16.msra.mxu0 %v12082_v44  ;;  %v12183_v44 = vld [vmem:[%s17963_s2 + $0x1ec] ss:$16 sps:$4 sm:$0xff]  }
  0xfd   : > { %3046 = vmatpush2.bf16.msra.mxu1 %v12085_v45  ;;  %3004 = vmatprep.subr.bf16.mxu0 %v12090_v46  ;;  %v12178_v45 = vld [vmem:[%s17963_s2 + $0x9e0] ss:$16 sps:$4 sm:$0xff]   ;;  %v12181_v46 = vld [vmem:[%s17963_s2 + $0x1e8] ss:$16 sps:$4 sm:$0xff]  }
  0xfe   : > { %3047 = vmatprep.subr.bf16.mxu1 %v12093_v47  ;;  %v12186_v47 = vld [vmem:[%s17963_s2 + $0x9c4] ss:$16 sps:$4 sm:$0xff]  }
 0x100   : > { %3005 = vmatpush2.bf16.msra.mxu0 %v12088_v48  ;;  %v12189_v48 = vld [vmem:[%s17963_s2 + $0x1cc] ss:$16 sps:$4 sm:$0xff]  }
 0x101   : > { %3048 = vmatpush2.bf16.msra.mxu1 %v12091_v50  ;;  %3006 = vmatprep.subr.bf16.mxu0 %v12096_v51  ;;  %v12184_v50 = vld [vmem:[%s17963_s2 + $0x9c0] ss:$16 sps:$4 sm:$0xff]   ;;  %v12187_v51 = vld [vmem:[%s17963_s2 + $0x1c8] ss:$16 sps:$4 sm:$0xff]  }
 0x102   : > { %3049 = vmatprep.subr.bf16.mxu1 %v12099_v52  ;;  %v12192_v52 = vld [vmem:[%s17963_s2 + $0x9a4] ss:$16 sps:$4 sm:$0xff]  }
 0x104   : > { %3007 = vmatpush2.bf16.msra.mxu0 %v12094_v53  ;;  %v12195_v53 = vld [vmem:[%s17963_s2 + $0x1ac] ss:$16 sps:$4 sm:$0xff]  }
 0x105   : > { %3050 = vmatpush2.bf16.msra.mxu1 %v12097_v54  ;;  %3008 = vmatprep.subr.bf16.mxu0 %v12102_v55  ;;  %v12190_v54 = vld [vmem:[%s17963_s2 + $0x9a0] ss:$16 sps:$4 sm:$0xff]   ;;  %v12193_v55 = vld [vmem:[%s17963_s2 + $0x1a8] ss:$16 sps:$4 sm:$0xff]  }
 0x106   : > { %3051 = vmatprep.subr.bf16.mxu1 %v12105_v56  ;;  %v12198_v56 = vld [vmem:[%s17963_s2 + $0x984] ss:$16 sps:$4 sm:$0xff]  }
 0x108   : > { %3009 = vmatpush2.bf16.msra.mxu0 %v12100_v57  ;;  %v12201_v57 = vld [vmem:[%s17963_s2 + $0x18c] ss:$16 sps:$4 sm:$0xff]  }
 0x109   : > { %3052 = vmatpush2.bf16.msra.mxu1 %v12103_v58  ;;  %3010 = vmatprep.subr.bf16.mxu0 %v12108_v59  ;;  %v12196_v58 = vld [vmem:[%s17963_s2 + $0x980] ss:$16 sps:$4 sm:$0xff]   ;;  %v12199_v59 = vld [vmem:[%s17963_s2 + $0x188] ss:$16 sps:$4 sm:$0xff]  }
 0x10a   : > { %3053 = vmatprep.subr.bf16.mxu1 %v12111_v60  ;;  %v12204_v60 = vld [vmem:[%s17963_s2 + $0x964] ss:$16 sps:$4 sm:$0xff]  }
 0x10c   : > { %3011 = vmatpush2.bf16.msra.mxu0 %v12106_v61  ;;  %v12207_v61 = vld [vmem:[%s17963_s2 + $0x16c] ss:$16 sps:$4 sm:$0xff]  }
 0x10d   : > { %3054 = vmatpush2.bf16.msra.mxu1 %v12109_v62  ;;  %3012 = vmatprep.subr.bf16.mxu0 %v12114_v63  ;;  %v12202_v62 = vld [vmem:[%s17963_s2 + $0x960] ss:$16 sps:$4 sm:$0xff]   ;;  %v12205_v63 = vld [vmem:[%s17963_s2 + $0x168] ss:$16 sps:$4 sm:$0xff]  }
 0x10e   : > { %3055 = vmatprep.subr.bf16.mxu1 %v12117_v0  ;;  %v12210_v0 = vld [vmem:[%s17963_s2 + $0x944] ss:$16 sps:$4 sm:$0xff]  }
 0x110   : > { %3013 = vmatpush2.bf16.msra.mxu0 %v12112_v1  ;;  %v12213_v1 = vld [vmem:[%s17963_s2 + $0x14c] ss:$16 sps:$4 sm:$0xff]  }
 0x111   : > { %3056 = vmatpush2.bf16.msra.mxu1 %v12115_v2  ;;  %3014 = vmatprep.subr.bf16.mxu0 %v12120_v3  ;;  %v12208_v2 = vld [vmem:[%s17963_s2 + $0x940] ss:$16 sps:$4 sm:$0xff]   ;;  %v12211_v3 = vld [vmem:[%s17963_s2 + $0x148] ss:$16 sps:$4 sm:$0xff]  }
 0x112   : > { %3057 = vmatprep.subr.bf16.mxu1 %v12123_v5  ;;  %v12216_v5 = vld [vmem:[%s17963_s2 + $0x924] ss:$16 sps:$4 sm:$0xff]  }
 0x114   : > { %3015 = vmatpush2.bf16.msra.mxu0 %v12118_v6  ;;  %v12219_v6 = vld [vmem:[%s17963_s2 + $0x12c] ss:$16 sps:$4 sm:$0xff]  }
 0x115   : > { %3058 = vmatpush2.bf16.msra.mxu1 %v12121_v7  ;;  %3070 = vmatprep.subr.bf16.mxu0 %v12132_v8  ;;  %v12214_v7 = vld [vmem:[%s17963_s2 + $0x920] ss:$16 sps:$4 sm:$0xff]   ;;  %v12217_v8 = vld [vmem:[%s17963_s2 + $0x128] ss:$16 sps:$4 sm:$0xff]  }
 0x116   : > { %3113 = vmatprep.subr.bf16.mxu1 %v12135_v9  ;;  %v12222_v9 = vld [vmem:[%s17963_s2 + $0x904] ss:$16 sps:$4 sm:$0xff]  }
 0x117   : > { %3017 = vmatmul.mubr.bf16.vlgmr.msra.gmra.mxu0 %v14667_v10 }
 0x118   : > { %3060 = vmatmul.mubr.bf16.vlgmr.msra.gmra.mxu1 %v12127_v11  ;;  %3071 = vmatpush1.bf16.msra.mxu0 %v12130_v12  ;;  %v12225_v11 = vld [vmem:[%s17963_s2 + $0x10c] ss:$16 sps:$4 sm:$0xff]   ;;  %v12220_v12 = vld [vmem:[%s17963_s2 + $0x900] ss:$16 sps:$4 sm:$0xff]  }
 0x119   : > { %3114 = vmatpush1.bf16.msra.mxu1 %v12133_v13  ;;  %3072 = vmatprep.subr.bf16.mxu0 %v12138_v14  ;;  %v12223_v13 = vld [vmem:[%s17963_s2 + $0x108] ss:$16 sps:$4 sm:$0xff]   ;;  %v12231_v14 = vld [vmem:[%s17963_s2 + $0x2ec] ss:$16 sps:$4 sm:$0xff]  }
 0x11a   : > { %3115 = vmatprep.subr.bf16.mxu1 %v12141_v15  ;;  %3145 = vmatprep.mubr.bf16.mxu1 %v14397_v49  ;;  %v12153_v49 = vld [vmem:[%s17963_s2 + $0x8c] ss:$16 sps:$4 sm:$0xff]  }
 0x11b   : > { %3102 = vmatprep.mubr.bf16.mxu0 %v14700_v20  ;;  %v12234_v15 = vld [vmem:[%s17963_s2 + $0x4ec] ss:$16 sps:$4 sm:$0xff]  }
 0x11c   : > { %3073 = vmatpush1.bf16.msra.mxu0 %v12136_v16  ;;  %v12226_v16 = vld [vmem:[%s17961_s0 + $0x20] ss:$40 sps:$4 sm:$0xff]  }
 0x11d   : > { %3116 = vmatpush1.bf16.msra.mxu1 %v12139_v17  ;;  %3074 = vmatprep.subr.bf16.mxu0 %v12144_v18  ;;  %v12229_v17 = vld [vmem:[%s17963_s2 + $0x2e8] ss:$16 sps:$4 sm:$0xff]  }
 0x11e   : > { %3117 = vmatprep.subr.bf16.mxu1 %v12147_v19  ;;  %v12232_v18 = vld [vmem:[%s17963_s2 + $0x4e8] ss:$16 sps:$4 sm:$0xff]   ;;  %v12237_v19 = vld [vmem:[%s17963_s2 + $0x2cc] ss:$16 sps:$4 sm:$0xff]  }
 0x120   : > { %3075 = vmatpush1.bf16.msra.mxu0 %v12142_v21  ;;  %v12240_v21 = vld [vmem:[%s17963_s2 + $0x4cc] ss:$16 sps:$4 sm:$0xff]  }
 0x121   : > { %3118 = vmatpush1.bf16.msra.mxu1 %v12145_v22  ;;  %3076 = vmatprep.subr.bf16.mxu0 %v12150_v23  ;;  %v12235_v22 = vld [vmem:[%s17963_s2 + $0x2c8] ss:$16 sps:$4 sm:$0xff]  }
 0x122   : > { %3119 = vmatprep.subr.bf16.mxu1 %v12153_v49  ;;  %v12238_v23 = vld [vmem:[%s17963_s2 + $0x4c8] ss:$16 sps:$4 sm:$0xff]   ;;  %v12243_v49 = vld [vmem:[%s17963_s2 + $0x2ac] ss:$16 sps:$4 sm:$0xff]  }
 0x124   : > { %3077 = vmatpush1.bf16.msra.mxu0 %v12148_v24  ;;  %v13330_v24 = vld [vmem:[%s17961_s0 + $0xc] ss:$40 sps:$4 sm:$0xff]  }
 0x125   : > { %3120 = vmatpush1.bf16.msra.mxu1 %v12151_v25  ;;  %3078 = vmatprep.subr.bf16.mxu0 %v12156_v26  ;;  %v12241_v25 = vld [vmem:[%s17963_s2 + $0x2a8] ss:$16 sps:$4 sm:$0xff]  }
 0x126   : > { %3121 = vmatprep.subr.bf16.mxu1 %v12159_v27  ;;  %v12244_v26 = vld [vmem:[%s17963_s2 + $0x4a8] ss:$16 sps:$4 sm:$0xff]   ;;  %v12249_v27 = vld [vmem:[%s17963_s2 + $0x28c] ss:$16 sps:$4 sm:$0xff]  }
 0x128   : > { %3079 = vmatpush1.bf16.msra.mxu0 %v12154_v28  ;;  %v12247_v28 = vld [vmem:[%s17963_s2 + $0x288] ss:$16 sps:$4 sm:$0xff]  }
 0x129   : > { %3122 = vmatpush1.bf16.msra.mxu1 %v12157_v29  ;;  %3080 = vmatprep.subr.bf16.mxu0 %v12162_v30  ;;  %v12250_v29 = vld [vmem:[%s17963_s2 + $0x488] ss:$16 sps:$4 sm:$0xff]   ;;  %v12255_v30 = vld [vmem:[%s17963_s2 + $0x26c] ss:$16 sps:$4 sm:$0xff]  }
 0x12a   : > { %3123 = vmatprep.subr.bf16.mxu1 %v12165_v31  ;;  %v12258_v31 = vld [vmem:[%s17963_s2 + $0x46c] ss:$16 sps:$4 sm:$0xff]  }
 0x12c   : > { %3081 = vmatpush1.bf16.msra.mxu0 %v12160_v32  ;;  %v12253_v32 = vld [vmem:[%s17963_s2 + $0x268] ss:$16 sps:$4 sm:$0xff]  }
 0x12d   : > { %3124 = vmatpush1.bf16.msra.mxu1 %v12163_v33  ;;  %3082 = vmatprep.subr.bf16.mxu0 %v12168_v35  ;;  %v12256_v33 = vld [vmem:[%s17963_s2 + $0x468] ss:$16 sps:$4 sm:$0xff]   ;;  %v12261_v35 = vld [vmem:[%s17963_s2 + $0x24c] ss:$16 sps:$4 sm:$0xff]  }
 0x12e   : > { %3125 = vmatprep.subr.bf16.mxu1 %v12171_v36  ;;  %v12264_v36 = vld [vmem:[%s17963_s2 + $0x44c] ss:$16 sps:$4 sm:$0xff]  }
 0x130   : > { %3083 = vmatpush1.bf16.msra.mxu0 %v12166_v37  ;;  %v12259_v37 = vld [vmem:[%s17963_s2 + $0x248] ss:$16 sps:$4 sm:$0xff]  }
 0x131   : > { %3126 = vmatpush1.bf16.msra.mxu1 %v12169_v38  ;;  %3084 = vmatprep.subr.bf16.mxu0 %v12174_v39  ;;  %v12262_v38 = vld [vmem:[%s17963_s2 + $0x448] ss:$16 sps:$4 sm:$0xff]   ;;  %v12267_v39 = vld [vmem:[%s17963_s2 + $0x22c] ss:$16 sps:$4 sm:$0xff]  }
 0x132   : > { %3127 = vmatprep.subr.bf16.mxu1 %v12177_v40  ;;  %v12270_v40 = vld [vmem:[%s17963_s2 + $0x42c] ss:$16 sps:$4 sm:$0xff]  }
 0x134   : > { %3085 = vmatpush1.bf16.msra.mxu0 %v12172_v41  ;;  %v12265_v41 = vld [vmem:[%s17963_s2 + $0x228] ss:$16 sps:$4 sm:$0xff]  }
 0x135   : > { %3128 = vmatpush1.bf16.msra.mxu1 %v12175_v42  ;;  %3086 = vmatprep.subr.bf16.mxu0 %v12180_v43  ;;  %v12268_v42 = vld [vmem:[%s17963_s2 + $0x428] ss:$16 sps:$4 sm:$0xff]   ;;  %v12273_v43 = vld [vmem:[%s17963_s2 + $0x20c] ss:$16 sps:$4 sm:$0xff]  }
 0x136   : > { %3129 = vmatprep.subr.bf16.mxu1 %v12183_v44  ;;  %v12276_v44 = vld [vmem:[%s17963_s2 + $0x40c] ss:$16 sps:$4 sm:$0xff]  }
 0x138   : > { %3087 = vmatpush2.bf16.msra.mxu0 %v12178_v45  ;;  %v12271_v45 = vld [vmem:[%s17963_s2 + $0x208] ss:$16 sps:$4 sm:$0xff]  }
 0x139   : > { %3130 = vmatpush2.bf16.msra.mxu1 %v12181_v46  ;;  %3088 = vmatprep.subr.bf16.mxu0 %v12186_v47  ;;  %v12274_v46 = vld [vmem:[%s17963_s2 + $0x408] ss:$16 sps:$4 sm:$0xff]   ;;  %v12279_v47 = vld [vmem:[%s17963_s2 + $0x3ec] ss:$16 sps:$4 sm:$0xff]  }
 0x13a   : > { %3131 = vmatprep.subr.bf16.mxu1 %v12189_v48  ;;  %v12282_v48 = vld [vmem:[%s17963_s2 + $0x5ec] ss:$16 sps:$4 sm:$0xff]  }
 0x13c   : > { %3089 = vmatpush2.bf16.msra.mxu0 %v12184_v50  ;;  %v12277_v50 = vld [vmem:[%s17963_s2 + $0x3e8] ss:$16 sps:$4 sm:$0xff]  }
 0x13d   : > { %3132 = vmatpush2.bf16.msra.mxu1 %v12187_v51  ;;  %3090 = vmatprep.subr.bf16.mxu0 %v12192_v52  ;;  %v12280_v51 = vld [vmem:[%s17963_s2 + $0x5e8] ss:$16 sps:$4 sm:$0xff]   ;;  %v12285_v52 = vld [vmem:[%s17963_s2 + $0x3cc] ss:$16 sps:$4 sm:$0xff]  }
 0x13e   : > { %3133 = vmatprep.subr.bf16.mxu1 %v12195_v53  ;;  %v12288_v53 = vld [vmem:[%s17963_s2 + $0x5cc] ss:$16 sps:$4 sm:$0xff]  }
 0x140   : > { %3091 = vmatpush2.bf16.msra.mxu0 %v12190_v54  ;;  %v12283_v54 = vld [vmem:[%s17963_s2 + $0x3c8] ss:$16 sps:$4 sm:$0xff]  }
 0x141   : > { %3134 = vmatpush2.bf16.msra.mxu1 %v12193_v55  ;;  %3092 = vmatprep.subr.bf16.mxu0 %v12198_v56  ;;  %v12286_v55 = vld [vmem:[%s17963_s2 + $0x5c8] ss:$16 sps:$4 sm:$0xff]   ;;  %v12291_v56 = vld [vmem:[%s17963_s2 + $0x3ac] ss:$16 sps:$4 sm:$0xff]  }
 0x142   : > { %3135 = vmatprep.subr.bf16.mxu1 %v12201_v57  ;;  %v12294_v57 = vld [vmem:[%s17963_s2 + $0x5ac] ss:$16 sps:$4 sm:$0xff]  }
 0x144   : > { %3093 = vmatpush2.bf16.msra.mxu0 %v12196_v58  ;;  %v12289_v58 = vld [vmem:[%s17963_s2 + $0x3a8] ss:$16 sps:$4 sm:$0xff]  }
 0x145   : > { %3136 = vmatpush2.bf16.msra.mxu1 %v12199_v59  ;;  %3094 = vmatprep.subr.bf16.mxu0 %v12204_v60  ;;  %v12292_v59 = vld [vmem:[%s17963_s2 + $0x5a8] ss:$16 sps:$4 sm:$0xff]   ;;  %v12297_v60 = vld [vmem:[%s17963_s2 + $0x38c] ss:$16 sps:$4 sm:$0xff]  }
 0x146   : > { %3137 = vmatprep.subr.bf16.mxu1 %v12207_v61  ;;  %v12300_v61 = vld [vmem:[%s17963_s2 + $0x58c] ss:$16 sps:$4 sm:$0xff]  }
 0x148   : > { %3095 = vmatpush2.bf16.msra.mxu0 %v12202_v62  ;;  %v12295_v62 = vld [vmem:[%s17963_s2 + $0x388] ss:$16 sps:$4 sm:$0xff]  }
 0x149   : > { %3138 = vmatpush2.bf16.msra.mxu1 %v12205_v63  ;;  %3096 = vmatprep.subr.bf16.mxu0 %v12210_v0  ;;  %v12298_v63 = vld [vmem:[%s17963_s2 + $0x588] ss:$16 sps:$4 sm:$0xff]   ;;  %v12303_v0 = vld [vmem:[%s17963_s2 + $0x36c] ss:$16 sps:$4 sm:$0xff]  }
 0x14a   : > { %3139 = vmatprep.subr.bf16.mxu1 %v12213_v1  ;;  %v12306_v1 = vld [vmem:[%s17963_s2 + $0x56c] ss:$16 sps:$4 sm:$0xff]  }
 0x14c   : > { %3097 = vmatpush2.bf16.msra.mxu0 %v12208_v2  ;;  %v12301_v2 = vld [vmem:[%s17963_s2 + $0x368] ss:$16 sps:$4 sm:$0xff]  }
 0x14d   : > { %3140 = vmatpush2.bf16.msra.mxu1 %v12211_v3  ;;  %3098 = vmatprep.subr.bf16.mxu0 %v12216_v5  ;;  %v12304_v3 = vld [vmem:[%s17963_s2 + $0x568] ss:$16 sps:$4 sm:$0xff]   ;;  %v12309_v5 = vld [vmem:[%s17963_s2 + $0x34c] ss:$16 sps:$4 sm:$0xff]  }
 0x14e   : > { %3141 = vmatprep.subr.bf16.mxu1 %v12219_v6  ;;  %v12312_v6 = vld [vmem:[%s17963_s2 + $0x54c] ss:$16 sps:$4 sm:$0xff]  }
 0x150   : > { %3099 = vmatpush2.bf16.msra.mxu0 %v12214_v7  ;;  %v12307_v7 = vld [vmem:[%s17963_s2 + $0x348] ss:$16 sps:$4 sm:$0xff]  }
 0x151   : > { %3142 = vmatpush2.bf16.msra.mxu1 %v12217_v8  ;;  %3100 = vmatprep.subr.bf16.mxu0 %v12222_v9  ;;  %v12310_v8 = vld [vmem:[%s17963_s2 + $0x548] ss:$16 sps:$4 sm:$0xff]   ;;  %v12315_v9 = vld [vmem:[%s17963_s2 + $0x32c] ss:$16 sps:$4 sm:$0xff]  }
 0x152   : > { %3143 = vmatprep.subr.bf16.mxu1 %v12225_v11  ;;  %v12318_v11 = vld [vmem:[%s17963_s2 + $0x52c] ss:$16 sps:$4 sm:$0xff]  }
 0x154   : > { %3101 = vmatpush2.bf16.msra.mxu0 %v12220_v12  ;;  %v12313_v12 = vld [vmem:[%s17963_s2 + $0x328] ss:$16 sps:$4 sm:$0xff]  }
 0x155   : > { %3144 = vmatpush2.bf16.msra.mxu1 %v12223_v13  ;;  %3156 = vmatprep.subr.bf16.mxu0 %v12231_v14  ;;  %v12316_v13 = vld [vmem:[%s17963_s2 + $0x528] ss:$16 sps:$4 sm:$0xff]   ;;  %v12321_v14 = vld [vmem:[%s17963_s2 + $0x30c] ss:$16 sps:$4 sm:$0xff]  }
 0x156   : > { %3199 = vmatprep.subr.bf16.mxu1 %v12234_v15  ;;  %v12324_v15 = vld [vmem:[%s17963_s2 + $0x50c] ss:$16 sps:$4 sm:$0xff]  }
 0x157   : > { %3103 = vmatmul.mubr.bf16.vlgmr.msra.gmra.mxu0 %v12226_v16  ;;  %v12319_v16 = vld [vmem:[%s17963_s2 + $0x308] ss:$16 sps:$4 sm:$0xff]  }
 0x158   : > { %3146 = vmatmul.mubr.bf16.vlgmr.msra.gmra.mxu1 %v14457_v4  ;;  %3157 = vmatpush1.bf16.msra.mxu0 %v12229_v17  ;;  %v12246_v4 = vld [vmem:[%s17963_s2 + $0x4ac] ss:$16 sps:$4 sm:$0xff]   ;;  %v12322_v17 = vld [vmem:[%s17963_s2 + $0x508] ss:$16 sps:$4 sm:$0xff]  }
 0x159   : > { %3200 = vmatpush1.bf16.msra.mxu1 %v12232_v18  ;;  %3158 = vmatprep.subr.bf16.mxu0 %v12237_v19  ;;  %v12327_v18 = vld [vmem:[%s17963_s2 + $0x6ec] ss:$16 sps:$4 sm:$0xff]  }
 0x15a   : > { %3201 = vmatprep.subr.bf16.mxu1 %v12240_v21  ;;  %3188 = vmatprep.mubr.bf16.mxu0 %v13330_v24  ;;  %v12330_v19 = vld [vmem:[%s17963_s2 + $0x8ec] ss:$16 sps:$4 sm:$0xff]   ;;  %v12325_v21 = vld [vmem:[%s17963_s2 + $0x6e8] ss:$16 sps:$4 sm:$0xff]  }
 0x15b   : > { %3231 = vmatprep.mubr.bf16.mxu1 %v14550_v34  ;;  %v12252_v34 = vld [vmem:[%s17963_s2 + $0x48c] ss:$16 sps:$4 sm:$0xff]   ;;  %v12334_v24 = vld [vmem:[%s17963_s2 + $0x8c8] ss:$16 sps:$4 sm:$0xff]  }
 0x15c   : > { %3159 = vmatpush1.bf16.msra.mxu0 %v12235_v22  ;;  %v12328_v22 = vld [vmem:[%s17963_s2 + $0x8e8] ss:$16 sps:$4 sm:$0xff]  }
 0x15d   : > { %3202 = vmatpush1.bf16.msra.mxu1 %v12238_v23  ;;  %3160 = vmatprep.subr.bf16.mxu0 %v12243_v49  ;;  %v12333_v23 = vld [vmem:[%s17963_s2 + $0x6cc] ss:$16 sps:$4 sm:$0xff]  }
 0x15e   : > { %3203 = vmatprep.subr.bf16.mxu1 %v12246_v4  ;;  %v12336_v49 = vld [vmem:[%s17963_s2 + $0x8cc] ss:$16 sps:$4 sm:$0xff]   ;;  %v12331_v4 = vld [vmem:[%s17963_s2 + $0x6c8] ss:$16 sps:$4 sm:$0xff]  }
 0x160   : > { %3161 = vmatpush1.bf16.msra.mxu0 %v12241_v25  ;;  %v13331_v25 = vld [vmem:[%s17961_s0 + $0x8] ss:$40 sps:$4 sm:$0xff]  }
 0x161   : > { %3204 = vmatpush1.bf16.msra.mxu1 %v12244_v26  ;;  %3162 = vmatprep.subr.bf16.mxu0 %v12249_v27  ;;  %v12339_v26 = vld [vmem:[%s17963_s2 + $0x6ac] ss:$16 sps:$4 sm:$0xff]  }
 0x162   : > { %3205 = vmatprep.subr.bf16.mxu1 %v12252_v34  ;;  %v12342_v27 = vld [vmem:[%s17963_s2 + $0x8ac] ss:$16 sps:$4 sm:$0xff]   ;;  %v12337_v34 = vld [vmem:[%s17963_s2 + $0x6a8] ss:$16 sps:$4 sm:$0xff]  }
 0x164   : > { %3163 = vmatpush1.bf16.msra.mxu0 %v12247_v28  ;;  %v13332_v28 = vld [vmem:[%s17961_s0 + $0x1c] ss:$40 sps:$4 sm:$0xff]  }
 0x165   : > { %3206 = vmatpush1.bf16.msra.mxu1 %v12250_v29  ;;  %3164 = vmatprep.subr.bf16.mxu0 %v12255_v30  ;;  %v12345_v29 = vld [vmem:[%s17963_s2 + $0x68c] ss:$16 sps:$4 sm:$0xff]  }
 0x166   : > { %3207 = vmatprep.subr.bf16.mxu1 %v12258_v31  ;;  %v12348_v30 = vld [vmem:[%s17963_s2 + $0x88c] ss:$16 sps:$4 sm:$0xff]   ;;  %v12343_v31 = vld [vmem:[%s17963_s2 + $0x688] ss:$16 sps:$4 sm:$0xff]  }
 0x168   : > { %3165 = vmatpush1.bf16.msra.mxu0 %v12253_v32  ;;  %v12351_v32 = vld [vmem:[%s17963_s2 + $0x66c] ss:$16 sps:$4 sm:$0xff]  }
 0x169   : > { %3208 = vmatpush1.bf16.msra.mxu1 %v12256_v33  ;;  %3166 = vmatprep.subr.bf16.mxu0 %v12261_v35  ;;  %v12354_v33 = vld [vmem:[%s17963_s2 + $0x86c] ss:$16 sps:$4 sm:$0xff]   ;;  %v12349_v35 = vld [vmem:[%s17963_s2 + $0x668] ss:$16 sps:$4 sm:$0xff]  }
 0x16a   : > { %3209 = vmatprep.subr.bf16.mxu1 %v12264_v36  ;;  %v12352_v36 = vld [vmem:[%s17963_s2 + $0x868] ss:$16 sps:$4 sm:$0xff]  }
 0x16c   : > { %3167 = vmatpush1.bf16.msra.mxu0 %v12259_v37  ;;  %v12357_v37 = vld [vmem:[%s17963_s2 + $0x64c] ss:$16 sps:$4 sm:$0xff]  }
 0x16d   : > { %3210 = vmatpush1.bf16.msra.mxu1 %v12262_v38  ;;  %3168 = vmatprep.subr.bf16.mxu0 %v12267_v39  ;;  %v12360_v38 = vld [vmem:[%s17963_s2 + $0x84c] ss:$16 sps:$4 sm:$0xff]   ;;  %v12355_v39 = vld [vmem:[%s17963_s2 + $0x648] ss:$16 sps:$4 sm:$0xff]  }
 0x16e   : > { %3211 = vmatprep.subr.bf16.mxu1 %v12270_v40  ;;  %v12358_v40 = vld [vmem:[%s17963_s2 + $0x848] ss:$16 sps:$4 sm:$0xff]  }
 0x170   : > { %3169 = vmatpush1.bf16.msra.mxu0 %v12265_v41  ;;  %v12363_v41 = vld [vmem:[%s17963_s2 + $0x62c] ss:$16 sps:$4 sm:$0xff]  }
 0x171   : > { %3212 = vmatpush1.bf16.msra.mxu1 %v12268_v42  ;;  %3170 = vmatprep.subr.bf16.mxu0 %v12273_v43  ;;  %v12366_v42 = vld [vmem:[%s17963_s2 + $0x82c] ss:$16 sps:$4 sm:$0xff]   ;;  %v12361_v43 = vld [vmem:[%s17963_s2 + $0x628] ss:$16 sps:$4 sm:$0xff]  }
 0x172   : > { %3213 = vmatprep.subr.bf16.mxu1 %v12276_v44  ;;  %v12364_v44 = vld [vmem:[%s17963_s2 + $0x828] ss:$16 sps:$4 sm:$0xff]  }
 0x174   : > { %3171 = vmatpush1.bf16.msra.mxu0 %v12271_v45  ;;  %v12369_v45 = vld [vmem:[%s17963_s2 + $0x60c] ss:$16 sps:$4 sm:$0xff]  }
 0x175   : > { %3214 = vmatpush1.bf16.msra.mxu1 %v12274_v46  ;;  %3172 = vmatprep.subr.bf16.mxu0 %v12279_v47  ;;  %v12372_v46 = vld [vmem:[%s17963_s2 + $0x80c] ss:$16 sps:$4 sm:$0xff]   ;;  %v12367_v47 = vld [vmem:[%s17963_s2 + $0x608] ss:$16 sps:$4 sm:$0xff]  }
 0x176   : > { %3215 = vmatprep.subr.bf16.mxu1 %v12282_v48  ;;  %v12370_v48 = vld [vmem:[%s17963_s2 + $0x808] ss:$16 sps:$4 sm:$0xff]  }
 0x178   : > { %3173 = vmatpush2.bf16.msra.mxu0 %v12277_v50  ;;  %v12375_v50 = vld [vmem:[%s17963_s2 + $0x7ec] ss:$16 sps:$4 sm:$0xff]  }
 0x179   : > { %3216 = vmatpush2.bf16.msra.mxu1 %v12280_v51  ;;  %3174 = vmatprep.subr.bf16.mxu0 %v12285_v52  ;;  %v12378_v51 = vld [vmem:[%s17963_s2 + $0x9ec] ss:$16 sps:$4 sm:$0xff]   ;;  %v12373_v52 = vld [vmem:[%s17963_s2 + $0x7e8] ss:$16 sps:$4 sm:$0xff]  }
 0x17a   : > { %3217 = vmatprep.subr.bf16.mxu1 %v12288_v53  ;;  %v12376_v53 = vld [vmem:[%s17963_s2 + $0x9e8] ss:$16 sps:$4 sm:$0xff]  }
 0x17c   : > { %3175 = vmatpush2.bf16.msra.mxu0 %v12283_v54  ;;  %v12381_v54 = vld [vmem:[%s17963_s2 + $0x7cc] ss:$16 sps:$4 sm:$0xff]  }
 0x17d   : > { %3218 = vmatpush2.bf16.msra.mxu1 %v12286_v55  ;;  %3176 = vmatprep.subr.bf16.mxu0 %v12291_v56  ;;  %v12384_v55 = vld [vmem:[%s17963_s2 + $0x9cc] ss:$16 sps:$4 sm:$0xff]   ;;  %v12379_v56 = vld [vmem:[%s17963_s2 + $0x7c8] ss:$16 sps:$4 sm:$0xff]  }
 0x17e   : > { %3219 = vmatprep.subr.bf16.mxu1 %v12294_v57  ;;  %v12382_v57 = vld [vmem:[%s17963_s2 + $0x9c8] ss:$16 sps:$4 sm:$0xff]  }
 0x180   : > { %3177 = vmatpush2.bf16.msra.mxu0 %v12289_v58  ;;  %v12387_v58 = vld [vmem:[%s17963_s2 + $0x7ac] ss:$16 sps:$4 sm:$0xff]  }
 0x181   : > { %3220 = vmatpush2.bf16.msra.mxu1 %v12292_v59  ;;  %3178 = vmatprep.subr.bf16.mxu0 %v12297_v60  ;;  %v12390_v59 = vld [vmem:[%s17963_s2 + $0x9ac] ss:$16 sps:$4 sm:$0xff]   ;;  %v12385_v60 = vld [vmem:[%s17963_s2 + $0x7a8] ss:$16 sps:$4 sm:$0xff]  }
 0x182   : > { %3221 = vmatprep.subr.bf16.mxu1 %v12300_v61  ;;  %v12388_v61 = vld [vmem:[%s17963_s2 + $0x9a8] ss:$16 sps:$4 sm:$0xff]  }
 0x184   : > { %3179 = vmatpush2.bf16.msra.mxu0 %v12295_v62  ;;  %v12393_v62 = vld [vmem:[%s17963_s2 + $0x78c] ss:$16 sps:$4 sm:$0xff]  }
 0x185   : > { %3222 = vmatpush2.bf16.msra.mxu1 %v12298_v63  ;;  %3180 = vmatprep.subr.bf16.mxu0 %v12303_v0  ;;  %v12396_v63 = vld [vmem:[%s17963_s2 + $0x98c] ss:$16 sps:$4 sm:$0xff]   ;;  %v12391_v0 = vld [vmem:[%s17963_s2 + $0x788] ss:$16 sps:$4 sm:$0xff]  }
 0x186   : > { %3223 = vmatprep.subr.bf16.mxu1 %v12306_v1  ;;  %v12394_v1 = vld [vmem:[%s17963_s2 + $0x988] ss:$16 sps:$4 sm:$0xff]  }
 0x188   : > { %3181 = vmatpush2.bf16.msra.mxu0 %v12301_v2  ;;  %v12399_v2 = vld [vmem:[%s17963_s2 + $0x76c] ss:$16 sps:$4 sm:$0xff]  }
 0x189   : > { %3224 = vmatpush2.bf16.msra.mxu1 %v12304_v3  ;;  %3182 = vmatprep.subr.bf16.mxu0 %v12309_v5  ;;  %v12402_v3 = vld [vmem:[%s17963_s2 + $0x96c] ss:$16 sps:$4 sm:$0xff]   ;;  %v12397_v5 = vld [vmem:[%s17963_s2 + $0x768] ss:$16 sps:$4 sm:$0xff]  }
 0x18a   : > { %3225 = vmatprep.subr.bf16.mxu1 %v12312_v6  ;;  %v12400_v6 = vld [vmem:[%s17963_s2 + $0x968] ss:$16 sps:$4 sm:$0xff]  }
 0x18c   : > { %3183 = vmatpush2.bf16.msra.mxu0 %v12307_v7  ;;  %v12405_v7 = vld [vmem:[%s17963_s2 + $0x74c] ss:$16 sps:$4 sm:$0xff]  }
 0x18d   : > { %3226 = vmatpush2.bf16.msra.mxu1 %v12310_v8  ;;  %3184 = vmatprep.subr.bf16.mxu0 %v12315_v9  ;;  %v12408_v8 = vld [vmem:[%s17963_s2 + $0x94c] ss:$16 sps:$4 sm:$0xff]   ;;  %v12403_v9 = vld [vmem:[%s17963_s2 + $0x748] ss:$16 sps:$4 sm:$0xff]  }
 0x18e   : > { %3227 = vmatprep.subr.bf16.mxu1 %v12318_v11  ;;  %v12406_v11 = vld [vmem:[%s17963_s2 + $0x948] ss:$16 sps:$4 sm:$0xff]  }
 0x190   : > { %3185 = vmatpush2.bf16.msra.mxu0 %v12313_v12  ;;  %v12411_v12 = vld [vmem:[%s17963_s2 + $0x72c] ss:$16 sps:$4 sm:$0xff]  }
 0x191   : > { %3228 = vmatpush2.bf16.msra.mxu1 %v12316_v13  ;;  %3186 = vmatprep.subr.bf16.mxu0 %v12321_v14  ;;  %v12414_v13 = vld [vmem:[%s17963_s2 + $0x92c] ss:$16 sps:$4 sm:$0xff]   ;;  %v12409_v14 = vld [vmem:[%s17963_s2 + $0x728] ss:$16 sps:$4 sm:$0xff]  }
 0x192   : > { %3229 = vmatprep.subr.bf16.mxu1 %v12324_v15  ;;  %v12412_v15 = vld [vmem:[%s17963_s2 + $0x928] ss:$16 sps:$4 sm:$0xff]  }
 0x194   : > { %3187 = vmatpush2.bf16.msra.mxu0 %v12319_v16  ;;  %v12417_v16 = vld [vmem:[%s17963_s2 + $0x70c] ss:$16 sps:$4 sm:$0xff]  }
 0x195   : > { %3230 = vmatpush2.bf16.msra.mxu1 %v12322_v17  ;;  %3242 = vmatprep.subr.bf16.mxu0 %v12327_v18  ;;  %v12420_v17 = vld [vmem:[%s17963_s2 + $0x90c] ss:$16 sps:$4 sm:$0xff]   ;;  %v12415_v18 = vld [vmem:[%s17963_s2 + $0x708] ss:$16 sps:$4 sm:$0xff]  }
 0x196   : > { %3285 = vmatprep.subr.bf16.mxu1 %v12330_v19  ;;  %v12418_v19 = vld [vmem:[%s17963_s2 + $0x908] ss:$16 sps:$4 sm:$0xff]  }
 0x197   : > { %3189 = vmatmul.mubr.bf16.vlgmr.msra.gmra.mxu0 %v13331_v25  ;;  %v12429_v25 = vld [vmem:[%s17965_s4 + $0xa4] ss:$16 sps:$4 sm:$0xff]  }
 0x198   : > { %3232 = vmatmul.mubr.bf16.vlgmr.msra.gmra.mxu1 %v14667_v10  ;;  %3243 = vmatpush1.bf16.msra.mxu0 %v12325_v21  ;;  %v12340_v10 = vld [vmem:[%s17963_s2 + $0x8a8] ss:$16 sps:$4 sm:$0xff]   ;;  %v12423_v21 = vld [vmem:[%s17965_s4 + $0xe4] ss:$16 sps:$4 sm:$0xff]  }
 0x199   : > { %3286 = vmatpush1.bf16.msra.mxu1 %v12328_v22  ;;  %3244 = vmatprep.subr.bf16.mxu0 %v12333_v23  ;;  %v12421_v22 = vld [vmem:[%s17965_s4 + $0xe0] ss:$16 sps:$4 sm:$0xff]   ;;  %v12426_v23 = vld [vmem:[%s17965_s4 + $0xc4] ss:$16 sps:$4 sm:$0xff]  }
 0x19a   : > { %3287 = vmatprep.subr.bf16.mxu1 %v12336_v49  ;;  %3274 = vmatprep.mubr.bf16.mxu0 %v13332_v28  ;;  %v13333_v49 = vld [vmem:[%s17961_s0 + $0x18] ss:$40 sps:$4 sm:$0xff]  }
 0x19b   : > { %3317 = vmatprep.mubr.bf16.mxu1 %v14700_v20  ;;  %v12346_v20 = vld [vmem:[%s17963_s2 + $0x888] ss:$16 sps:$4 sm:$0xff]   ;;  %v12433_v28 = vld [vmem:[%s17965_s4 + $0x60] ss:$16 sps:$4 sm:$0xff]  }
 0x19c   : > { %3245 = vmatpush1.bf16.msra.mxu0 %v12331_v4  ;;  %v13334_v4 = vld [vmem:[%s17961_s0 + $0x20] ss:$40 sps:$4 sm:$0xff]  }
 0x19d   : > { %3288 = vmatpush1.bf16.msra.mxu1 %v12334_v24  ;;  %3246 = vmatprep.subr.bf16.mxu0 %v12339_v26  ;;  %v12424_v24 = vld [vmem:[%s17965_s4 + $0xc0] ss:$16 sps:$4 sm:$0xff]  }
 0x19e   : > { %3289 = vmatprep.subr.bf16.mxu1 %v12342_v27  ;;  %v12427_v26 = vld [vmem:[%s17965_s4 + $0xa0] ss:$16 sps:$4 sm:$0xff]   ;;  %v12432_v27 = vld [vmem:[%s17965_s4 + $0x84] ss:$16 sps:$4 sm:$0xff]  }
 0x1a0   : > { %3247 = vmatpush1.bf16.msra.mxu0 %v12337_v34  ;;  %v12430_v34 = vld [vmem:[%s17965_s4 + $0x80] ss:$16 sps:$4 sm:$0xff]  }
 0x1a1   : > { %3290 = vmatpush1.bf16.msra.mxu1 %v12340_v10  ;;  %3248 = vmatprep.subr.bf16.mxu0 %v12345_v29  ;;  %v12435_v10 = vld [vmem:[%s17965_s4 + $0x64] ss:$16 sps:$4 sm:$0xff]  }
 0x1a2   : > { %3291 = vmatprep.subr.bf16.mxu1 %v12348_v30  ;;  %v12438_v29 = vld [vmem:[%s17965_s4 + $0x44] ss:$16 sps:$4 sm:$0xff]   ;;  %v12517_v30 = vld [vmem:[%s17965_s4 + $0x2e0] ss:$16 sps:$4 sm:$0xff]  }
 0x1a4   : > { %3249 = vmatpush1.bf16.msra.mxu0 %v12343_v31  ;;  %v12519_v31 = vld [vmem:[%s17965_s4 + $0x2e4] ss:$16 sps:$4 sm:$0xff]  }
 0x1a5   : > { %3292 = vmatpush1.bf16.msra.mxu1 %v12346_v20  ;;  %3250 = vmatprep.subr.bf16.mxu0 %v12351_v32  ;;  %v12522_v20 = vld [vmem:[%s17965_s4 + $0x2c4] ss:$16 sps:$4 sm:$0xff]   ;;  %v12436_v32 = vld [vmem:[%s17965_s4 + $0x40] ss:$16 sps:$4 sm:$0xff]  }
 0x1a6   : > { %3293 = vmatprep.subr.bf16.mxu1 %v12354_v33  ;;  %v12520_v33 = vld [vmem:[%s17965_s4 + $0x2c0] ss:$16 sps:$4 sm:$0xff]  }
 0x1a8   : > { %3251 = vmatpush1.bf16.msra.mxu0 %v12349_v35  ;;  %v12441_v35 = vld [vmem:[%s17965_s4 + $0x24] ss:$16 sps:$4 sm:$0xff]  }
 0x1a9   : > { %3294 = vmatpush1.bf16.msra.mxu1 %v12352_v36  ;;  %3252 = vmatprep.subr.bf16.mxu0 %v12357_v37  ;;  %v12525_v36 = vld [vmem:[%s17965_s4 + $0x2a4] ss:$16 sps:$4 sm:$0xff]   ;;  %v12439_v37 = vld [vmem:[%s17965_s4 + $0x20] ss:$16 sps:$4 sm:$0xff]  }
 0x1aa   : > { %3295 = vmatprep.subr.bf16.mxu1 %v12360_v38  ;;  %v12523_v38 = vld [vmem:[%s17965_s4 + $0x2a0] ss:$16 sps:$4 sm:$0xff]  }
 0x1ac   : > { %3253 = vmatpush1.bf16.msra.mxu0 %v12355_v39  ;;  %v12444_v39 = vld [vmem:[%s17965_s4 + $0x4] ss:$16 sps:$4 sm:$0xff]  }
 0x1ad   : > { %3296 = vmatpush1.bf16.msra.mxu1 %v12358_v40  ;;  %3254 = vmatprep.subr.bf16.mxu0 %v12363_v41  ;;  %v12528_v40 = vld [vmem:[%s17965_s4 + $0x284] ss:$16 sps:$4 sm:$0xff]   ;;  %v12442_v41 = vld [vmem:[%s17965_s4] ss:$16 sps:$4 sm:$0xff]  }
 0x1ae   : > { %3297 = vmatprep.subr.bf16.mxu1 %v12366_v42  ;;  %v12526_v42 = vld [vmem:[%s17965_s4 + $0x280] ss:$16 sps:$4 sm:$0xff]  }
 0x1b0   : > { %3255 = vmatpush1.bf16.msra.mxu0 %v12361_v43  ;;  %v12447_v43 = vld [vmem:[%s17965_s4 + $0x1e4] ss:$16 sps:$4 sm:$0xff]  }
 0x1b1   : > { %3298 = vmatpush1.bf16.msra.mxu1 %v12364_v44  ;;  %3256 = vmatprep.subr.bf16.mxu0 %v12369_v45  ;;  %v12531_v44 = vld [vmem:[%s17965_s4 + $0x264] ss:$16 sps:$4 sm:$0xff]   ;;  %v12445_v45 = vld [vmem:[%s17965_s4 + $0x1e0] ss:$16 sps:$4 sm:$0xff]  }
 0x1b2   : > { %3299 = vmatprep.subr.bf16.mxu1 %v12372_v46  ;;  %v12529_v46 = vld [vmem:[%s17965_s4 + $0x260] ss:$16 sps:$4 sm:$0xff]  }
 0x1b4   : > { %3257 = vmatpush1.bf16.msra.mxu0 %v12367_v47  ;;  %v12450_v47 = vld [vmem:[%s17965_s4 + $0x1c4] ss:$16 sps:$4 sm:$0xff]  }
 0x1b5   : > { %3300 = vmatpush1.bf16.msra.mxu1 %v12370_v48  ;;  %3258 = vmatprep.subr.bf16.mxu0 %v12375_v50  ;;  %v12534_v48 = vld [vmem:[%s17965_s4 + $0x244] ss:$16 sps:$4 sm:$0xff]   ;;  %v12448_v50 = vld [vmem:[%s17965_s4 + $0x1c0] ss:$16 sps:$4 sm:$0xff]  }
 0x1b6   : > { %3301 = vmatprep.subr.bf16.mxu1 %v12378_v51  ;;  %v12532_v51 = vld [vmem:[%s17965_s4 + $0x240] ss:$16 sps:$4 sm:$0xff]  }
 0x1b8   : > { %3259 = vmatpush2.bf16.msra.mxu0 %v12373_v52  ;;  %v12453_v52 = vld [vmem:[%s17965_s4 + $0x1a4] ss:$16 sps:$4 sm:$0xff]  }
 0x1b9   : > { %3302 = vmatpush2.bf16.msra.mxu1 %v12376_v53  ;;  %3260 = vmatprep.subr.bf16.mxu0 %v12381_v54  ;;  %v12537_v53 = vld [vmem:[%s17965_s4 + $0x224] ss:$16 sps:$4 sm:$0xff]   ;;  %v12451_v54 = vld [vmem:[%s17965_s4 + $0x1a0] ss:$16 sps:$4 sm:$0xff]  }
 0x1ba   : > { %3303 = vmatprep.subr.bf16.mxu1 %v12384_v55  ;;  %v12535_v55 = vld [vmem:[%s17965_s4 + $0x220] ss:$16 sps:$4 sm:$0xff]  }
 0x1bc   : > { %3261 = vmatpush2.bf16.msra.mxu0 %v12379_v56  ;;  %v15380_v56 = vpop.f32.mrf.mxu0 }
 0x1bd   : > { %3304 = vmatpush2.bf16.msra.mxu1 %v12382_v57  ;;  %3262 = vmatprep.subr.bf16.mxu0 %v12387_v58  ;;  %v12456_v57 = vld [vmem:[%s17965_s4 + $0x184] ss:$16 sps:$4 sm:$0xff]  }
 0x1be   : > { %3305 = vmatprep.subr.bf16.mxu1 %v12390_v59  ;;  %v12540_v58 = vld [vmem:[%s17965_s4 + $0x204] ss:$16 sps:$4 sm:$0xff]   ;;  %v12454_v59 = vld [vmem:[%s17965_s4 + $0x180] ss:$16 sps:$4 sm:$0xff]  }
 0x1c0   : > { %3263 = vmatpush2.bf16.msra.mxu0 %v12385_v60  ;;  %v12538_v60 = vld [vmem:[%s17965_s4 + $0x200] ss:$16 sps:$4 sm:$0xff]  }
 0x1c1   : > { %3306 = vmatpush2.bf16.msra.mxu1 %v12388_v61  ;;  %3264 = vmatprep.subr.bf16.mxu0 %v12393_v62  ;;  %v2934_v61 = vpop.f32.mrf.mxu0  ;;  %v12459_v62 = vld [vmem:[%s17965_s4 + $0x164] ss:$16 sps:$4 sm:$0xff]  }
 0x1c2   : > { %3307 = vmatprep.subr.bf16.mxu1 %v12396_v63  ;;  %v12543_v63 = vld [vmem:[%s17965_s4 + $0x3e4] ss:$16 sps:$4 sm:$0xff]  }
 0x1c4   : > { %3265 = vmatpush2.bf16.msra.mxu0 %v12391_v0  ;;  %v1228_v0 = vlaneseq }
 0x1c5   : > { %3308 = vmatpush2.bf16.msra.mxu1 %v12394_v1  ;;  %3266 = vmatprep.subr.bf16.mxu0 %v12399_v2  ;;  %v2975_v1 = vpop.f32.mrf.mxu1  ;;  %v12457_v2 = vld [vmem:[%s17965_s4 + $0x160] ss:$16 sps:$4 sm:$0xff]  }
 0x1c6   : > { %3309 = vmatprep.subr.bf16.mxu1 %v12402_v3  ;;  %v12541_v3 = vld [vmem:[%s17965_s4 + $0x3e0] ss:$16 sps:$4 sm:$0xff]  }
 0x1c8   : > { %3267 = vmatpush2.bf16.msra.mxu0 %v12397_v5  ;;  %v2936_v5 = vpop.f32.mrf.mxu0 }
 0x1c9   : > { %3310 = vmatpush2.bf16.msra.mxu1 %v12400_v6  ;;  %3268 = vmatprep.subr.bf16.mxu0 %v12405_v7  ;;  %v12462_v6 = vld [vmem:[%s17965_s4 + $0x144] ss:$16 sps:$4 sm:$0xff]  }
 0x1ca   : > { %3311 = vmatprep.subr.bf16.mxu1 %v12408_v8  ;;  %v12546_v7 = vld [vmem:[%s17965_s4 + $0x3c4] ss:$16 sps:$4 sm:$0xff]   ;;  %v15412_v8 = vshrl.u32 %v1228_v0, 7 }
 0x1cc   : > { %3269 = vmatpush2.bf16.msra.mxu0 %v12403_v9  ;;  %v2977_v9 = vpop.f32.mrf.mxu1 }
 0x1cd   : > { %3312 = vmatpush2.bf16.msra.mxu1 %v12406_v11  ;;  %3270 = vmatprep.subr.bf16.mxu0 %v12411_v12  ;;  %v12460_v11 = vld [vmem:[%s17965_s4 + $0x140] ss:$16 sps:$4 sm:$0xff]  }
 0x1ce   : > { %3313 = vmatprep.subr.bf16.mxu1 %v12414_v13  ;;  %v12544_v12 = vld [vmem:[%s17965_s4 + $0x3c0] ss:$16 sps:$4 sm:$0xff]  }
 0x1cf   : > { %v15423_v13 = vld [vmem:[%s17964_s3] sm:$0xf] }
 0x1d0   : > { %3271 = vmatpush2.bf16.msra.mxu0 %v12409_v14  ;;  %v2938_v14 = vpop.f32.mrf.mxu0 }
 0x1d1   : > { %3314 = vmatpush2.bf16.msra.mxu1 %v12412_v15  ;;  %3272 = vmatprep.subr.bf16.mxu0 %v12417_v16  ;;  %v12465_v15 = vld [vmem:[%s17965_s4 + $0x124] ss:$16 sps:$4 sm:$0xff]  }
 0x1d2   : > { %3315 = vmatprep.subr.bf16.mxu1 %v12420_v17  ;;  %v12549_v16 = vld [vmem:[%s17965_s4 + $0x3a4] ss:$16 sps:$4 sm:$0xff]   ;;  %v15432_v17 = vsub.s32 1, %v15412_v8 }
 0x1d4   : > { %3273 = vmatpush2.bf16.msra.mxu0 %v12415_v18  ;;  %v15435_v18 = vsub.s32 0, %v15412_v8 }
 0x1d5   : > { %3316 = vmatpush2.bf16.msra.mxu1 %v12418_v19  ;;  %4130 = vmatprep.subr.bf16.mxu0 %v12423_v21  ;;  %v2979_v19 = vpop.f32.mrf.mxu1 }
 0x1d6   : > { %4173 = vmatprep.subr.bf16.mxu1 %v12519_v31 }
 0x1d7   : > { %3275 = vmatmul.mubr.bf16.vlgmr.msra.gmra.mxu0 %v13333_v49  ;;  %v3018_v21 = vpop.f32.mrf.mxu0  ;;  %v12468_v49 = vld [vmem:[%s17965_s4 + $0x104] ss:$16 sps:$4 sm:$0xff]  }
 0x1d8   : > { %3318 = vmatmul.mubr.bf16.vlgmr.msra.gmra.mxu1 %v13334_v4  ;;  %4131 = vmatpush1.bf16.msra.mxu0 %v12421_v22  ;;  %v12463_v22 = vld [vmem:[%s17965_s4 + $0x120] ss:$16 sps:$4 sm:$0xff]   ;;  %v12552_v4 = vld [vmem:[%s17965_s4 + $0x384] ss:$16 sps:$4 sm:$0xff]  }
 0x1d9   : > { %4132 = vmatprep.subr.bf16.mxu0 %v12426_v23  ;;  %4174 = vmatpush1.bf16.msra.mxu1 %v12517_v30  ;;  %v12547_v23 = vld [vmem:[%s17965_s4 + $0x3a0] ss:$16 sps:$4 sm:$0xff]   ;;  %v12555_v30 = vld [vmem:[%s17965_s4 + $0x364] ss:$16 sps:$4 sm:$0xff]  }
 0x1da   : > { %4175 = vmatprep.subr.bf16.mxu1 %v12522_v20 }
 0x1dc   : > { %4133 = vmatpush1.bf16.msra.mxu0 %v12424_v24  ;;  %v1235_v24 = vrot.slane %v15423_v13, %v15432_v17 }
 0x1dd   : > { %4134 = vmatprep.subr.bf16.mxu0 %v12429_v25  ;;  %4176 = vmatpush1.bf16.msra.mxu1 %v12520_v33  ;;  %v1231_v25 = vrot.slane %v15423_v13, %v15435_v18 }
 0x1de   : > { %4177 = vmatprep.subr.bf16.mxu1 %v12525_v36  ;;  %v2935_v31 = vadd.f32 %v2934_v61, %v1235_v24  ;;  %v12553_v36 = vld [vmem:[%s17965_s4 + $0x360] ss:$16 sps:$4 sm:$0xff]  }
 0x1df   : > { %v2937_v20 = vadd.f32 %v2936_v5, %v1231_v25 }
 0x1e0   : > { %4135 = vmatpush1.bf16.msra.mxu0 %v12427_v26  ;;  %v2981_v26 = vpop.f32.mrf.mxu1 }
 0x1e1   : > { %4136 = vmatprep.subr.bf16.mxu0 %v12432_v27  ;;  %4178 = vmatpush1.bf16.msra.mxu1 %v12523_v38  ;;  %v3020_v27 = vpop.f32.mrf.mxu0  ;;  %v2978_v38 = vadd.f32 %v2977_v9, %v2935_v31  ;;  %v12474_v9 = vld [vmem:[%s17965_s4 + $0xcc] ss:$16 sps:$4 sm:$0xff]  }
 0x1e2   : > { %4179 = vmatprep.subr.bf16.mxu1 %v12528_v40  ;;  %v12498_v31 = vld [vmem:[%s17965_s4 + $0x1cc] ss:$16 sps:$4 sm:$0xff]  }
 0x1e3   : > { %v3022_v33 = vpop.f32.mrf.mxu0 }
 0x1e4   : > { %4137 = vmatpush1.bf16.msra.mxu0 %v12430_v34  ;;  %v12466_v34 = vld [vmem:[%s17965_s4 + $0x100] ss:$16 sps:$4 sm:$0xff]  }
 0x1e5   : > { %4138 = vmatprep.subr.bf16.mxu0 %v12435_v10  ;;  %4180 = vmatpush1.bf16.msra.mxu1 %v12526_v42  ;;  %v12550_v10 = vld [vmem:[%s17965_s4 + $0x380] ss:$16 sps:$4 sm:$0xff]  }
 0x1e6   : > { %4181 = vmatprep.subr.bf16.mxu1 %v12531_v44 }
 0x1e8   : > { %4139 = vmatpush1.bf16.msra.mxu0 %v12433_v28  ;;  %v3061_v28 = vpop.f32.mrf.mxu1 }
 0x1e9   : > { %4140 = vmatprep.subr.bf16.mxu0 %v12438_v29  ;;  %4182 = vmatpush1.bf16.msra.mxu1 %v12529_v46  ;;  %v12471_v29 = vld [vmem:[%s17965_s4 + $0xec] ss:$16 sps:$4 sm:$0xff]  }
 0x1ea   : > { %4183 = vmatprep.subr.bf16.mxu1 %v12534_v48 }
 0x1ec   : > { %4141 = vmatpush1.bf16.msra.mxu0 %v12436_v32  ;;  %v2933_v32 = vadd.f32 %v15380_v56, %v1231_v25  ;;  %v12486_v25 = vld [vmem:[%s17965_s4 + $0x4c] ss:$16 sps:$4 sm:$0xff]  }
 0x1ed   : > { %4142 = vmatprep.subr.bf16.mxu0 %v12441_v35  ;;  %4184 = vmatpush1.bf16.msra.mxu1 %v12532_v51  ;;  %v2939_v35 = vadd.f32 %v2938_v14, %v1235_v24  ;;  %v12558_v51 = vld [vmem:[%s17965_s4 + $0x344] ss:$16 sps:$4 sm:$0xff]   ;;  %v12562_v14 = vld [vmem:[%s17965_s4 + $0x300] ss:$16 sps:$4 sm:$0xff]   ;;  %v12481_v24 = vld [vmem:[%s17965_s4 + $0x68] ss:$16 sps:$4 sm:$0xff]  }
 0x1ee   : > { %4185 = vmatprep.subr.bf16.mxu1 %v12537_v53  ;;  %v2976_v40 = vadd.f32 %v2975_v1, %v2933_v32  ;;  %v12559_v1 = vld [vmem:[%s17965_s4 + $0x320] ss:$16 sps:$4 sm:$0xff]   ;;  %v12501_v32 = vld [vmem:[%s17965_s4 + $0x1ac] ss:$16 sps:$4 sm:$0xff]  }
 0x1ef   : > { %v2982_v42 = vadd.f32 %v2981_v26, %v2939_v35  ;;  %v12484_v26 = vld [vmem:[%s17965_s4 + $0x48] ss:$16 sps:$4 sm:$0xff]   ;;  %v12504_v35 = vld [vmem:[%s17965_s4 + $0x18c] ss:$16 sps:$4 sm:$0xff]  }
 0x1f0   : > { %4143 = vmatpush1.bf16.msra.mxu0 %v12439_v37  ;;  %v3063_v37 = vpop.f32.mrf.mxu1 }
 0x1f1   : > { %4144 = vmatprep.subr.bf16.mxu0 %v12444_v39  ;;  %4186 = vmatpush1.bf16.msra.mxu1 %v12535_v55  ;;  %v2980_v39 = vadd.f32 %v2979_v19, %v2937_v20  ;;  %v12472_v19 = vld [vmem:[%s17965_s4 + $0xc8] ss:$16 sps:$4 sm:$0xff]  }
 0x1f2   : > { %4187 = vmatprep.subr.bf16.mxu1 %v12540_v58  ;;  %v3065_v46 = vpop.f32.mrf.mxu1  ;;  %v12496_v20 = vld [vmem:[%s17965_s4 + $0x1c8] ss:$16 sps:$4 sm:$0xff]  }
 0x1f3   : > { %v3023_v44 = vadd.f32 %v3022_v33, %v2980_v39  ;;  %v12499_v33 = vld [vmem:[%s17965_s4 + $0x1a8] ss:$16 sps:$4 sm:$0xff]   ;;  %v12510_v39 = vld [vmem:[%s17965_s4 + $0x14c] ss:$16 sps:$4 sm:$0xff]  }
 0x1f4   : > { %4145 = vmatpush1.bf16.msra.mxu0 %v12442_v41  ;;  %v3024_v41 = vpop.f32.mrf.mxu0  ;;  %v3067_v56 = vpop.f32.mrf.mxu1 }
 0x1f5   : > { %4146 = vmatprep.subr.bf16.mxu0 %v12447_v43  ;;  %4188 = vmatpush1.bf16.msra.mxu1 %v12538_v60  ;;  %v3021_v43 = vadd.f32 %v3020_v27, %v2978_v38  ;;  %v3025_v48 = vadd.f32 %v3024_v41, %v2982_v42  ;;  %v3066_v53 = vadd.f32 %v3065_v46, %v3023_v44  ;;  %v12489_v27 = vld [vmem:[%s17965_s4 + $0x2c] ss:$16 sps:$4 sm:$0xff]   ;;  %v12505_v38 = vld [vmem:[%s17965_s4 + $0x168] ss:$16 sps:$4 sm:$0xff]   ;;  %v12568_v46 = vld [vmem:[%s17967_s6 + $0xe0] ss:$16 sps:$4 sm:$0xff]  }
 0x1f6   : > { %4189 = vmatprep.subr.bf16.mxu1 %v12543_v63  ;;  %v12561_v63 = vld [vmem:[%s17965_s4 + $0x324] ss:$16 sps:$4 sm:$0xff]   ;;  %v12513_v41 = vld [vmem:[%s17965_s4 + $0x12c] ss:$16 sps:$4 sm:$0xff]   ;;  %v12511_v42 = vld [vmem:[%s17965_s4 + $0x128] ss:$16 sps:$4 sm:$0xff]  }
 0x1f7   : > { %v3068_v58 = vadd.f32 %v3067_v56, %v3025_v48  ;;  %v12514_v44 = vld [vmem:[%s17965_s4 + $0x108] ss:$16 sps:$4 sm:$0xff]   ;;  %v12574_v48 = vld [vmem:[%s17967_s6 + $0xc0] ss:$16 sps:$4 sm:$0xff]  }
 0x1f8   : > { %4147 = vmatpush2.bf16.msra.mxu0 %v12445_v45  ;;  %v3019_v45 = vadd.f32 %v3018_v21, %v2976_v40  ;;  %v12477_v21 = vld [vmem:[%s17965_s4 + $0xac] ss:$16 sps:$4 sm:$0xff]   ;;  %v12508_v40 = vld [vmem:[%s17965_s4 + $0x148] ss:$16 sps:$4 sm:$0xff]   ;;  %v12592_v56 = vld [vmem:[%s17967_s6 + $0x60] ss:$16 sps:$4 sm:$0xff]  }
 0x1f9   : > { %4148 = vmatprep.subr.bf16.mxu0 %v12450_v47  ;;  %4190 = vmatpush2.bf16.msra.mxu1 %v12541_v3 }
 0x1fa   : > { %4191 = vmatprep.subr.bf16.mxu1 %v12546_v7  ;;  %v3062_v55 = vadd.f32 %v3061_v28, %v3019_v45  ;;  %v12490_v28 = vld [vmem:[%s17965_s4 + $0x8] ss:$16 sps:$4 sm:$0xff]   ;;  %v12570_v45 = vld [vmem:[%s17967_s6 + $0xe4] ss:$16 sps:$4 sm:$0xff]  }
 0x1fc   : > { %4149 = vmatpush2.bf16.msra.mxu0 %v12448_v50 }
 0x1fd   : > { %4150 = vmatprep.subr.bf16.mxu0 %v12453_v52  ;;  %4192 = vmatpush2.bf16.msra.mxu1 %v12544_v12  ;;  %v3064_v52 = vadd.f32 %v3063_v37, %v3021_v43  ;;  %v12507_v37 = vld [vmem:[%s17965_s4 + $0x16c] ss:$16 sps:$4 sm:$0xff]  }
 0x1fe   : > { %4193 = vmatprep.subr.bf16.mxu1 %v12549_v16  ;;  %v12567_v16 = vld [vmem:[%s17965_s4 + $0x2ec] ss:$16 sps:$4 sm:$0xff]  }
 0x1ff   : > { %v12516_v43 = vld [vmem:[%s17965_s4 + $0x10c] ss:$16 sps:$4 sm:$0xff]  }
 0x200   : > { %4151 = vmatpush2.bf16.msra.mxu0 %v12451_v54  ;;  %v12556_v54 = vld [vmem:[%s17965_s4 + $0x340] ss:$16 sps:$4 sm:$0xff]  }
 0x201   : > { %4152 = vmatprep.subr.bf16.mxu0 %v12456_v57  ;;  %4194 = vmatpush2.bf16.msra.mxu1 %v12547_v23  ;;  %v12480_v23 = vld [vmem:[%s17965_s4 + $0x8c] ss:$16 sps:$4 sm:$0xff]  }
 0x202   : > { %4195 = vmatprep.subr.bf16.mxu1 %v12552_v4  ;;  %v12483_v4 = vld [vmem:[%s17965_s4 + $0x6c] ss:$16 sps:$4 sm:$0xff]  }
 0x204   : > { %4153 = vmatpush2.bf16.msra.mxu0 %v12454_v59 }
 0x205   : > { %4154 = vmatprep.subr.bf16.mxu0 %v12459_v62  ;;  %4196 = vmatpush2.bf16.msra.mxu1 %v12550_v10  ;;  %v12492_v10 = vld [vmem:[%s17965_s4 + $0xc] ss:$16 sps:$4 sm:$0xff]  }
 0x206   : > { %4197 = vmatprep.subr.bf16.mxu1 %v12555_v30  ;;  %v12493_v30 = vld [vmem:[%s17965_s4 + $0x1e8] ss:$16 sps:$4 sm:$0xff]  }
 0x208   : > { %4155 = vmatpush2.bf16.msra.mxu0 %v12457_v2 }
 0x209   : > { %4156 = vmatprep.subr.bf16.mxu0 %v12462_v6  ;;  %4198 = vmatpush2.bf16.msra.mxu1 %v12553_v36  ;;  %v12469_v6 = vld [vmem:[%s17965_s4 + $0xe8] ss:$16 sps:$4 sm:$0xff]  }
 0x20a   : > { %4199 = vmatprep.subr.bf16.mxu1 %v12558_v51  ;;  %v12502_v36 = vld [vmem:[%s17965_s4 + $0x188] ss:$16 sps:$4 sm:$0xff]   ;;  %v12666_v51 = vld [vmem:[%s17962_s1 + $0x4] ss:$40 sps:$4 sm:$0xff]  }
 0x20c   : > { %4157 = vmatpush2.bf16.msra.mxu0 %v12460_v11  ;;  %v12564_v11 = vld [vmem:[%s17965_s4 + $0x304] ss:$16 sps:$4 sm:$0xff]  }
 0x20d   : > { %4158 = vmatprep.subr.bf16.mxu0 %v12465_v15  ;;  %4200 = vmatpush2.bf16.msra.mxu1 %v12556_v54  ;;  %v12586_v54 = vld [vmem:[%s17967_s6 + $0x80] ss:$16 sps:$4 sm:$0xff]  }
 0x20e   : > { %4201 = vmatprep.subr.bf16.mxu1 %v12561_v63  ;;  %v12610_v63 = vld [vmem:[%s17967_s6] ss:$16 sps:$4 sm:$0xff]  }
 0x210   : > { %4159 = vmatpush2.bf16.msra.mxu0 %v12463_v22  ;;  %v12475_v22 = vld [vmem:[%s17965_s4 + $0xa8] ss:$16 sps:$4 sm:$0xff]  }
 0x211   : > { %4160 = vmatprep.subr.bf16.mxu0 %v12468_v49  ;;  %4202 = vmatpush2.bf16.msra.mxu1 %v12559_v1  ;;  %v12478_v49 = vld [vmem:[%s17965_s4 + $0x88] ss:$16 sps:$4 sm:$0xff]   ;;  %v12618_v1 = vld [vmem:[%s17967_s6 + $0x1e4] ss:$16 sps:$4 sm:$0xff]  }
 0x212   : > { %4203 = vmatprep.subr.bf16.mxu1 %v12564_v11 }
 0x214   : > { %4161 = vmatpush2.bf16.msra.mxu0 %v12466_v34  ;;  %v12487_v34 = vld [vmem:[%s17965_s4 + $0x28] ss:$16 sps:$4 sm:$0xff]  }
 0x215   : > { %4216 = vmatprep.subr.bf16.mxu0 %v12471_v29  ;;  %4204 = vmatpush2.bf16.msra.mxu1 %v12562_v14  ;;  %v12495_v29 = vld [vmem:[%s17965_s4 + $0x1ec] ss:$16 sps:$4 sm:$0xff]   ;;  %v15654_v14 = vsub.s32 3, %v15412_v8 }
 0x216   : > { %4259 = vmatprep.subr.bf16.mxu1 %v12567_v16  ;;  %v15660_v16 = vsub.s32 2, %v15412_v8  ;;  %v12642_v8 = vld [vmem:[%s17967_s6 + $0x164] ss:$16 sps:$4 sm:$0xff]  }
 0x217   : > { %v3104_v47 = vpop.f32.mrf.mxu0  ;;  %17981 = vst [vmem:[#allocation11_spill] sm:$0xff] %v15654_v14 }
 0x218   : > { %v3105_v61 = vadd.f32 %v3104_v47, %v3062_v55  ;;  %v12576_v47 = vld [vmem:[%s17967_s6 + $0xc4] ss:$16 sps:$4 sm:$0xff]   ;;  %17982 = vst [vmem:[#allocation12_spill] sm:$0xff] %v15660_v16 }
 0x219   : > { %v3106_v50 = vpop.f32.mrf.mxu0  ;;  %v12594_v55 = vld [vmem:[%s17967_s6 + $0x64] ss:$16 sps:$4 sm:$0xff]  }
 0x21a   : > { %v3107_v59 = vadd.f32 %v3106_v50, %v3064_v52  ;;  %v3328_v7 = vmax.f32 %v3105_v61, 0.0  ;;  %v12582_v50 = vld [vmem:[%s17967_s6 + $0xa4] ss:$16 sps:$4 sm:$0xff]   ;;  %v12580_v52 = vld [vmem:[%s17967_s6 + $0xa0] ss:$16 sps:$4 sm:$0xff]   ;;  %v3147_v61 = vpop.f32.mrf.mxu1 }
 0x21b   : > { %v3108_v57 = vpop.f32.mrf.mxu0 }
 0x21c   : > { %v3109_v60 = vadd.f32 %v3108_v57, %v3066_v53  ;;  %v3329_v3 = vmax.f32 %v3107_v59, 0.0  ;;  %v12588_v53 = vld [vmem:[%s17967_s6 + $0x84] ss:$16 sps:$4 sm:$0xff]  }
 0x21d   : > { %v3110_v62 = vpop.f32.mrf.mxu0  ;;  %v12600_v57 = vld [vmem:[%s17967_s6 + $0x44] ss:$16 sps:$4 sm:$0xff]  }
 0x21e   : > { %v3111_v0 = vadd.f32 %v3110_v62, %v3068_v58  ;;  %v3332_v2 = vmax.f32 %v3109_v60, 0.0  ;;  %v12598_v58 = vld [vmem:[%s17967_s6 + $0x40] ss:$16 sps:$4 sm:$0xff]   ;;  %v12606_v59 = vld [vmem:[%s17967_s6 + $0x24] ss:$16 sps:$4 sm:$0xff]  }
 0x21f   : > { %v12604_v60 = vld [vmem:[%s17967_s6 + $0x20] ss:$16 sps:$4 sm:$0xff]   ;;  %v12612_v62 = vld [vmem:[%s17967_s6 + $0x4] ss:$16 sps:$4 sm:$0xff]  }
 0x220   : > { %v3333_v5 = vmax.f32 %v3111_v0, 0.0  ;;  %v15493_v15 = vpack.c.bf16 %v3332_v2, %v3328_v7  ;;  %v3149_v0 = vpop.f32.mrf.mxu1  ;;  %v12616_v2 = vld [vmem:[%s17967_s6 + $0x1e0] ss:$16 sps:$4 sm:$0xff]  }
 0x222   : > { %v3337_v12 = vpack.c.bf16 %v3333_v5, %v3329_v3  ;;  %v3151_v3 = vpop.f32.mrf.mxu1  ;;  %v12624_v5 = vld [vmem:[%s17967_s6 + $0x1c4] ss:$16 sps:$4 sm:$0xff]  }
 0x224   : > { %4162 = vmatprep.mubr.bf16.mxu0 %v3337_v12  ;;  %v3153_v7 = vpop.f32.mrf.mxu1 }
 0x225   : > { %4163 = vmatmul.mubr.bf16.vlgmr.msra.gmra.mxu0 %v15493_v15 }
 0x226   : > { %4217 = vmatpush1.bf16.msra.mxu0 %v12469_v6  ;;  %4248 = vmatprep.mubr.bf16.mxu0 %v3337_v12  ;;  %v12622_v6 = vld [vmem:[%s17967_s6 + $0x1c0] ss:$16 sps:$4 sm:$0xff]  }
 0x227   : > { %4218 = vmatprep.subr.bf16.mxu0 %v12474_v9  ;;  %v12630_v9 = vld [vmem:[%s17967_s6 + $0x1a4] ss:$16 sps:$4 sm:$0xff]  }
 0x22a   : > { %4219 = vmatpush1.bf16.msra.mxu0 %v12472_v19  ;;  %v12636_v19 = vld [vmem:[%s17967_s6 + $0x184] ss:$16 sps:$4 sm:$0xff]  }
 0x22b   : > { %4220 = vmatprep.subr.bf16.mxu0 %v12477_v21 }
 0x22e   : > { %4221 = vmatpush1.bf16.msra.mxu0 %v12475_v22 }
 0x22f   : > { %4222 = vmatprep.subr.bf16.mxu0 %v12480_v23  ;;  %v1243_v23 = vrot.slane %v15423_v13, %v15654_v14 }
 0x232   : > { %4223 = vmatpush1.bf16.msra.mxu0 %v12478_v49  ;;  %v12634_v49 = vld [vmem:[%s17967_s6 + $0x180] ss:$16 sps:$4 sm:$0xff]  }
 0x233   : > { %4224 = vmatprep.subr.bf16.mxu0 %v12483_v4  ;;  %v1239_v4 = vrot.slane %v15423_v13, %v15660_v16 }
 0x235   : > { %v3152_v13 = vadd.f32 %v3151_v3, %v1239_v4 }
 0x236   : > { %4225 = vmatpush1.bf16.msra.mxu0 %v12481_v24 }
 0x237   : > { %4226 = vmatprep.subr.bf16.mxu0 %v12486_v25 }
 0x23a   : > { %4227 = vmatpush1.bf16.msra.mxu0 %v12484_v26  ;;  %v3150_v26 = vadd.f32 %v3149_v0, %v1243_v23 }
 0x23b   : > { %4228 = vmatprep.subr.bf16.mxu0 %v12489_v27  ;;  %v12640_v27 = vld [vmem:[%s17967_s6 + $0x160] ss:$16 sps:$4 sm:$0xff]  }
 0x23e   : > { %4229 = vmatpush1.bf16.msra.mxu0 %v12487_v34  ;;  %v3148_v34 = vadd.f32 %v3147_v61, %v1239_v4  ;;  %v12754_v4 = vld [vmem:[%s17962_s1 + $0xa4] ss:$40 sps:$4 sm:$0xff]  }
 0x23f   : > { %4230 = vmatprep.subr.bf16.mxu0 %v12492_v10  ;;  %v12648_v10 = vld [vmem:[%s17967_s6 + $0x144] ss:$16 sps:$4 sm:$0xff]  }
 0x242   : > { %4231 = vmatpush1.bf16.msra.mxu0 %v12490_v28 }
 0x243   : > { %4232 = vmatprep.subr.bf16.mxu0 %v12495_v29 }
 0x246   : > { %4233 = vmatpush2.bf16.msra.mxu0 %v12493_v30 }
 0x247   : > { %4234 = vmatprep.subr.bf16.mxu0 %v12498_v31 }
 0x24a   : > { %4235 = vmatpush2.bf16.msra.mxu0 %v12496_v20  ;;  %v3154_v20 = vadd.f32 %v3153_v7, %v1243_v23  ;;  %v12565_v7 = vld [vmem:[%s17965_s4 + $0x2e8] ss:$16 sps:$4 sm:$0xff]  }
 0x24b   : > { %4236 = vmatprep.subr.bf16.mxu0 %v12501_v32  ;;  %v12741_v23 = vld [vmem:[%s17962_s1 + $0x50] ss:$40 sps:$4 sm:$0xff]  }
 0x24e   : > { %4237 = vmatpush2.bf16.msra.mxu0 %v12499_v33  ;;  %v12646_v33 = vld [vmem:[%s17967_s6 + $0x140] ss:$16 sps:$4 sm:$0xff]  }
 0x24f   : > { %4238 = vmatprep.subr.bf16.mxu0 %v12504_v35 }
 0x252   : > { %4239 = vmatpush2.bf16.msra.mxu0 %v12502_v36 }
 0x253   : > { %4240 = vmatprep.subr.bf16.mxu0 %v12507_v37  ;;  %v12654_v37 = vld [vmem:[%s17967_s6 + $0x124] ss:$16 sps:$4 sm:$0xff]  }
 0x256   : > { %4241 = vmatpush2.bf16.msra.mxu0 %v12505_v38 }
 0x257   : > { %4242 = vmatprep.subr.bf16.mxu0 %v12510_v39  ;;  %v3190_v11 = vpop.f32.mrf.mxu0 }
 0x258   : > { %v3233_v12 = vpop.f32.mrf.mxu1  ;;  %v3191_v29 = vadd.f32 %v3190_v11, %v3148_v34  ;;  %v12573_v11 = vld [vmem:[%s17965_s4 + $0x2cc] ss:$16 sps:$4 sm:$0xff]   ;;  %v12583_v34 = vld [vmem:[%s17965_s4 + $0x288] ss:$16 sps:$4 sm:$0xff]  }
 0x259   : > { %v3192_v21 = vpop.f32.mrf.mxu0 }
 0x25a   : > { %4243 = vmatpush2.bf16.msra.mxu0 %v12508_v40  ;;  %v3235_v22 = vpop.f32.mrf.mxu1  ;;  %v3193_v28 = vadd.f32 %v3192_v21, %v3150_v26  ;;  %v3234_v40 = vadd.f32 %v3233_v12, %v3191_v29  ;;  %v12739_v12 = vld [vmem:[%s17962_s1 + $0x54] ss:$40 sps:$4 sm:$0xff]   ;;  %v12571_v21 = vld [vmem:[%s17965_s4 + $0x2c8] ss:$16 sps:$4 sm:$0xff]   ;;  %v12685_v26 = vld [vmem:[%s17967_s6 + $0x480] ss:$16 sps:$4 sm:$0xff]  }
 0x25b   : > { %4244 = vmatprep.subr.bf16.mxu0 %v12513_v41  ;;  %v3194_v24 = vpop.f32.mrf.mxu0  ;;  %v12774_v29 = vld [vmem:[%s17962_s1 + $0x14] ss:$40 sps:$4 sm:$0xff]  }
 0x25c   : > { %v3237_v25 = vpop.f32.mrf.mxu1  ;;  %v3195_v32 = vadd.f32 %v3194_v24, %v3152_v13  ;;  %v3236_v38 = vadd.f32 %v3235_v22, %v3193_v28  ;;  %v12579_v22 = vld [vmem:[%s17965_s4 + $0x2ac] ss:$16 sps:$4 sm:$0xff]   ;;  %v12577_v24 = vld [vmem:[%s17965_s4 + $0x2a8] ss:$16 sps:$4 sm:$0xff]   ;;  %v12691_v28 = vld [vmem:[%s17967_s6 + $0x460] ss:$16 sps:$4 sm:$0xff]  }
 0x25d   : > { %v3196_v30 = vpop.f32.mrf.mxu0  ;;  %v12756_v13 = vld [vmem:[%s17962_s1 + $0xa0] ss:$40 sps:$4 sm:$0xff]  }
 0x25e   : > { %4245 = vmatpush2.bf16.msra.mxu0 %v12511_v42  ;;  %v3239_v31 = vpop.f32.mrf.mxu1  ;;  %v3197_v39 = vadd.f32 %v3196_v30, %v3154_v20  ;;  %v12699_v30 = vld [vmem:[%s17967_s6 + $0x444] ss:$16 sps:$4 sm:$0xff]   ;;  %v12597_v20 = vld [vmem:[%s17965_s4 + $0x24c] ss:$16 sps:$4 sm:$0xff]  }
 0x25f   : > { %4246 = vmatprep.subr.bf16.mxu0 %v12516_v43  ;;  %v3238_v43 = vadd.f32 %v3237_v25, %v3195_v32  ;;  %v12585_v25 = vld [vmem:[%s17965_s4 + $0x28c] ss:$16 sps:$4 sm:$0xff]   ;;  %v12697_v32 = vld [vmem:[%s17967_s6 + $0x440] ss:$16 sps:$4 sm:$0xff]  }
 0x262   : > { %4247 = vmatpush2.bf16.msra.mxu0 %v12514_v44 }
 0x263   : > { %6460 = vmatprep.subr.bf16.mxu0 %v12570_v45  ;;  %v12652_v45 = vld [vmem:[%s17967_s6 + $0x120] ss:$16 sps:$4 sm:$0xff]  }
 0x265   : > { %4249 = vmatmul.mubr.bf16.vlgmr.msra.gmra.mxu0 %v15493_v15  ;;  %v12628_v15 = vld [vmem:[%s17967_s6 + $0x1a0] ss:$16 sps:$4 sm:$0xff]  }
 0x266   : > { %6461 = vmatpush1.bf16.msra.mxu0 %v12568_v46  ;;  %6492 = vmatprep.mubr.bf16.mxu0 %v12666_v51  ;;  %v3240_v51 = vadd.f32 %v3239_v31, %v3197_v39  ;;  %v12589_v31 = vld [vmem:[%s17965_s4 + $0x268] ss:$16 sps:$4 sm:$0xff]  }
 0x267   : > { %6462 = vmatprep.subr.bf16.mxu0 %v12576_v47  ;;  %v12601_v39 = vld [vmem:[%s17965_s4 + $0x228] ss:$16 sps:$4 sm:$0xff]  }
 0x26a   : > { %6463 = vmatpush1.bf16.msra.mxu0 %v12574_v48 }
 0x26b   : > { %6464 = vmatprep.subr.bf16.mxu0 %v12582_v50  ;;  %v12660_v50 = vld [vmem:[%s17967_s6 + $0x104] ss:$16 sps:$4 sm:$0xff]  }
 0x26e   : > { %6465 = vmatpush1.bf16.msra.mxu0 %v12580_v52 }
 0x26f   : > { %6466 = vmatprep.subr.bf16.mxu0 %v12588_v53 }
 0x272   : > { %6467 = vmatpush1.bf16.msra.mxu0 %v12586_v54 }
 0x273   : > { %6468 = vmatprep.subr.bf16.mxu0 %v12594_v55 }
 0x276   : > { %6469 = vmatpush1.bf16.msra.mxu0 %v12592_v56 }
 0x277   : > { %6470 = vmatprep.subr.bf16.mxu0 %v12600_v57  ;;  %v12658_v57 = vld [vmem:[%s17967_s6 + $0x100] ss:$16 sps:$4 sm:$0xff]  }
 0x27a   : > { %6471 = vmatpush1.bf16.msra.mxu0 %v12598_v58 }
 0x27b   : > { %6472 = vmatprep.subr.bf16.mxu0 %v12606_v59 }
 0x27e   : > { %6473 = vmatpush1.bf16.msra.mxu0 %v12604_v60  ;;  %v12669_v60 = vld [vmem:[%s17967_s6 + $0x4e4] ss:$16 sps:$4 sm:$0xff]  }
 0x27f   : > { %6474 = vmatprep.subr.bf16.mxu0 %v12612_v62 }
 0x282   : > { %6475 = vmatpush1.bf16.msra.mxu0 %v12610_v63  ;;  %v12664_v63 = vld [vmem:[%s17962_s1] ss:$40 sps:$4 sm:$0xff]  }
 0x283   : > { %6476 = vmatprep.subr.bf16.mxu0 %v12618_v1 }
 0x286   : > { %6477 = vmatpush2.bf16.msra.mxu0 %v12616_v2  ;;  %v12667_v2 = vld [vmem:[%s17967_s6 + $0x4e0] ss:$16 sps:$4 sm:$0xff]  }
 0x287   : > { %6478 = vmatprep.subr.bf16.mxu0 %v12624_v5  ;;  %v12675_v5 = vld [vmem:[%s17967_s6 + $0x4c4] ss:$16 sps:$4 sm:$0xff]  }
 0x28a   : > { %6479 = vmatpush2.bf16.msra.mxu0 %v12622_v6 }
 0x28b   : > { %6480 = vmatprep.subr.bf16.mxu0 %v12630_v9 }
 0x28e   : > { %6481 = vmatpush2.bf16.msra.mxu0 %v12628_v15  ;;  %v12673_v15 = vld [vmem:[%s17967_s6 + $0x4c0] ss:$16 sps:$4 sm:$0xff]  }
 0x28f   : > { %6482 = vmatprep.subr.bf16.mxu0 %v12636_v19  ;;  %v12681_v19 = vld [vmem:[%s17967_s6 + $0x4a4] ss:$16 sps:$4 sm:$0xff]  }
 0x292   : > { %6483 = vmatpush2.bf16.msra.mxu0 %v12634_v49  ;;  %v12679_v49 = vld [vmem:[%s17967_s6 + $0x4a0] ss:$16 sps:$4 sm:$0xff]  }
 0x293   : > { %6484 = vmatprep.subr.bf16.mxu0 %v12642_v8  ;;  %v12687_v8 = vld [vmem:[%s17967_s6 + $0x484] ss:$16 sps:$4 sm:$0xff]  }
 0x296   : > { %6485 = vmatpush2.bf16.msra.mxu0 %v12640_v27  ;;  %v12693_v27 = vld [vmem:[%s17967_s6 + $0x464] ss:$16 sps:$4 sm:$0xff]  }
 0x297   : > { %v3276_v35 = vpop.f32.mrf.mxu0  ;;  %6486 = vmatprep.subr.bf16.mxu0 %v12648_v10  ;;  %v12591_v10 = vld [vmem:[%s17965_s4 + $0x26c] ss:$16 sps:$4 sm:$0xff]  }
 0x298   : > { %v3319_v36 = vpop.f32.mrf.mxu1  ;;  %v3277_v46 = vadd.f32 %v3276_v35, %v3234_v40  ;;  %v12595_v35 = vld [vmem:[%s17965_s4 + $0x248] ss:$16 sps:$4 sm:$0xff]   ;;  %v12609_v40 = vld [vmem:[%s17965_s4 + $0x20c] ss:$16 sps:$4 sm:$0xff]  }
 0x299   : > { %v3278_v41 = vpop.f32.mrf.mxu0 }
 0x29a   : > { %v3321_v42 = vpop.f32.mrf.mxu1  ;;  %v3279_v44 = vadd.f32 %v3278_v41, %v3236_v38  ;;  %6487 = vmatpush2.bf16.msra.mxu0 %v12646_v33  ;;  %v3320_v58 = vadd.f32 %v3319_v36, %v3277_v46  ;;  %v12705_v33 = vld [vmem:[%s17967_s6 + $0x424] ss:$16 sps:$4 sm:$0xff]   ;;  %v12603_v36 = vld [vmem:[%s17965_s4 + $0x22c] ss:$16 sps:$4 sm:$0xff]   ;;  %v12709_v41 = vld [vmem:[%s17967_s6 + $0x400] ss:$16 sps:$4 sm:$0xff]  }
 0x29b   : > { %v3280_v47 = vpop.f32.mrf.mxu0  ;;  %6488 = vmatprep.subr.bf16.mxu0 %v12654_v37  ;;  %v12703_v37 = vld [vmem:[%s17967_s6 + $0x420] ss:$16 sps:$4 sm:$0xff]   ;;  %v12711_v38 = vld [vmem:[%s17967_s6 + $0x404] ss:$16 sps:$4 sm:$0xff]  }
 0x29c   : > { %v3323_v48 = vpop.f32.mrf.mxu1  ;;  %v3281_v52 = vadd.f32 %v3280_v47, %v3238_v43  ;;  %v3322_v54 = vadd.f32 %v3321_v42, %v3279_v44  ;;  %v3330_v3 = vmax.f32 %v3320_v58, 0.0  ;;  %v12717_v42 = vld [vmem:[%s17967_s6 + $0x5e4] ss:$16 sps:$4 sm:$0xff]   ;;  %v12607_v43 = vld [vmem:[%s17965_s4 + $0x208] ss:$16 sps:$4 sm:$0xff]  }
 0x29d   : > { %v3282_v53 = vpop.f32.mrf.mxu0  ;;  %v12615_v44 = vld [vmem:[%s17965_s4 + $0x3ec] ss:$16 sps:$4 sm:$0xff]   ;;  %v12723_v46 = vld [vmem:[%s17967_s6 + $0x5c4] ss:$16 sps:$4 sm:$0xff]   ;;  %v12613_v47 = vld [vmem:[%s17965_s4 + $0x3e8] ss:$16 sps:$4 sm:$0xff]  }
 0x29e   : > { %v3324_v55 = vadd.f32 %v3323_v48, %v3281_v52  ;;  %v3283_v56 = vadd.f32 %v3282_v53, %v3240_v51  ;;  %6489 = vmatpush2.bf16.msra.mxu0 %v12652_v45  ;;  %v3325_v59 = vpop.f32.mrf.mxu1  ;;  %v3331_v0 = vmax.f32 %v3322_v54, 0.0  ;;  %v12715_v45 = vld [vmem:[%s17967_s6 + $0x5e0] ss:$16 sps:$4 sm:$0xff]   ;;  %v12621_v48 = vld [vmem:[%s17965_s4 + $0x3cc] ss:$16 sps:$4 sm:$0xff]  }
 0x29f   : > { %6490 = vmatprep.subr.bf16.mxu0 %v12660_v50  ;;  %v12721_v50 = vld [vmem:[%s17967_s6 + $0x5c0] ss:$16 sps:$4 sm:$0xff]   ;;  %v12729_v51 = vld [vmem:[%s17967_s6 + $0x5a4] ss:$16 sps:$4 sm:$0xff]   ;;  %v12619_v52 = vld [vmem:[%s17965_s4 + $0x3c8] ss:$16 sps:$4 sm:$0xff]  }
 0x2a0   : > { %v3326_v61 = vadd.f32 %v3325_v59, %v3283_v56  ;;  %v3334_v62 = vmax.f32 %v3324_v55, 0.0  ;;  %v12627_v53 = vld [vmem:[%s17965_s4 + $0x3ac] ss:$16 sps:$4 sm:$0xff]   ;;  %v12727_v54 = vld [vmem:[%s17967_s6 + $0x5a0] ss:$16 sps:$4 sm:$0xff]  }
 0x2a1   : > { %v12735_v55 = vld [vmem:[%s17967_s6 + $0x584] ss:$16 sps:$4 sm:$0xff]   ;;  %v12625_v56 = vld [vmem:[%s17965_s4 + $0x3a8] ss:$16 sps:$4 sm:$0xff]   ;;  %v12733_v58 = vld [vmem:[%s17967_s6 + $0x580] ss:$16 sps:$4 sm:$0xff]  }
 0x2a2   : > { %v3335_v1 = vmax.f32 %v3326_v61, 0.0  ;;  %6491 = vmatpush2.bf16.msra.mxu0 %v12658_v57  ;;  %v15711_v9 = vpack.c.bf16 %v3334_v62, %v3330_v3  ;;  %v12633_v57 = vld [vmem:[%s17965_s4 + $0x38c] ss:$16 sps:$4 sm:$0xff]   ;;  %v12744_v59 = vld [vmem:[%s17967_s6 + $0x564] ss:$16 sps:$4 sm:$0xff]  }
 0x2a3   : > { %6586 = vmatprep.subr.bf16.mxu0 %v12669_v60  ;;  %v12631_v60 = vld [vmem:[%s17965_s4 + $0x388] ss:$16 sps:$4 sm:$0xff]   ;;  %v12639_v61 = vld [vmem:[%s17965_s4 + $0x36c] ss:$16 sps:$4 sm:$0xff]   ;;  %v12742_v62 = vld [vmem:[%s17967_s6 + $0x560] ss:$16 sps:$4 sm:$0xff]  }
 0x2a4   : > { %v3339_v6 = vpack.c.bf16 %v3335_v1, %v3331_v0  ;;  %v12637_v0 = vld [vmem:[%s17965_s4 + $0x368] ss:$16 sps:$4 sm:$0xff]   ;;  %v12645_v1 = vld [vmem:[%s17965_s4 + $0x34c] ss:$16 sps:$4 sm:$0xff]   ;;  %v12759_v3 = vld [vmem:[%s17967_s6 + $0x524] ss:$16 sps:$4 sm:$0xff]  }
 0x2a5   : > { %6493 = vmatmul.mubr.bf16.vlgmr.msra.gmra.mxu0 %v12664_v63  ;;  %v12750_v63 = vld [vmem:[%s17967_s6 + $0x544] ss:$16 sps:$4 sm:$0xff]  }
 0x2a6   : > { %4205 = vmatprep.mubr.bf16.mxu1 %v3339_v6  ;;  %6587 = vmatpush1.bf16.msra.mxu0 %v12667_v2  ;;  %v12748_v2 = vld [vmem:[%s17967_s6 + $0x540] ss:$16 sps:$4 sm:$0xff]  }
 0x2a7   : > { %4206 = vmatmul.mubr.bf16.vlgmr.msra.gmra.mxu1 %v15711_v9  ;;  %6588 = vmatprep.subr.bf16.mxu0 %v12675_v5  ;;  %v12643_v5 = vld [vmem:[%s17965_s4 + $0x348] ss:$16 sps:$4 sm:$0xff]  }
 0x2a8   : > { %4260 = vmatpush1.bf16.msra.mxu1 %v12565_v7  ;;  %4291 = vmatprep.mubr.bf16.mxu1 %v3339_v6  ;;  %v12651_v6 = vld [vmem:[%s17965_s4 + $0x32c] ss:$16 sps:$4 sm:$0xff]   ;;  %v12757_v7 = vld [vmem:[%s17967_s6 + $0x520] ss:$16 sps:$4 sm:$0xff]  }
 0x2a9   : > { %4261 = vmatprep.subr.bf16.mxu1 %v12573_v11  ;;  %6502 = vmatprep.mubr.bf16.mxu0 %v12739_v12  ;;  %v12765_v11 = vld [vmem:[%s17967_s6 + $0x504] ss:$16 sps:$4 sm:$0xff]   ;;  %v12649_v12 = vld [vmem:[%s17965_s4 + $0x328] ss:$16 sps:$4 sm:$0xff]  }
 0x2aa   : > { %6589 = vmatpush1.bf16.msra.mxu0 %v12673_v15  ;;  %v12657_v15 = vld [vmem:[%s17965_s4 + $0x30c] ss:$16 sps:$4 sm:$0xff]  }
 0x2ab   : > { %6590 = vmatprep.subr.bf16.mxu0 %v12681_v19  ;;  %v12763_v19 = vld [vmem:[%s17967_s6 + $0x500] ss:$16 sps:$4 sm:$0xff]  }
 0x2ac   : > { %4262 = vmatpush1.bf16.msra.mxu1 %v12571_v21  ;;  %v12777_v21 = vld [vmem:[%s17967_s6 + $0x8e4] ss:$16 sps:$4 sm:$0xff]  }
 0x2ad   : > { %4263 = vmatprep.subr.bf16.mxu1 %v12579_v22  ;;  %6503 = vmatmul.mubr.bf16.gmra.mxu0 %v12741_v23  ;;  %v12655_v22 = vld [vmem:[%s17965_s4 + $0x308] ss:$16 sps:$4 sm:$0xff]   ;;  %v12663_v23 = vld [vmem:[%s17967_s6 + $0x2e4] ss:$16 sps:$4 sm:$0xff]  }
 0x2ae   : > { %6591 = vmatpush1.bf16.msra.mxu0 %v12679_v49  ;;  %6512 = vmatprep.mubr.bf16.mxu0 %v12754_v4  ;;  %v12772_v49 = vld [vmem:[%s17962_s1 + $0x10] ss:$40 sps:$4 sm:$0xff]  }
 0x2af   : > { %6592 = vmatprep.subr.bf16.mxu0 %v12687_v8  ;;  %v12775_v4 = vld [vmem:[%s17967_s6 + $0x8e0] ss:$16 sps:$4 sm:$0xff]   ;;  %v12841_v8 = vld [vmem:[%s17962_s1 + $0x64] ss:$40 sps:$4 sm:$0xff]  }
 0x2b0   : > { %4264 = vmatpush1.bf16.msra.mxu1 %v12577_v24  ;;  %v12783_v24 = vld [vmem:[%s17967_s6 + $0x8c4] ss:$16 sps:$4 sm:$0xff]  }
 0x2b1   : > { %4265 = vmatprep.subr.bf16.mxu1 %v12585_v25  ;;  %v12661_v25 = vld [vmem:[%s17967_s6 + $0x2e0] ss:$16 sps:$4 sm:$0xff]  }
 0x2b2   : > { %6593 = vmatpush1.bf16.msra.mxu0 %v12685_v26  ;;  %v15930_v26 = vld [vmem:[%s17962_s1 + $0xc] ss:$40 sps:$4 sm:$0xff]  }
 0x2b3   : > { %6594 = vmatprep.subr.bf16.mxu0 %v12693_v27  ;;  %v12672_v27 = vld [vmem:[%s17967_s6 + $0x2c4] ss:$16 sps:$4 sm:$0xff]  }
 0x2b4   : > { %4266 = vmatpush1.bf16.msra.mxu1 %v12583_v34  ;;  %v12781_v34 = vld [vmem:[%s17967_s6 + $0x8c0] ss:$16 sps:$4 sm:$0xff]  }
 0x2b5   : > { %4267 = vmatprep.subr.bf16.mxu1 %v12591_v10  ;;  %6513 = vmatmul.mubr.bf16.gmra.mxu0 %v12756_v13  ;;  %v12789_v10 = vld [vmem:[%s17967_s6 + $0x8a4] ss:$16 sps:$4 sm:$0xff]   ;;  %v12670_v13 = vld [vmem:[%s17967_s6 + $0x2c0] ss:$16 sps:$4 sm:$0xff]  }
 0x2b6   : > { %6595 = vmatpush1.bf16.msra.mxu0 %v12691_v28  ;;  %6618 = vmatprep.mubr.bf16.mxu0 %v12774_v29  ;;  %v12678_v28 = vld [vmem:[%s17967_s6 + $0x2a4] ss:$16 sps:$4 sm:$0xff]   ;;  %v12787_v29 = vld [vmem:[%s17967_s6 + $0x8a0] ss:$16 sps:$4 sm:$0xff]  }
 0x2b7   : > { %6596 = vmatprep.subr.bf16.mxu0 %v12699_v30  ;;  %v12859_v30 = vld [vmem:[%s17962_s1 + $0xb4] ss:$40 sps:$4 sm:$0xff]  }
 0x2b8   : > { %4268 = vmatpush1.bf16.msra.mxu1 %v12589_v31  ;;  %v12795_v31 = vld [vmem:[%s17967_s6 + $0x884] ss:$16 sps:$4 sm:$0xff]  }
 0x2b9   : > { %4269 = vmatprep.subr.bf16.mxu1 %v12597_v20  ;;  %v12676_v20 = vld [vmem:[%s17967_s6 + $0x2a0] ss:$16 sps:$4 sm:$0xff]  }
 0x2ba   : > { %6597 = vmatpush1.bf16.msra.mxu0 %v12697_v32  ;;  %v12684_v32 = vld [vmem:[%s17967_s6 + $0x284] ss:$16 sps:$4 sm:$0xff]  }
 0x2bb   : > { %6598 = vmatprep.subr.bf16.mxu0 %v12705_v33  ;;  %v12793_v33 = vld [vmem:[%s17967_s6 + $0x880] ss:$16 sps:$4 sm:$0xff]  }
 0x2bc   : > { %4270 = vmatpush1.bf16.msra.mxu1 %v12595_v35  ;;  %v12801_v35 = vld [vmem:[%s17967_s6 + $0x864] ss:$16 sps:$4 sm:$0xff]  }
 0x2bd   : > { %4271 = vmatprep.subr.bf16.mxu1 %v12603_v36  ;;  %v12682_v36 = vld [vmem:[%s17967_s6 + $0x280] ss:$16 sps:$4 sm:$0xff]  }
 0x2be   : > { %6599 = vmatpush1.bf16.msra.mxu0 %v12703_v37  ;;  %v12690_v37 = vld [vmem:[%s17967_s6 + $0x264] ss:$16 sps:$4 sm:$0xff]  }
 0x2bf   : > { %6600 = vmatprep.subr.bf16.mxu0 %v12711_v38  ;;  %v12864_v38 = vld [vmem:[%s17962_s1 + $0xb0] ss:$40 sps:$4 sm:$0xff]  }
 0x2c0   : > { %4272 = vmatpush1.bf16.msra.mxu1 %v12601_v39  ;;  %v12799_v39 = vld [vmem:[%s17967_s6 + $0x860] ss:$16 sps:$4 sm:$0xff]  }
 0x2c1   : > { %4273 = vmatprep.subr.bf16.mxu1 %v12609_v40  ;;  %v12888_v40 = vld [vmem:[%s17962_s1 + $0x24] ss:$40 sps:$4 sm:$0xff]  }
 0x2c2   : > { %6601 = vmatpush1.bf16.msra.mxu0 %v12709_v41  ;;  %v12807_v41 = vld [vmem:[%s17967_s6 + $0x844] ss:$16 sps:$4 sm:$0xff]  }
 0x2c3   : > { %6602 = vmatprep.subr.bf16.mxu0 %v12717_v42  ;;  %v12688_v42 = vld [vmem:[%s17967_s6 + $0x260] ss:$16 sps:$4 sm:$0xff]  }
 0x2c4   : > { %4274 = vmatpush1.bf16.msra.mxu1 %v12607_v43  ;;  %v12696_v43 = vld [vmem:[%s17967_s6 + $0x244] ss:$16 sps:$4 sm:$0xff]  }
 0x2c5   : > { %4275 = vmatprep.subr.bf16.mxu1 %v12615_v44  ;;  %v12805_v44 = vld [vmem:[%s17967_s6 + $0x840] ss:$16 sps:$4 sm:$0xff]  }
 0x2c6   : > { %6603 = vmatpush2.bf16.msra.mxu0 %v12715_v45  ;;  %v12813_v45 = vld [vmem:[%s17967_s6 + $0x824] ss:$16 sps:$4 sm:$0xff]  }
 0x2c7   : > { %6604 = vmatprep.subr.bf16.mxu0 %v12723_v46  ;;  %v12694_v46 = vld [vmem:[%s17967_s6 + $0x240] ss:$16 sps:$4 sm:$0xff]  }
 0x2c8   : > { %4276 = vmatpush2.bf16.msra.mxu1 %v12613_v47  ;;  %v12702_v47 = vld [vmem:[%s17967_s6 + $0x224] ss:$16 sps:$4 sm:$0xff]  }
 0x2c9   : > { %4277 = vmatprep.subr.bf16.mxu1 %v12621_v48  ;;  %v12811_v48 = vld [vmem:[%s17967_s6 + $0x820] ss:$16 sps:$4 sm:$0xff]  }
 0x2ca   : > { %6605 = vmatpush2.bf16.msra.mxu0 %v12721_v50  ;;  %v12819_v50 = vld [vmem:[%s17967_s6 + $0x804] ss:$16 sps:$4 sm:$0xff]  }
 0x2cb   : > { %6606 = vmatprep.subr.bf16.mxu0 %v12729_v51  ;;  %v12700_v51 = vld [vmem:[%s17967_s6 + $0x220] ss:$16 sps:$4 sm:$0xff]  }
 0x2cc   : > { %4278 = vmatpush2.bf16.msra.mxu1 %v12619_v52  ;;  %v12708_v52 = vld [vmem:[%s17967_s6 + $0x204] ss:$16 sps:$4 sm:$0xff]  }
 0x2cd   : > { %4279 = vmatprep.subr.bf16.mxu1 %v12627_v53  ;;  %v12817_v53 = vld [vmem:[%s17967_s6 + $0x800] ss:$16 sps:$4 sm:$0xff]  }
 0x2ce   : > { %6607 = vmatpush2.bf16.msra.mxu0 %v12727_v54  ;;  %v12825_v54 = vld [vmem:[%s17967_s6 + $0x9e4] ss:$16 sps:$4 sm:$0xff]  }
 0x2cf   : > { %6608 = vmatprep.subr.bf16.mxu0 %v12735_v55  ;;  %v12706_v55 = vld [vmem:[%s17967_s6 + $0x200] ss:$16 sps:$4 sm:$0xff]  }
 0x2d0   : > { %4280 = vmatpush2.bf16.msra.mxu1 %v12625_v56  ;;  %v12714_v56 = vld [vmem:[%s17967_s6 + $0x3e4] ss:$16 sps:$4 sm:$0xff]  }
 0x2d1   : > { %4281 = vmatprep.subr.bf16.mxu1 %v12633_v57  ;;  %v12823_v57 = vld [vmem:[%s17967_s6 + $0x9e0] ss:$16 sps:$4 sm:$0xff]  }
 0x2d2   : > { %6609 = vmatpush2.bf16.msra.mxu0 %v12733_v58  ;;  %v12831_v58 = vld [vmem:[%s17967_s6 + $0x9c4] ss:$16 sps:$4 sm:$0xff]  }
 0x2d3   : > { %6610 = vmatprep.subr.bf16.mxu0 %v12744_v59  ;;  %v12712_v59 = vld [vmem:[%s17967_s6 + $0x3e0] ss:$16 sps:$4 sm:$0xff]  }
 0x2d4   : > { %4282 = vmatpush2.bf16.msra.mxu1 %v12631_v60  ;;  %v12720_v60 = vld [vmem:[%s17967_s6 + $0x3c4] ss:$16 sps:$4 sm:$0xff]  }
 0x2d5   : > { %4283 = vmatprep.subr.bf16.mxu1 %v12639_v61  ;;  %v12829_v61 = vld [vmem:[%s17967_s6 + $0x9c0] ss:$16 sps:$4 sm:$0xff]  }
 0x2d6   : > { %6611 = vmatpush2.bf16.msra.mxu0 %v12742_v62  ;;  %v12839_v62 = vld [vmem:[%s17967_s6 + $0x9a4] ss:$16 sps:$4 sm:$0xff]  }
 0x2d7   : > { %6612 = vmatprep.subr.bf16.mxu0 %v12750_v63  ;;  %v12718_v63 = vld [vmem:[%s17967_s6 + $0x3c0] ss:$16 sps:$4 sm:$0xff]  }
 0x2d8   : > { %4284 = vmatpush2.bf16.msra.mxu1 %v12637_v0  ;;  %v12726_v0 = vld [vmem:[%s17967_s6 + $0x3a4] ss:$16 sps:$4 sm:$0xff]  }
 0x2d9   : > { %4285 = vmatprep.subr.bf16.mxu1 %v12645_v1  ;;  %v12837_v1 = vld [vmem:[%s17967_s6 + $0x9a0] ss:$16 sps:$4 sm:$0xff]  }
 0x2da   : > { %6613 = vmatpush2.bf16.msra.mxu0 %v12748_v2  ;;  %v12849_v2 = vld [vmem:[%s17967_s6 + $0x984] ss:$16 sps:$4 sm:$0xff]  }
 0x2db   : > { %6614 = vmatprep.subr.bf16.mxu0 %v12759_v3  ;;  %v12724_v3 = vld [vmem:[%s17967_s6 + $0x3a0] ss:$16 sps:$4 sm:$0xff]  }
 0x2dc   : > { %4286 = vmatpush2.bf16.msra.mxu1 %v12643_v5  ;;  %v12732_v5 = vld [vmem:[%s17967_s6 + $0x384] ss:$16 sps:$4 sm:$0xff]  }
 0x2dd   : > { %4287 = vmatprep.subr.bf16.mxu1 %v12651_v6  ;;  %v12847_v6 = vld [vmem:[%s17967_s6 + $0x980] ss:$16 sps:$4 sm:$0xff]  }
 0x2de   : > { %6615 = vmatpush2.bf16.msra.mxu0 %v12757_v7  ;;  %v12857_v7 = vld [vmem:[%s17967_s6 + $0x964] ss:$16 sps:$4 sm:$0xff]  }
 0x2df   : > { %6616 = vmatprep.subr.bf16.mxu0 %v12765_v11  ;;  %v12730_v11 = vld [vmem:[%s17967_s6 + $0x380] ss:$16 sps:$4 sm:$0xff]  }
 0x2e0   : > { %4288 = vmatpush2.bf16.msra.mxu1 %v12649_v12  ;;  %v12738_v12 = vld [vmem:[%s17967_s6 + $0x364] ss:$16 sps:$4 sm:$0xff]  }
 0x2e1   : > { %4289 = vmatprep.subr.bf16.mxu1 %v12657_v15  ;;  %v12855_v15 = vld [vmem:[%s17967_s6 + $0x960] ss:$16 sps:$4 sm:$0xff]  }
 0x2e2   : > { %6617 = vmatpush2.bf16.msra.mxu0 %v12763_v19  ;;  %v12867_v19 = vld [vmem:[%s17967_s6 + $0x944] ss:$16 sps:$4 sm:$0xff]  }
 0x2e3   : > { %6712 = vmatprep.subr.bf16.mxu0 %v12777_v21  ;;  %v12736_v21 = vld [vmem:[%s17967_s6 + $0x360] ss:$16 sps:$4 sm:$0xff]  }
 0x2e4   : > { %4290 = vmatpush2.bf16.msra.mxu1 %v12655_v22  ;;  %v12747_v22 = vld [vmem:[%s17967_s6 + $0x344] ss:$16 sps:$4 sm:$0xff]  }
 0x2e5   : > { %6523 = vmatprep.subr.bf16.mxu1 %v12663_v23  ;;  %6619 = vmatmul.mubr.bf16.vlgmr.msra.gmra.mxu0 %v12772_v49  ;;  %v12865_v23 = vld [vmem:[%s17967_s6 + $0x940] ss:$16 sps:$4 sm:$0xff]   ;;  %v12873_v49 = vld [vmem:[%s17967_s6 + $0x924] ss:$16 sps:$4 sm:$0xff]  }
 0x2e6   : > { %6713 = vmatpush1.bf16.msra.mxu0 %v12775_v4  ;;  %6628 = vmatprep.mubr.bf16.mxu0 %v12841_v8  ;;  %v12745_v4 = vld [vmem:[%s17967_s6 + $0x340] ss:$16 sps:$4 sm:$0xff]   ;;  %v12753_v8 = vld [vmem:[%s17967_s6 + $0x324] ss:$16 sps:$4 sm:$0xff]  }
 0x2e7   : > { %4292 = vmatmul.mubr.bf16.vlgmr.msra.gmra.mxu1 %v15711_v9  ;;  %6714 = vmatprep.subr.bf16.mxu0 %v12783_v24  ;;  %v12846_v9 = vld [vmem:[%s17962_s1 + $0x60] ss:$40 sps:$4 sm:$0xff]  }
 0x2e8   : > { %6524 = vmatpush1.bf16.msra.mxu1 %v12661_v25  ;;  %6555 = vmatprep.mubr.bf16.mxu1 %v15930_v26  ;;  %v12871_v24 = vld [vmem:[%s17967_s6 + $0x920] ss:$16 sps:$4 sm:$0xff]   ;;  %v12879_v25 = vld [vmem:[%s17967_s6 + $0x904] ss:$16 sps:$4 sm:$0xff]  }
 0x2e9   : > { %6525 = vmatprep.subr.bf16.mxu1 %v12672_v27  ;;  %v12751_v27 = vld [vmem:[%s17967_s6 + $0x320] ss:$16 sps:$4 sm:$0xff]  }
 0x2ea   : > { %6715 = vmatpush1.bf16.msra.mxu0 %v12781_v34  ;;  %v12762_v34 = vld [vmem:[%s17967_s6 + $0x304] ss:$16 sps:$4 sm:$0xff]  }
 0x2eb   : > { %6716 = vmatprep.subr.bf16.mxu0 %v12789_v10  ;;  %v12877_v10 = vld [vmem:[%s17967_s6 + $0x900] ss:$16 sps:$4 sm:$0xff]  }
 0x2ec   : > { %6526 = vmatpush1.bf16.msra.mxu1 %v12670_v13  ;;  %v12891_v13 = vld [vmem:[%s17967_s6 + $0x2ec] ss:$16 sps:$4 sm:$0xff]  }
 0x2ed   : > { %6527 = vmatprep.subr.bf16.mxu1 %v12678_v28  ;;  %6629 = vmatmul.mubr.bf16.gmra.mxu0 %v12846_v9  ;;  %v12760_v28 = vld [vmem:[%s17967_s6 + $0x300] ss:$16 sps:$4 sm:$0xff]   ;;  %v12771_v9 = vld [vmem:[%s17967_s6 + $0x6e4] ss:$16 sps:$4 sm:$0xff]  }
 0x2ee   : > { %6717 = vmatpush1.bf16.msra.mxu0 %v12787_v29  ;;  %6638 = vmatprep.mubr.bf16.mxu0 %v12859_v30  ;;  %v12886_v29 = vld [vmem:[%s17962_s1 + $0x20] ss:$40 sps:$4 sm:$0xff]  }
 0x2ef   : > { %6718 = vmatprep.subr.bf16.mxu0 %v12795_v31  ;;  %v12889_v30 = vld [vmem:[%s17967_s6 + $0x2e8] ss:$16 sps:$4 sm:$0xff]   ;;  %v12904_v31 = vld [vmem:[%s17962_s1 + $0x74] ss:$40 sps:$4 sm:$0xff]  }
 0x2f0   : > { %6528 = vmatpush1.bf16.msra.mxu1 %v12676_v20  ;;  %v16141_v20 = vld [vmem:[%s17962_s1 + $0x8] ss:$40 sps:$4 sm:$0xff]  }
 0x2f1   : > { %6529 = vmatprep.subr.bf16.mxu1 %v12684_v32  ;;  %v12897_v32 = vld [vmem:[%s17967_s6 + $0x2cc] ss:$16 sps:$4 sm:$0xff]  }
 0x2f2   : > { %6719 = vmatpush1.bf16.msra.mxu0 %v12793_v33  ;;  %v12769_v33 = vld [vmem:[%s17967_s6 + $0x6e0] ss:$16 sps:$4 sm:$0xff]  }
 0x2f3   : > { %6720 = vmatprep.subr.bf16.mxu0 %v12801_v35  ;;  %v16152_v35 = vld [vmem:[%s17962_s1 + $0x5c] ss:$40 sps:$4 sm:$0xff]  }
 0x2f4   : > { %6530 = vmatpush1.bf16.msra.mxu1 %v12682_v36  ;;  %v12780_v36 = vld [vmem:[%s17967_s6 + $0x6c4] ss:$16 sps:$4 sm:$0xff]  }
 0x2f5   : > { %6531 = vmatprep.subr.bf16.mxu1 %v12690_v37  ;;  %6639 = vmatmul.mubr.bf16.gmra.mxu0 %v12864_v38  ;;  %v12895_v37 = vld [vmem:[%s17967_s6 + $0x2c8] ss:$16 sps:$4 sm:$0xff]   ;;  %v12909_v38 = vld [vmem:[%s17967_s6 + $0x2ac] ss:$16 sps:$4 sm:$0xff]  }
 0x2f6   : > { %6721 = vmatpush1.bf16.msra.mxu0 %v12799_v39  ;;  %6744 = vmatprep.mubr.bf16.mxu0 %v12888_v40  ;;  %v12778_v39 = vld [vmem:[%s17967_s6 + $0x6c0] ss:$16 sps:$4 sm:$0xff]   ;;  %v12786_v40 = vld [vmem:[%s17967_s6 + $0x6a4] ss:$16 sps:$4 sm:$0xff]  }
 0x2f7   : > { %6722 = vmatprep.subr.bf16.mxu0 %v12807_v41  ;;  %v12906_v41 = vld [vmem:[%s17962_s1 + $0x70] ss:$40 sps:$4 sm:$0xff]  }
 0x2f8   : > { %6532 = vmatpush1.bf16.msra.mxu1 %v12688_v42  ;;  %v12907_v42 = vld [vmem:[%s17967_s6 + $0x2a8] ss:$16 sps:$4 sm:$0xff]  }
 0x2f9   : > { %6533 = vmatprep.subr.bf16.mxu1 %v12696_v43  ;;  %v12922_v43 = vld [vmem:[%s17962_s1 + $0xc4] ss:$40 sps:$4 sm:$0xff]  }
 0x2fa   : > { %6723 = vmatpush1.bf16.msra.mxu0 %v12805_v44  ;;  %v16183_v44 = vld [vmem:[%s17962_s1 + $0x58] ss:$40 sps:$4 sm:$0xff]  }
 0x2fb   : > { %6724 = vmatprep.subr.bf16.mxu0 %v12813_v45  ;;  %v12915_v45 = vld [vmem:[%s17967_s6 + $0x28c] ss:$16 sps:$4 sm:$0xff]  }
 0x2fc   : > { %6534 = vmatpush1.bf16.msra.mxu1 %v12694_v46  ;;  %v12784_v46 = vld [vmem:[%s17967_s6 + $0x6a0] ss:$16 sps:$4 sm:$0xff]  }
 0x2fd   : > { %6535 = vmatprep.subr.bf16.mxu1 %v12702_v47  ;;  %v16194_v47 = vld [vmem:[%s17962_s1 + $0xac] ss:$40 sps:$4 sm:$0xff]  }
 0x2fe   : > { %6725 = vmatpush1.bf16.msra.mxu0 %v12811_v48  ;;  %v12792_v48 = vld [vmem:[%s17967_s6 + $0x684] ss:$16 sps:$4 sm:$0xff]  }
 0x2ff   : > { %6726 = vmatprep.subr.bf16.mxu0 %v12819_v50  ;;  %v12913_v50 = vld [vmem:[%s17967_s6 + $0x288] ss:$16 sps:$4 sm:$0xff]  }
 0x300   : > { %6536 = vmatpush1.bf16.msra.mxu1 %v12700_v51  ;;  %v12927_v51 = vld [vmem:[%s17967_s6 + $0x26c] ss:$16 sps:$4 sm:$0xff]  }
 0x301   : > { %6537 = vmatprep.subr.bf16.mxu1 %v12708_v52  ;;  %v12790_v52 = vld [vmem:[%s17967_s6 + $0x680] ss:$16 sps:$4 sm:$0xff]  }
 0x302   : > { %6727 = vmatpush1.bf16.msra.mxu0 %v12817_v53  ;;  %v12798_v53 = vld [vmem:[%s17967_s6 + $0x664] ss:$16 sps:$4 sm:$0xff]  }
 0x303   : > { %6728 = vmatprep.subr.bf16.mxu0 %v12825_v54  ;;  %v12924_v54 = vld [vmem:[%s17962_s1 + $0xc0] ss:$40 sps:$4 sm:$0xff]  }
 0x304   : > { %6538 = vmatpush1.bf16.msra.mxu1 %v12706_v55  ;;  %v12925_v55 = vld [vmem:[%s17967_s6 + $0x268] ss:$16 sps:$4 sm:$0xff]  }
 0x305   : > { %6539 = vmatprep.subr.bf16.mxu1 %v12714_v56  ;;  %v16222_v56 = vld [vmem:[%s17962_s1 + $0xa8] ss:$40 sps:$4 sm:$0xff]  }
 0x306   : > { %6729 = vmatpush2.bf16.msra.mxu0 %v12823_v57  ;;  %v12933_v57 = vld [vmem:[%s17967_s6 + $0x24c] ss:$16 sps:$4 sm:$0xff]  }
 0x307   : > { %6730 = vmatprep.subr.bf16.mxu0 %v12831_v58  ;;  %v12796_v58 = vld [vmem:[%s17967_s6 + $0x660] ss:$16 sps:$4 sm:$0xff]  }
 0x308   : > { %6540 = vmatpush2.bf16.msra.mxu1 %v12712_v59  ;;  %v16233_v59 = vld [vmem:[%s17962_s1 + $0x1c] ss:$40 sps:$4 sm:$0xff]  }
 0x309   : > { %6541 = vmatprep.subr.bf16.mxu1 %v12720_v60  ;;  %v12804_v60 = vld [vmem:[%s17967_s6 + $0x644] ss:$16 sps:$4 sm:$0xff]  }
 0x30a   : > { %6731 = vmatpush2.bf16.msra.mxu0 %v12829_v61  ;;  %v12931_v61 = vld [vmem:[%s17967_s6 + $0x248] ss:$16 sps:$4 sm:$0xff]  }
 0x30b   : > { %6732 = vmatprep.subr.bf16.mxu0 %v12839_v62  ;;  %v12939_v62 = vld [vmem:[%s17967_s6 + $0x22c] ss:$16 sps:$4 sm:$0xff]  }
 0x30c   : > { %6542 = vmatpush2.bf16.msra.mxu1 %v12718_v63  ;;  %v12802_v63 = vld [vmem:[%s17967_s6 + $0x640] ss:$16 sps:$4 sm:$0xff]  }
 0x30d   : > { %6543 = vmatprep.subr.bf16.mxu1 %v12726_v0  ;;  %v12810_v0 = vld [vmem:[%s17967_s6 + $0x624] ss:$16 sps:$4 sm:$0xff]  }
 0x30e   : > { %6733 = vmatpush2.bf16.msra.mxu0 %v12837_v1  ;;  %v12945_v1 = vld [vmem:[%s17967_s6 + $0x20c] ss:$16 sps:$4 sm:$0xff]  }
 0x30f   : > { %6734 = vmatprep.subr.bf16.mxu0 %v12849_v2  ;;  %v12808_v2 = vld [vmem:[%s17967_s6 + $0x620] ss:$16 sps:$4 sm:$0xff]  }
 0x310   : > { %6544 = vmatpush2.bf16.msra.mxu1 %v12724_v3  ;;  %v12816_v3 = vld [vmem:[%s17967_s6 + $0x604] ss:$16 sps:$4 sm:$0xff]  }
 0x311   : > { %6545 = vmatprep.subr.bf16.mxu1 %v12732_v5  ;;  %v12943_v5 = vld [vmem:[%s17967_s6 + $0x208] ss:$16 sps:$4 sm:$0xff]  }
 0x312   : > { %6735 = vmatpush2.bf16.msra.mxu0 %v12847_v6  ;;  %v12951_v6 = vld [vmem:[%s17967_s6 + $0x3ec] ss:$16 sps:$4 sm:$0xff]  }
 0x313   : > { %6736 = vmatprep.subr.bf16.mxu0 %v12857_v7  ;;  %v12814_v7 = vld [vmem:[%s17967_s6 + $0x600] ss:$16 sps:$4 sm:$0xff]  }
 0x314   : > { %6546 = vmatpush2.bf16.msra.mxu1 %v12730_v11  ;;  %v12822_v11 = vld [vmem:[%s17967_s6 + $0x7e4] ss:$16 sps:$4 sm:$0xff]  }
 0x315   : > { %6547 = vmatprep.subr.bf16.mxu1 %v12738_v12  ;;  %v12949_v12 = vld [vmem:[%s17967_s6 + $0x3e8] ss:$16 sps:$4 sm:$0xff]  }
 0x316   : > { %6737 = vmatpush2.bf16.msra.mxu0 %v12855_v15  ;;  %v12957_v15 = vld [vmem:[%s17967_s6 + $0x3cc] ss:$16 sps:$4 sm:$0xff]  }
 0x317   : > { %6738 = vmatprep.subr.bf16.mxu0 %v12867_v19  ;;  %v12820_v19 = vld [vmem:[%s17967_s6 + $0x7e0] ss:$16 sps:$4 sm:$0xff]  }
 0x318   : > { %6548 = vmatpush2.bf16.msra.mxu1 %v12736_v21  ;;  %v12828_v21 = vld [vmem:[%s17967_s6 + $0x7c4] ss:$16 sps:$4 sm:$0xff]  }
 0x319   : > { %6549 = vmatprep.subr.bf16.mxu1 %v12747_v22  ;;  %v12955_v22 = vld [vmem:[%s17967_s6 + $0x3c8] ss:$16 sps:$4 sm:$0xff]  }
 0x31a   : > { %6739 = vmatpush2.bf16.msra.mxu0 %v12865_v23  ;;  %v12963_v23 = vld [vmem:[%s17967_s6 + $0x3ac] ss:$16 sps:$4 sm:$0xff]  }
 0x31b   : > { %6740 = vmatprep.subr.bf16.mxu0 %v12873_v49  ;;  %v12826_v49 = vld [vmem:[%s17967_s6 + $0x7c0] ss:$16 sps:$4 sm:$0xff]  }
 0x31c   : > { %6550 = vmatpush2.bf16.msra.mxu1 %v12745_v4  ;;  %v12834_v4 = vld [vmem:[%s17967_s6 + $0x7a4] ss:$16 sps:$4 sm:$0xff]  }
 0x31d   : > { %6551 = vmatprep.subr.bf16.mxu1 %v12753_v8  ;;  %v12961_v8 = vld [vmem:[%s17967_s6 + $0x3a8] ss:$16 sps:$4 sm:$0xff]  }
 0x31e   : > { %6741 = vmatpush2.bf16.msra.mxu0 %v12871_v24  ;;  %v12969_v24 = vld [vmem:[%s17967_s6 + $0x38c] ss:$16 sps:$4 sm:$0xff]  }
 0x31f   : > { %6742 = vmatprep.subr.bf16.mxu0 %v12879_v25  ;;  %v12832_v25 = vld [vmem:[%s17967_s6 + $0x7a0] ss:$16 sps:$4 sm:$0xff]  }
 0x320   : > { %6552 = vmatpush2.bf16.msra.mxu1 %v12751_v27  ;;  %v12845_v27 = vld [vmem:[%s17967_s6 + $0x784] ss:$16 sps:$4 sm:$0xff]  }
 0x321   : > { %6553 = vmatprep.subr.bf16.mxu1 %v12762_v34  ;;  %v12967_v34 = vld [vmem:[%s17967_s6 + $0x388] ss:$16 sps:$4 sm:$0xff]  }
 0x322   : > { %6743 = vmatpush2.bf16.msra.mxu0 %v12877_v10  ;;  %v12975_v10 = vld [vmem:[%s17967_s6 + $0x36c] ss:$16 sps:$4 sm:$0xff]  }
 0x323   : > { %6838 = vmatprep.subr.bf16.mxu0 %v12891_v13  ;;  %v12843_v13 = vld [vmem:[%s17967_s6 + $0x780] ss:$16 sps:$4 sm:$0xff]  }
 0x324   : > { %6554 = vmatpush2.bf16.msra.mxu1 %v12760_v28  ;;  %v12852_v28 = vld [vmem:[%s17967_s6 + $0x764] ss:$16 sps:$4 sm:$0xff]  }
 0x325   : > { %6649 = vmatprep.subr.bf16.mxu1 %v12771_v9  ;;  %6745 = vmatmul.mubr.bf16.vlgmr.msra.gmra.mxu0 %v12886_v29  ;;  %v12973_v9 = vld [vmem:[%s17967_s6 + $0x368] ss:$16 sps:$4 sm:$0xff]   ;;  %v12981_v29 = vld [vmem:[%s17967_s6 + $0x34c] ss:$16 sps:$4 sm:$0xff]  }
 0x326   : > { %6839 = vmatpush1.bf16.msra.mxu0 %v12889_v30  ;;  %6754 = vmatprep.mubr.bf16.mxu0 %v12904_v31  ;;  %v12850_v30 = vld [vmem:[%s17967_s6 + $0x760] ss:$16 sps:$4 sm:$0xff]   ;;  %v12863_v31 = vld [vmem:[%s17967_s6 + $0x744] ss:$16 sps:$4 sm:$0xff]  }
 0x327   : > { %6556 = vmatmul.mubr.bf16.vlgmr.msra.gmra.mxu1 %v16141_v20  ;;  %6840 = vmatprep.subr.bf16.mxu0 %v12897_v32  ;;  %v12979_v32 = vld [vmem:[%s17967_s6 + $0x348] ss:$16 sps:$4 sm:$0xff]  }
 0x328   : > { %6650 = vmatpush1.bf16.msra.mxu1 %v12769_v33  ;;  %6565 = vmatprep.mubr.bf16.mxu1 %v16152_v35  ;;  %v12987_v33 = vld [vmem:[%s17967_s6 + $0x32c] ss:$16 sps:$4 sm:$0xff]  }
 0x329   : > { %6651 = vmatprep.subr.bf16.mxu1 %v12780_v36  ;;  %v12861_v36 = vld [vmem:[%s17967_s6 + $0x740] ss:$16 sps:$4 sm:$0xff]  }
 0x32a   : > { %6841 = vmatpush1.bf16.msra.mxu0 %v12895_v37  ;;  %v12870_v37 = vld [vmem:[%s17967_s6 + $0x724] ss:$16 sps:$4 sm:$0xff]  }
 0x32b   : > { %6842 = vmatprep.subr.bf16.mxu0 %v12909_v38  ;;  %v12985_v38 = vld [vmem:[%s17967_s6 + $0x328] ss:$16 sps:$4 sm:$0xff]  }
 0x32c   : > { %6652 = vmatpush1.bf16.msra.mxu1 %v12778_v39  ;;  %v12993_v39 = vld [vmem:[%s17967_s6 + $0x30c] ss:$16 sps:$4 sm:$0xff]  }
 0x32d   : > { %6653 = vmatprep.subr.bf16.mxu1 %v12786_v40  ;;  %6755 = vmatmul.mubr.bf16.gmra.mxu0 %v12906_v41  ;;  %v12868_v40 = vld [vmem:[%s17967_s6 + $0x720] ss:$16 sps:$4 sm:$0xff]   ;;  %v4164_v41 = vpop.f32.mrf.mxu0 }
 0x32e   : > { %6843 = vmatpush1.bf16.msra.mxu0 %v12907_v42  ;;  %6764 = vmatprep.mubr.bf16.mxu0 %v12922_v43  ;;  %v12876_v42 = vld [vmem:[%s17967_s6 + $0x704] ss:$16 sps:$4 sm:$0xff]   ;;  %v12991_v43 = vld [vmem:[%s17967_s6 + $0x308] ss:$16 sps:$4 sm:$0xff]  }
 0x32f   : > { %6566 = vmatmul.mubr.bf16.gmra.mxu1 %v16183_v44  ;;  %6844 = vmatprep.subr.bf16.mxu0 %v12915_v45  ;;  %v16367_v45 = vld [vmem:[%s17966_s5] sm:$0xf] }
 0x330   : > { %6654 = vmatpush1.bf16.msra.mxu1 %v12784_v46  ;;  %6575 = vmatprep.mubr.bf16.mxu1 %v16194_v47  ;;  %v12999_v46 = vld [vmem:[%s17967_s6 + $0x6ec] ss:$16 sps:$4 sm:$0xff]  }
 0x331   : > { %6655 = vmatprep.subr.bf16.mxu1 %v12792_v48  ;;  %v12874_v48 = vld [vmem:[%s17967_s6 + $0x700] ss:$16 sps:$4 sm:$0xff]  }
 0x332   : > { %6845 = vmatpush1.bf16.msra.mxu0 %v12913_v50  ;;  %v4166_v50 = vpop.f32.mrf.mxu0 }
 0x333   : > { %6846 = vmatprep.subr.bf16.mxu0 %v12927_v51  ;;  %v12885_v51 = vld [vmem:[%s17967_s6 + $0xec] ss:$16 sps:$4 sm:$0xff]  }
 0x334   : > { %6656 = vmatpush1.bf16.msra.mxu1 %v12790_v52  ;;  %v3473_v52 = vrot.slane %v16367_v45, %v15435_v18 }
 0x335   : > { %6657 = vmatprep.subr.bf16.mxu1 %v12798_v53  ;;  %6765 = vmatmul.mubr.bf16.gmra.mxu0 %v12924_v54  ;;  %v12997_v53 = vld [vmem:[%s17967_s6 + $0x6e8] ss:$16 sps:$4 sm:$0xff]  }
 0x336   : > { %6847 = vmatpush1.bf16.msra.mxu0 %v12925_v55  ;;  %6870 = vmatprep.mubr.bf16.mxu0 %v15930_v26  ;;  %v12937_v26 = vld [vmem:[%s17967_s6 + $0x228] ss:$16 sps:$4 sm:$0xff]   ;;  %v13005_v55 = vld [vmem:[%s17967_s6 + $0x6cc] ss:$16 sps:$4 sm:$0xff]  }
 0x337   : > { %6576 = vmatmul.mubr.bf16.gmra.mxu1 %v16222_v56  ;;  %6848 = vmatprep.subr.bf16.mxu0 %v12933_v57  ;;  %v16386_v54 = vld [vmem:[%s17962_s1 + $0x18] ss:$40 sps:$4 sm:$0xff]   ;;  %v3477_v57 = vrot.slane %v16367_v45, %v15432_v17 }
 0x338   : > { %6658 = vmatpush1.bf16.msra.mxu1 %v12796_v58  ;;  %6681 = vmatprep.mubr.bf16.mxu1 %v16233_v59  ;;  %v12883_v58 = vld [vmem:[%s17967_s6 + $0xe8] ss:$16 sps:$4 sm:$0xff]  }
 0x339   : > { %6659 = vmatprep.subr.bf16.mxu1 %v12804_v60  ;;  %v16399_v60 = vld [vmem:[%s17962_s1 + $0x6c] ss:$40 sps:$4 sm:$0xff]  }
 0x33a   : > { %6849 = vmatpush1.bf16.msra.mxu0 %v12931_v61  ;;  %v4168_v61 = vpop.f32.mrf.mxu0 }
 0x33b   : > { %6850 = vmatprep.subr.bf16.mxu0 %v12939_v62  ;;  %v12894_v62 = vld [vmem:[%s17967_s6 + $0xcc] ss:$16 sps:$4 sm:$0xff]  }
 0x33c   : > { %6660 = vmatpush1.bf16.msra.mxu1 %v12802_v63  ;;  %v4165_v63 = vadd.f32 %v4164_v41, %v3473_v52  ;;  %v13033_v41 = vld [vmem:[%s17967_s6 + $0x628] ss:$16 sps:$4 sm:$0xff]  }
 0x33d   : > { %6661 = vmatprep.subr.bf16.mxu1 %v12810_v0  ;;  %v13003_v0 = vld [vmem:[%s17967_s6 + $0x6c8] ss:$16 sps:$4 sm:$0xff]  }
 0x33e   : > { %6851 = vmatpush1.bf16.msra.mxu0 %v12937_v26 }
 0x33f   : > { %6852 = vmatprep.subr.bf16.mxu0 %v12945_v1  ;;  %v13011_v1 = vld [vmem:[%s17967_s6 + $0x6ac] ss:$16 sps:$4 sm:$0xff]  }
 0x340   : > { %6662 = vmatpush1.bf16.msra.mxu1 %v12808_v2  ;;  %v4167_v2 = vadd.f32 %v4166_v50, %v3477_v57  ;;  %v13047_v50 = vld [vmem:[%s17967_s6 + $0x7ec] ss:$16 sps:$4 sm:$0xff]  }
 0x341   : > { %6663 = vmatprep.subr.bf16.mxu1 %v12816_v3 }
 0x342   : > { %6853 = vmatpush1.bf16.msra.mxu0 %v12943_v5  ;;  %v4170_v5 = vpop.f32.mrf.mxu0 }
 0x343   : > { %6854 = vmatprep.subr.bf16.mxu0 %v12951_v6 }
 0x344   : > { %6664 = vmatpush1.bf16.msra.mxu1 %v12814_v7  ;;  %v4169_v7 = vadd.f32 %v4168_v61, %v3473_v52  ;;  %v12948_v52 = vld [vmem:[%s17967_s6 + $0x1ec] ss:$16 sps:$4 sm:$0xff]   ;;  %v13051_v61 = vld [vmem:[%s17967_s6 + $0x7c8] ss:$16 sps:$4 sm:$0xff]  }
 0x345   : > { %6665 = vmatprep.subr.bf16.mxu1 %v12822_v11 }
 0x346   : > { %6855 = vmatpush2.bf16.msra.mxu0 %v12949_v12  ;;  %v13009_v12 = vld [vmem:[%s17967_s6 + $0x6a8] ss:$16 sps:$4 sm:$0xff]  }
 0x347   : > { %6856 = vmatprep.subr.bf16.mxu0 %v12957_v15 }
 0x348   : > { %6666 = vmatpush2.bf16.msra.mxu1 %v12820_v19  ;;  %v16426_v19 = vld [vmem:[%s17962_s1 + $0x68] ss:$40 sps:$4 sm:$0xff]  }
 0x349   : > { %6667 = vmatprep.subr.bf16.mxu1 %v12828_v21  ;;  %v13017_v21 = vld [vmem:[%s17967_s6 + $0x68c] ss:$16 sps:$4 sm:$0xff]  }
 0x34a   : > { %6857 = vmatpush2.bf16.msra.mxu0 %v12955_v22  ;;  %v4171_v22 = vadd.f32 %v4170_v5, %v3477_v57  ;;  %v12946_v57 = vld [vmem:[%s17967_s6 + $0x1e8] ss:$16 sps:$4 sm:$0xff]   ;;  %v13071_v5 = vld [vmem:[%s17967_s6 + $0x76c] ss:$16 sps:$4 sm:$0xff]  }
 0x34b   : > { %6858 = vmatprep.subr.bf16.mxu0 %v12963_v23 }
 0x34c   : > { %6668 = vmatpush2.bf16.msra.mxu1 %v12826_v49 }
 0x34d   : > { %6669 = vmatprep.subr.bf16.mxu1 %v12834_v4 }
 0x34e   : > { %6859 = vmatpush2.bf16.msra.mxu0 %v12961_v8  ;;  %v12901_v8 = vld [vmem:[%s17967_s6 + $0xa8] ss:$16 sps:$4 sm:$0xff]  }
 0x34f   : > { %6860 = vmatprep.subr.bf16.mxu0 %v12969_v24  ;;  %v16437_v24 = vld [vmem:[%s17962_s1 + $0xbc] ss:$40 sps:$4 sm:$0xff]  }
 0x350   : > { %6670 = vmatpush2.bf16.msra.mxu1 %v12832_v25 }
 0x351   : > { %6671 = vmatprep.subr.bf16.mxu1 %v12845_v27  ;;  %v12912_v27 = vld [vmem:[%s17967_s6 + $0x8c] ss:$16 sps:$4 sm:$0xff]  }
 0x352   : > { %6861 = vmatpush2.bf16.msra.mxu0 %v12967_v34 }
 0x353   : > { %6862 = vmatprep.subr.bf16.mxu0 %v12975_v10 }
 0x354   : > { %6672 = vmatpush2.bf16.msra.mxu1 %v12843_v13  ;;  %v13015_v13 = vld [vmem:[%s17967_s6 + $0x688] ss:$16 sps:$4 sm:$0xff]  }
 0x355   : > { %6673 = vmatprep.subr.bf16.mxu1 %v12852_v28  ;;  %v13023_v28 = vld [vmem:[%s17967_s6 + $0x66c] ss:$16 sps:$4 sm:$0xff]  }
 0x356   : > { %6863 = vmatpush2.bf16.msra.mxu0 %v12973_v9 }
 0x357   : > { %6864 = vmatprep.subr.bf16.mxu0 %v12981_v29 }
 0x358   : > { %6674 = vmatpush2.bf16.msra.mxu1 %v12850_v30 }
 0x359   : > { %6675 = vmatprep.subr.bf16.mxu1 %v12863_v31  ;;  %v13021_v31 = vld [vmem:[%s17967_s6 + $0x668] ss:$16 sps:$4 sm:$0xff]  }
 0x35a   : > { %6865 = vmatpush2.bf16.msra.mxu0 %v12979_v32  ;;  %v16464_v32 = vld [vmem:[%s17962_s1 + $0xb8] ss:$40 sps:$4 sm:$0xff]  }
 0x35b   : > { %6866 = vmatprep.subr.bf16.mxu0 %v12987_v33  ;;  %v13029_v33 = vld [vmem:[%s17967_s6 + $0x64c] ss:$16 sps:$4 sm:$0xff]  }
 0x35c   : > { %6676 = vmatpush2.bf16.msra.mxu1 %v12861_v36  ;;  %v12919_v36 = vld [vmem:[%s17967_s6 + $0x68] ss:$16 sps:$4 sm:$0xff]  }
 0x35d   : > { %6677 = vmatprep.subr.bf16.mxu1 %v12870_v37  ;;  %v12930_v37 = vld [vmem:[%s17967_s6 + $0x4c] ss:$16 sps:$4 sm:$0xff]  }
 0x35e   : > { %6867 = vmatpush2.bf16.msra.mxu0 %v12985_v38  ;;  %v13027_v38 = vld [vmem:[%s17967_s6 + $0x648] ss:$16 sps:$4 sm:$0xff]  }
 0x35f   : > { %6868 = vmatprep.subr.bf16.mxu0 %v12993_v39  ;;  %v13035_v39 = vld [vmem:[%s17967_s6 + $0x62c] ss:$16 sps:$4 sm:$0xff]  }
 0x360   : > { %6678 = vmatpush2.bf16.msra.mxu1 %v12868_v40  ;;  %v12928_v40 = vld [vmem:[%s17967_s6 + $0x48] ss:$16 sps:$4 sm:$0xff]  }
 0x361   : > { %6679 = vmatprep.subr.bf16.mxu1 %v12876_v42  ;;  %v13041_v42 = vld [vmem:[%s17967_s6 + $0x60c] ss:$16 sps:$4 sm:$0xff]  }
 0x362   : > { %6869 = vmatpush2.bf16.msra.mxu0 %v12991_v43  ;;  %v12934_v43 = vld [vmem:[%s17967_s6 + $0x28] ss:$16 sps:$4 sm:$0xff]  }
 0x363   : > { %6964 = vmatprep.subr.bf16.mxu0 %v12999_v46  ;;  %v12942_v46 = vld [vmem:[%s17967_s6 + $0xc] ss:$16 sps:$4 sm:$0xff]  }
 0x364   : > { %6680 = vmatpush2.bf16.msra.mxu1 %v12874_v48  ;;  %v13039_v48 = vld [vmem:[%s17967_s6 + $0x608] ss:$16 sps:$4 sm:$0xff]  }
 0x365   : > { %6775 = vmatprep.subr.bf16.mxu1 %v12885_v51  ;;  %6871 = vmatmul.mubr.bf16.vlgmr.msra.gmra.mxu0 %v16141_v20  ;;  %v12892_v20 = vld [vmem:[%s17967_s6 + $0xc8] ss:$16 sps:$4 sm:$0xff]  }
 0x366   : > { %6965 = vmatpush1.bf16.msra.mxu0 %v12997_v53  ;;  %6880 = vmatprep.mubr.bf16.mxu0 %v16152_v35  ;;  %v12903_v35 = vld [vmem:[%s17967_s6 + $0xac] ss:$16 sps:$4 sm:$0xff]   ;;  %v12940_v51 = vld [vmem:[%s17967_s6 + $0x8] ss:$16 sps:$4 sm:$0xff]  }
 0x367   : > { %6682 = vmatmul.mubr.bf16.vlgmr.msra.gmra.mxu1 %v16386_v54  ;;  %v4207_v26 = vpop.f32.mrf.mxu1  ;;  %6966 = vmatprep.subr.bf16.mxu0 %v13005_v55  ;;  %v13045_v53 = vld [vmem:[%s17967_s6 + $0x7e8] ss:$16 sps:$4 sm:$0xff]   ;;  %v13053_v55 = vld [vmem:[%s17967_s6 + $0x7cc] ss:$16 sps:$4 sm:$0xff]  }
 0x368   : > { %v4208_v3 = vadd.f32 %v4207_v26, %v4165_v63  ;;  %6776 = vmatpush1.bf16.msra.mxu1 %v12883_v58  ;;  %6691 = vmatprep.mubr.bf16.mxu1 %v16399_v60  ;;  %v12954_v58 = vld [vmem:[%s17967_s6 + $0x1cc] ss:$16 sps:$4 sm:$0xff]   ;;  %v12952_v63 = vld [vmem:[%s17967_s6 + $0x1c8] ss:$16 sps:$4 sm:$0xff]  }
 0x369   : > { %v4209_v6 = vpop.f32.mrf.mxu1  ;;  %6777 = vmatprep.subr.bf16.mxu1 %v12894_v62  ;;  %v13059_v62 = vld [vmem:[%s17967_s6 + $0x7ac] ss:$16 sps:$4 sm:$0xff]   ;;  %v13057_v26 = vld [vmem:[%s17967_s6 + $0x7a8] ss:$16 sps:$4 sm:$0xff]  }
 0x36a   : > { %v4210_v11 = vadd.f32 %v4209_v6, %v4167_v2  ;;  %6967 = vmatpush1.bf16.msra.mxu0 %v13003_v0  ;;  %v4302_v23 = vmax.f32 %v4208_v3, 0.0  ;;  %v12960_v0 = vld [vmem:[%s17967_s6 + $0x1ac] ss:$16 sps:$4 sm:$0xff]   ;;  %v12958_v2 = vld [vmem:[%s17967_s6 + $0x1a8] ss:$16 sps:$4 sm:$0xff]  }
 0x36b   : > { %v4211_v15 = vpop.f32.mrf.mxu1  ;;  %6968 = vmatprep.subr.bf16.mxu0 %v13011_v1  ;;  %v13065_v1 = vld [vmem:[%s17967_s6 + $0x78c] ss:$16 sps:$4 sm:$0xff]   ;;  %v12964_v6 = vld [vmem:[%s17967_s6 + $0x188] ss:$16 sps:$4 sm:$0xff]  }
 0x36c   : > { %v4303_v49 = vmax.f32 %v4210_v11, 0.0  ;;  %v4212_v4 = vadd.f32 %v4211_v15, %v4169_v7  ;;  %6778 = vmatpush1.bf16.msra.mxu1 %v12892_v20  ;;  %v12966_v3 = vld [vmem:[%s17967_s6 + $0x18c] ss:$16 sps:$4 sm:$0xff]   ;;  %v13063_v20 = vld [vmem:[%s17967_s6 + $0x788] ss:$16 sps:$4 sm:$0xff]  }
 0x36d   : > { %v4213_v25 = vpop.f32.mrf.mxu1  ;;  %6779 = vmatprep.subr.bf16.mxu1 %v12903_v35  ;;  %6881 = vmatmul.mubr.bf16.gmra.mxu0 %v16183_v44  ;;  %v12910_v44 = vld [vmem:[%s17967_s6 + $0x88] ss:$16 sps:$4 sm:$0xff]   ;;  %v12972_v35 = vld [vmem:[%s17967_s6 + $0x16c] ss:$16 sps:$4 sm:$0xff]  }
 0x36e   : > { %v11704_v34 = vpack.c.bf16 %v4303_v49, %v4302_v23  ;;  %v4214_v10 = vadd.f32 %v4213_v25, %v4171_v22  ;;  %6969 = vmatpush1.bf16.msra.mxu0 %v13009_v12  ;;  %6890 = vmatprep.mubr.bf16.mxu0 %v16194_v47  ;;  %v4306_v9 = vmax.f32 %v4212_v4, 0.0  ;;  %v12921_v47 = vld [vmem:[%s17967_s6 + $0x6c] ss:$16 sps:$4 sm:$0xff]   ;;  %v13069_v7 = vld [vmem:[%s17967_s6 + $0x768] ss:$16 sps:$4 sm:$0xff]  }
 0x36f   : > { %6692 = vmatmul.mubr.bf16.gmra.mxu1 %v16426_v19  ;;  %6970 = vmatprep.subr.bf16.mxu0 %v13017_v21  ;;  %v13077_v11 = vld [vmem:[%s17967_s6 + $0x74c] ss:$16 sps:$4 sm:$0xff]   ;;  %v12970_v12 = vld [vmem:[%s17967_s6 + $0x168] ss:$16 sps:$4 sm:$0xff]  }
 0x370   : > { %4334 = vst [vmem:[#allocation2 + $0x30] sm:$0xff] %v11704_v34  ;;  %v4307_v29 = vmax.f32 %v4214_v10, 0.0  ;;  %6780 = vmatpush1.bf16.msra.mxu1 %v12901_v8  ;;  %6701 = vmatprep.mubr.bf16.mxu1 %v16437_v24  ;;  %v12978_v15 = vld [vmem:[%s17967_s6 + $0x14c] ss:$16 sps:$4 sm:$0xff]   ;;  %v13075_v21 = vld [vmem:[%s17967_s6 + $0x748] ss:$16 sps:$4 sm:$0xff]  }
 0x371   : > { %6781 = vmatprep.subr.bf16.mxu1 %v12912_v27  ;;  %v13083_v22 = vld [vmem:[%s17967_s6 + $0x72c] ss:$16 sps:$4 sm:$0xff]   ;;  %v12976_v23 = vld [vmem:[%s17967_s6 + $0x148] ss:$16 sps:$4 sm:$0xff]   ;;  %v4250_v27 = vpop.f32.mrf.mxu0 }
 0x372   : > { %v11706_v30 = vpack.c.bf16 %v4307_v29, %v4306_v9  ;;  %6971 = vmatpush1.bf16.msra.mxu0 %v13015_v13  ;;  %v12984_v49 = vld [vmem:[%s17967_s6 + $0x12c] ss:$16 sps:$4 sm:$0xff]   ;;  %v13081_v4 = vld [vmem:[%s17967_s6 + $0x728] ss:$16 sps:$4 sm:$0xff]   ;;  %v13104_v13 = vld [vmem:[%s17969_s8 + $0xe4] ss:$16 sps:$4 sm:$0xff]  }
 0x373   : > { %6972 = vmatprep.subr.bf16.mxu0 %v13023_v28  ;;  %v13089_v8 = vld [vmem:[%s17967_s6 + $0x70c] ss:$16 sps:$4 sm:$0xff]   ;;  %v12982_v25 = vld [vmem:[%s17967_s6 + $0x128] ss:$16 sps:$4 sm:$0xff]   ;;  %v4252_v9 = vpop.f32.mrf.mxu0 }
 0x374   : > { %4336 = vst [vmem:[#allocation2 + $0x58] sm:$0xff] %v11706_v30  ;;  %6782 = vmatpush1.bf16.msra.mxu1 %v12910_v44  ;;  %v12990_v34 = vld [vmem:[%s17967_s6 + $0x10c] ss:$16 sps:$4 sm:$0xff]   ;;  %v13087_v10 = vld [vmem:[%s17967_s6 + $0x708] ss:$16 sps:$4 sm:$0xff]   ;;  %v3481_v44 = vrot.slane %v16367_v45, %v15660_v16 }
 0x375   : > { %6783 = vmatprep.subr.bf16.mxu1 %v12921_v47  ;;  %6891 = vmatmul.mubr.bf16.gmra.mxu0 %v16222_v56  ;;  %v13335_v56 = vld [vmem:[%s17962_s1 + $0x4] ss:$40 sps:$4 sm:$0xff]   ;;  %v12988_v28 = vld [vmem:[%s17967_s6 + $0x108] ss:$16 sps:$4 sm:$0xff]   ;;  %v13102_v47 = vld [vmem:[%s17969_s8 + $0xe0] ss:$16 sps:$4 sm:$0xff]  }
 0x376   : > { %6973 = vmatpush1.bf16.msra.mxu0 %v13021_v31  ;;  %6996 = vmatprep.mubr.bf16.mxu0 %v16233_v59  ;;  %v12936_v59 = vld [vmem:[%s17967_s6 + $0x2c] ss:$16 sps:$4 sm:$0xff]   ;;  %v13110_v30 = vld [vmem:[%s17969_s8 + $0xc4] ss:$16 sps:$4 sm:$0xff]   ;;  %v3485_v31 = vrot.slane %v16367_v45, %v15654_v14  ;;  %v13108_v45 = vld [vmem:[%s17969_s8 + $0xc0] ss:$16 sps:$4 sm:$0xff]  }
 0x377   : > { %6702 = vmatmul.mubr.bf16.gmra.mxu1 %v16464_v32  ;;  %6974 = vmatprep.subr.bf16.mxu0 %v13029_v33  ;;  %v12996_v29 = vld [vmem:[%s17967_s6 + $0x4ec] ss:$16 sps:$4 sm:$0xff]   ;;  %v12994_v33 = vld [vmem:[%s17967_s6 + $0x4e8] ss:$16 sps:$4 sm:$0xff]  }
 0x378   : > { %6784 = vmatpush1.bf16.msra.mxu1 %v12919_v36  ;;  %6807 = vmatprep.mubr.bf16.mxu1 %v13335_v56  ;;  %v4254_v36 = vpop.f32.mrf.mxu0  ;;  %v13116_v56 = vld [vmem:[%s17969_s8 + $0xa4] ss:$16 sps:$4 sm:$0xff]  }
 0x379   : > { %6785 = vmatprep.subr.bf16.mxu1 %v12930_v37  ;;  %v13002_v37 = vld [vmem:[%s17967_s6 + $0x4cc] ss:$16 sps:$4 sm:$0xff]  }
 0x37a   : > { %6975 = vmatpush1.bf16.msra.mxu0 %v13027_v38  ;;  %v4251_v38 = vadd.f32 %v4250_v27, %v3481_v44 }
 0x37b   : > { %6976 = vmatprep.subr.bf16.mxu0 %v13035_v39 }
 0x37c   : > { %6786 = vmatpush1.bf16.msra.mxu1 %v12928_v40  ;;  %v13336_v40 = vld [vmem:[%s17962_s1] ss:$40 sps:$4 sm:$0xff]  }
 0x37d   : > { %6787 = vmatprep.subr.bf16.mxu1 %v12936_v59 }
 0x37e   : > { %6977 = vmatpush1.bf16.msra.mxu0 %v13033_v41  ;;  %v13337_v41 = vld [vmem:[%s17962_s1 + $0x54] ss:$40 sps:$4 sm:$0xff]  }
 0x37f   : > { %6978 = vmatprep.subr.bf16.mxu0 %v13041_v42  ;;  %v4256_v42 = vpop.f32.mrf.mxu0 }
 0x380   : > { %6788 = vmatpush1.bf16.msra.mxu1 %v12934_v43 }
 0x381   : > { %6789 = vmatprep.subr.bf16.mxu1 %v12942_v46  ;;  %v13008_v46 = vld [vmem:[%s17967_s6 + $0x4ac] ss:$16 sps:$4 sm:$0xff]  }
 0x382   : > { %6979 = vmatpush1.bf16.msra.mxu0 %v13039_v48  ;;  %v4255_v48 = vadd.f32 %v4254_v36, %v3481_v44  ;;  %v13152_v44 = vld [vmem:[%s17969_s8 + $0x1e4] ss:$16 sps:$4 sm:$0xff]  }
 0x383   : > { %6980 = vmatprep.subr.bf16.mxu0 %v13047_v50  ;;  %v13158_v36 = vld [vmem:[%s17969_s8 + $0x1c4] ss:$16 sps:$4 sm:$0xff]  }
 0x384   : > { %6790 = vmatpush1.bf16.msra.mxu1 %v12940_v51  ;;  %v13114_v51 = vld [vmem:[%s17969_s8 + $0xa0] ss:$16 sps:$4 sm:$0xff]  }
 0x385   : > { %6791 = vmatprep.subr.bf16.mxu1 %v12948_v52 }
 0x386   : > { %6981 = vmatpush2.bf16.msra.mxu0 %v13045_v53  ;;  %v13122_v53 = vld [vmem:[%s17969_s8 + $0x84] ss:$16 sps:$4 sm:$0xff]  }
 0x387   : > { %6982 = vmatprep.subr.bf16.mxu0 %v13053_v55  ;;  %v4257_v55 = vadd.f32 %v4256_v42, %v3485_v31  ;;  %v13054_v42 = vld [vmem:[%s17967_s6 + $0x5a8] ss:$16 sps:$4 sm:$0xff]  }
 0x388   : > { %6792 = vmatpush2.bf16.msra.mxu1 %v12946_v57 }
 0x389   : > { %6793 = vmatprep.subr.bf16.mxu1 %v12954_v58 }
 0x38a   : > { %6983 = vmatpush2.bf16.msra.mxu0 %v13051_v61 }
 0x38b   : > { %6984 = vmatprep.subr.bf16.mxu0 %v13059_v62  ;;  %v13006_v62 = vld [vmem:[%s17967_s6 + $0x4a8] ss:$16 sps:$4 sm:$0xff]  }
 0x38c   : > { %6794 = vmatpush2.bf16.msra.mxu1 %v12952_v63 }
 0x38d   : > { %6795 = vmatprep.subr.bf16.mxu1 %v12960_v0  ;;  %v13014_v0 = vld [vmem:[%s17967_s6 + $0x48c] ss:$16 sps:$4 sm:$0xff]  }
 0x38e   : > { %6985 = vmatpush2.bf16.msra.mxu0 %v13057_v26 }
 0x38f   : > { %6986 = vmatprep.subr.bf16.mxu0 %v13065_v1 }
 0x390   : > { %6796 = vmatpush2.bf16.msra.mxu1 %v12958_v2  ;;  %v13120_v2 = vld [vmem:[%s17969_s8 + $0x80] ss:$16 sps:$4 sm:$0xff]  }
 0x391   : > { %6797 = vmatprep.subr.bf16.mxu1 %v12966_v3  ;;  %v13338_v3 = vld [vmem:[%s17962_s1 + $0x50] ss:$40 sps:$4 sm:$0xff]  }
 0x392   : > { %6987 = vmatpush2.bf16.msra.mxu0 %v13063_v20  ;;  %v13128_v20 = vld [vmem:[%s17969_s8 + $0x64] ss:$16 sps:$4 sm:$0xff]  }
 0x393   : > { %6988 = vmatprep.subr.bf16.mxu0 %v13071_v5 }
 0x394   : > { %6798 = vmatpush2.bf16.msra.mxu1 %v12964_v6  ;;  %v13339_v6 = vld [vmem:[%s17962_s1 + $0xa4] ss:$40 sps:$4 sm:$0xff]  }
 0x395   : > { %6799 = vmatprep.subr.bf16.mxu1 %v12972_v35  ;;  %v13020_v35 = vld [vmem:[%s17967_s6 + $0x46c] ss:$16 sps:$4 sm:$0xff]  }
 0x396   : > { %6989 = vmatpush2.bf16.msra.mxu0 %v13069_v7 }
 0x397   : > { %6990 = vmatprep.subr.bf16.mxu0 %v13077_v11  ;;  %v13126_v11 = vld [vmem:[%s17969_s8 + $0x60] ss:$16 sps:$4 sm:$0xff]  }
 0x398   : > { %6800 = vmatpush2.bf16.msra.mxu1 %v12970_v12  ;;  %v13134_v12 = vld [vmem:[%s17969_s8 + $0x44] ss:$16 sps:$4 sm:$0xff]  }
 0x399   : > { %6801 = vmatprep.subr.bf16.mxu1 %v12978_v15  ;;  %v13018_v15 = vld [vmem:[%s17967_s6 + $0x468] ss:$16 sps:$4 sm:$0xff]  }
 0x39a   : > { %6991 = vmatpush2.bf16.msra.mxu0 %v13075_v21  ;;  %v13026_v21 = vld [vmem:[%s17967_s6 + $0x44c] ss:$16 sps:$4 sm:$0xff]  }
 0x39b   : > { %6992 = vmatprep.subr.bf16.mxu0 %v13083_v22  ;;  %v16693_v22 = vpop.f32.mrf.mxu0 }
 0x39c   : > { %6802 = vmatpush2.bf16.msra.mxu1 %v12976_v23  ;;  %v13132_v23 = vld [vmem:[%s17969_s8 + $0x40] ss:$16 sps:$4 sm:$0xff]  }
 0x39d   : > { %6803 = vmatprep.subr.bf16.mxu1 %v12984_v49  ;;  %v13340_v49 = vld [vmem:[%s17962_s1 + $0xa0] ss:$40 sps:$4 sm:$0xff]   ;;  %v16714_v27 = vpop.f32.mrf.mxu0 }
 0x39e   : > { %6993 = vmatpush2.bf16.msra.mxu0 %v13081_v4  ;;  %v13140_v4 = vld [vmem:[%s17969_s8 + $0x24] ss:$16 sps:$4 sm:$0xff]  }
 0x39f   : > { %6994 = vmatprep.subr.bf16.mxu0 %v13089_v8  ;;  %v13341_v8 = vld [vmem:[%s17962_s1 + $0x14] ss:$40 sps:$4 sm:$0xff]  }
 0x3a0   : > { %6804 = vmatpush2.bf16.msra.mxu1 %v12982_v25  ;;  %v13032_v25 = vld [vmem:[%s17967_s6 + $0x42c] ss:$16 sps:$4 sm:$0xff]  }
 0x3a1   : > { %6805 = vmatprep.subr.bf16.mxu1 %v12990_v34  ;;  %v13138_v34 = vld [vmem:[%s17969_s8 + $0x20] ss:$16 sps:$4 sm:$0xff]  }
 0x3a2   : > { %6995 = vmatpush2.bf16.msra.mxu0 %v13087_v10  ;;  %v13146_v10 = vld [vmem:[%s17969_s8 + $0x4] ss:$16 sps:$4 sm:$0xff]  }
 0x3a3   : > { %7916 = vmatprep.subr.bf16.mxu0 %v13104_v13  ;;  %v13030_v13 = vld [vmem:[%s17967_s6 + $0x428] ss:$16 sps:$4 sm:$0xff]  }
 0x3a4   : > { %6806 = vmatpush2.bf16.msra.mxu1 %v12988_v28  ;;  %v13038_v28 = vld [vmem:[%s17967_s6 + $0x40c] ss:$16 sps:$4 sm:$0xff]  }
 0x3a5   : > { %6901 = vmatprep.subr.bf16.mxu1 %v12996_v29  ;;  %6997 = vmatmul.mubr.bf16.vlgmr.msra.gmra.mxu0 %v16386_v54  ;;  %v4253_v54 = vadd.f32 %v4252_v9, %v3485_v31  ;;  %v16728_v9 = vpop.f32.mrf.mxu0  ;;  %v13144_v29 = vld [vmem:[%s17969_s8] ss:$16 sps:$4 sm:$0xff]  }
 0x3a6   : > { %7006 = vmatprep.mubr.bf16.mxu0 %v16399_v60  ;;  %7917 = vmatpush1.bf16.msra.mxu0 %v13102_v47  ;;  %v13000_v60 = vld [vmem:[%s17967_s6 + $0x4c8] ss:$16 sps:$4 sm:$0xff]  }
 0x3a7   : > { %v4293_v39 = vpop.f32.mrf.mxu1  ;;  %6808 = vmatmul.mubr.bf16.vlgmr.msra.gmra.mxu1 %v13336_v40  ;;  %7918 = vmatprep.subr.bf16.mxu0 %v13110_v30  ;;  %v13036_v47 = vld [vmem:[%s17967_s6 + $0x408] ss:$16 sps:$4 sm:$0xff]   ;;  %v13044_v30 = vld [vmem:[%s17967_s6 + $0x5ec] ss:$16 sps:$4 sm:$0xff]   ;;  %v16742_v31 = vpop.f32.mrf.mxu0  ;;  %v13164_v40 = vld [vmem:[%s17969_s8 + $0x1a4] ss:$16 sps:$4 sm:$0xff]  }
 0x3a8   : > { %v4294_v59 = vadd.f32 %v4293_v39, %v4251_v38  ;;  %6902 = vmatpush1.bf16.msra.mxu1 %v12994_v33  ;;  %6817 = vmatprep.mubr.bf16.mxu1 %v13337_v41  ;;  %v13150_v33 = vld [vmem:[%s17969_s8 + $0x1e0] ss:$16 sps:$4 sm:$0xff]   ;;  %v13050_v38 = vld [vmem:[%s17967_s6 + $0x5cc] ss:$16 sps:$4 sm:$0xff]   ;;  %v13170_v41 = vld [vmem:[%s17969_s8 + $0x184] ss:$16 sps:$4 sm:$0xff]  }
 0x3a9   : > { %v4295_v43 = vpop.f32.mrf.mxu1  ;;  %6903 = vmatprep.subr.bf16.mxu1 %v13002_v37  ;;  %v13042_v37 = vld [vmem:[%s17967_s6 + $0x5e8] ss:$16 sps:$4 sm:$0xff]   ;;  %v13156_v39 = vld [vmem:[%s17969_s8 + $0x1c0] ss:$16 sps:$4 sm:$0xff]  }
 0x3aa   : > { %v4296_v50 = vadd.f32 %v4295_v43, %v4253_v54  ;;  %7919 = vmatpush1.bf16.msra.mxu0 %v13108_v45  ;;  %v4304_v57 = vmax.f32 %v4294_v59, 0.0  ;;  %v16756_v45 = vpop.f32.mrf.mxu0  ;;  %v13056_v54 = vld [vmem:[%s17967_s6 + $0x5ac] ss:$16 sps:$4 sm:$0xff]  }
 0x3ab   : > { %v4297_v52 = vpop.f32.mrf.mxu1  ;;  %7920 = vmatprep.subr.bf16.mxu0 %v13116_v56  ;;  %v13048_v56 = vld [vmem:[%s17967_s6 + $0x5c8] ss:$16 sps:$4 sm:$0xff]   ;;  %v13062_v43 = vld [vmem:[%s17967_s6 + $0x58c] ss:$16 sps:$4 sm:$0xff]  }
 0x3ac   : > { %v4305_v58 = vmax.f32 %v4296_v50, 0.0  ;;  %v4298_v61 = vadd.f32 %v4297_v52, %v4255_v48  ;;  %6904 = vmatpush1.bf16.msra.mxu1 %v13000_v60  ;;  %v16770_v59 = vpop.f32.mrf.mxu0  ;;  %v13162_v60 = vld [vmem:[%s17969_s8 + $0x1a0] ss:$16 sps:$4 sm:$0xff]   ;;  %v13176_v50 = vld [vmem:[%s17969_s8 + $0x164] ss:$16 sps:$4 sm:$0xff]  }
 0x3ad   : > { %v4299_v63 = vpop.f32.mrf.mxu1  ;;  %6905 = vmatprep.subr.bf16.mxu1 %v13008_v46  ;;  %7007 = vmatmul.mubr.bf16.gmra.mxu0 %v16426_v19  ;;  %v13168_v48 = vld [vmem:[%s17969_s8 + $0x180] ss:$16 sps:$4 sm:$0xff]   ;;  %v13068_v52 = vld [vmem:[%s17967_s6 + $0x56c] ss:$16 sps:$4 sm:$0xff]  }
 0x3ae   : > { %v11705_v26 = vpack.c.bf16 %v4305_v58, %v4304_v57  ;;  %v4300_v1 = vadd.f32 %v4299_v63, %v4257_v55  ;;  %7016 = vmatprep.mubr.bf16.mxu0 %v16437_v24  ;;  %7921 = vmatpush1.bf16.msra.mxu0 %v13114_v51  ;;  %v4308_v19 = vmax.f32 %v4298_v61, 0.0  ;;  %v13012_v24 = vld [vmem:[%s17967_s6 + $0x488] ss:$16 sps:$4 sm:$0xff]   ;;  %v16784_v46 = vpop.f32.mrf.mxu0  ;;  %v13174_v55 = vld [vmem:[%s17969_s8 + $0x160] ss:$16 sps:$4 sm:$0xff]  }
 0x3af   : > { %6818 = vmatmul.mubr.bf16.gmra.mxu1 %v13338_v3  ;;  %7922 = vmatprep.subr.bf16.mxu0 %v13122_v53  ;;  %v13060_v51 = vld [vmem:[%s17967_s6 + $0x588] ss:$16 sps:$4 sm:$0xff]   ;;  %v13179_v57 = vld [vmem:[%s17969_s8 + $0x144] ss:$16 sps:$4 sm:$0xff]   ;;  %v13074_v61 = vld [vmem:[%s17967_s6 + $0x54c] ss:$16 sps:$4 sm:$0xff]  }
 0x3b0   : > { %4335 = vst [vmem:[#allocation2] sm:$0xff] %v11705_v26  ;;  %v4309_v5 = vmax.f32 %v4300_v1, 0.0  ;;  %6906 = vmatpush1.bf16.msra.mxu1 %v13006_v62  ;;  %6827 = vmatprep.mubr.bf16.mxu1 %v13339_v6  ;;  %v16798_v53 = vpop.f32.mrf.mxu0  ;;  %v13066_v58 = vld [vmem:[%s17967_s6 + $0x568] ss:$16 sps:$4 sm:$0xff]   ;;  %v13177_v63 = vld [vmem:[%s17969_s8 + $0x140] ss:$16 sps:$4 sm:$0xff]  }
 0x3b1   : > { %6907 = vmatprep.subr.bf16.mxu1 %v13014_v0  ;;  %v13182_v0 = vld [vmem:[%s17969_s8 + $0x124] ss:$16 sps:$4 sm:$0xff]   ;;  %v13072_v26 = vld [vmem:[%s17967_s6 + $0x548] ss:$16 sps:$4 sm:$0xff]   ;;  %v13080_v1 = vld [vmem:[%s17967_s6 + $0x52c] ss:$16 sps:$4 sm:$0xff]  }
 0x3b2   : > { %v11707_v7 = vpack.c.bf16 %v4309_v5, %v4308_v19  ;;  %7923 = vmatpush1.bf16.msra.mxu0 %v13120_v2  ;;  %v16812_v62 = vpop.f32.mrf.mxu0  ;;  %v13180_v3 = vld [vmem:[%s17969_s8 + $0x120] ss:$16 sps:$4 sm:$0xff]   ;;  %v13078_v19 = vld [vmem:[%s17967_s6 + $0x528] ss:$16 sps:$4 sm:$0xff]   ;;  %v13086_v5 = vld [vmem:[%s17967_s6 + $0x50c] ss:$16 sps:$4 sm:$0xff]  }
 0x3b3   : > { %7924 = vmatprep.subr.bf16.mxu0 %v13128_v20  ;;  %v13185_v20 = vld [vmem:[%s17969_s8 + $0x104] ss:$16 sps:$4 sm:$0xff]   ;;  %v13183_v6 = vld [vmem:[%s17969_s8 + $0x100] ss:$16 sps:$4 sm:$0xff]  }
 0x3b4   : > { %4337 = vst [vmem:[#allocation2 + $0x18] sm:$0xff] %v11707_v7  ;;  %6908 = vmatpush1.bf16.msra.mxu1 %v13012_v24  ;;  %v16826_v2 = vpop.f32.mrf.mxu0  ;;  %v13084_v7 = vld [vmem:[%s17967_s6 + $0x508] ss:$16 sps:$4 sm:$0xff]  }
 0x3b5   : > { %6909 = vmatprep.subr.bf16.mxu1 %v13020_v35  ;;  %7017 = vmatmul.mubr.bf16.gmra.mxu0 %v16464_v32  ;;  %v13024_v32 = vld [vmem:[%s17967_s6 + $0x448] ss:$16 sps:$4 sm:$0xff]   ;;  %v13188_v35 = vld [vmem:[%s17969_s8 + $0xec] ss:$16 sps:$4 sm:$0xff]  }
 0x3b6   : > { %7925 = vmatpush1.bf16.msra.mxu0 %v13126_v11  ;;  %v16840_v24 = vpop.f32.mrf.mxu0 }
 0x3b7   : > { %6828 = vmatmul.mubr.bf16.gmra.mxu1 %v13340_v49  ;;  %7926 = vmatprep.subr.bf16.mxu0 %v13134_v12  ;;  %v13092_v12 = vld [vmem:[%s17967_s6 + $0x8ec] ss:$16 sps:$4 sm:$0xff]   ;;  %v13342_v49 = vld [vmem:[%s17962_s1 + $0x10] ss:$40 sps:$4 sm:$0xff]  }
 0x3b8   : > { %6910 = vmatpush1.bf16.msra.mxu1 %v13018_v15  ;;  %6933 = vmatprep.mubr.bf16.mxu1 %v13341_v8  ;;  %v16851_v11 = vpop.f32.mrf.mxu0  ;;  %v13090_v15 = vld [vmem:[%s17967_s6 + $0x8e8] ss:$16 sps:$4 sm:$0xff]  }
 0x3b9   : > { %6911 = vmatprep.subr.bf16.mxu1 %v13026_v21 }
 0x3ba   : > { %7927 = vmatpush1.bf16.msra.mxu0 %v13132_v23  ;;  %v16859_v21 = vpop.f32.mrf.mxu0  ;;  %v13095_v23 = vld [vmem:[%s17967_s6 + $0x8cc] ss:$16 sps:$4 sm:$0xff]  }
 0x3bb   : > { %7928 = vmatprep.subr.bf16.mxu0 %v13140_v4  ;;  %v13093_v4 = vld [vmem:[%s17967_s6 + $0x8c8] ss:$16 sps:$4 sm:$0xff]  }
 0x3bc   : > { %6912 = vmatpush1.bf16.msra.mxu1 %v13024_v32  ;;  %v13343_v32 = vld [vmem:[%s17962_s1 + $0x64] ss:$40 sps:$4 sm:$0xff]   ;;  %v16873_v8 = vpop.f32.mrf.mxu0 }
 0x3bd   : > { %6913 = vmatprep.subr.bf16.mxu1 %v13032_v25  ;;  %v13098_v25 = vld [vmem:[%s17967_s6 + $0x8ac] ss:$16 sps:$4 sm:$0xff]  }
 0x3be   : > { %7929 = vmatpush1.bf16.msra.mxu0 %v13138_v34  ;;  %v13096_v34 = vld [vmem:[%s17967_s6 + $0x8a8] ss:$16 sps:$4 sm:$0xff]  }
 0x3bf   : > { %7930 = vmatprep.subr.bf16.mxu0 %v13146_v10  ;;  %v16881_v10 = vpop.f32.mrf.mxu0 }
 0x3c0   : > { %6914 = vmatpush1.bf16.msra.mxu1 %v13030_v13  ;;  %v13101_v13 = vld [vmem:[%s17967_s6 + $0x88c] ss:$16 sps:$4 sm:$0xff]  }
 0x3c1   : > { %6915 = vmatprep.subr.bf16.mxu1 %v13038_v28  ;;  %v13344_v28 = vld [vmem:[%s17962_s1 + $0x60] ss:$40 sps:$4 sm:$0xff]  }
 0x3c2   : > { %7931 = vmatpush1.bf16.msra.mxu0 %v13144_v29  ;;  %v13099_v29 = vld [vmem:[%s17967_s6 + $0x888] ss:$16 sps:$4 sm:$0xff]  }
 0x3c3   : > { %7932 = vmatprep.subr.bf16.mxu0 %v13152_v44  ;;  %v13345_v44 = vld [vmem:[%s17962_s1 + $0xb4] ss:$40 sps:$4 sm:$0xff]  }
 0x3c4   : > { %6916 = vmatpush1.bf16.msra.mxu1 %v13036_v47  ;;  %v16895_v47 = vpop.f32.mrf.mxu0 }
 0x3c5   : > { %6917 = vmatprep.subr.bf16.mxu1 %v13044_v30  ;;  %v13107_v30 = vld [vmem:[%s17967_s6 + $0x86c] ss:$16 sps:$4 sm:$0xff]  }
 0x3c6   : > { %7933 = vmatpush2.bf16.msra.mxu0 %v13150_v33  ;;  %v16900_v33 = vpop.f32.mrf.mxu0 }
 0x3c7   : > { %7934 = vmatprep.subr.bf16.mxu0 %v13158_v36  ;;  %v13105_v36 = vld [vmem:[%s17967_s6 + $0x868] ss:$16 sps:$4 sm:$0xff]  }
 0x3c8   : > { %6918 = vmatpush2.bf16.msra.mxu1 %v13042_v37  ;;  %v13113_v37 = vld [vmem:[%s17967_s6 + $0x84c] ss:$16 sps:$4 sm:$0xff]  }
 0x3c9   : > { %6919 = vmatprep.subr.bf16.mxu1 %v13050_v38  ;;  %v13346_v38 = vld [vmem:[%s17962_s1 + $0xb0] ss:$40 sps:$4 sm:$0xff]  }
 0x3ca   : > { %7935 = vmatpush2.bf16.msra.mxu0 %v13156_v39  ;;  %v16911_v39 = vpop.f32.mrf.mxu0 }
 0x3cb   : > { %7936 = vmatprep.subr.bf16.mxu0 %v13164_v40  ;;  %v13111_v40 = vld [vmem:[%s17967_s6 + $0x848] ss:$16 sps:$4 sm:$0xff]  }
 0x3cc   : > { %6920 = vmatpush2.bf16.msra.mxu1 %v13048_v56  ;;  %v13347_v56 = vld [vmem:[%s17962_s1 + $0x24] ss:$40 sps:$4 sm:$0xff]  }
 0x3cd   : > { %6921 = vmatprep.subr.bf16.mxu1 %v13056_v54  ;;  %v13119_v54 = vld [vmem:[%s17967_s6 + $0x82c] ss:$16 sps:$4 sm:$0xff]  }
 0x3ce   : > { %7937 = vmatpush2.bf16.msra.mxu0 %v13162_v60 }
 0x3cf   : > { %7938 = vmatprep.subr.bf16.mxu0 %v13170_v41  ;;  %v16924_v41 = vpop.f32.mrf.mxu0 }
 0x3d0   : > { %6922 = vmatpush2.bf16.msra.mxu1 %v13054_v42  ;;  %v13117_v42 = vld [vmem:[%s17967_s6 + $0x828] ss:$16 sps:$4 sm:$0xff]  }
 0x3d1   : > { %6923 = vmatprep.subr.bf16.mxu1 %v13062_v43  ;;  %v13125_v43 = vld [vmem:[%s17967_s6 + $0x80c] ss:$16 sps:$4 sm:$0xff]  }
 0x3d2   : > { %7939 = vmatpush2.bf16.msra.mxu0 %v13168_v48 }
 0x3d3   : > { %7940 = vmatprep.subr.bf16.mxu0 %v13176_v50  ;;  %v16932_v50 = vpop.f32.mrf.mxu0 }
 0x3d4   : > { %6924 = vmatpush2.bf16.msra.mxu1 %v13060_v51  ;;  %v13123_v51 = vld [vmem:[%s17967_s6 + $0x808] ss:$16 sps:$4 sm:$0xff]  }
 0x3d5   : > { %6925 = vmatprep.subr.bf16.mxu1 %v13068_v52  ;;  %v13131_v52 = vld [vmem:[%s17967_s6 + $0x9ec] ss:$16 sps:$4 sm:$0xff]  }
 0x3d6   : > { %7941 = vmatpush2.bf16.msra.mxu0 %v13174_v55 }
 0x3d7   : > { %7942 = vmatprep.subr.bf16.mxu0 %v13179_v57  ;;  %v16940_v57 = vpop.f32.mrf.mxu0 }
 0x3d8   : > { %6926 = vmatpush2.bf16.msra.mxu1 %v13066_v58  ;;  %v13129_v58 = vld [vmem:[%s17967_s6 + $0x9e8] ss:$16 sps:$4 sm:$0xff]  }
 0x3d9   : > { %6927 = vmatprep.subr.bf16.mxu1 %v13074_v61  ;;  %v13137_v61 = vld [vmem:[%s17967_s6 + $0x9cc] ss:$16 sps:$4 sm:$0xff]  }
 0x3da   : > { %7943 = vmatpush2.bf16.msra.mxu0 %v13177_v63 }
 0x3db   : > { %7944 = vmatprep.subr.bf16.mxu0 %v13182_v0  ;;  %v16948_v0 = vpop.f32.mrf.mxu0 }
 0x3dc   : > { %6928 = vmatpush2.bf16.msra.mxu1 %v13072_v26  ;;  %v13135_v26 = vld [vmem:[%s17967_s6 + $0x9c8] ss:$16 sps:$4 sm:$0xff]  }
 0x3dd   : > { %6929 = vmatprep.subr.bf16.mxu1 %v13080_v1  ;;  %v13143_v1 = vld [vmem:[%s17967_s6 + $0x9ac] ss:$16 sps:$4 sm:$0xff]  }
 0x3de   : > { %7945 = vmatpush2.bf16.msra.mxu0 %v13180_v3 }
 0x3df   : > { %7946 = vmatprep.subr.bf16.mxu0 %v13185_v20  ;;  %v16958_v20 = vpop.f32.mrf.mxu0 }
 0x3e0   : > { %6930 = vmatpush2.bf16.msra.mxu1 %v13078_v19  ;;  %v13141_v19 = vld [vmem:[%s17967_s6 + $0x9a8] ss:$16 sps:$4 sm:$0xff]  }
 0x3e1   : > { %6931 = vmatprep.subr.bf16.mxu1 %v13086_v5  ;;  %v13149_v5 = vld [vmem:[%s17967_s6 + $0x98c] ss:$16 sps:$4 sm:$0xff]  }
 0x3e2   : > { %7947 = vmatpush2.bf16.msra.mxu0 %v13183_v6 }
 0x3e3   : > { %8042 = vmatprep.subr.bf16.mxu0 %v13188_v35  ;;  %v16968_v35 = vpop.f32.mrf.mxu0 }
 0x3e4   : > { %6932 = vmatpush2.bf16.msra.mxu1 %v13084_v7  ;;  %v13147_v7 = vld [vmem:[%s17967_s6 + $0x988] ss:$16 sps:$4 sm:$0xff]  }
 0x3e5   : > { %7027 = vmatprep.subr.bf16.mxu1 %v13092_v12 }
 0x3e7   : > { %6934 = vmatmul.mubr.bf16.vlgmr.msra.gmra.mxu1 %v13342_v49  ;;  %v16922_v60 = vpop.f32.mrf.mxu1  ;;  %v13153_v49 = vld [vmem:[%s17967_s6 + $0x968] ss:$16 sps:$4 sm:$0xff]  }
 0x3e8   : > { %7028 = vmatpush1.bf16.msra.mxu1 %v13090_v15  ;;  %6943 = vmatprep.mubr.bf16.mxu1 %v13343_v32  ;;  %v13155_v15 = vld [vmem:[%s17967_s6 + $0x96c] ss:$16 sps:$4 sm:$0xff]  }
 0x3e9   : > { %7029 = vmatprep.subr.bf16.mxu1 %v13095_v23  ;;  %v6559_v48 = vpop.f32.mrf.mxu1  ;;  %v16978_v23 = vpop.f32.mrf.mxu0  ;;  %v13161_v32 = vld [vmem:[%s17967_s6 + $0x94c] ss:$16 sps:$4 sm:$0xff]  }
 0x3eb   : > { %v6561_v55 = vpop.f32.mrf.mxu1 }
 0x3ec   : > { %7030 = vmatpush1.bf16.msra.mxu1 %v13093_v4 }
 0x3ed   : > { %7031 = vmatprep.subr.bf16.mxu1 %v13098_v25  ;;  %v6563_v63 = vpop.f32.mrf.mxu1  ;;  %v6748_v25 = vpop.f32.mrf.mxu0 }
 0x3ef   : > { %6944 = vmatmul.mubr.bf16.gmra.mxu1 %v13344_v28  ;;  %v16956_v3 = vpop.f32.mrf.mxu1 }
 0x3f0   : > { %7032 = vmatpush1.bf16.msra.mxu1 %v13096_v34  ;;  %6953 = vmatprep.mubr.bf16.mxu1 %v13345_v44  ;;  %v13159_v34 = vld [vmem:[%s17967_s6 + $0x948] ss:$16 sps:$4 sm:$0xff]   ;;  %v6750_v44 = vpop.f32.mrf.mxu0 }
 0x3f1   : > { %7033 = vmatprep.subr.bf16.mxu1 %v13101_v13  ;;  %v16966_v6 = vpop.f32.mrf.mxu1  ;;  %v16994_v13 = vld [vmem:[%s17968_s7] sm:$0xf] }
 0x3f3   : > { %v16973_v12 = vpop.f32.mrf.mxu1 }
 0x3f4   : > { %7034 = vmatpush1.bf16.msra.mxu1 %v13099_v29  ;;  %v13167_v29 = vld [vmem:[%s17967_s6 + $0x92c] ss:$16 sps:$4 sm:$0xff]  }
 0x3f5   : > { %7035 = vmatprep.subr.bf16.mxu1 %v13107_v30  ;;  %v16983_v4 = vpop.f32.mrf.mxu1  ;;  %v17003_v30 = vrot.slane %v16994_v13, %v15432_v17 }
 0x3f7   : > { %6954 = vmatmul.mubr.bf16.gmra.mxu1 %v13346_v38  ;;  %v16996_v28 = vpop.f32.mrf.mxu1 }
 0x3f8   : > { %7036 = vmatpush1.bf16.msra.mxu1 %v13105_v36  ;;  %7059 = vmatprep.mubr.bf16.mxu1 %v13347_v56  ;;  %v13165_v36 = vld [vmem:[%s17967_s6 + $0x928] ss:$16 sps:$4 sm:$0xff]   ;;  %v6752_v56 = vpop.f32.mrf.mxu0 }
 0x3f9   : > { %7037 = vmatprep.subr.bf16.mxu1 %v13113_v37  ;;  %v4693_v37 = vrot.slane %v16994_v13, %v15435_v18  ;;  %v17010_v38 = vpop.f32.mrf.mxu1 }
 0x3fc   : > { %7038 = vmatpush1.bf16.msra.mxu1 %v13111_v40  ;;  %v13173_v40 = vld [vmem:[%s17967_s6 + $0x90c] ss:$16 sps:$4 sm:$0xff]  }
 0x3fd   : > { %7039 = vmatprep.subr.bf16.mxu1 %v13119_v54  ;;  %v6497_v54 = vadd.f32 %v16714_v27, %v17003_v30 }
 0x400   : > { %7040 = vmatpush1.bf16.msra.mxu1 %v13117_v42  ;;  %v13171_v42 = vld [vmem:[%s17967_s6 + $0x908] ss:$16 sps:$4 sm:$0xff]  }
 0x401   : > { %7041 = vmatprep.subr.bf16.mxu1 %v13125_v43  ;;  %v6495_v43 = vadd.f32 %v16693_v22, %v4693_v37 }
 0x404   : > { %7042 = vmatpush1.bf16.msra.mxu1 %v13123_v51  ;;  %v17021_v51 = vpop.f32.mrf.mxu1 }
 0x405   : > { %7043 = vmatprep.subr.bf16.mxu1 %v13131_v52  ;;  %v17023_v52 = vpop.f32.mrf.mxu0 }
 0x407   : > { %v17029_v27 = vpop.f32.mrf.mxu0 }
 0x408   : > { %7044 = vmatpush2.bf16.msra.mxu1 %v13129_v58  ;;  %v6499_v58 = vadd.f32 %v16728_v9, %v4693_v37  ;;  %v6507_v9 = vadd.f32 %v16770_v59, %v17003_v30 }
 0x409   : > { %7045 = vmatprep.subr.bf16.mxu1 %v13137_v61  ;;  %v6560_v61 = vadd.f32 %v6559_v48, %v6497_v54 }
 0x40a   : > { %v6570_v54 = vadd.f32 %v16966_v6, %v6507_v9 }
 0x40b   : > { %v6623_v48 = vadd.f32 %v16873_v8, %v6560_v61  ;;  %v6511_v8 = vadd.f32 %v16798_v53, %v17003_v30  ;;  %v13350_v53 = vld [vmem:[%s17962_s1 + $0x70] ss:$40 sps:$4 sm:$0xff]  }
 0x40c   : > { %7046 = vmatpush2.bf16.msra.mxu1 %v13135_v26  ;;  %v6558_v26 = vadd.f32 %v16922_v60, %v6495_v43 }
 0x40d   : > { %7047 = vmatprep.subr.bf16.mxu1 %v13143_v1  ;;  %v17027_v1 = vpop.f32.mrf.mxu1  ;;  %v6574_v6 = vadd.f32 %v16983_v4, %v6511_v8 }
 0x410   : > { %7048 = vmatpush2.bf16.msra.mxu1 %v13141_v19  ;;  %v6501_v19 = vadd.f32 %v16742_v31, %v17003_v30  ;;  %v6505_v31 = vadd.f32 %v16756_v45, %v4693_v37 }
 0x411   : > { %7049 = vmatprep.subr.bf16.mxu1 %v13149_v5  ;;  %v6562_v5 = vadd.f32 %v6561_v55, %v6499_v58  ;;  %v6621_v55 = vadd.f32 %v16859_v21, %v6558_v26 }
 0x412   : > { %v6564_v60 = vadd.f32 %v6563_v63, %v6501_v19  ;;  %v6568_v45 = vadd.f32 %v16956_v3, %v6505_v31  ;;  %v6633_v3 = vadd.f32 %v16911_v39, %v6570_v54 }
 0x414   : > { %7050 = vmatpush2.bf16.msra.mxu1 %v13147_v7  ;;  %v13348_v7 = vld [vmem:[%s17962_s1 + $0x20] ss:$40 sps:$4 sm:$0xff]   ;;  %v6627_v63 = vadd.f32 %v16895_v47, %v6564_v60  ;;  %v6517_v47 = vadd.f32 %v16826_v2, %v17003_v30 }
 0x415   : > { %7051 = vmatprep.subr.bf16.mxu1 %v13155_v15  ;;  %v13349_v15 = vld [vmem:[%s17962_s1 + $0x74] ss:$40 sps:$4 sm:$0xff]  }
 0x418   : > { %7052 = vmatpush2.bf16.msra.mxu1 %v13153_v49 }
 0x419   : > { %7053 = vmatprep.subr.bf16.mxu1 %v13161_v32  ;;  %v6760_v32 = vpop.f32.mrf.mxu0 }
 0x41b   : > { %v6762_v43 = vpop.f32.mrf.mxu0 }
 0x41c   : > { %7054 = vmatpush2.bf16.msra.mxu1 %v13159_v34  ;;  %v6509_v34 = vadd.f32 %v16784_v46, %v4693_v37 }
 0x41d   : > { %7055 = vmatprep.subr.bf16.mxu1 %v13167_v29  ;;  %v6625_v29 = vadd.f32 %v16881_v10, %v6562_v5  ;;  %v17066_v9 = vpop.f32.mrf.mxu0 }
 0x41e   : > { %v6572_v58 = vadd.f32 %v16973_v12, %v6509_v34  ;;  %v13351_v12 = vld [vmem:[%s17962_s1 + $0xc4] ss:$40 sps:$4 sm:$0xff]  }
 0x420   : > { %7056 = vmatpush2.bf16.msra.mxu1 %v13165_v36  ;;  %v6635_v2 = vadd.f32 %v16924_v41, %v6572_v58 }
 0x421   : > { %7057 = vmatprep.subr.bf16.mxu1 %v13173_v40 }
 0x424   : > { %7058 = vmatpush2.bf16.msra.mxu1 %v13171_v42 }
 0x427   : > { %v6683_v22 = vpop.f32.mrf.mxu1  ;;  %7060 = vmatmul.mubr.bf16.vlgmr.msra.gmra.mxu1 %v13348_v7 }
 0x428   : > { %7069 = vmatprep.mubr.bf16.mxu1 %v13349_v15  ;;  %v6684_v59 = vadd.f32 %v6683_v22, %v6621_v55  ;;  %v13186_v55 = vld [vmem:[%s17969_s8 + $0xe8] ss:$16 sps:$4 sm:$0xff]  }
 0x429   : > { %v6685_v49 = vpop.f32.mrf.mxu1 }
 0x42a   : > { %v6686_v36 = vadd.f32 %v6685_v49, %v6623_v48  ;;  %v6747_v26 = vadd.f32 %v16978_v23, %v6684_v59  ;;  %v6515_v23 = vadd.f32 %v16812_v62, %v4693_v37  ;;  %v6521_v48 = vadd.f32 %v16851_v11, %v17003_v30  ;;  %v13236_v62 = vld [vmem:[%s17969_s8 + $0x2e4] ss:$16 sps:$4 sm:$0xff]   ;;  %v13234_v11 = vld [vmem:[%s17969_s8 + $0x2e0] ss:$16 sps:$4 sm:$0xff]  }
 0x42b   : > { %v6687_v40 = vpop.f32.mrf.mxu1  ;;  %7979 = vmatprep.subr.bf16.mxu1 %v13236_v62 }
 0x42c   : > { %v6688_v42 = vadd.f32 %v6687_v40, %v6625_v29  ;;  %v6749_v46 = vadd.f32 %v6748_v25, %v6686_v36  ;;  %v6519_v25 = vadd.f32 %v16840_v24, %v4693_v37  ;;  %v7090_v60 = vmax.f32 %v6747_v26, 0.0  ;;  %v6768_v29 = vpop.f32.mrf.mxu0  ;;  %7980 = vmatpush1.bf16.msra.mxu1 %v13234_v11  ;;  %v13198_v11 = vld [vmem:[%s17969_s8 + $0x68] ss:$16 sps:$4 sm:$0xff]  }
 0x42d   : > { %v6689_v21 = vpop.f32.mrf.mxu1  ;;  %v6637_v24 = vadd.f32 %v16932_v50, %v6574_v6  ;;  %v6578_v30 = vadd.f32 %v16996_v28, %v6515_v23 }
 0x42e   : > { %v6690_v61 = vadd.f32 %v6689_v21, %v6627_v63  ;;  %v6751_v10 = vadd.f32 %v6750_v44, %v6688_v42  ;;  %v6631_v44 = vadd.f32 %v16900_v33, %v6568_v45  ;;  %v7091_v39 = vmax.f32 %v6749_v46, 0.0  ;;  %v13239_v63 = vld [vmem:[%s17969_s8 + $0x2c4] ss:$16 sps:$4 sm:$0xff]   ;;  %v13237_v42 = vld [vmem:[%s17969_s8 + $0x2c0] ss:$16 sps:$4 sm:$0xff]   ;;  %v6770_v46 = vpop.f32.mrf.mxu0 }
 0x42f   : > { %v6693_v19 = vpop.f32.mrf.mxu1  ;;  %7070 = vmatmul.mubr.bf16.gmra.mxu1 %v13350_v53  ;;  %v6580_v33 = vadd.f32 %v17010_v38, %v6517_v47  ;;  %v6582_v49 = vadd.f32 %v17021_v51, %v6519_v25  ;;  %v13191_v38 = vld [vmem:[%s17969_s8 + $0xcc] ss:$16 sps:$4 sm:$0xff]   ;;  %v13352_v51 = vld [vmem:[%s17962_s1 + $0xc0] ss:$40 sps:$4 sm:$0xff]   ;;  %v6641_v45 = vadd.f32 %v16940_v57, %v6578_v30  ;;  %7981 = vmatprep.subr.bf16.mxu1 %v13239_v63  ;;  %v13242_v57 = vld [vmem:[%s17969_s8 + $0x2a4] ss:$16 sps:$4 sm:$0xff]  }
 0x430   : > { %v6753_v5 = vadd.f32 %v6752_v56, %v6690_v61  ;;  %7079 = vmatprep.mubr.bf16.mxu1 %v13351_v12  ;;  %v7094_v22 = vmax.f32 %v6751_v10, 0.0  ;;  %v6694_v15 = vadd.f32 %v6693_v19, %v6631_v44  ;;  %7982 = vmatpush1.bf16.msra.mxu1 %v13237_v42  ;;  %v6772_v25 = vpop.f32.mrf.mxu0  ;;  %v13207_v63 = vld [vmem:[%s17969_s8 + $0x8] ss:$16 sps:$4 sm:$0xff]   ;;  %v13215_v42 = vld [vmem:[%s17969_s8 + $0x1cc] ss:$16 sps:$4 sm:$0xff]  }
 0x431   : > { %v6695_v7 = vpop.f32.mrf.mxu1  ;;  %7983 = vmatprep.subr.bf16.mxu1 %v13242_v57  ;;  %v13270_v57 = vld [vmem:[%s17969_s8 + $0x360] ss:$16 sps:$4 sm:$0xff]  }
 0x432   : > { %v7095_v4 = vmax.f32 %v6753_v5, 0.0  ;;  %v6696_v56 = vadd.f32 %v6695_v7, %v6633_v3  ;;  %v17086_v34 = vpack.c.bf16 %v7094_v22, %v7090_v60  ;;  %v6757_v28 = vadd.f32 %v17023_v52, %v6694_v15  ;;  %v13189_v52 = vld [vmem:[%s17969_s8 + $0xc8] ss:$16 sps:$4 sm:$0xff]   ;;  %v13240_v5 = vld [vmem:[%s17969_s8 + $0x2a0] ss:$16 sps:$4 sm:$0xff]  }
 0x433   : > { %v6697_v31 = vpop.f32.mrf.mxu1  ;;  %v13248_v15 = vld [vmem:[%s17969_s8 + $0x264] ss:$16 sps:$4 sm:$0xff]  }
 0x434   : > { %v17076_v37 = vpack.c.bf16 %v7095_v4, %v7091_v39  ;;  %v6698_v41 = vadd.f32 %v6697_v31, %v6635_v2  ;;  %v6759_v36 = vadd.f32 %v17029_v27, %v6696_v56  ;;  %v6643_v27 = vadd.f32 %v16948_v0, %v6580_v33  ;;  %v13194_v0 = vld [vmem:[%s17969_s8 + $0xac] ss:$16 sps:$4 sm:$0xff]   ;;  %7984 = vmatpush1.bf16.msra.mxu1 %v13240_v5  ;;  %v13245_v39 = vld [vmem:[%s17969_s8 + $0x284] ss:$16 sps:$4 sm:$0xff]   ;;  %v13195_v56 = vld [vmem:[%s17969_s8 + $0x88] ss:$16 sps:$4 sm:$0xff]  }
 0x435   : > { %v6699_v50 = vpop.f32.mrf.mxu1  ;;  %v7098_v26 = vmax.f32 %v6757_v28, 0.0  ;;  %7985 = vmatprep.subr.bf16.mxu1 %v13245_v39  ;;  %v13209_v28 = vld [vmem:[%s17969_s8 + $0xc] ss:$16 sps:$4 sm:$0xff]   ;;  %v13225_v5 = vld [vmem:[%s17969_s8 + $0x148] ss:$16 sps:$4 sm:$0xff]  }
 0x436   : > { %v6700_v59 = vadd.f32 %v6699_v50, %v6637_v24  ;;  %v6761_v40 = vadd.f32 %v6760_v32, %v6698_v41  ;;  %7948 = vmatprep.mubr.bf16.mxu0 %v17076_v37  ;;  %v6584_v32 = vadd.f32 %v17027_v1, %v6521_v48  ;;  %v6645_v1 = vadd.f32 %v16958_v20, %v6582_v49  ;;  %v13192_v20 = vld [vmem:[%s17969_s8 + $0xa8] ss:$16 sps:$4 sm:$0xff]   ;;  %v13243_v48 = vld [vmem:[%s17969_s8 + $0x280] ss:$16 sps:$4 sm:$0xff]   ;;  %v13251_v41 = vld [vmem:[%s17969_s8 + $0x244] ss:$16 sps:$4 sm:$0xff]  }
 0x437   : > { %v6703_v8 = vpop.f32.mrf.mxu1  ;;  %7080 = vmatmul.mubr.bf16.gmra.mxu1 %v13352_v51  ;;  %7949 = vmatmul.mubr.bf16.vlgmr.msra.gmra.mxu0 %v17086_v34  ;;  %v13246_v24 = vld [vmem:[%s17969_s8 + $0x260] ss:$16 sps:$4 sm:$0xff]   ;;  %v13203_v49 = vld [vmem:[%s17969_s8 + $0x4c] ss:$16 sps:$4 sm:$0xff]   ;;  %v13260_v51 = vld [vmem:[%s17969_s8 + $0x3e4] ss:$16 sps:$4 sm:$0xff]  }
 0x438   : > { %v6763_v54 = vadd.f32 %v6762_v43, %v6700_v59  ;;  %8043 = vmatpush1.bf16.msra.mxu0 %v13186_v55  ;;  %v7102_v21 = vmax.f32 %v6761_v40, 0.0  ;;  %v7099_v43 = vmax.f32 %v6759_v36, 0.0  ;;  %v6704_v19 = vadd.f32 %v6703_v8, %v6641_v45  ;;  %7986 = vmatpush1.bf16.msra.mxu1 %v13243_v48  ;;  %v13249_v50 = vld [vmem:[%s17969_s8 + $0x240] ss:$16 sps:$4 sm:$0xff]   ;;  %v13206_v36 = vld [vmem:[%s17969_s8 + $0x2c] ss:$16 sps:$4 sm:$0xff]  }
 0x439   : > { %v6705_v58 = vpop.f32.mrf.mxu1  ;;  %8044 = vmatprep.subr.bf16.mxu0 %v13191_v38  ;;  %v6647_v47 = vadd.f32 %v16968_v35, %v6584_v32  ;;  %v13197_v35 = vld [vmem:[%s17969_s8 + $0x8c] ss:$16 sps:$4 sm:$0xff]   ;;  %7987 = vmatprep.subr.bf16.mxu1 %v13248_v15  ;;  %v13254_v38 = vld [vmem:[%s17969_s8 + $0x224] ss:$16 sps:$4 sm:$0xff]   ;;  %v13252_v59 = vld [vmem:[%s17969_s8 + $0x220] ss:$16 sps:$4 sm:$0xff]  }
 0x43a   : > { %v7103_v61 = vmax.f32 %v6763_v54, 0.0  ;;  %v6706_v10 = vadd.f32 %v6705_v58, %v6643_v27  ;;  %v17126_v12 = vpack.c.bf16 %v7102_v21, %v7098_v26  ;;  %v6767_v2 = vadd.f32 %v17066_v9, %v6704_v19  ;;  %v13200_v9 = vld [vmem:[%s17969_s8 + $0x6c] ss:$16 sps:$4 sm:$0xff]   ;;  %v13257_v40 = vld [vmem:[%s17969_s8 + $0x204] ss:$16 sps:$4 sm:$0xff]  }
 0x43b   : > { %v6707_v53 = vpop.f32.mrf.mxu1  ;;  %v13255_v8 = vld [vmem:[%s17969_s8 + $0x200] ss:$16 sps:$4 sm:$0xff]   ;;  %v13212_v27 = vld [vmem:[%s17969_s8 + $0x1ec] ss:$16 sps:$4 sm:$0xff]   ;;  %v13263_v54 = vld [vmem:[%s17969_s8 + $0x3c4] ss:$16 sps:$4 sm:$0xff]  }
 0x43c   : > { %v17118_v3 = vpack.c.bf16 %v7103_v61, %v7099_v43  ;;  %v6708_v6 = vadd.f32 %v6707_v53, %v6645_v1  ;;  %8045 = vmatpush1.bf16.msra.mxu0 %v13189_v52  ;;  %v6769_v44 = vadd.f32 %v6768_v29, %v6706_v10  ;;  %v7106_v33 = vmax.f32 %v6767_v2, 0.0  ;;  %7988 = vmatpush1.bf16.msra.mxu1 %v13246_v24  ;;  %v13201_v29 = vld [vmem:[%s17969_s8 + $0x48] ss:$16 sps:$4 sm:$0xff]   ;;  %v13258_v32 = vld [vmem:[%s17969_s8 + $0x3e0] ss:$16 sps:$4 sm:$0xff]   ;;  %v6872_v24 = vpop.f32.mrf.mxu0 }
 0x43d   : > { %v6709_v23 = vpop.f32.mrf.mxu1  ;;  %8046 = vmatprep.subr.bf16.mxu0 %v13194_v0  ;;  %7989 = vmatprep.subr.bf16.mxu1 %v13251_v41  ;;  %v13210_v52 = vld [vmem:[%s17969_s8 + $0x1e8] ss:$16 sps:$4 sm:$0xff]   ;;  %v13261_v45 = vld [vmem:[%s17969_s8 + $0x3c0] ss:$16 sps:$4 sm:$0xff]   ;;  %v13266_v21 = vld [vmem:[%s17969_s8 + $0x3a4] ss:$16 sps:$4 sm:$0xff]  }
 0x43e   : > { %v6710_v22 = vadd.f32 %v6709_v23, %v6647_v47  ;;  %v6771_v7 = vadd.f32 %v6770_v46, %v6708_v6  ;;  %7958 = vmatprep.mubr.bf16.mxu0 %v17118_v3  ;;  %v7107_v31 = vmax.f32 %v6769_v44, 0.0  ;;  %v13213_v58 = vld [vmem:[%s17969_s8 + $0x1c8] ss:$16 sps:$4 sm:$0xff]   ;;  %v13218_v46 = vld [vmem:[%s17969_s8 + $0x1ac] ss:$16 sps:$4 sm:$0xff]   ;;  %v6874_v41 = vpop.f32.mrf.mxu0 }
 0x43f   : > { %7959 = vmatmul.mubr.bf16.gmra.mxu0 %v17126_v12  ;;  %v13264_v0 = vld [vmem:[%s17969_s8 + $0x3a0] ss:$16 sps:$4 sm:$0xff]   ;;  %v13269_v1 = vld [vmem:[%s17969_s8 + $0x384] ss:$16 sps:$4 sm:$0xff]   ;;  %v13216_v43 = vld [vmem:[%s17969_s8 + $0x1a8] ss:$16 sps:$4 sm:$0xff]  }
 0x440   : > { %v6773_v4 = vadd.f32 %v6772_v25, %v6710_v22  ;;  %8047 = vmatpush1.bf16.msra.mxu0 %v13192_v20  ;;  %v7110_v60 = vmax.f32 %v6771_v7, 0.0  ;;  %7990 = vmatpush1.bf16.msra.mxu1 %v13249_v50  ;;  %v13221_v61 = vld [vmem:[%s17969_s8 + $0x18c] ss:$16 sps:$4 sm:$0xff]   ;;  %v13267_v10 = vld [vmem:[%s17969_s8 + $0x380] ss:$16 sps:$4 sm:$0xff]  }
 0x441   : > { %8048 = vmatprep.subr.bf16.mxu0 %v13197_v35  ;;  %7991 = vmatprep.subr.bf16.mxu1 %v13254_v38  ;;  %v13272_v26 = vld [vmem:[%s17969_s8 + $0x364] ss:$16 sps:$4 sm:$0xff]   ;;  %v13219_v19 = vld [vmem:[%s17969_s8 + $0x188] ss:$16 sps:$4 sm:$0xff]   ;;  %v13224_v53 = vld [vmem:[%s17969_s8 + $0x16c] ss:$16 sps:$4 sm:$0xff]  }
 0x442   : > { %v7111_v62 = vmax.f32 %v6773_v4, 0.0  ;;  %v17160_v30 = vpack.c.bf16 %v7110_v60, %v7106_v33  ;;  %v13222_v47 = vld [vmem:[%s17969_s8 + $0x168] ss:$16 sps:$4 sm:$0xff]   ;;  %v13227_v6 = vld [vmem:[%s17969_s8 + $0x14c] ss:$16 sps:$4 sm:$0xff]  }
 0x443   : > { %v13275_v20 = vld [vmem:[%s17969_s8 + $0x344] ss:$16 sps:$4 sm:$0xff]   ;;  %v13273_v23 = vld [vmem:[%s17969_s8 + $0x340] ss:$16 sps:$4 sm:$0xff]   ;;  %v13230_v25 = vld [vmem:[%s17969_s8 + $0x12c] ss:$16 sps:$4 sm:$0xff]  }
 0x444   : > { %v17155_v55 = vpack.c.bf16 %v7111_v62, %v7107_v31  ;;  %8049 = vmatpush1.bf16.msra.mxu0 %v13195_v56  ;;  %7992 = vmatpush1.bf16.msra.mxu1 %v13252_v59  ;;  %v13278_v35 = vld [vmem:[%s17969_s8 + $0x324] ss:$16 sps:$4 sm:$0xff]   ;;  %v13228_v44 = vld [vmem:[%s17969_s8 + $0x128] ss:$16 sps:$4 sm:$0xff]   ;;  %v13276_v22 = vld [vmem:[%s17969_s8 + $0x320] ss:$16 sps:$4 sm:$0xff]  }
 0x445   : > { %8050 = vmatprep.subr.bf16.mxu0 %v13200_v9  ;;  %7993 = vmatprep.subr.bf16.mxu1 %v13257_v40  ;;  %v13233_v7 = vld [vmem:[%s17969_s8 + $0x10c] ss:$16 sps:$4 sm:$0xff]   ;;  %v13281_v2 = vld [vmem:[%s17969_s8 + $0x304] ss:$16 sps:$4 sm:$0xff]   ;;  %v13231_v39 = vld [vmem:[%s17969_s8 + $0x108] ss:$16 sps:$4 sm:$0xff]  }
 0x446   : > { %7968 = vmatprep.mubr.bf16.mxu0 %v17155_v55  ;;  %v13279_v4 = vld [vmem:[%s17969_s8 + $0x300] ss:$16 sps:$4 sm:$0xff]   ;;  %v13284_v56 = vld [vmem:[%s17969_s8 + $0x2ec] ss:$16 sps:$4 sm:$0xff]  }
 0x447   : > { %7969 = vmatmul.mubr.bf16.gmra.mxu0 %v17160_v30 }
 0x448   : > { %8051 = vmatpush1.bf16.msra.mxu0 %v13198_v11  ;;  %8074 = vmatprep.mubr.bf16.mxu0 %v17076_v37  ;;  %v13204_v37 = vld [vmem:[%s17969_s8 + $0x28] ss:$16 sps:$4 sm:$0xff]  }
 0x449   : > { %8052 = vmatprep.subr.bf16.mxu0 %v13203_v49  ;;  %7994 = vmatpush1.bf16.msra.mxu1 %v13255_v8  ;;  %v6876_v49 = vpop.f32.mrf.mxu0 }
 0x44a   : > { %7995 = vmatprep.subr.bf16.mxu1 %v13260_v51 }
 0x44c   : > { %8053 = vmatpush1.bf16.msra.mxu0 %v13201_v29 }
 0x44d   : > { %8054 = vmatprep.subr.bf16.mxu0 %v13206_v36  ;;  %7996 = vmatpush2.bf16.msra.mxu1 %v13258_v32 }
 0x44e   : > { %7997 = vmatprep.subr.bf16.mxu1 %v13263_v54 }
 0x450   : > { %8055 = vmatpush1.bf16.msra.mxu0 %v13204_v37 }
 0x451   : > { %8056 = vmatprep.subr.bf16.mxu0 %v13209_v28  ;;  %7998 = vmatpush2.bf16.msra.mxu1 %v13261_v45 }
 0x452   : > { %7999 = vmatprep.subr.bf16.mxu1 %v13266_v21 }
 0x454   : > { %8057 = vmatpush1.bf16.msra.mxu0 %v13207_v63 }
 0x455   : > { %8058 = vmatprep.subr.bf16.mxu0 %v13212_v27  ;;  %8000 = vmatpush2.bf16.msra.mxu1 %v13264_v0 }
 0x456   : > { %8001 = vmatprep.subr.bf16.mxu1 %v13269_v1  ;;  %v4705_v1 = vrot.slane %v16994_v13, %v15654_v14 }
 0x458   : > { %8059 = vmatpush2.bf16.msra.mxu0 %v13210_v52 }
 0x459   : > { %8060 = vmatprep.subr.bf16.mxu0 %v13215_v42  ;;  %8002 = vmatpush2.bf16.msra.mxu1 %v13267_v10 }
 0x45a   : > { %8003 = vmatprep.subr.bf16.mxu1 %v13272_v26 }
 0x45c   : > { %8061 = vmatpush2.bf16.msra.mxu0 %v13213_v58 }
 0x45d   : > { %8062 = vmatprep.subr.bf16.mxu0 %v13218_v46  ;;  %8004 = vmatpush2.bf16.msra.mxu1 %v13270_v57 }
 0x45e   : > { %8005 = vmatprep.subr.bf16.mxu1 %v13275_v20 }
 0x460   : > { %8063 = vmatpush2.bf16.msra.mxu0 %v13216_v43  ;;  %v4701_v43 = vrot.slane %v16994_v13, %v15660_v16 }
 0x461   : > { %8064 = vmatprep.subr.bf16.mxu0 %v13221_v61  ;;  %8006 = vmatpush2.bf16.msra.mxu1 %v13273_v23 }
 0x462   : > { %8007 = vmatprep.subr.bf16.mxu1 %v13278_v35 }
 0x464   : > { %8065 = vmatpush2.bf16.msra.mxu0 %v13219_v19 }
 0x465   : > { %8066 = vmatprep.subr.bf16.mxu0 %v13224_v53  ;;  %8008 = vmatpush2.bf16.msra.mxu1 %v13276_v22 }
 0x466   : > { %8009 = vmatprep.subr.bf16.mxu1 %v13281_v2 }
 0x467   : > { %v6809_v48 = vpop.f32.mrf.mxu1 }
 0x468   : > { %8067 = vmatpush2.bf16.msra.mxu0 %v13222_v47  ;;  %v6810_v53 = vadd.f32 %v6809_v48, %v4701_v43 }
 0x469   : > { %8068 = vmatprep.subr.bf16.mxu0 %v13227_v6  ;;  %8010 = vmatpush2.bf16.msra.mxu1 %v13279_v4  ;;  %v6811_v60 = vpop.f32.mrf.mxu1 }
 0x46a   : > { %8105 = vmatprep.subr.bf16.mxu1 %v13284_v56  ;;  %v6812_v26 = vadd.f32 %v6811_v60, %v4705_v1  ;;  %v6873_v23 = vadd.f32 %v6872_v24, %v6810_v53 }
 0x46b   : > { %v6813_v9 = vpop.f32.mrf.mxu1 }
 0x46c   : > { %8069 = vmatpush2.bf16.msra.mxu0 %v13225_v5  ;;  %v6814_v19 = vadd.f32 %v6813_v9, %v4701_v43  ;;  %v6875_v20 = vadd.f32 %v6874_v41, %v6812_v26 }
 0x46d   : > { %8070 = vmatprep.subr.bf16.mxu0 %v13230_v25  ;;  %v6815_v15 = vpop.f32.mrf.mxu1 }
 0x46e   : > { %v6816_v6 = vadd.f32 %v6815_v15, %v4705_v1  ;;  %v6877_v5 = vadd.f32 %v6876_v49, %v6814_v19 }
 0x46f   : > { %v6819_v31 = vpop.f32.mrf.mxu1 }
 0x470   : > { %8071 = vmatpush2.bf16.msra.mxu0 %v13228_v44  ;;  %v6820_v60 = vadd.f32 %v6819_v31, %v4701_v43 }
 0x471   : > { %8072 = vmatprep.subr.bf16.mxu0 %v13233_v7  ;;  %v6821_v62 = vpop.f32.mrf.mxu1 }
 0x472   : > { %v6822_v13 = vadd.f32 %v6821_v62, %v4705_v1 }
 0x473   : > { %v6823_v33 = vpop.f32.mrf.mxu1 }
 0x474   : > { %8073 = vmatpush2.bf16.msra.mxu0 %v13231_v39  ;;  %v6824_v4 = vadd.f32 %v6823_v33, %v4701_v43 }
 0x475   : > { %v6825_v11 = vpop.f32.mrf.mxu1 }
 0x476   : > { %v6826_v14 = vadd.f32 %v6825_v11, %v4705_v1 }
 0x477   : > { %8075 = vmatmul.mubr.bf16.vlgmr.msra.gmra.mxu0 %v17086_v34  ;;  %v17302_v34 = vpop.f32.mrf.mxu1 }
 0x478   : > { %8084 = vmatprep.mubr.bf16.mxu0 %v17118_v3  ;;  %v6878_v3 = vpop.f32.mrf.mxu0 }
 0x479   : > { %v6879_v44 = vadd.f32 %v6878_v3, %v6816_v6 }
 0x47a   : > { %v6882_v50 = vpop.f32.mrf.mxu0 }
 0x47f   : > { %8085 = vmatmul.mubr.bf16.gmra.mxu0 %v17126_v12  ;;  %v17304_v12 = vpop.f32.mrf.mxu1 }
 0x480   : > { %8094 = vmatprep.mubr.bf16.mxu0 %v17155_v55  ;;  %v6884_v55 = vpop.f32.mrf.mxu0 }
 0x481   : > { %v17306_v38 = vpop.f32.mrf.mxu1  ;;  %v6885_v41 = vadd.f32 %v6884_v55, %v6822_v13 }
 0x482   : > { %v6834_v55 = vadd.f32 %v17306_v38, %v4701_v43 }
 0x483   : > { %v17308_v29 = vpop.f32.mrf.mxu1 }
 0x487   : > { %8095 = vmatmul.mubr.bf16.gmra.mxu0 %v17160_v30  ;;  %v6886_v30 = vpop.f32.mrf.mxu0 }
 0x488   : > { %v6887_v26 = vadd.f32 %v6886_v30, %v6824_v4 }
 0x489   : > { %v6888_v59 = vpop.f32.mrf.mxu0 }
 0x48a   : > { %v6889_v6 = vadd.f32 %v6888_v59, %v6826_v14  ;;  %v6836_v14 = vadd.f32 %v17308_v29, %v4705_v1 }
 0x48b   : > { %v17310_v37 = vpop.f32.mrf.mxu0 }
 0x48d   : > { %v17312_v8 = vpop.f32.mrf.mxu0 }
 0x48f   : > { %v17314_v63 = vpop.f32.mrf.mxu0 }
 0x490   : > { %v6897_v29 = vadd.f32 %v17314_v63, %v6834_v55  ;;  %v13285_v63 = vld [vmem:[%s17969_s8 + $0x2c8] ss:$16 sps:$4 sm:$0xff]  }
 0x491   : > { %v17316_v32 = vpop.f32.mrf.mxu0  ;;  %v13294_v55 = vld [vmem:[%s17969_s8 + $0x268] ss:$16 sps:$4 sm:$0xff]  }
 0x493   : > { %v6998_v54 = vpop.f32.mrf.mxu0 }
 0x495   : > { %v7000_v42 = vpop.f32.mrf.mxu0 }
 0x497   : > { %v7002_v21 = vpop.f32.mrf.mxu0 }
 0x499   : > { %v7004_v46 = vpop.f32.mrf.mxu0 }
 0x49b   : > { %v7008_v61 = vpop.f32.mrf.mxu0 }
 0x49d   : > { %v7010_v57 = vpop.f32.mrf.mxu0 }
 0x49f   : > { %v7012_v25 = vpop.f32.mrf.mxu0 }
 0x4a1   : > { %v7014_v48 = vpop.f32.mrf.mxu0 }
 0x4a7   : > { %v6935_v36 = vpop.f32.mrf.mxu1 }
 0x4a8   : > { %v6936_v2 = vadd.f32 %v6935_v36, %v6873_v23 }
 0x4a9   : > { %v6937_v40 = vpop.f32.mrf.mxu1 }
 0x4aa   : > { %v6938_v22 = vadd.f32 %v6937_v40, %v6875_v20  ;;  %v6999_v49 = vadd.f32 %v6998_v54, %v6936_v2  ;;  %v6883_v40 = vadd.f32 %v6882_v50, %v6820_v60  ;;  %v6832_v20 = vadd.f32 %v17304_v12, %v4705_v1  ;;  %v13282_v12 = vld [vmem:[%s17969_s8 + $0x2e8] ss:$16 sps:$4 sm:$0xff]   ;;  %v13290_v60 = vld [vmem:[%s17969_s8 + $0x2ac] ss:$16 sps:$4 sm:$0xff]  }
 0x4ab   : > { %v6939_v28 = vpop.f32.mrf.mxu1 }
 0x4ac   : > { %v6940_v7 = vadd.f32 %v6939_v28, %v6877_v5  ;;  %v7001_v16 = vadd.f32 %v7000_v42, %v6938_v22  ;;  %v7018_v28 = vpop.f32.mrf.mxu0  ;;  %v6895_v38 = vadd.f32 %v17312_v8, %v6832_v20 }
 0x4ad   : > { %v6941_v51 = vpop.f32.mrf.mxu1 }
 0x4ae   : > { %v6942_v56 = vadd.f32 %v6941_v51, %v6879_v44  ;;  %v7003_v15 = vadd.f32 %v7002_v21, %v6940_v7  ;;  %v7020_v50 = vpop.f32.mrf.mxu0 }
 0x4af   : > { %v6945_v27 = vpop.f32.mrf.mxu1 }
 0x4b0   : > { %v7005_v19 = vadd.f32 %v7004_v46, %v6942_v56  ;;  %v6946_v11 = vadd.f32 %v6945_v27, %v6883_v40  ;;  %v7022_v22 = vpop.f32.mrf.mxu0 }
 0x4b1   : > { %v6947_v52 = vpop.f32.mrf.mxu1 }
 0x4b2   : > { %v6948_v33 = vadd.f32 %v6947_v52, %v6885_v41  ;;  %v7009_v27 = vadd.f32 %v7008_v61, %v6946_v11  ;;  %v6899_v61 = vadd.f32 %v17316_v32, %v6836_v14  ;;  %v13308_v14 = vld [vmem:[%s17969_s8 + $0x3ec] ss:$16 sps:$4 sm:$0xff]  }
 0x4b3   : > { %v6949_v45 = vpop.f32.mrf.mxu1 }
 0x4b4   : > { %v6950_v51 = vadd.f32 %v6949_v45, %v6887_v26  ;;  %v7011_v59 = vadd.f32 %v7010_v57, %v6948_v33 }
 0x4b5   : > { %v6951_v58 = vpop.f32.mrf.mxu1 }
 0x4b6   : > { %v6952_v54 = vadd.f32 %v6951_v58, %v6889_v6  ;;  %v7013_v52 = vadd.f32 %v7012_v25, %v6950_v51 }
 0x4b7   : > { %v17318_v0 = vpop.f32.mrf.mxu1 }
 0x4b8   : > { %v7015_v1 = vadd.f32 %v7014_v48, %v6952_v54 }
 0x4b9   : > { %v17324_v10 = vpop.f32.mrf.mxu1 }
 0x4ba   : > { %v6958_v13 = vadd.f32 %v17324_v10, %v6895_v38  ;;  %v13312_v38 = vld [vmem:[%s17969_s8 + $0x3a8] ss:$16 sps:$4 sm:$0xff]  }
 0x4bb   : > { %v17326_v47 = vpop.f32.mrf.mxu1 }
 0x4bc   : > { %v6960_v2 = vadd.f32 %v17326_v47, %v6897_v29  ;;  %v7024_v47 = vpop.f32.mrf.mxu0  ;;  %v7021_v41 = vadd.f32 %v7020_v50, %v6958_v13  ;;  %v13300_v50 = vld [vmem:[%s17969_s8 + $0x228] ss:$16 sps:$4 sm:$0xff]  }
 0x4bd   : > { %v17328_v35 = vpop.f32.mrf.mxu1  ;;  %v13318_v29 = vld [vmem:[%s17969_s8 + $0x368] ss:$16 sps:$4 sm:$0xff]  }
 0x4be   : > { %v6962_v32 = vadd.f32 %v17328_v35, %v6899_v61  ;;  %v13293_v35 = vld [vmem:[%s17969_s8 + $0x28c] ss:$16 sps:$4 sm:$0xff]  }
 0x4e7   : > { %v7061_v39 = vpop.f32.mrf.mxu1 }
 0x4e8   : > { %v7062_v62 = vadd.f32 %v7061_v39, %v6999_v49  ;;  %v7023_v49 = vadd.f32 %v7022_v22, %v6960_v2  ;;  %v13329_v22 = vld [vmem:[%s17969_s8 + $0x30c] ss:$16 sps:$4 sm:$0xff]  }
 0x4e9   : > { %v7063_v9 = vpop.f32.mrf.mxu1 }
 0x4ea   : > { %v7064_v53 = vadd.f32 %v7063_v9, %v7001_v16  ;;  %v6830_v16 = vadd.f32 %v17302_v34, %v4701_v43  ;;  %v7092_v5 = vmax.f32 %v7062_v62, 0.0  ;;  %v13287_v34 = vld [vmem:[%s17969_s8 + $0x2cc] ss:$16 sps:$4 sm:$0xff]  }
 0x4eb   : > { %v7065_v24 = vpop.f32.mrf.mxu1 }
 0x4ec   : > { %v7066_v3 = vadd.f32 %v7065_v24, %v7003_v15  ;;  %v7093_v30 = vmax.f32 %v7064_v53, 0.0  ;;  %v6893_v25 = vadd.f32 %v17310_v37, %v6830_v16  ;;  %v13302_v16 = vld [vmem:[%s17969_s8 + $0x22c] ss:$16 sps:$4 sm:$0xff]  }
 0x4ed   : > { %v7067_v36 = vpop.f32.mrf.mxu1 }
 0x4ee   : > { %v7068_v31 = vadd.f32 %v7067_v36, %v7005_v19  ;;  %v7096_v42 = vmax.f32 %v7066_v3, 0.0  ;;  %v6956_v4 = vadd.f32 %v17318_v0, %v6893_v25  ;;  %v13288_v0 = vld [vmem:[%s17969_s8 + $0x2a8] ss:$16 sps:$4 sm:$0xff]   ;;  %v7025_v3 = vadd.f32 %v7024_v47, %v6962_v32 }
 0x4ef   : > { %v7071_v21 = vpop.f32.mrf.mxu1  ;;  %v13324_v25 = vld [vmem:[%s17969_s8 + $0x328] ss:$16 sps:$4 sm:$0xff]  }
 0x4f0   : > { %v7097_v46 = vmax.f32 %v7068_v31, 0.0  ;;  %v17340_v58 = vpack.c.bf16 %v7096_v42, %v7092_v5  ;;  %v7072_v7 = vadd.f32 %v7071_v21, %v7009_v27  ;;  %v7019_v26 = vadd.f32 %v7018_v28, %v6956_v4  ;;  %v13291_v28 = vld [vmem:[%s17969_s8 + $0x288] ss:$16 sps:$4 sm:$0xff]   ;;  %v13296_v31 = vld [vmem:[%s17969_s8 + $0x26c] ss:$16 sps:$4 sm:$0xff]  }
 0x4f1   : > { %v7073_v23 = vpop.f32.mrf.mxu1  ;;  %v13305_v5 = vld [vmem:[%s17969_s8 + $0x20c] ss:$16 sps:$4 sm:$0xff]  }
 0x4f2   : > { %v17334_v45 = vpack.c.bf16 %v7097_v46, %v7093_v30  ;;  %v7074_v43 = vadd.f32 %v7073_v23, %v7011_v59  ;;  %v7100_v9 = vmax.f32 %v7072_v7, 0.0  ;;  %v13299_v30 = vld [vmem:[%s17969_s8 + $0x24c] ss:$16 sps:$4 sm:$0xff]   ;;  %v13297_v46 = vld [vmem:[%s17969_s8 + $0x248] ss:$16 sps:$4 sm:$0xff]  }
 0x4f3   : > { %v7075_v44 = vpop.f32.mrf.mxu1  ;;  %v13303_v23 = vld [vmem:[%s17969_s8 + $0x208] ss:$16 sps:$4 sm:$0xff]   ;;  %v13317_v27 = vld [vmem:[%s17969_s8 + $0x38c] ss:$16 sps:$4 sm:$0xff]  }
 0x4f4   : > { %v7076_v57 = vadd.f32 %v7075_v44, %v7013_v52  ;;  %8011 = vmatprep.mubr.bf16.mxu1 %v17334_v45  ;;  %v7101_v10 = vmax.f32 %v7074_v43, 0.0  ;;  %v13306_v59 = vld [vmem:[%s17969_s8 + $0x3e8] ss:$16 sps:$4 sm:$0xff]   ;;  %v13311_v52 = vld [vmem:[%s17969_s8 + $0x3cc] ss:$16 sps:$4 sm:$0xff]  }
 0x4f5   : > { %v7077_v8 = vpop.f32.mrf.mxu1  ;;  %8012 = vmatmul.mubr.bf16.vlgmr.msra.gmra.mxu1 %v17340_v58  ;;  %v13315_v44 = vld [vmem:[%s17969_s8 + $0x388] ss:$16 sps:$4 sm:$0xff]  }
 0x4f6   : > { %v7078_v39 = vadd.f32 %v7077_v8, %v7015_v1  ;;  %8106 = vmatpush1.bf16.msra.mxu1 %v13282_v12  ;;  %v7104_v37 = vmax.f32 %v7076_v57, 0.0  ;;  %v13314_v12 = vld [vmem:[%s17969_s8 + $0x3ac] ss:$16 sps:$4 sm:$0xff]   ;;  %v13321_v43 = vld [vmem:[%s17969_s8 + $0x348] ss:$16 sps:$4 sm:$0xff]  }
 0x4f7   : > { %v7081_v56 = vpop.f32.mrf.mxu1  ;;  %8107 = vmatprep.subr.bf16.mxu1 %v13287_v34  ;;  %v13320_v34 = vld [vmem:[%s17969_s8 + $0x36c] ss:$16 sps:$4 sm:$0xff]   ;;  %v13327_v7 = vld [vmem:[%s17969_s8 + $0x308] ss:$16 sps:$4 sm:$0xff]   ;;  %v7950_v8 = vpop.f32.mrf.mxu0 }
 0x4f8   : > { %v7105_v48 = vmax.f32 %v7078_v39, 0.0  ;;  %v17365_v19 = vpack.c.bf16 %v7104_v37, %v7100_v9  ;;  %v7082_v36 = vadd.f32 %v7081_v56, %v7019_v26  ;;  %v13323_v1 = vld [vmem:[%s17969_s8 + $0x34c] ss:$16 sps:$4 sm:$0xff]  }
 0x4f9   : > { %v7083_v15 = vpop.f32.mrf.mxu1  ;;  %v13326_v57 = vld [vmem:[%s17969_s8 + $0x32c] ss:$16 sps:$4 sm:$0xff]   ;;  %v7952_v61 = vpop.f32.mrf.mxu0 }
 0x4fa   : > { %v17360_v24 = vpack.c.bf16 %v7105_v48, %v7101_v10  ;;  %8108 = vmatpush1.bf16.msra.mxu1 %v13285_v63  ;;  %v7084_v40 = vadd.f32 %v7083_v15, %v7021_v41  ;;  %v7108_v42 = vmax.f32 %v7082_v36, 0.0  ;;  %v17454_v63 = vld [vmem:[%s17970_s9] sm:$0xf] }
 0x4fb   : > { %v7085_v53 = vpop.f32.mrf.mxu1  ;;  %8109 = vmatprep.subr.bf16.mxu1 %v13290_v60  ;;  %v7954_v13 = vpop.f32.mrf.mxu0  ;;  %v7263_v37 = vrot.slane %v17454_v63, %v15432_v17 }
 0x4fc   : > { %v7086_v62 = vadd.f32 %v7085_v53, %v7023_v49  ;;  %8021 = vmatprep.mubr.bf16.mxu1 %v17360_v24  ;;  %v7109_v20 = vmax.f32 %v7084_v40, 0.0 }
 0x4fd   : > { %v7087_v6 = vpop.f32.mrf.mxu1  ;;  %8022 = vmatmul.mubr.bf16.gmra.mxu1 %v17365_v19  ;;  %v7956_v2 = vpop.f32.mrf.mxu0  ;;  %v7953_v10 = vadd.f32 %v7952_v61, %v7263_v37 }
 0x4fe   : > { %v7088_v33 = vadd.f32 %v7087_v6, %v7025_v3  ;;  %8110 = vmatpush1.bf16.msra.mxu1 %v13288_v0  ;;  %v7112_v51 = vmax.f32 %v7086_v62, 0.0 }
 0x4ff   : > { %8111 = vmatprep.subr.bf16.mxu1 %v13293_v35  ;;  %v7960_v39 = vpop.f32.mrf.mxu0 }
 0x500   : > { %v7113_v11 = vmax.f32 %v7088_v33, 0.0  ;;  %v7124_v54 = vpack.c.bf16 %v7112_v51, %v7108_v42 }
 0x501   : > { %v7962_v4 = vpop.f32.mrf.mxu0 }
 0x502   : > { %v7125_v21 = vpack.c.bf16 %v7113_v11, %v7109_v20  ;;  %8112 = vmatpush1.bf16.msra.mxu1 %v13291_v28  ;;  %v7963_v62 = vadd.f32 %v7962_v4, %v7263_v37 }
 0x503   : > { %8113 = vmatprep.subr.bf16.mxu1 %v13296_v31  ;;  %v7964_v56 = vpop.f32.mrf.mxu0 }
 0x504   : > { %8031 = vmatprep.mubr.bf16.mxu1 %v7125_v21 }
 0x505   : > { %8032 = vmatmul.mubr.bf16.gmra.mxu1 %v7124_v54  ;;  %v7966_v47 = vpop.f32.mrf.mxu0 }
 0x506   : > { %8114 = vmatpush1.bf16.msra.mxu1 %v13294_v55  ;;  %8137 = vmatprep.mubr.bf16.mxu1 %v17334_v45  ;;  %v13309_v45 = vld [vmem:[%s17969_s8 + $0x3c8] ss:$16 sps:$4 sm:$0xff]  }
 0x507   : > { %8115 = vmatprep.subr.bf16.mxu1 %v13299_v30  ;;  %v7970_v53 = vpop.f32.mrf.mxu0 }
 0x509   : > { %v7972_v28 = vpop.f32.mrf.mxu0 }
 0x50a   : > { %8116 = vmatpush1.bf16.msra.mxu1 %v13297_v46 }
 0x50b   : > { %8117 = vmatprep.subr.bf16.mxu1 %v13302_v16  ;;  %v7974_v46 = vpop.f32.mrf.mxu0 }
 0x50e   : > { %8118 = vmatpush1.bf16.msra.mxu1 %v13300_v50 }
 0x50f   : > { %8119 = vmatprep.subr.bf16.mxu1 %v13305_v5 }
 0x512   : > { %8120 = vmatpush1.bf16.msra.mxu1 %v13303_v23 }
 0x513   : > { %8121 = vmatprep.subr.bf16.mxu1 %v13308_v14 }
 0x516   : > { %8122 = vmatpush2.bf16.msra.mxu1 %v13306_v59  ;;  %v7973_v59 = vadd.f32 %v7972_v28, %v7263_v37 }
 0x517   : > { %8123 = vmatprep.subr.bf16.mxu1 %v13311_v52 }
 0x51a   : > { %8124 = vmatpush2.bf16.msra.mxu1 %v13309_v45 }
 0x51b   : > { %8125 = vmatprep.subr.bf16.mxu1 %v13314_v12 }
 0x51e   : > { %8126 = vmatpush2.bf16.msra.mxu1 %v13312_v38  ;;  %v7976_v38 = vpop.f32.mrf.mxu0 }
 0x51f   : > { %8127 = vmatprep.subr.bf16.mxu1 %v13317_v27 }
 0x522   : > { %8128 = vmatpush2.bf16.msra.mxu1 %v13315_v44 }
 0x523   : > { %8129 = vmatprep.subr.bf16.mxu1 %v13320_v34 }
 0x526   : > { %8130 = vmatpush2.bf16.msra.mxu1 %v13318_v29 }
 0x527   : > { %8131 = vmatprep.subr.bf16.mxu1 %v13323_v1 }
 0x52a   : > { %8132 = vmatpush2.bf16.msra.mxu1 %v13321_v43  ;;  %v7977_v43 = vadd.f32 %v7976_v38, %v7263_v37 }
 0x52b   : > { %8133 = vmatprep.subr.bf16.mxu1 %v13326_v57 }
 0x52e   : > { %8134 = vmatpush2.bf16.msra.mxu1 %v13324_v25 }
 0x52f   : > { %8135 = vmatprep.subr.bf16.mxu1 %v13329_v22 }
 0x532   : > { %8136 = vmatpush2.bf16.msra.mxu1 %v13327_v7 }
 0x535   : > { %8138 = vmatmul.mubr.bf16.vlgmr.msra.gmra.mxu1 %v17340_v58  ;;  %v7259_v58 = vrot.slane %v17454_v63, %v15435_v18 }
 0x536   : > { %8147 = vmatprep.mubr.bf16.mxu1 %v17360_v24  ;;  %v7957_v24 = vadd.f32 %v7956_v2, %v7263_v37 }
 0x537   : > { %v7951_v60 = vadd.f32 %v7950_v8, %v7259_v58  ;;  %v7955_v15 = vadd.f32 %v7954_v13, %v7259_v58  ;;  %v7961_v18 = vadd.f32 %v7960_v39, %v7259_v58  ;;  %v7965_v31 = vadd.f32 %v7964_v56, %v7259_v58  ;;  %v8076_v4 = vpop.f32.mrf.mxu0 }
 0x538   : > { %v7971_v50 = vadd.f32 %v7970_v53, %v7259_v58  ;;  %v7975_v44 = vadd.f32 %v7974_v46, %v7259_v58 }
 0x539   : > { %v8078_v56 = vpop.f32.mrf.mxu0 }
 0x53d   : > { %8148 = vmatmul.mubr.bf16.gmra.mxu1 %v17365_v19 }
 0x53e   : > { %8157 = vmatprep.mubr.bf16.mxu1 %v7125_v21  ;;  %v7967_v21 = vadd.f32 %v7966_v47, %v7263_v37  ;;  %v17984_v47 = vld [vmem:[#allocation11_spill] sm:$0xff] }
 0x545   : > { %8158 = vmatmul.mubr.bf16.gmra.mxu1 %v7124_v54 }
 0x5b5   : > { %v8013_v32 = vpop.f32.mrf.mxu1 }
 0x5b6   : > { %v8014_v48 = vadd.f32 %v8013_v32, %v7951_v60  ;;  %v8080_v60 = vpop.f32.mrf.mxu0 }
 0x5b7   : > { %v8015_v9 = vpop.f32.mrf.mxu1 }
 0x5b8   : > { %v8016_v41 = vadd.f32 %v8015_v9, %v7953_v10  ;;  %v8168_v0 = vmax.f32 %v8014_v48, 0.0  ;;  %v8082_v58 = vpop.f32.mrf.mxu0  ;;  %v17983_v48 = vld [vmem:[#allocation12_spill] sm:$0xff]  ;;  %v7271_v9 = vrot.slane %v17454_v63, %v17984_v47 }
 0x5b9   : > { %v8017_v49 = vpop.f32.mrf.mxu1  ;;  %v7267_v37 = vrot.slane %v17454_v63, %v17983_v48 }
 0x5ba   : > { %v8169_v26 = vmax.f32 %v8016_v41, 0.0  ;;  %v8018_v19 = vadd.f32 %v8017_v49, %v7955_v15  ;;  %v8086_v32 = vpop.f32.mrf.mxu0 }
 0x5bb   : > { %v8019_v35 = vpop.f32.mrf.mxu1  ;;  %v8077_v41 = vadd.f32 %v8076_v4, %v7267_v37  ;;  %v8081_v53 = vadd.f32 %v8080_v60, %v7267_v37 }
 0x5bc   : > { %v11708_v3 = vpack.c.bf16 %v8169_v26, %v8168_v0  ;;  %v8020_v40 = vadd.f32 %v8019_v35, %v7957_v24  ;;  %v8172_v36 = vmax.f32 %v8018_v19, 0.0  ;;  %v8088_v10 = vpop.f32.mrf.mxu0  ;;  %v8079_v24 = vadd.f32 %v8078_v56, %v7271_v9 }
 0x5bd   : > { %v8023_v17 = vpop.f32.mrf.mxu1 }
 0x5be   : > { %8264 = vst [vmem:[#allocation2 + $0x50] sm:$0xff] %v11708_v3  ;;  %v8173_v6 = vmax.f32 %v8020_v40, 0.0  ;;  %v8024_v33 = vadd.f32 %v8023_v17, %v7961_v18  ;;  %v8090_v15 = vpop.f32.mrf.mxu0  ;;  %v8083_v3 = vadd.f32 %v8082_v58, %v7271_v9 }
 0x5bf   : > { %v8025_v51 = vpop.f32.mrf.mxu1 }
 0x5c0   : > { %v11710_v20 = vpack.c.bf16 %v8173_v6, %v8172_v36  ;;  %v8026_v11 = vadd.f32 %v8025_v51, %v7963_v62  ;;  %v8176_v55 = vmax.f32 %v8024_v33, 0.0  ;;  %v8092_v26 = vpop.f32.mrf.mxu0  ;;  %v8087_v33 = vadd.f32 %v8086_v32, %v7267_v37 }
 0x5c1   : > { %v8027_v42 = vpop.f32.mrf.mxu1 }
 0x5c2   : > { %8266 = vst [vmem:[#allocation2 + $0x8] sm:$0xff] %v11710_v20  ;;  %v8177_v54 = vmax.f32 %v8026_v11, 0.0  ;;  %v8028_v30 = vadd.f32 %v8027_v42, %v7965_v31  ;;  %v8096_v36 = vpop.f32.mrf.mxu0  ;;  %v8089_v31 = vadd.f32 %v8088_v10, %v7271_v9 }
 0x5c3   : > { %v8029_v16 = vpop.f32.mrf.mxu1 }
 0x5c4   : > { %v11712_v5 = vpack.c.bf16 %v8177_v54, %v8176_v55  ;;  %v8030_v23 = vadd.f32 %v8029_v16, %v7967_v21  ;;  %v8180_v52 = vmax.f32 %v8028_v30, 0.0  ;;  %v8098_v21 = vpop.f32.mrf.mxu0  ;;  %v8091_v54 = vadd.f32 %v8090_v15, %v7267_v37 }
 0x5c5   : > { %v8033_v14 = vpop.f32.mrf.mxu1 }
 0x5c6   : > { %8268 = vst [vmem:[#allocation2 + $0x40] sm:$0xff] %v11712_v5  ;;  %v8181_v45 = vmax.f32 %v8030_v23, 0.0  ;;  %v8034_v12 = vadd.f32 %v8033_v14, %v7971_v50  ;;  %v8093_v50 = vadd.f32 %v8092_v26, %v7271_v9 }
 0x5c7   : > { %v8035_v27 = vpop.f32.mrf.mxu1 }
 0x5c8   : > { %v11714_v34 = vpack.c.bf16 %v8181_v45, %v8180_v52  ;;  %v8036_v29 = vadd.f32 %v8035_v27, %v7973_v59  ;;  %v8184_v57 = vmax.f32 %v8034_v12, 0.0  ;;  %v8100_v59 = vpop.f32.mrf.mxu0  ;;  %v8097_v45 = vadd.f32 %v8096_v36, %v7267_v37 }
 0x5c9   : > { %v8037_v1 = vpop.f32.mrf.mxu1 }
 0x5ca   : > { %8270 = vst [vmem:[#allocation2 + $0x10] sm:$0xff] %v11714_v34  ;;  %v8185_v25 = vmax.f32 %v8036_v29, 0.0  ;;  %v8038_v22 = vadd.f32 %v8037_v1, %v7975_v44  ;;  %v8099_v44 = vadd.f32 %v8098_v21, %v7271_v9 }
 0x5cb   : > { %v8039_v7 = vpop.f32.mrf.mxu1 }
 0x5cc   : > { %v11716_v8 = vpack.c.bf16 %v8185_v25, %v8184_v57  ;;  %v8040_v61 = vadd.f32 %v8039_v7, %v7977_v43  ;;  %v8188_v13 = vmax.f32 %v8038_v22, 0.0  ;;  %v8102_v43 = vpop.f32.mrf.mxu0  ;;  %v8101_v25 = vadd.f32 %v8100_v59, %v7267_v37 }
 0x5ce   : > { %8272 = vst [vmem:[#allocation2 + $0x60] sm:$0xff] %v11716_v8  ;;  %v8189_v2 = vmax.f32 %v8040_v61, 0.0  ;;  %v8103_v61 = vadd.f32 %v8102_v43, %v7271_v9 }
 0x5d0   : > { %v11718_v39 = vpack.c.bf16 %v8189_v2, %v8188_v13 }
 0x5d2   : > { %8274 = vst [vmem:[#allocation2 + $0x78] sm:$0xff] %v11718_v39 }
 0x5f5   : > { %v8139_v49 = vpop.f32.mrf.mxu1 }
 0x5f6   : > { %v8140_v0 = vadd.f32 %v8139_v49, %v8077_v41 }
 0x5f7   : > { %v8141_v19 = vpop.f32.mrf.mxu1 }
 0x5f8   : > { %v8142_v35 = vadd.f32 %v8141_v19, %v8079_v24  ;;  %v8170_v40 = vmax.f32 %v8140_v0, 0.0 }
 0x5f9   : > { %v8143_v18 = vpop.f32.mrf.mxu1 }
 0x5fa   : > { %v8171_v17 = vmax.f32 %v8142_v35, 0.0  ;;  %v8144_v62 = vadd.f32 %v8143_v18, %v8081_v53 }
 0x5fb   : > { %v8145_v6 = vpop.f32.mrf.mxu1 }
 0x5fc   : > { %v11709_v28 = vpack.c.bf16 %v8171_v17, %v8170_v40  ;;  %v8146_v51 = vadd.f32 %v8145_v6, %v8083_v3  ;;  %v8174_v20 = vmax.f32 %v8144_v62, 0.0 }
 0x5fd   : > { %v8149_v63 = vpop.f32.mrf.mxu1 }
 0x5fe   : > { %8265 = vst [vmem:[#allocation2 + $0x68] sm:$0xff] %v11709_v28  ;;  %v8175_v11 = vmax.f32 %v8146_v51, 0.0  ;;  %v8150_v42 = vadd.f32 %v8149_v63, %v8087_v33 }
 0x5ff   : > { %v8151_v55 = vpop.f32.mrf.mxu1 }
 0x600   : > { %v11711_v30 = vpack.c.bf16 %v8175_v11, %v8174_v20  ;;  %v8152_v46 = vadd.f32 %v8151_v55, %v8089_v31  ;;  %v8178_v5 = vmax.f32 %v8150_v42, 0.0 }
 0x601   : > { %v8153_v16 = vpop.f32.mrf.mxu1 }
 0x602   : > { %8267 = vst [vmem:[#allocation2 + $0x48] sm:$0xff] %v11711_v30  ;;  %v8179_v23 = vmax.f32 %v8152_v46, 0.0  ;;  %v8154_v14 = vadd.f32 %v8153_v16, %v8091_v54 }
 0x603   : > { %v8155_v52 = vpop.f32.mrf.mxu1 }
 0x604   : > { %v11713_v12 = vpack.c.bf16 %v8179_v23, %v8178_v5  ;;  %v8156_v38 = vadd.f32 %v8155_v52, %v8093_v50  ;;  %v8182_v34 = vmax.f32 %v8154_v14, 0.0 }
 0x605   : > { %v8159_v27 = vpop.f32.mrf.mxu1 }
 0x606   : > { %8269 = vst [vmem:[#allocation2 + $0x20] sm:$0xff] %v11713_v12  ;;  %v8183_v29 = vmax.f32 %v8156_v38, 0.0  ;;  %v8160_v1 = vadd.f32 %v8159_v27, %v8097_v45 }
 0x607   : > { %v8161_v57 = vpop.f32.mrf.mxu1 }
 0x608   : > { %v11715_v22 = vpack.c.bf16 %v8183_v29, %v8182_v34  ;;  %v8162_v7 = vadd.f32 %v8161_v57, %v8099_v44  ;;  %v8186_v13 = vmax.f32 %v8160_v1, 0.0 }
 0x609   : > { %v8163_v8 = vpop.f32.mrf.mxu1 }
 0x60a   : > { %8271 = vst [vmem:[#allocation2 + $0x38] sm:$0xff] %v11715_v22  ;;  %v8187_v2 = vmax.f32 %v8162_v7, 0.0  ;;  %v8164_v39 = vadd.f32 %v8163_v8, %v8101_v25 }
 0x60b   : > { %v8165_v4 = vpop.f32.mrf.mxu1 }
 0x60c   : > { %v11717_v56 = vpack.c.bf16 %v8187_v2, %v8186_v13  ;;  %v8166_v60 = vadd.f32 %v8165_v4, %v8103_v61  ;;  %v8190_v58 = vmax.f32 %v8164_v39, 0.0 }
 0x60e   : > { %8273 = vst [vmem:[#allocation2 + $0x70] sm:$0xff] %v11717_v56  ;;  %v8191_v32 = vmax.f32 %v8166_v60, 0.0 }
 0x610   : > { %v11719_v10 = vpack.c.bf16 %v8191_v32, %v8190_v58 }
 0x612   : > { %8275 = vst [vmem:[#allocation2 + $0x28] sm:$0xff] %v11719_v10 }
 0x613 PF: > { %v13353_v48 = vld [vmem:[%s14233_s27 + $0x154] ss:$24 sps:$4 sm:$0xff]   ;;  %v13357_v47 = vld [vmem:[%s14233_s27 + $0x150] ss:$24 sps:$4 sm:$0xff]   ;;  %v13359_v15 = vld [vmem:[%s14233_s27 + $0x124] ss:$24 sps:$4 sm:$0xff]  }
 0x614   : > { %v13355_v37 = vld [vmem:[%s14233_s27 + $0x454] ss:$24 sps:$4 sm:$0xff]   ;;  %9030 = vmatprep.subr.bf16.mxu0 %v13353_v48  ;;  %v13358_v9 = vld [vmem:[%s14233_s27 + $0x450] ss:$24 sps:$4 sm:$0xff]   ;;  %v13361_v41 = vld [vmem:[%s14233_s27 + $0x424] ss:$24 sps:$4 sm:$0xff]  }
 0x615   : > { %9103 = vmatprep.subr.bf16.mxu1 %v13355_v37  ;;  %9031 = vmatpush1.bf16.msra.mxu0 %v13357_v47  ;;  %v13363_v49 = vld [vmem:[%s14233_s27 + $0x120] ss:$24 sps:$4 sm:$0xff]   ;;  %v13365_v0 = vld [vmem:[%s14233_s27 + $0xf4] ss:$24 sps:$4 sm:$0xff]   ;;  %v13369_v19 = vld [vmem:[%s14233_s27 + $0xf0] ss:$24 sps:$4 sm:$0xff]  }
 0x616   : > { %9104 = vmatpush1.bf16.msra.mxu1 %v13358_v9  ;;  %9032 = vmatprep.subr.bf16.mxu0 %v13359_v15  ;;  %v13364_v24 = vld [vmem:[%s14233_s27 + $0x420] ss:$24 sps:$4 sm:$0xff]   ;;  %v13367_v26 = vld [vmem:[%s14233_s27 + $0x3f4] ss:$24 sps:$4 sm:$0xff]   ;;  %v13370_v53 = vld [vmem:[%s14233_s27 + $0x3f0] ss:$24 sps:$4 sm:$0xff]  }
 0x617   : > { %9105 = vmatprep.subr.bf16.mxu1 %v13361_v41  ;;  %v13371_v35 = vld [vmem:[%s14233_s27 + $0xc4] ss:$24 sps:$4 sm:$0xff]   ;;  %v13375_v3 = vld [vmem:[%s14233_s27 + $0xc0] ss:$24 sps:$4 sm:$0xff]   ;;  %v13377_v17 = vld [vmem:[%s14233_s27 + $0x94] ss:$24 sps:$4 sm:$0xff]  }
 0x618   : > { %v13373_v18 = vld [vmem:[%s14233_s27 + $0x3c4] ss:$24 sps:$4 sm:$0xff]   ;;  %v13376_v40 = vld [vmem:[%s14233_s27 + $0x3c0] ss:$24 sps:$4 sm:$0xff]   ;;  %v13379_v62 = vld [vmem:[%s14233_s27 + $0x394] ss:$24 sps:$4 sm:$0xff]  }
 0x619   : > { %9033 = vmatpush1.bf16.msra.mxu0 %v13363_v49  ;;  %v13381_v36 = vld [vmem:[%s14233_s27 + $0x90] ss:$24 sps:$4 sm:$0xff]   ;;  %v13383_v33 = vld [vmem:[%s14233_s27 + $0x64] ss:$24 sps:$4 sm:$0xff]   ;;  %v13387_v51 = vld [vmem:[%s14233_s27 + $0x60] ss:$24 sps:$4 sm:$0xff]  }
 0x61a   : > { %9106 = vmatpush1.bf16.msra.mxu1 %v13364_v24  ;;  %9034 = vmatprep.subr.bf16.mxu0 %v13365_v0  ;;  %v13382_v6 = vld [vmem:[%s14233_s27 + $0x390] ss:$24 sps:$4 sm:$0xff]   ;;  %v13385_v28 = vld [vmem:[%s14233_s27 + $0x364] ss:$24 sps:$4 sm:$0xff]   ;;  %v13388_v63 = vld [vmem:[%s14233_s27 + $0x360] ss:$24 sps:$4 sm:$0xff]  }
 0x61b   : > { %9107 = vmatprep.subr.bf16.mxu1 %v13367_v26  ;;  %v13389_v31 = vld [vmem:[%s14233_s27 + $0x34] ss:$24 sps:$4 sm:$0xff]   ;;  %v13393_v11 = vld [vmem:[%s14233_s27 + $0x30] ss:$24 sps:$4 sm:$0xff]   ;;  %v13395_v21 = vld [vmem:[%s14233_s27 + $0x4] ss:$24 sps:$4 sm:$0xff]  }
 0x61c   : > { %v13391_v20 = vld [vmem:[%s14233_s27 + $0x334] ss:$24 sps:$4 sm:$0xff]   ;;  %v13394_v42 = vld [vmem:[%s14233_s27 + $0x330] ss:$24 sps:$4 sm:$0xff]   ;;  %v13397_v55 = vld [vmem:[%s14233_s27 + $0x304] ss:$24 sps:$4 sm:$0xff]  }
 0x61d   : > { %9035 = vmatpush1.bf16.msra.mxu0 %v13369_v19  ;;  %v13399_v54 = vld [vmem:[%s14233_s27] ss:$24 sps:$4 sm:$0xff]   ;;  %v13401_v46 = vld [vmem:[%s14233_s27 + $0x2d4] ss:$24 sps:$4 sm:$0xff]   ;;  %v13405_v50 = vld [vmem:[%s14233_s27 + $0x2d0] ss:$24 sps:$4 sm:$0xff]  }
 0x61e   : > { %9108 = vmatpush1.bf16.msra.mxu1 %v13370_v53  ;;  %9036 = vmatprep.subr.bf16.mxu0 %v13371_v35  ;;  %v13400_v30 = vld [vmem:[%s14233_s27 + $0x300] ss:$24 sps:$4 sm:$0xff]   ;;  %v13403_v16 = vld [vmem:[%s14233_s27 + $0x5d4] ss:$24 sps:$4 sm:$0xff]   ;;  %v13406_v5 = vld [vmem:[%s14233_s27 + $0x5d0] ss:$24 sps:$4 sm:$0xff]  }
 0x61f   : > { %9109 = vmatprep.subr.bf16.mxu1 %v13373_v18  ;;  %v13407_v23 = vld [vmem:[%s14233_s27 + $0x2a4] ss:$24 sps:$4 sm:$0xff]   ;;  %v13411_v59 = vld [vmem:[%s14233_s27 + $0x2a0] ss:$24 sps:$4 sm:$0xff]   ;;  %v13413_v45 = vld [vmem:[%s14233_s27 + $0x274] ss:$24 sps:$4 sm:$0xff]  }
 0x620   : > { %v13409_v14 = vld [vmem:[%s14233_s27 + $0x5a4] ss:$24 sps:$4 sm:$0xff]   ;;  %v13412_v52 = vld [vmem:[%s14233_s27 + $0x5a0] ss:$24 sps:$4 sm:$0xff]   ;;  %v13415_v12 = vld [vmem:[%s14233_s27 + $0x574] ss:$24 sps:$4 sm:$0xff]  }
 0x621   : > { %9037 = vmatpush1.bf16.msra.mxu0 %v13375_v3  ;;  %v13417_v38 = vld [vmem:[%s14233_s27 + $0x270] ss:$24 sps:$4 sm:$0xff]   ;;  %v13419_v44 = vld [vmem:[%s14233_s27 + $0x244] ss:$24 sps:$4 sm:$0xff]   ;;  %v13423_v29 = vld [vmem:[%s14233_s27 + $0x240] ss:$24 sps:$4 sm:$0xff]  }
 0x622   : > { %9110 = vmatpush1.bf16.msra.mxu1 %v13376_v40  ;;  %9038 = vmatprep.subr.bf16.mxu0 %v13377_v17  ;;  %v13418_v27 = vld [vmem:[%s14233_s27 + $0x570] ss:$24 sps:$4 sm:$0xff]   ;;  %v13421_v34 = vld [vmem:[%s14233_s27 + $0x544] ss:$24 sps:$4 sm:$0xff]   ;;  %v13424_v1 = vld [vmem:[%s14233_s27 + $0x540] ss:$24 sps:$4 sm:$0xff]  }
 0x623   : > { %9111 = vmatprep.subr.bf16.mxu1 %v13379_v62  ;;  %v17512_v43 = vld [vmem:[#allocation2 + $0x34] ss:$40 sps:$4 sm:$0xff]   ;;  %v13429_v7 = vld [vmem:[%s14233_s27 + $0x210] ss:$24 sps:$4 sm:$0xff]   ;;  %v13435_v2 = vld [vmem:[%s14233_s27 + $0x1e0] ss:$24 sps:$4 sm:$0xff]  }
 0x624   : > { %v13425_v57 = vld [vmem:[%s14233_s27 + $0x214] ss:$24 sps:$4 sm:$0xff]   ;;  %v17515_v25 = vld [vmem:[#allocation2 + $0x4] ss:$24 sps:$4 sm:$0xff]   ;;  %9062 = vmatprep.mubr.bf16.mxu0 %v17512_v43  ;;  %v13430_v8 = vld [vmem:[%s14233_s27 + $0x510] ss:$24 sps:$4 sm:$0xff]  }
 0x625   : > { %9039 = vmatpush1.bf16.msra.mxu0 %v13381_v36  ;;  %v13427_v22 = vld [vmem:[%s14233_s27 + $0x514] ss:$24 sps:$4 sm:$0xff]   ;;  %9135 = vmatprep.mubr.bf16.mxu1 %v17515_v25  ;;  %v13431_v61 = vld [vmem:[%s14233_s27 + $0x1e4] ss:$24 sps:$4 sm:$0xff]   ;;  %v13436_v39 = vld [vmem:[%s14233_s27 + $0x4e0] ss:$24 sps:$4 sm:$0xff]  }
 0x626   : > { %9112 = vmatpush1.bf16.msra.mxu1 %v13382_v6  ;;  %9040 = vmatprep.subr.bf16.mxu0 %v13383_v33  ;;  %v13433_v13 = vld [vmem:[%s14233_s27 + $0x4e4] ss:$24 sps:$4 sm:$0xff]   ;;  %v13437_v4 = vld [vmem:[%s14233_s27 + $0x1b4] ss:$24 sps:$4 sm:$0xff]   ;;  %v13441_v60 = vld [vmem:[%s14233_s27 + $0x1b0] ss:$24 sps:$4 sm:$0xff]  }
 0x627   : > { %9113 = vmatprep.subr.bf16.mxu1 %v13385_v28  ;;  %v13439_v56 = vld [vmem:[%s14233_s27 + $0x4b4] ss:$24 sps:$4 sm:$0xff]   ;;  %v13442_v58 = vld [vmem:[%s14233_s27 + $0x4b0] ss:$24 sps:$4 sm:$0xff]   ;;  %v13443_v32 = vld [vmem:[%s14233_s27 + $0x184] ss:$24 sps:$4 sm:$0xff]  }
 0x628   : > { %v13445_v10 = vld [vmem:[%s14233_s27 + $0x484] ss:$24 sps:$4 sm:$0xff]   ;;  %v13447_v48 = vld [vmem:[%s14233_s27 + $0x180] ss:$24 sps:$4 sm:$0xff]   ;;  %v8281_v24 = vld [vmem:[#allocation2 + $0x68] sm:$0xff]  ;;  %s9387_s19 = smul.u32 768, %s13801_s13 }
 0x629   : > { %9041 = vmatpush1.bf16.msra.mxu0 %v13387_v51  ;;  %v13448_v37 = vld [vmem:[%s14233_s27 + $0x480] ss:$24 sps:$4 sm:$0xff]   ;;  %v8283_v0 = vld [vmem:[#allocation2 + $0x48] sm:$0xff]  ;;  %s17773_s24 = sld [smem:[#allocation5 + $0x1]]  ;;  %p11695_p7 = scmp.ge.s32.totalorder %s13801_s13, 2 }
 0x62a   : > { %9114 = vmatpush1.bf16.msra.mxu1 %v13388_v63  ;;  %9042 = vmatprep.subr.bf16.mxu0 %v13389_v31  ;;  %v13455_v47 = vld [vmem:[%s14233_s27 + $0x2d8] ss:$24 sps:$4 sm:$0xff]   ;;  %v13459_v19 = vld [vmem:[%s14233_s27 + $0x2a8] ss:$24 sps:$4 sm:$0xff]   ;;  %v17545_v18 = vld [vmem:[#allocation2 + $0x54] ss:$-72 sps:$4 sm:$0xff]   ;;  %v17547_v3 = vcombine.high %v8281_v24, %v8283_v0  ;;  %v17560_v28 = vcombine.low %v8281_v24, %v8283_v0 }
 0x62b   : > { %9115 = vmatprep.subr.bf16.mxu1 %v13391_v20  ;;  %v17535_v9 = vld [vmem:[#allocation2 + $0x30] ss:$40 sps:$4 sm:$0xff]   ;;  %v13460_v53 = vld [vmem:[%s14233_s27 + $0x5a8] ss:$24 sps:$4 sm:$0xff]   ;;  %v17564_v31 = vld [vmem:[#allocation2 + $0x44] ss:$-48 sps:$4 sm:$0xff]  }
 0x62c   : > { %v17537_v15 = vld [vmem:[#allocation2] ss:$24 sps:$4 sm:$0xff]   ;;  %v17553_v62 = vld [vmem:[#allocation2 + $0x50] ss:$-72 sps:$4 sm:$0xff]   ;;  %v17566_v20 = vld [vmem:[#allocation2 + $0x24] ss:$24 sps:$4 sm:$0xff]  }
 0x62d   : > { %9043 = vmatpush1.bf16.msra.mxu0 %v13393_v11  ;;  %v13456_v41 = vld [vmem:[%s14233_s27 + $0x5d8] ss:$24 sps:$4 sm:$0xff]   ;;  %v13461_v35 = vld [vmem:[%s14233_s27 + $0x128] ss:$24 sps:$4 sm:$0xff]   ;;  %v13526_v0 = vld [vmem:[%s14233_s27 + $0x9c] ss:$24 sps:$4 sm:$0xff]  }
 0x62e   : > { %9116 = vmatpush1.bf16.msra.mxu1 %v13394_v42  ;;  %9044 = vmatprep.subr.bf16.mxu0 %v13395_v21  ;;  %v13457_v49 = vld [vmem:[%s14233_s27 + $0x158] ss:$24 sps:$4 sm:$0xff]   ;;  %v13462_v40 = vld [vmem:[%s14233_s27 + $0x428] ss:$24 sps:$4 sm:$0xff]   ;;  %s17709_s20 = sadd.s32 384, %s9387_s19  ;;  %s17775_s25 = sld [smem:[#allocation5 + $0x2]] }
 0x62f   : > { %9117 = vmatprep.subr.bf16.mxu1 %v13397_v55  ;;  %v13458_v26 = vld [vmem:[%s14233_s27 + $0x458] ss:$24 sps:$4 sm:$0xff]   ;;  %v13470_v51 = vld [vmem:[%s14233_s27 + $0x248] ss:$24 sps:$4 sm:$0xff]   ;;  %s17781_s22 = sld [smem:[#allocation3]]  ;;  %s17815_s26 = sshra.s32 %s9387_s19, 7 }
 0x630   : > { %v13466_v17 = vld [vmem:[%s14233_s27 + $0x278] ss:$24 sps:$4 sm:$0xff]   ;;  %v13471_v63 = vld [vmem:[%s14233_s27 + $0x548] ss:$24 sps:$4 sm:$0xff]   ;;  %s17784_s17 = sld [smem:[#allocation5 + $0x3]]  ;;  %s11595_s28 = sshll.u32 %s17815_s26, 3 }
 0x631   : > { %9045 = vmatpush1.bf16.msra.mxu0 %v13399_v54  ;;  %v13467_v36 = vld [vmem:[%s14233_s27 + $0x578] ss:$24 sps:$4 sm:$0xff]   ;;  %v13472_v11 = vld [vmem:[%s14233_s27 + $0xc8] ss:$24 sps:$4 sm:$0xff]   ;;  %s17831_s29 = scalar_lea.vmem [#allocation8], %s11595_s28 }
 0x632   : > { %9118 = vmatpush1.bf16.msra.mxu1 %v13400_v30  ;;  %9046 = vmatprep.subr.bf16.mxu0 %v13401_v46  ;;  %v13468_v6 = vld [vmem:[%s14233_s27 + $0xf8] ss:$24 sps:$4 sm:$0xff]   ;;  %v13473_v42 = vld [vmem:[%s14233_s27 + $0x3c8] ss:$24 sps:$4 sm:$0xff]  }
 0x633   : > { %9119 = vmatprep.subr.bf16.mxu1 %v13403_v16  ;;  %v13469_v33 = vld [vmem:[%s14233_s27 + $0x3f8] ss:$24 sps:$4 sm:$0xff]  }
 0x634   : > { %v13480_v21 = vld [vmem:[%s14233_s27 + $0x218] ss:$24 sps:$4 sm:$0xff]  }
 0x635   : > { %9047 = vmatpush2.bf16.msra.mxu0 %v13405_v50  ;;  %v17573_v55 = vld [vmem:[#allocation2 + $0x40] ss:$-48 sps:$4 sm:$0xff]  }
 0x636   : > { %9120 = vmatpush2.bf16.msra.mxu1 %v13406_v5  ;;  %9048 = vmatprep.subr.bf16.mxu0 %v13407_v23  ;;  %v17575_v54 = vld [vmem:[#allocation2 + $0x20] ss:$24 sps:$4 sm:$0xff]   ;;  %v17584_v23 = vld [vmem:[#allocation2 + $0x64] ss:$24 sps:$4 sm:$0xff]  }
 0x637   : > { %9121 = vmatprep.subr.bf16.mxu1 %v13409_v14  ;;  %v13481_v30 = vld [vmem:[%s14233_s27 + $0x518] ss:$24 sps:$4 sm:$0xff]   ;;  %v13484_v50 = vld [vmem:[%s14233_s27 + $0x1e8] ss:$24 sps:$4 sm:$0xff]   ;;  %v17586_v14 = vld [vmem:[#allocation2 + $0x74] ss:$-72 sps:$4 sm:$0xff]  }
 0x638   : > { %v13482_v46 = vld [vmem:[%s14233_s27 + $0x98] ss:$24 sps:$4 sm:$0xff]   ;;  %v13485_v5 = vld [vmem:[%s14233_s27 + $0x4e8] ss:$24 sps:$4 sm:$0xff]  }
 0x639   : > { %9049 = vmatpush2.bf16.msra.mxu0 %v13411_v59  ;;  %v13483_v16 = vld [vmem:[%s14233_s27 + $0x398] ss:$24 sps:$4 sm:$0xff]   ;;  %v13486_v59 = vld [vmem:[%s14233_s27 + $0x68] ss:$24 sps:$4 sm:$0xff]  }
 0x63a   : > { %9122 = vmatpush2.bf16.msra.mxu1 %v13412_v52  ;;  %9050 = vmatprep.subr.bf16.mxu0 %v13413_v45  ;;  %v13487_v52 = vld [vmem:[%s14233_s27 + $0x368] ss:$24 sps:$4 sm:$0xff]   ;;  %v13494_v45 = vld [vmem:[%s14233_s27 + $0x1b8] ss:$24 sps:$4 sm:$0xff]  }
 0x63b   : > { %9123 = vmatprep.subr.bf16.mxu1 %v13415_v12  ;;  %v13495_v12 = vld [vmem:[%s14233_s27 + $0x4b8] ss:$24 sps:$4 sm:$0xff]  }
 0x63c   : > { %v13531_v24 = vld [vmem:[%s14233_s27 + $0x3a0] ss:$24 sps:$4 sm:$0xff]  }
 0x63d   : > { %9051 = vmatpush2.bf16.msra.mxu0 %v13417_v38  ;;  %v17596_v38 = vld [vmem:[#allocation2 + $0x60] ss:$24 sps:$4 sm:$0xff]  }
 0x63e   : > { %9124 = vmatpush2.bf16.msra.mxu1 %v13418_v27  ;;  %9052 = vmatprep.subr.bf16.mxu0 %v13419_v44  ;;  %v17598_v27 = vld [vmem:[#allocation2 + $0x70] ss:$-72 sps:$4 sm:$0xff]  }
 0x63f   : > { %9125 = vmatprep.subr.bf16.mxu1 %v13421_v34  ;;  %v13496_v44 = vld [vmem:[%s14233_s27 + $0x38] ss:$24 sps:$4 sm:$0xff]  }
 0x640   : > { %v13497_v34 = vld [vmem:[%s14233_s27 + $0x338] ss:$24 sps:$4 sm:$0xff]  }
 0x641   : > { %9053 = vmatpush2.bf16.msra.mxu0 %v13423_v29  ;;  %v13498_v29 = vld [vmem:[%s14233_s27 + $0x188] ss:$24 sps:$4 sm:$0xff]  }
 0x642   : > { %9126 = vmatpush2.bf16.msra.mxu1 %v13424_v1  ;;  %9054 = vmatprep.subr.bf16.mxu0 %v13425_v57  ;;  %v13499_v1 = vld [vmem:[%s14233_s27 + $0x488] ss:$24 sps:$4 sm:$0xff]  }
 0x643   : > { %9127 = vmatprep.subr.bf16.mxu1 %v13427_v22  ;;  %v13500_v57 = vld [vmem:[%s14233_s27 + $0x8] ss:$24 sps:$4 sm:$0xff]  }
 0x644   : > { %v13501_v22 = vld [vmem:[%s14233_s27 + $0x308] ss:$24 sps:$4 sm:$0xff]  }
 0x645   : > { %9055 = vmatpush2.bf16.msra.mxu0 %v13429_v7  ;;  %v13504_v7 = vld [vmem:[%s14233_s27 + $0x160] ss:$24 sps:$4 sm:$0xff]  }
 0x646   : > { %9128 = vmatpush2.bf16.msra.mxu1 %v13430_v8  ;;  %9056 = vmatprep.subr.bf16.mxu0 %v13431_v61  ;;  %v13507_v8 = vld [vmem:[%s14233_s27 + $0x460] ss:$24 sps:$4 sm:$0xff]   ;;  %v13502_v61 = vld [vmem:[%s14233_s27 + $0x15c] ss:$24 sps:$4 sm:$0xff]  }
 0x647   : > { %9129 = vmatprep.subr.bf16.mxu1 %v13433_v13  ;;  %v13505_v13 = vld [vmem:[%s14233_s27 + $0x45c] ss:$24 sps:$4 sm:$0xff]  }
 0x649   : > { %9057 = vmatpush2.bf16.msra.mxu0 %v13435_v2  ;;  %v13510_v2 = vld [vmem:[%s14233_s27 + $0x130] ss:$24 sps:$4 sm:$0xff]  }
 0x64a   : > { %9130 = vmatpush2.bf16.msra.mxu1 %v13436_v39  ;;  %9058 = vmatprep.subr.bf16.mxu0 %v13437_v4  ;;  %v13513_v39 = vld [vmem:[%s14233_s27 + $0x430] ss:$24 sps:$4 sm:$0xff]   ;;  %v13508_v4 = vld [vmem:[%s14233_s27 + $0x12c] ss:$24 sps:$4 sm:$0xff]  }
 0x64b   : > { %9131 = vmatprep.subr.bf16.mxu1 %v13439_v56  ;;  %v13511_v56 = vld [vmem:[%s14233_s27 + $0x42c] ss:$24 sps:$4 sm:$0xff]  }
 0x64d   : > { %9059 = vmatpush2.bf16.msra.mxu0 %v13441_v60  ;;  %v13516_v60 = vld [vmem:[%s14233_s27 + $0x100] ss:$24 sps:$4 sm:$0xff]  }
 0x64e   : > { %9132 = vmatpush2.bf16.msra.mxu1 %v13442_v58  ;;  %9060 = vmatprep.subr.bf16.mxu0 %v13443_v32  ;;  %v13519_v58 = vld [vmem:[%s14233_s27 + $0x400] ss:$24 sps:$4 sm:$0xff]   ;;  %v13514_v32 = vld [vmem:[%s14233_s27 + $0xfc] ss:$24 sps:$4 sm:$0xff]  }
 0x64f   : > { %9133 = vmatprep.subr.bf16.mxu1 %v13445_v10  ;;  %v13517_v10 = vld [vmem:[%s14233_s27 + $0x3fc] ss:$24 sps:$4 sm:$0xff]  }
 0x651   : > { %9061 = vmatpush2.bf16.msra.mxu0 %v13447_v48  ;;  %v13522_v48 = vld [vmem:[%s14233_s27 + $0xd0] ss:$24 sps:$4 sm:$0xff]  }
 0x652   : > { %9134 = vmatpush2.bf16.msra.mxu1 %v13448_v37  ;;  %11720 = vmatprep.subr.bf16.mxu0 %v13455_v47  ;;  %v13525_v37 = vld [vmem:[%s14233_s27 + $0x3d0] ss:$24 sps:$4 sm:$0xff]   ;;  %v13520_v47 = vld [vmem:[%s14233_s27 + $0xcc] ss:$24 sps:$4 sm:$0xff]  }
 0x653   : > { %11760 = vmatprep.subr.bf16.mxu1 %v13456_v41  ;;  %v13523_v41 = vld [vmem:[%s14233_s27 + $0x3cc] ss:$24 sps:$4 sm:$0xff]  }
 0x654   : > { %9063 = vmatmul.mubr.bf16.vlgmr.msra.gmra.mxu0 %v17535_v9 }
 0x655   : > { %9136 = vmatmul.mubr.bf16.vlgmr.msra.gmra.mxu1 %v17537_v15  ;;  %11721 = vmatpush3.bf16.msra.mxu0 %v13457_v49  ;;  %v13528_v49 = vld [vmem:[%s14233_s27 + $0xa0] ss:$24 sps:$4 sm:$0xff]  }
 0x656   : > { %11761 = vmatpush3.bf16.msra.mxu1 %v13458_v26  ;;  %11722 = vmatprep.subr.bf16.mxu0 %v13459_v19  ;;  %v13529_v26 = vld [vmem:[%s14233_s27 + $0x39c] ss:$24 sps:$4 sm:$0xff]   ;;  %v13534_v19 = vld [vmem:[%s14233_s27 + $0x70] ss:$24 sps:$4 sm:$0xff]  }
 0x657   : > { %11762 = vmatprep.subr.bf16.mxu1 %v13460_v53  ;;  %9072 = vmatprep.mubr.bf16.mxu0 %v17545_v18  ;;  %v13537_v53 = vld [vmem:[%s14233_s27 + $0x370] ss:$24 sps:$4 sm:$0xff]  }
 0x658   : > { %9145 = vmatprep.mubr.bf16.mxu1 %v17547_v3 }
 0x659   : > { %11723 = vmatpush3.bf16.msra.mxu0 %v13461_v35  ;;  %v13532_v35 = vld [vmem:[%s14233_s27 + $0x6c] ss:$24 sps:$4 sm:$0xff]  }
 0x65a   : > { %11763 = vmatpush3.bf16.msra.mxu1 %v13462_v40  ;;  %11724 = vmatprep.subr.bf16.mxu0 %v13466_v17  ;;  %v13535_v40 = vld [vmem:[%s14233_s27 + $0x36c] ss:$24 sps:$4 sm:$0xff]   ;;  %v13540_v17 = vld [vmem:[%s14233_s27 + $0x40] ss:$24 sps:$4 sm:$0xff]  }
 0x65b   : > { %11764 = vmatprep.subr.bf16.mxu1 %v13467_v36  ;;  %v13543_v36 = vld [vmem:[%s14233_s27 + $0x340] ss:$24 sps:$4 sm:$0xff]  }
 0x65c   : > { %9073 = vmatmul.mubr.bf16.gmra.mxu0 %v17553_v62 }
 0x65d   : > { %9146 = vmatmul.mubr.bf16.gmra.mxu1 %v17560_v28  ;;  %11725 = vmatpush3.bf16.msra.mxu0 %v13468_v6  ;;  %v13538_v6 = vld [vmem:[%s14233_s27 + $0x3c] ss:$24 sps:$4 sm:$0xff]  }
 0x65e   : > { %11765 = vmatpush3.bf16.msra.mxu1 %v13469_v33  ;;  %11726 = vmatprep.subr.bf16.mxu0 %v13470_v51  ;;  %v13541_v33 = vld [vmem:[%s14233_s27 + $0x33c] ss:$24 sps:$4 sm:$0xff]   ;;  %v13546_v51 = vld [vmem:[%s14233_s27 + $0x10] ss:$24 sps:$4 sm:$0xff]  }
 0x65f   : > { %11766 = vmatprep.subr.bf16.mxu1 %v13471_v63  ;;  %9082 = vmatprep.mubr.bf16.mxu0 %v17564_v31  ;;  %v13549_v63 = vld [vmem:[%s14233_s27 + $0x310] ss:$24 sps:$4 sm:$0xff]  }
 0x660   : > { %9155 = vmatprep.mubr.bf16.mxu1 %v17566_v20 }
 0x661   : > { %11727 = vmatpush3.bf16.msra.mxu0 %v13472_v11  ;;  %v13544_v11 = vld [vmem:[%s14233_s27 + $0xc] ss:$24 sps:$4 sm:$0xff]  }
 0x662   : > { %11767 = vmatpush3.bf16.msra.mxu1 %v13473_v42  ;;  %11728 = vmatprep.subr.bf16.mxu0 %v13480_v21  ;;  %v13547_v42 = vld [vmem:[%s14233_s27 + $0x30c] ss:$24 sps:$4 sm:$0xff]   ;;  %v13552_v21 = vld [vmem:[%s14233_s27 + $0x2e0] ss:$24 sps:$4 sm:$0xff]  }
 0x663   : > { %11768 = vmatprep.subr.bf16.mxu1 %v13481_v30  ;;  %v13555_v30 = vld [vmem:[%s14233_s27 + $0x5e0] ss:$24 sps:$4 sm:$0xff]  }
 0x664   : > { %9083 = vmatmul.mubr.bf16.gmra.mxu0 %v17573_v55 }
 0x665   : > { %9156 = vmatmul.mubr.bf16.gmra.mxu1 %v17575_v54  ;;  %11729 = vmatpush3.bf16.msra.mxu0 %v13482_v46  ;;  %v13550_v46 = vld [vmem:[%s14233_s27 + $0x2dc] ss:$24 sps:$4 sm:$0xff]  }
 0x666   : > { %11769 = vmatpush3.bf16.msra.mxu1 %v13483_v16  ;;  %11730 = vmatprep.subr.bf16.mxu0 %v13484_v50  ;;  %v13553_v16 = vld [vmem:[%s14233_s27 + $0x5dc] ss:$24 sps:$4 sm:$0xff]   ;;  %v13558_v50 = vld [vmem:[%s14233_s27 + $0x2b0] ss:$24 sps:$4 sm:$0xff]  }
 0x667   : > { %11770 = vmatprep.subr.bf16.mxu1 %v13485_v5  ;;  %9092 = vmatprep.mubr.bf16.mxu0 %v17584_v23  ;;  %v13561_v5 = vld [vmem:[%s14233_s27 + $0x5b0] ss:$24 sps:$4 sm:$0xff]  }
 0x668   : > { %9165 = vmatprep.mubr.bf16.mxu1 %v17586_v14 }
 0x669   : > { %11731 = vmatpush3.bf16.msra.mxu0 %v13486_v59  ;;  %v13556_v59 = vld [vmem:[%s14233_s27 + $0x2ac] ss:$24 sps:$4 sm:$0xff]  }
 0x66a   : > { %11771 = vmatpush3.bf16.msra.mxu1 %v13487_v52  ;;  %11732 = vmatprep.subr.bf16.mxu0 %v13494_v45  ;;  %v13559_v52 = vld [vmem:[%s14233_s27 + $0x5ac] ss:$24 sps:$4 sm:$0xff]   ;;  %v13562_v45 = vld [vmem:[%s14233_s27 + $0x27c] ss:$24 sps:$4 sm:$0xff]  }
 0x66b   : > { %11772 = vmatprep.subr.bf16.mxu1 %v13495_v12  ;;  %v13565_v12 = vld [vmem:[%s14233_s27 + $0x57c] ss:$24 sps:$4 sm:$0xff]  }
 0x66c   : > { %9093 = vmatmul.mubr.bf16.gmra.mxu0 %v17596_v38 }
 0x66d   : > { %9166 = vmatmul.mubr.bf16.gmra.mxu1 %v17598_v27  ;;  %11733 = vmatpush3.bf16.msra.mxu0 %v13496_v44  ;;  %v13570_v44 = vld [vmem:[%s14233_s27 + $0x250] ss:$24 sps:$4 sm:$0xff]  }
 0x66e   : > { %11773 = vmatpush3.bf16.msra.mxu1 %v13497_v34  ;;  %11734 = vmatprep.subr.bf16.mxu0 %v13498_v29  ;;  %v13573_v34 = vld [vmem:[%s14233_s27 + $0x550] ss:$24 sps:$4 sm:$0xff]   ;;  %v13568_v29 = vld [vmem:[%s14233_s27 + $0x24c] ss:$24 sps:$4 sm:$0xff]  }
 0x66f   : > { %11774 = vmatprep.subr.bf16.mxu1 %v13499_v1  ;;  %9208 = vmatprep.mubr.bf16.mxu0 %v17512_v43  ;;  %v13571_v1 = vld [vmem:[%s14233_s27 + $0x54c] ss:$24 sps:$4 sm:$0xff]  }
 0x670   : > { %9273 = vmatprep.mubr.bf16.mxu1 %v17515_v25 }
 0x671   : > { %11735 = vmatpush3.bf16.msra.mxu0 %v13500_v57  ;;  %v13576_v57 = vld [vmem:[%s14233_s27 + $0x220] ss:$24 sps:$4 sm:$0xff]  }
 0x672   : > { %11775 = vmatpush3.bf16.msra.mxu1 %v13501_v22  ;;  %10055 = vmatprep.subr.bf16.mxu0 %v13504_v7  ;;  %v13579_v22 = vld [vmem:[%s14233_s27 + $0x520] ss:$24 sps:$4 sm:$0xff]   ;;  %v13574_v7 = vld [vmem:[%s14233_s27 + $0x21c] ss:$24 sps:$4 sm:$0xff]  }
 0x673   : > { %10128 = vmatprep.subr.bf16.mxu1 %v13507_v8  ;;  %v13577_v8 = vld [vmem:[%s14233_s27 + $0x51c] ss:$24 sps:$4 sm:$0xff]  }
 0x674   : > { %9209 = vmatmul.mubr.bf16.vlgmr.msra.gmra.mxu0 %v17535_v9 }
 0x675   : > { %9274 = vmatmul.mubr.bf16.vlgmr.msra.gmra.mxu1 %v17537_v15  ;;  %10056 = vmatpush1.bf16.msra.mxu0 %v13502_v61  ;;  %v13582_v61 = vld [vmem:[%s14233_s27 + $0x1f0] ss:$24 sps:$4 sm:$0xff]  }
 0x676   : > { %10129 = vmatpush1.bf16.msra.mxu1 %v13505_v13  ;;  %10057 = vmatprep.subr.bf16.mxu0 %v13510_v2  ;;  %v13585_v13 = vld [vmem:[%s14233_s27 + $0x4f0] ss:$24 sps:$4 sm:$0xff]   ;;  %v13580_v2 = vld [vmem:[%s14233_s27 + $0x1ec] ss:$24 sps:$4 sm:$0xff]  }
 0x677   : > { %10130 = vmatprep.subr.bf16.mxu1 %v13513_v39  ;;  %9216 = vmatprep.mubr.bf16.mxu0 %v17545_v18  ;;  %v13583_v39 = vld [vmem:[%s14233_s27 + $0x4ec] ss:$24 sps:$4 sm:$0xff]  }
 0x678   : > { %9281 = vmatprep.mubr.bf16.mxu1 %v17547_v3 }
 0x679   : > { %10058 = vmatpush1.bf16.msra.mxu0 %v13508_v4  ;;  %v13588_v4 = vld [vmem:[%s14233_s27 + $0x1c0] ss:$24 sps:$4 sm:$0xff]  }
 0x67a   : > { %10131 = vmatpush1.bf16.msra.mxu1 %v13511_v56  ;;  %10059 = vmatprep.subr.bf16.mxu0 %v13516_v60  ;;  %v13591_v56 = vld [vmem:[%s14233_s27 + $0x4c0] ss:$24 sps:$4 sm:$0xff]   ;;  %v13586_v60 = vld [vmem:[%s14233_s27 + $0x1bc] ss:$24 sps:$4 sm:$0xff]  }
 0x67b   : > { %10132 = vmatprep.subr.bf16.mxu1 %v13519_v58  ;;  %v13589_v58 = vld [vmem:[%s14233_s27 + $0x4bc] ss:$24 sps:$4 sm:$0xff]  }
 0x67c   : > { %9217 = vmatmul.mubr.bf16.gmra.mxu0 %v17553_v62 }
 0x67d   : > { %9282 = vmatmul.mubr.bf16.gmra.mxu1 %v17560_v28  ;;  %10060 = vmatpush1.bf16.msra.mxu0 %v13514_v32  ;;  %v13594_v32 = vld [vmem:[%s14233_s27 + $0x190] ss:$24 sps:$4 sm:$0xff]  }
 0x67e   : > { %10133 = vmatpush1.bf16.msra.mxu1 %v13517_v10  ;;  %10061 = vmatprep.subr.bf16.mxu0 %v13522_v48  ;;  %v13597_v10 = vld [vmem:[%s14233_s27 + $0x490] ss:$24 sps:$4 sm:$0xff]   ;;  %v13592_v48 = vld [vmem:[%s14233_s27 + $0x18c] ss:$24 sps:$4 sm:$0xff]  }
 0x67f   : > { %10134 = vmatprep.subr.bf16.mxu1 %v13525_v37  ;;  %9224 = vmatprep.mubr.bf16.mxu0 %v17564_v31  ;;  %v13595_v37 = vld [vmem:[%s14233_s27 + $0x48c] ss:$24 sps:$4 sm:$0xff]  }
 0x680   : > { %9289 = vmatprep.mubr.bf16.mxu1 %v17566_v20 }
 0x681   : > { %10062 = vmatpush1.bf16.msra.mxu0 %v13520_v47  ;;  %v13598_v47 = vld [vmem:[%s14233_s27 + $0x2e4] ss:$24 sps:$4 sm:$0xff]  }
 0x682   : > { %10135 = vmatpush1.bf16.msra.mxu1 %v13523_v41  ;;  %10063 = vmatprep.subr.bf16.mxu0 %v13528_v49  ;;  %v13599_v41 = vld [vmem:[%s14233_s27 + $0x5e4] ss:$24 sps:$4 sm:$0xff]  }
 0x683   : > { %10136 = vmatprep.subr.bf16.mxu1 %v13531_v24  ;;  %v13600_v49 = vld [vmem:[%s14233_s27 + $0x164] ss:$24 sps:$4 sm:$0xff]  }
 0x684   : > { %9225 = vmatmul.mubr.bf16.gmra.mxu0 %v17573_v55  ;;  %v13601_v24 = vld [vmem:[%s14233_s27 + $0x464] ss:$24 sps:$4 sm:$0xff]  }
 0x685   : > { %9290 = vmatmul.mubr.bf16.gmra.mxu1 %v17575_v54  ;;  %10064 = vmatpush1.bf16.msra.mxu0 %v13526_v0  ;;  %v13602_v0 = vld [vmem:[%s14233_s27 + $0x2b4] ss:$24 sps:$4 sm:$0xff]  }
 0x686   : > { %10137 = vmatpush1.bf16.msra.mxu1 %v13529_v26  ;;  %10065 = vmatprep.subr.bf16.mxu0 %v13534_v19  ;;  %v13603_v26 = vld [vmem:[%s14233_s27 + $0x5b4] ss:$24 sps:$4 sm:$0xff]  }
 0x687   : > { %10138 = vmatprep.subr.bf16.mxu1 %v13537_v53  ;;  %9232 = vmatprep.mubr.bf16.mxu0 %v17584_v23  ;;  %v13604_v19 = vld [vmem:[%s14233_s27 + $0x134] ss:$24 sps:$4 sm:$0xff]  }
 0x688   : > { %9297 = vmatprep.mubr.bf16.mxu1 %v17586_v14  ;;  %v13605_v53 = vld [vmem:[%s14233_s27 + $0x434] ss:$24 sps:$4 sm:$0xff]  }
 0x689   : > { %10066 = vmatpush1.bf16.msra.mxu0 %v13532_v35  ;;  %v13606_v35 = vld [vmem:[%s14233_s27 + $0x284] ss:$24 sps:$4 sm:$0xff]  }
 0x68a   : > { %10139 = vmatpush1.bf16.msra.mxu1 %v13535_v40  ;;  %10067 = vmatprep.subr.bf16.mxu0 %v13540_v17  ;;  %v13607_v40 = vld [vmem:[%s14233_s27 + $0x584] ss:$24 sps:$4 sm:$0xff]  }
 0x68b   : > { %10140 = vmatprep.subr.bf16.mxu1 %v13543_v36  ;;  %v13608_v17 = vld [vmem:[%s14233_s27 + $0x104] ss:$24 sps:$4 sm:$0xff]  }
 0x68c   : > { %9233 = vmatmul.mubr.bf16.gmra.mxu0 %v17596_v38  ;;  %v13609_v36 = vld [vmem:[%s14233_s27 + $0x404] ss:$24 sps:$4 sm:$0xff]  }
 0x68d   : > { %9298 = vmatmul.mubr.bf16.gmra.mxu1 %v17598_v27  ;;  %10068 = vmatpush1.bf16.msra.mxu0 %v13538_v6  ;;  %v13610_v6 = vld [vmem:[%s14233_s27 + $0x254] ss:$24 sps:$4 sm:$0xff]  }
 0x68e   : > { %10141 = vmatpush1.bf16.msra.mxu1 %v13541_v33  ;;  %10069 = vmatprep.subr.bf16.mxu0 %v13546_v51  ;;  %v13611_v33 = vld [vmem:[%s14233_s27 + $0x554] ss:$24 sps:$4 sm:$0xff]  }
 0x68f   : > { %10142 = vmatprep.subr.bf16.mxu1 %v13549_v63  ;;  %10087 = vmatprep.mubr.bf16.mxu0 %v17512_v43  ;;  %v13564_v43 = vld [vmem:[%s14233_s27 + $0x280] ss:$24 sps:$4 sm:$0xff]   ;;  %v13612_v51 = vld [vmem:[%s14233_s27 + $0xd4] ss:$24 sps:$4 sm:$0xff]  }
 0x690   : > { %10160 = vmatprep.mubr.bf16.mxu1 %v17515_v25  ;;  %v13567_v25 = vld [vmem:[%s14233_s27 + $0x580] ss:$24 sps:$4 sm:$0xff]   ;;  %v13613_v63 = vld [vmem:[%s14233_s27 + $0x3d4] ss:$24 sps:$4 sm:$0xff]  }
 0x691   : > { %10070 = vmatpush1.bf16.msra.mxu0 %v13544_v11  ;;  %v13614_v11 = vld [vmem:[%s14233_s27 + $0x224] ss:$24 sps:$4 sm:$0xff]  }
 0x692   : > { %10143 = vmatpush1.bf16.msra.mxu1 %v13547_v42  ;;  %10071 = vmatprep.subr.bf16.mxu0 %v13552_v21  ;;  %v13615_v42 = vld [vmem:[%s14233_s27 + $0x524] ss:$24 sps:$4 sm:$0xff]  }
 0x693   : > { %10144 = vmatprep.subr.bf16.mxu1 %v13555_v30  ;;  %v13616_v21 = vld [vmem:[%s14233_s27 + $0xa4] ss:$24 sps:$4 sm:$0xff]  }
 0x694   : > { %v13617_v30 = vld [vmem:[%s14233_s27 + $0x3a4] ss:$24 sps:$4 sm:$0xff]  }
 0x695   : > { %10072 = vmatpush2.bf16.msra.mxu0 %v13550_v46  ;;  %v13618_v46 = vld [vmem:[%s14233_s27 + $0x1f4] ss:$24 sps:$4 sm:$0xff]  }
 0x696   : > { %10145 = vmatpush2.bf16.msra.mxu1 %v13553_v16  ;;  %10073 = vmatprep.subr.bf16.mxu0 %v13558_v50  ;;  %v13619_v16 = vld [vmem:[%s14233_s27 + $0x4f4] ss:$24 sps:$4 sm:$0xff]  }
 0x697   : > { %10146 = vmatprep.subr.bf16.mxu1 %v13561_v5  ;;  %v13620_v50 = vld [vmem:[%s14233_s27 + $0x74] ss:$24 sps:$4 sm:$0xff]  }
 0x698   : > { %v13621_v5 = vld [vmem:[%s14233_s27 + $0x374] ss:$24 sps:$4 sm:$0xff]  }
 0x699   : > { %10074 = vmatpush2.bf16.msra.mxu0 %v13556_v59  ;;  %v13622_v59 = vld [vmem:[%s14233_s27 + $0x1c4] ss:$24 sps:$4 sm:$0xff]  }
 0x69a   : > { %10147 = vmatpush2.bf16.msra.mxu1 %v13559_v52  ;;  %10075 = vmatprep.subr.bf16.mxu0 %v13564_v43  ;;  %v13623_v52 = vld [vmem:[%s14233_s27 + $0x4c4] ss:$24 sps:$4 sm:$0xff]  }
 0x69b   : > { %10148 = vmatprep.subr.bf16.mxu1 %v13567_v25  ;;  %v13624_v43 = vld [vmem:[%s14233_s27 + $0x44] ss:$24 sps:$4 sm:$0xff]  }
 0x69c   : > { %v13625_v25 = vld [vmem:[%s14233_s27 + $0x344] ss:$24 sps:$4 sm:$0xff]  }
 0x69d   : > { %10076 = vmatpush2.bf16.msra.mxu0 %v13562_v45  ;;  %v13626_v45 = vld [vmem:[%s14233_s27 + $0x194] ss:$24 sps:$4 sm:$0xff]  }
 0x69e   : > { %10149 = vmatpush2.bf16.msra.mxu1 %v13565_v12  ;;  %10077 = vmatprep.subr.bf16.mxu0 %v13570_v44  ;;  %v13627_v12 = vld [vmem:[%s14233_s27 + $0x494] ss:$24 sps:$4 sm:$0xff]  }
 0x69f   : > { %10150 = vmatprep.subr.bf16.mxu1 %v13573_v34  ;;  %v13628_v44 = vld [vmem:[%s14233_s27 + $0x14] ss:$24 sps:$4 sm:$0xff]  }
 0x6a0   : > { %v13629_v34 = vld [vmem:[%s14233_s27 + $0x314] ss:$24 sps:$4 sm:$0xff]   ;;  %s9330_s27 = sld [smem:[#allocation5]] }
 0x6a1   : > { %10078 = vmatpush2.bf16.msra.mxu0 %v13568_v29  ;;  %v13630_v29 = vld [vmem:[#allocation2 + $0x34] ss:$40 sps:$4 sm:$0xff]  }
 0x6a2   : > { %10151 = vmatpush2.bf16.msra.mxu1 %v13571_v1  ;;  %10079 = vmatprep.subr.bf16.mxu0 %v13576_v57  ;;  %v13631_v1 = vld [vmem:[#allocation2 + $0x4] ss:$24 sps:$4 sm:$0xff]  }
 0x6a3   : > { %10152 = vmatprep.subr.bf16.mxu1 %v13579_v22 }
 0x6a5   : > { %10080 = vmatpush2.bf16.msra.mxu0 %v13574_v7 }
 0x6a6   : > { %10153 = vmatpush2.bf16.msra.mxu1 %v13577_v8  ;;  %10081 = vmatprep.subr.bf16.mxu0 %v13582_v61 }
 0x6a7   : > { %10154 = vmatprep.subr.bf16.mxu1 %v13585_v13 }
 0x6a9   : > { %10082 = vmatpush2.bf16.msra.mxu0 %v13580_v2 }
 0x6aa   : > { %10155 = vmatpush2.bf16.msra.mxu1 %v13583_v39  ;;  %10083 = vmatprep.subr.bf16.mxu0 %v13588_v4 }
 0x6ab   : > { %10156 = vmatprep.subr.bf16.mxu1 %v13591_v56 }
 0x6ad   : > { %10084 = vmatpush2.bf16.msra.mxu0 %v13586_v60 }
 0x6ae   : > { %10157 = vmatpush2.bf16.msra.mxu1 %v13589_v58  ;;  %10085 = vmatprep.subr.bf16.mxu0 %v13594_v32 }
 0x6af   : > { %10158 = vmatprep.subr.bf16.mxu1 %v13597_v10 }
 0x6b1   : > { %10086 = vmatpush2.bf16.msra.mxu0 %v13592_v48 }
 0x6b2   : > { %10159 = vmatpush2.bf16.msra.mxu1 %v13595_v37  ;;  %11800 = vmatprep.subr.bf16.mxu0 %v13598_v47 }
 0x6b3   : > { %11840 = vmatprep.subr.bf16.mxu1 %v13599_v41 }
 0x6b4   : > { %10088 = vmatmul.mubr.bf16.vlgmr.msra.gmra.mxu0 %v17535_v9 }
 0x6b5   : > { %10161 = vmatmul.mubr.bf16.vlgmr.msra.gmra.mxu1 %v17537_v15  ;;  %11801 = vmatpush3.bf16.msra.mxu0 %v13600_v49 }
 0x6b6   : > { %11841 = vmatpush3.bf16.msra.mxu1 %v13601_v24  ;;  %11802 = vmatprep.subr.bf16.mxu0 %v13602_v0 }
 0x6b7   : > { %11842 = vmatprep.subr.bf16.mxu1 %v13603_v26  ;;  %10097 = vmatprep.mubr.bf16.mxu0 %v17545_v18 }
 0x6b8   : > { %10170 = vmatprep.mubr.bf16.mxu1 %v17547_v3 }
 0x6b9   : > { %11803 = vmatpush3.bf16.msra.mxu0 %v13604_v19 }
 0x6ba   : > { %11843 = vmatpush3.bf16.msra.mxu1 %v13605_v53  ;;  %11804 = vmatprep.subr.bf16.mxu0 %v13606_v35  ;;  %v17788_v53 = vstv %s9330_s27 }
 0x6bb   : > { %11844 = vmatprep.subr.bf16.mxu1 %v13607_v40 }
 0x6bc   : > { %10098 = vmatmul.mubr.bf16.gmra.mxu0 %v17553_v62 }
 0x6bd   : > { %10171 = vmatmul.mubr.bf16.gmra.mxu1 %v17560_v28  ;;  %11805 = vmatpush3.bf16.msra.mxu0 %v13608_v17 }
 0x6be   : > { %11845 = vmatpush3.bf16.msra.mxu1 %v13609_v36  ;;  %11806 = vmatprep.subr.bf16.mxu0 %v13610_v6 }
 0x6bf   : > { %11846 = vmatprep.subr.bf16.mxu1 %v13611_v33  ;;  %10107 = vmatprep.mubr.bf16.mxu0 %v17564_v31 }
 0x6c0   : > { %10180 = vmatprep.mubr.bf16.mxu1 %v17566_v20 }
 0x6c1   : > { %11807 = vmatpush3.bf16.msra.mxu0 %v13612_v51 }
 0x6c2   : > { %11847 = vmatpush3.bf16.msra.mxu1 %v13613_v63  ;;  %11808 = vmatprep.subr.bf16.mxu0 %v13614_v11 }
 0x6c3   : > { %11848 = vmatprep.subr.bf16.mxu1 %v13615_v42 }
 0x6c4   : > { %10108 = vmatmul.mubr.bf16.gmra.mxu0 %v17573_v55 }
 0x6c5   : > { %10181 = vmatmul.mubr.bf16.gmra.mxu1 %v17575_v54  ;;  %11809 = vmatpush3.bf16.msra.mxu0 %v13616_v21  ;;  %v17793_v21 = vstv %s17773_s24 }
 0x6c6   : > { %11849 = vmatpush3.bf16.msra.mxu1 %v13617_v30  ;;  %11810 = vmatprep.subr.bf16.mxu0 %v13618_v46  ;;  %v17796_v30 = vstv %s17775_s25 }
 0x6c7   : > { %11850 = vmatprep.subr.bf16.mxu1 %v13619_v16  ;;  %10117 = vmatprep.mubr.bf16.mxu0 %v17584_v23 }
 0x6c8   : > { %10190 = vmatprep.mubr.bf16.mxu1 %v17586_v14 }
 0x6c9   : > { %11811 = vmatpush3.bf16.msra.mxu0 %v13620_v50 }
 0x6ca   : > { %11851 = vmatpush3.bf16.msra.mxu1 %v13621_v5  ;;  %11812 = vmatprep.subr.bf16.mxu0 %v13622_v59 }
 0x6cb   : > { %11852 = vmatprep.subr.bf16.mxu1 %v13623_v52 }
 0x6cc   : > { %10118 = vmatmul.mubr.bf16.gmra.mxu0 %v17596_v38 }
 0x6cd   : > { %10191 = vmatmul.mubr.bf16.gmra.mxu1 %v17598_v27  ;;  %11813 = vmatpush3.bf16.msra.mxu0 %v13624_v43 }
 0x6ce   : > { %11853 = vmatpush3.bf16.msra.mxu1 %v13625_v25  ;;  %11814 = vmatprep.subr.bf16.mxu0 %v13626_v45 }
 0x6cf   : > { %11854 = vmatprep.subr.bf16.mxu1 %v13627_v12  ;;  %10233 = vmatprep.mubr.bf16.mxu0 %v13630_v29 }
 0x6d0   : > { %10298 = vmatprep.mubr.bf16.mxu1 %v13631_v1 }
 0x6d1   : > { %11815 = vmatpush3.bf16.msra.mxu0 %v13628_v44 }
 0x6d2   : > { %11855 = vmatpush3.bf16.msra.mxu1 %v13629_v34 }
 0x6d4   : > { %10234 = vmatmul.mubr.bf16.vlgmr.msra.gmra.mxu0 %v17535_v9  ;;  %v8423_v9 = vlaneseq }
 0x6d5   : > { %10299 = vmatmul.mubr.bf16.vlgmr.msra.gmra.mxu1 %v17537_v15  ;;  %10241 = vmatprep.mubr.bf16.mxu0 %v17545_v18 }
 0x6d6   : > { %10306 = vmatprep.mubr.bf16.mxu1 %v17547_v3  ;;  %v17755_v3 = vshrl.u32 %v8423_v9, 7 }
 0x6dc   : > { %10242 = vmatmul.mubr.bf16.gmra.mxu0 %v17553_v62 }
 0x6dd   : > { %10307 = vmatmul.mubr.bf16.gmra.mxu1 %v17560_v28  ;;  %10249 = vmatprep.mubr.bf16.mxu0 %v17564_v31 }
 0x6de   : > { %10314 = vmatprep.mubr.bf16.mxu1 %v17566_v20 }
 0x6e4   : > { %10250 = vmatmul.mubr.bf16.gmra.mxu0 %v17573_v55  ;;  %v8425_v55 = vsub.s32 0, %v17755_v3 }
 0x6e5   : > { %10315 = vmatmul.mubr.bf16.gmra.mxu1 %v17575_v54  ;;  %10257 = vmatprep.mubr.bf16.mxu0 %v17584_v23  ;;  %v17759_v23 = vld [vmem:[%s14243_s23] sm:$0x7] }
 0x6e6   : > { %10322 = vmatprep.mubr.bf16.mxu1 %v17586_v14  ;;  %v8429_v14 = vsub.s32 1, %v17755_v3 }
 0x6e8   : > { %v17770_v61 = vrot.slane %v17759_v23, %v8429_v14 }
 0x6ec   : > { %10258 = vmatmul.mubr.bf16.gmra.mxu0 %v17596_v38 }
 0x6ed   : > { %10323 = vmatmul.mubr.bf16.gmra.mxu1 %v17598_v27  ;;  %v17765_v27 = vrot.slane %v17759_v23, %v8425_v55 }
 0x714   : > { %v9064_v15 = vpop.f32.mrf.mxu0 }
 0x715   : > { %v9137_v18 = vpop.f32.mrf.mxu1  ;;  %v9065_v4 = vadd.f32 %v9064_v15, %v17765_v27 }
 0x716   : > { %v9066_v62 = vpop.f32.mrf.mxu0 }
 0x717   : > { %v9139_v28 = vpop.f32.mrf.mxu1  ;;  %v9067_v58 = vadd.f32 %v9066_v62, %v17770_v61  ;;  %v9138_v49 = vadd.f32 %v9137_v18, %v9065_v4  ;;  %v17802_v18 = vstv %s17781_s22 }
 0x718   : > { %v9068_v31 = vpop.f32.mrf.mxu0 }
 0x719   : > { %v9141_v20 = vpop.f32.mrf.mxu1  ;;  %v9069_v41 = vadd.f32 %v9068_v31, %v17765_v27  ;;  %v9140_v35 = vadd.f32 %v9139_v28, %v9067_v58  ;;  %v9306_v16 = vmax.f32 %v9138_v49, 0.0 }
 0x71a   : > { %v9070_v54 = vpop.f32.mrf.mxu0 }
 0x71b   : > { %v9143_v57 = vpop.f32.mrf.mxu1  ;;  %v9071_v40 = vadd.f32 %v9070_v54, %v17770_v61  ;;  %v9142_v42 = vadd.f32 %v9141_v20, %v9069_v41  ;;  %v9307_v25 = vmax.f32 %v9140_v35, 0.0  ;;  %v17806_v20 = vstv %s17784_s17 }
 0x71c   : > { %v9074_v38 = vpop.f32.mrf.mxu0  ;;  %v9332_v54 = vmul.f32 %v17788_v53, %v9306_v16 }
 0x71d   : > { %v9147_v22 = vpop.f32.mrf.mxu1  ;;  %v9075_v13 = vadd.f32 %v9074_v38, %v17765_v27  ;;  %v9144_v45 = vadd.f32 %v9143_v57, %v9071_v40  ;;  %v9309_v62 = vmax.f32 %v9142_v42, 0.0 }
 0x71e   : > { %v9076_v7 = vpop.f32.mrf.mxu0 }
 0x71f   : > { %v9149_v8 = vpop.f32.mrf.mxu1  ;;  %v9148_v32 = vadd.f32 %v9147_v22, %v9075_v13  ;;  %v9077_v10 = vadd.f32 %v9076_v7, %v17770_v61  ;;  %v9333_v13 = vmul.f32 %v17788_v53, %v9307_v25 }
 0x720   : > { %v9078_v2 = vpop.f32.mrf.mxu0 }
 0x721   : > { %v9151_v39 = vpop.f32.mrf.mxu1  ;;  %v9079_v48 = vadd.f32 %v9078_v2, %v17765_v27  ;;  %v9312_v36 = vmax.f32 %v9148_v32, 0.0  ;;  %v9150_v6 = vadd.f32 %v9149_v8, %v9077_v10  ;;  %v9310_v2 = vmax.f32 %v9144_v45, 0.0 }
 0x722   : > { %v9080_v56 = vpop.f32.mrf.mxu0 }
 0x723   : > { %v9153_v60 = vpop.f32.mrf.mxu1  ;;  %v9081_v24 = vadd.f32 %v9080_v56, %v17770_v61  ;;  %v9152_v33 = vadd.f32 %v9151_v39, %v9079_v48  ;;  %v9340_v34 = vmul.f32 %v17793_v21, %v9312_v36  ;;  %v9313_v29 = vmax.f32 %v9150_v6, 0.0 }
 0x724   : > { %v9084_v37 = vpop.f32.mrf.mxu0 }
 0x725   : > { %v9157_v47 = vpop.f32.mrf.mxu1  ;;  %v9085_v0 = vadd.f32 %v9084_v37, %v17765_v27  ;;  %v9154_v50 = vadd.f32 %v9153_v60, %v9081_v24  ;;  %v9315_v1 = vmax.f32 %v9152_v33, 0.0  ;;  %v9346_v56 = vadd.f32 %v9340_v34, %v9332_v54 }
 0x726   : > { %v9086_v26 = vpop.f32.mrf.mxu0  ;;  %v9341_v60 = vmul.f32 %v17793_v21, %v9313_v29  ;;  %v9335_v37 = vmul.f32 %v17788_v53, %v9309_v62 }
 0x727   : > { %v9159_v19 = vpop.f32.mrf.mxu1  ;;  %v9087_v17 = vadd.f32 %v9086_v26, %v17770_v61  ;;  %v9158_v51 = vadd.f32 %v9157_v47, %v9085_v0  ;;  %v9316_v57 = vmax.f32 %v9154_v50, 0.0  ;;  %v9343_v58 = vmul.f32 %v17793_v21, %v9315_v1 }
 0x728   : > { %v9088_v63 = vpop.f32.mrf.mxu0 }
 0x729   : > { %v9161_v11 = vpop.f32.mrf.mxu1  ;;  %v9089_v46 = vadd.f32 %v9088_v63, %v17765_v27  ;;  %v9318_v5 = vmax.f32 %v9158_v51, 0.0  ;;  %v9160_v59 = vadd.f32 %v9159_v19, %v9087_v17  ;;  %v9344_v24 = vmul.f32 %v17793_v21, %v9316_v57 }
 0x72a   : > { %v9090_v52 = vpop.f32.mrf.mxu0  ;;  %v9336_v51 = vmul.f32 %v17788_v53, %v9310_v2  ;;  %v9347_v63 = vadd.f32 %v9341_v60, %v9333_v13 }
 0x72b   : > { %v9163_v43 = vpop.f32.mrf.mxu1  ;;  %v9162_v12 = vadd.f32 %v9161_v11, %v9089_v46  ;;  %v9091_v44 = vadd.f32 %v9090_v52, %v17770_v61  ;;  %v9354_v38 = vmul.f32 %v17796_v30, %v9318_v5  ;;  %v9319_v22 = vmax.f32 %v9160_v59, 0.0 }
 0x72c   : > { %v9094_v9 = vpop.f32.mrf.mxu0  ;;  %v9350_v52 = vadd.f32 %v9344_v24, %v9336_v51 }
 0x72d   : > { %v9167_v15 = vpop.f32.mrf.mxu1  ;;  %v9164_v28 = vadd.f32 %v9163_v43, %v9091_v44  ;;  %v9095_v31 = vadd.f32 %v9094_v9, %v17765_v27  ;;  %v9321_v39 = vmax.f32 %v9162_v12, 0.0  ;;  %v9360_v0 = vadd.f32 %v9354_v38, %v9346_v56 }
 0x72e   : > { %v9096_v7 = vpop.f32.mrf.mxu0  ;;  %v9355_v26 = vmul.f32 %v17796_v30, %v9319_v22 }
 0x72f   : > { %v9169_v8 = vpop.f32.mrf.mxu1  ;;  %v9168_v4 = vadd.f32 %v9167_v15, %v9095_v31  ;;  %v9097_v32 = vadd.f32 %v9096_v7, %v17770_v61  ;;  %v9322_v47 = vmax.f32 %v9164_v28, 0.0  ;;  %v9357_v17 = vmul.f32 %v17796_v30, %v9321_v39 }
 0x730   : > { %v9098_v10 = vpop.f32.mrf.mxu0  ;;  %v9361_v43 = vadd.f32 %v9355_v26, %v9347_v63  ;;  %v8433_v39 = vsub.s32 2, %v17755_v3 }
 0x731   : > { %v9171_v48 = vpop.f32.mrf.mxu1  ;;  %v9324_v41 = vmax.f32 %v9168_v4, 0.0  ;;  %v9099_v49 = vadd.f32 %v9098_v10, %v17765_v27  ;;  %v9170_v19 = vadd.f32 %v9169_v8, %v9097_v32  ;;  %v9349_v27 = vadd.f32 %v9343_v58, %v9335_v37 }
 0x732   : > { %v9100_v35 = vpop.f32.mrf.mxu0  ;;  %v9358_v16 = vmul.f32 %v17796_v30, %v9322_v47  ;;  %v8434_v10 = vrot.slane %v17759_v23, %v8433_v39 }
 0x733   : > { %v9173_v40 = vpop.f32.mrf.mxu1  ;;  %v9368_v36 = vmul.f32 %v17806_v20, %v9324_v41  ;;  %v9172_v6 = vadd.f32 %v9171_v48, %v9099_v49  ;;  %v9101_v33 = vadd.f32 %v9100_v35, %v17770_v61  ;;  %v9325_v11 = vmax.f32 %v9170_v19, 0.0 }
 0x734   : > { %v11736_v42 = vpop.f32.mrf.mxu0  ;;  %v9363_v44 = vadd.f32 %v9357_v17, %v9349_v27  ;;  %v9364_v62 = vadd.f32 %v9358_v16, %v9350_v52 }
 0x735   : > { %v11776_v46 = vpop.f32.mrf.mxu1  ;;  %v9374_v50 = vadd.f32 %v9368_v36, %v9360_v0  ;;  %v9327_v5 = vmax.f32 %v9172_v6, 0.0  ;;  %v9174_v59 = vadd.f32 %v9173_v40, %v9101_v33  ;;  %v9369_v25 = vmul.f32 %v17806_v20, %v9325_v11 }
 0x736   : > { %v11737_v45 = vpop.f32.mrf.mxu0 }
 0x737   : > { %v11777_v12 = vpop.f32.mrf.mxu1  ;;  %v9381_v61 = vadd.f32 %v17802_v18, %v9374_v50  ;;  %v9371_v34 = vmul.f32 %v17806_v20, %v9327_v5  ;;  %v9328_v29 = vmax.f32 %v9174_v59, 0.0  ;;  %v9375_v1 = vadd.f32 %v9369_v25, %v9361_v43 }
 0x738   : > { %v11739_v9 = vpop.f32.mrf.mxu0  ;;  %v11738_v48 = vadd.f32 %v11737_v45, %v11736_v42  ;;  %v11778_v35 = vadd.f32 %v11777_v12, %v11776_v46 }
 0x739   : > { %v11779_v15 = vpop.f32.mrf.mxu1  ;;  %9392 = vst [vmem:[%s17831_s29] sm:$0xff] %v9381_v61  ;;  %v9377_v28 = vadd.f32 %v9371_v34, %v9363_v44  ;;  %v9372_v31 = vmul.f32 %v17806_v20, %v9328_v29  ;;  %v9382_v54 = vadd.f32 %v17802_v18, %v9375_v1 }
 0x73a   : > { %v11740_v57 = vpop.f32.mrf.mxu0  ;;  %v9211_v19 = vadd.f32 %v11738_v48, %v8434_v10 }
 0x73b   : > { %v11780_v38 = vpop.f32.mrf.mxu1  ;;  %v9384_v22 = vadd.f32 %v17802_v18, %v9377_v28  ;;  %v9378_v7 = vadd.f32 %v9372_v31, %v9364_v62  ;;  %9393 = vst [vmem:[%s17831_s29 + $0x8] sm:$0xff] %v9382_v54  ;;  %v11741_v40 = vadd.f32 %v11740_v57, %v11739_v9 }
 0x73c   : > { %v11742_v8 = vpop.f32.mrf.mxu0  ;;  %v9276_v16 = vadd.f32 %v11778_v35, %v9211_v19  ;;  %v11781_v45 = vadd.f32 %v11780_v38, %v11779_v15 }
 0x73d   : > { %v11782_v13 = vpop.f32.mrf.mxu1  ;;  %9395 = vst [vmem:[%s17831_s29 + $0x88] sm:$0xff] %v9384_v22  ;;  %v9385_v2 = vadd.f32 %v17802_v18, %v9378_v7  ;;  %v9214_v50 = vadd.f32 %v11741_v40, %v8434_v10 }
 0x73e   : > { %v11743_v4 = vpop.f32.mrf.mxu0  ;;  %v9308_v29 = vmax.f32 %v9276_v16, 0.0 }
 0x73f   : > { %v11783_v56 = vpop.f32.mrf.mxu1  ;;  %9396 = vst [vmem:[%s17831_s29 + $0x90] sm:$0xff] %v9385_v2  ;;  %v11744_v32 = vadd.f32 %v11743_v4, %v11742_v8  ;;  %v9279_v1 = vadd.f32 %v11781_v45, %v9214_v50 }
 0x740   : > { %v11745_v60 = vpop.f32.mrf.mxu0  ;;  %v11784_v0 = vadd.f32 %v11783_v56, %v11782_v13  ;;  %v9334_v15 = vmul.f32 %v17788_v53, %v9308_v29 }
 0x741   : > { %v11785_v58 = vpop.f32.mrf.mxu1  ;;  %v9219_v24 = vadd.f32 %v11744_v32, %v8434_v10  ;;  %v9311_v38 = vmax.f32 %v9279_v1, 0.0 }
 0x742   : > { %v11746_v37 = vpop.f32.mrf.mxu0 }
 0x743   : > { %v11786_v47 = vpop.f32.mrf.mxu1  ;;  %v11747_v26 = vadd.f32 %v11746_v37, %v11745_v60  ;;  %v9284_v27 = vadd.f32 %v11784_v0, %v9219_v24  ;;  %v9337_v0 = vmul.f32 %v17788_v53, %v9311_v38 }
 0x744   : > { %v11748_v41 = vpop.f32.mrf.mxu0  ;;  %v11787_v23 = vadd.f32 %v11786_v47, %v11785_v58 }
 0x745   : > { %v11788_v49 = vpop.f32.mrf.mxu1  ;;  %v9222_v11 = vadd.f32 %v11747_v26, %v8434_v10  ;;  %v9314_v44 = vmax.f32 %v9284_v27, 0.0 }
 0x746   : > { %v11749_v17 = vpop.f32.mrf.mxu0 }
 0x747   : > { %v11789_v36 = vpop.f32.mrf.mxu1  ;;  %v11750_v6 = vadd.f32 %v11749_v17, %v11748_v41  ;;  %v9287_v61 = vadd.f32 %v11787_v23, %v9222_v11  ;;  %v9342_v8 = vmul.f32 %v17793_v21, %v9314_v44 }
 0x748   : > { %v11790_v33 = vadd.f32 %v11789_v36, %v11788_v49  ;;  %v11751_v51 = vpop.f32.mrf.mxu0 }
 0x749   : > { %v11791_v63 = vpop.f32.mrf.mxu1  ;;  %v9227_v42 = vadd.f32 %v11750_v6, %v8434_v10  ;;  %v9317_v13 = vmax.f32 %v9287_v61, 0.0  ;;  %v9348_v47 = vadd.f32 %v9342_v8, %v9334_v15 }
 0x74a   : > { %v11752_v5 = vpop.f32.mrf.mxu0 }
 0x74b   : > { %v11792_v59 = vpop.f32.mrf.mxu1  ;;  %v9292_v52 = vadd.f32 %v11790_v33, %v9227_v42  ;;  %v11753_v43 = vadd.f32 %v11752_v5, %v11751_v51  ;;  %v9345_v41 = vmul.f32 %v17793_v21, %v9317_v13 }
 0x74c   : > { %v11793_v25 = vadd.f32 %v11792_v59, %v11791_v63  ;;  %v11754_v46 = vpop.f32.mrf.mxu0 }
 0x74d   : > { %v11794_v12 = vpop.f32.mrf.mxu1  ;;  %v9230_v34 = vadd.f32 %v11753_v43, %v8434_v10  ;;  %v9320_v9 = vmax.f32 %v9292_v52, 0.0  ;;  %v9351_v17 = vadd.f32 %v9345_v41, %v9337_v0  ;;  %v17858_v43 = vld [vmem:[%s14243_s23 + $0x3] sm:$0x7]  ;;  %s10416_s23 = sshra.s32 (!%p11695_p7), %s17709_s20, 7 }
 0x74e   : > { %v11755_v62 = vpop.f32.mrf.mxu0  ;;  %v17868_v61 = vrot.slane %v17858_v43, %v8429_v14  ;;  %s11696_s30 = sshll.u32 (!%p11695_p7), %s10416_s23, 3 }
 0x74f   : > { %v11795_v28 = vpop.f32.mrf.mxu1  ;;  %v9295_v31 = vadd.f32 %v11793_v25, %v9230_v34  ;;  %v11756_v54 = vadd.f32 %v11755_v62, %v11754_v46  ;;  %v9356_v4 = vmul.f32 %v17796_v30, %v9320_v9  ;;  %v17863_v46 = vrot.slane %v17858_v43, %v8425_v55  ;;  %s10419_s15 = scalar_lea.vmem (!%p11695_p7), [#allocation8], %s11696_s30 }
 0x750   : > { %v11796_v57 = vadd.f32 %v11795_v28, %v11794_v12  ;;  %v11757_v22 = vpop.f32.mrf.mxu0 }
 0x751   : > { %v11797_v7 = vpop.f32.mrf.mxu1  ;;  %v9235_v2 = vadd.f32 %v11756_v54, %v8434_v10  ;;  %v9323_v58 = vmax.f32 %v9295_v31, 0.0  ;;  %v9362_v26 = vadd.f32 %v9356_v4, %v9348_v47 }
 0x752   : > { %v11758_v56 = vpop.f32.mrf.mxu0 }
 0x753   : > { %v11798_v60 = vpop.f32.mrf.mxu1  ;;  %v9300_v32 = vadd.f32 %v11796_v57, %v9235_v2  ;;  %v11759_v48 = vadd.f32 %v11758_v56, %v11757_v22  ;;  %v9359_v19 = vmul.f32 %v17796_v30, %v9323_v58 }
 0x754   : > { %v11799_v37 = vadd.f32 %v11798_v60, %v11797_v7 }
 0x755   : > { %v9326_v49 = vmax.f32 %v9300_v32, 0.0  ;;  %v9238_v24 = vadd.f32 %v11759_v48, %v8434_v10  ;;  %v9365_v33 = vadd.f32 %v9359_v19, %v9351_v17 }
 0x757   : > { %v9370_v35 = vmul.f32 %v17806_v20, %v9326_v49  ;;  %v9303_v40 = vadd.f32 %v11799_v37, %v9238_v24 }
 0x759   : > { %v9376_v36 = vadd.f32 %v9370_v35, %v9362_v26  ;;  %v9329_v6 = vmax.f32 %v9303_v40, 0.0 }
 0x75b   : > { %v9383_v51 = vadd.f32 %v17802_v18, %v9376_v36  ;;  %v9373_v63 = vmul.f32 %v17806_v20, %v9329_v6 }
 0x75d   : > { %9394 = vst [vmem:[%s17831_s29 + $0x10] sm:$0xff] %v9383_v51  ;;  %v9379_v27 = vadd.f32 %v9373_v63, %v9365_v33 }
 0x75f   : > { %v9386_v10 = vadd.f32 %v17802_v18, %v9379_v27 }
 0x761   : > { %9397 = vst [vmem:[%s17831_s29 + $0x98] sm:$0xff] %v9386_v10 }
 0x774   : > { %v10089_v11 = vpop.f32.mrf.mxu0 }
 0x775   : > { %v10162_v23 = vpop.f32.mrf.mxu1  ;;  %v10090_v9 = vadd.f32 %v10089_v11, %v17863_v46 }
 0x776   : > { %v10091_v42 = vpop.f32.mrf.mxu0 }
 0x777   : > { %v10164_v16 = vpop.f32.mrf.mxu1  ;;  %v10092_v31 = vadd.f32 %v10091_v42, %v17868_v61  ;;  %v10163_v8 = vadd.f32 %v10162_v23, %v10090_v9 }
 0x778   : > { %v10093_v50 = vpop.f32.mrf.mxu0 }
 0x779   : > { %v10166_v5 = vpop.f32.mrf.mxu1  ;;  %v10094_v14 = vadd.f32 %v10093_v50, %v17863_v46  ;;  %v10165_v4 = vadd.f32 %v10164_v16, %v10092_v31  ;;  %v10331_v0 = vmax.f32 %v10163_v8, 0.0 }
 0x77a   : > { %v10095_v59 = vpop.f32.mrf.mxu0 }
 0x77b   : > { %v10168_v52 = vpop.f32.mrf.mxu1  ;;  %v10096_v56 = vadd.f32 %v10095_v59, %v17868_v61  ;;  %v10167_v49 = vadd.f32 %v10166_v5, %v10094_v14  ;;  %v10332_v36 = vmax.f32 %v10165_v4, 0.0  ;;  %v10357_v5 = vmul.f32 %v10331_v0, %v17788_v53 }
 0x77c   : > { %v10099_v25 = vpop.f32.mrf.mxu0 }
 0x77d   : > { %v10172_v45 = vpop.f32.mrf.mxu1  ;;  %v10100_v34 = vadd.f32 %v10099_v25, %v17863_v46  ;;  %v10169_v6 = vadd.f32 %v10168_v52, %v10096_v56  ;;  %v10334_v42 = vmax.f32 %v10167_v49, 0.0 }
 0x77e   : > { %v10101_v12 = vpop.f32.mrf.mxu0 }
 0x77f   : > { %v10174_v44 = vpop.f32.mrf.mxu1  ;;  %v10173_v54 = vadd.f32 %v10172_v45, %v10100_v34  ;;  %v10102_v55 = vadd.f32 %v10101_v12, %v17868_v61  ;;  %v10335_v34 = vmax.f32 %v10169_v6, 0.0 }
 0x780   : > { %v10103_v29 = vpop.f32.mrf.mxu0 }
 0x781   : > { %v10176_v1 = vpop.f32.mrf.mxu1  ;;  %v10104_v57 = vadd.f32 %v10103_v29, %v17863_v46  ;;  %v10337_v58 = vmax.f32 %v10173_v54, 0.0  ;;  %v10175_v32 = vadd.f32 %v10174_v44, %v10102_v55  ;;  %v10358_v44 = vmul.f32 %v10332_v36, %v17788_v53 }
 0x782   : > { %v10105_v62 = vpop.f32.mrf.mxu0 }
 0x783   : > { %v10178_v28 = vpop.f32.mrf.mxu1  ;;  %v10106_v13 = vadd.f32 %v10105_v62, %v17868_v61  ;;  %v10177_v48 = vadd.f32 %v10176_v1, %v10104_v57  ;;  %v10365_v63 = vmul.f32 %v10337_v58, %v17793_v21  ;;  %v10338_v27 = vmax.f32 %v10175_v32, 0.0 }
 0x784   : > { %v10109_v22 = vpop.f32.mrf.mxu0  ;;  %v10360_v57 = vmul.f32 %v10334_v42, %v17788_v53 }
 0x785   : > { %v10182_v7 = vpop.f32.mrf.mxu1  ;;  %v10110_v2 = vadd.f32 %v10109_v22, %v17863_v46  ;;  %v10179_v26 = vadd.f32 %v10178_v28, %v10106_v13  ;;  %v10340_v10 = vmax.f32 %v10177_v48, 0.0  ;;  %v10371_v9 = vadd.f32 %v10365_v63, %v10357_v5 }
 0x786   : > { %v10111_v15 = vpop.f32.mrf.mxu0  ;;  %v10366_v62 = vmul.f32 %v10338_v27, %v17793_v21  ;;  %v10361_v48 = vmul.f32 %v10335_v34, %v17788_v53 }
 0x787   : > { %v10184_v38 = vpop.f32.mrf.mxu1  ;;  %v10112_v60 = vadd.f32 %v10111_v15, %v17868_v61  ;;  %v10183_v37 = vadd.f32 %v10182_v7, %v10110_v2  ;;  %v10341_v59 = vmax.f32 %v10179_v26, 0.0  ;;  %v10368_v28 = vmul.f32 %v10340_v10, %v17793_v21 }
 0x788   : > { %v10113_v47 = vpop.f32.mrf.mxu0 }
 0x789   : > { %v10186_v41 = vpop.f32.mrf.mxu1  ;;  %v10114_v24 = vadd.f32 %v10113_v47, %v17863_v46  ;;  %v10343_v19 = vmax.f32 %v10183_v37, 0.0  ;;  %v10185_v35 = vadd.f32 %v10184_v38, %v10112_v60  ;;  %v10369_v8 = vmul.f32 %v10341_v59, %v17793_v21 }
 0x78a   : > { %v10115_v40 = vpop.f32.mrf.mxu0  ;;  %v10372_v37 = vadd.f32 %v10366_v62, %v10358_v44  ;;  %v10374_v47 = vadd.f32 %v10368_v28, %v10360_v57  ;;  %v9539_v28 = vrot.slane %v17858_v43, %v8433_v39 }
 0x78b   : > { %v10188_v17 = vpop.f32.mrf.mxu1  ;;  %v10187_v33 = vadd.f32 %v10186_v41, %v10114_v24  ;;  %v10116_v51 = vadd.f32 %v10115_v40, %v17868_v61  ;;  %v10379_v25 = vmul.f32 %v10343_v19, %v17796_v30  ;;  %v10344_v45 = vmax.f32 %v10185_v35, 0.0 }
 0x78c   : > { %v10119_v11 = vpop.f32.mrf.mxu0  ;;  %v10375_v35 = vadd.f32 %v10369_v8, %v10361_v48 }
 0x78d   : > { %v10192_v23 = vpop.f32.mrf.mxu1  ;;  %v10189_v16 = vadd.f32 %v10188_v17, %v10116_v51  ;;  %v10120_v50 = vadd.f32 %v10119_v11, %v17863_v46  ;;  %v10346_v29 = vmax.f32 %v10187_v33, 0.0  ;;  %v10385_v13 = vadd.f32 %v10379_v25, %v10371_v9 }
 0x78e   : > { %v10121_v52 = vpop.f32.mrf.mxu0  ;;  %v10380_v2 = vmul.f32 %v10344_v45, %v17796_v30 }
 0x78f   : > { %v10194_v12 = vpop.f32.mrf.mxu1  ;;  %v10193_v1 = vadd.f32 %v10192_v23, %v10120_v50  ;;  %v10122_v31 = vadd.f32 %v10121_v52, %v17868_v61  ;;  %v10347_v22 = vmax.f32 %v10189_v16, 0.0  ;;  %v10382_v56 = vmul.f32 %v10346_v29, %v17796_v30 }
 0x790   : > { %v10123_v54 = vpop.f32.mrf.mxu0  ;;  %v10386_v40 = vadd.f32 %v10380_v2, %v10372_v37 }
 0x791   : > { %v10196_v55 = vpop.f32.mrf.mxu1  ;;  %v10349_v7 = vmax.f32 %v10193_v1, 0.0  ;;  %v10124_v14 = vadd.f32 %v10123_v54, %v17863_v46  ;;  %v10195_v15 = vadd.f32 %v10194_v12, %v10122_v31  ;;  %v10383_v24 = vmul.f32 %v10347_v22, %v17796_v30 }
 0x792   : > { %v10125_v38 = vpop.f32.mrf.mxu0  ;;  %v10388_v33 = vadd.f32 %v10382_v56, %v10374_v47 }
 0x793   : > { %v10198_v4 = vpop.f32.mrf.mxu1  ;;  %v10393_v60 = vmul.f32 %v10349_v7, %v17806_v20  ;;  %v10197_v58 = vadd.f32 %v10196_v55, %v10124_v14  ;;  %v10126_v32 = vadd.f32 %v10125_v38, %v17868_v61  ;;  %v10350_v46 = vmax.f32 %v10195_v15, 0.0 }
 0x794   : > { %v11816_v41 = vpop.f32.mrf.mxu0  ;;  %v10389_v23 = vadd.f32 %v10383_v24, %v10375_v35 }
 0x795   : > { %v11856_v49 = vpop.f32.mrf.mxu1  ;;  %v10399_v0 = vadd.f32 %v10393_v60, %v10385_v13  ;;  %v10352_v26 = vmax.f32 %v10197_v58, 0.0  ;;  %v10199_v19 = vadd.f32 %v10198_v4, %v10126_v32  ;;  %v10394_v17 = vmul.f32 %v10350_v46, %v17806_v20 }
 0x796   : > { %v11817_v36 = vpop.f32.mrf.mxu0 }
 0x797   : > { %v11857_v6 = vpop.f32.mrf.mxu1  ;;  %v17901_v61 = vadd.f32 %v10399_v0, %v17802_v18  ;;  %v10396_v51 = vmul.f32 %v10352_v26, %v17806_v20  ;;  %v10353_v63 = vmax.f32 %v10199_v19, 0.0  ;;  %v10400_v27 = vadd.f32 %v10394_v17, %v10386_v40 }
 0x798   : > { %v11819_v10 = vpop.f32.mrf.mxu0  ;;  %v11818_v31 = vadd.f32 %v11817_v36, %v11816_v41  ;;  %v11858_v56 = vadd.f32 %v11857_v6, %v11856_v49 }
 0x799   : > { %v11859_v11 = vpop.f32.mrf.mxu1  ;;  %v10402_v42 = vadd.f32 %v10396_v51, %v10388_v33  ;;  %v10397_v16 = vmul.f32 %v10353_v63, %v17806_v20  ;;  %v17906_v50 = vadd.f32 %v10400_v27, %v17802_v18 }
 0x79a   : > { %v11820_v5 = vpop.f32.mrf.mxu0  ;;  %v10236_v8 = vadd.f32 %v11818_v31, %v9539_v28 }
 0x79b   : > { %v11860_v59 = vpop.f32.mrf.mxu1  ;;  %v17909_v25 = vadd.f32 %v10402_v42, %v17802_v18  ;;  %v10403_v45 = vadd.f32 %v10397_v16, %v10389_v23  ;;  %v11821_v13 = vadd.f32 %v11820_v5, %v11819_v10 }
 0x79c   : > { %v11822_v52 = vpop.f32.mrf.mxu0  ;;  %v10301_v43 = vadd.f32 %v11858_v56, %v10236_v8  ;;  %v11861_v26 = vadd.f32 %v11860_v59, %v11859_v11 }
 0x79d   : > { %v11862_v12 = vpop.f32.mrf.mxu1  ;;  %v17912_v44 = vadd.f32 %v10403_v45, %v17802_v18  ;;  %v10239_v37 = vadd.f32 %v11821_v13, %v9539_v28 }
 0x79e   : > { %v11823_v34 = vpop.f32.mrf.mxu0  ;;  %v10333_v6 = vmax.f32 %v10301_v43, 0.0 }
 0x79f   : > { %v11863_v29 = vpop.f32.mrf.mxu1  ;;  %v11824_v1 = vadd.f32 %v11823_v34, %v11822_v52  ;;  %v10304_v33 = vadd.f32 %v11861_v26, %v10239_v37 }
 0x7a0   : > { %v11825_v9 = vpop.f32.mrf.mxu0  ;;  %v11864_v2 = vadd.f32 %v11863_v29, %v11862_v12  ;;  %v10359_v59 = vmul.f32 %v10333_v6, %v17788_v53 }
 0x7a1   : > { %v11865_v62 = vpop.f32.mrf.mxu1  ;;  %v10244_v57 = vadd.f32 %v11824_v1, %v9539_v28  ;;  %v10336_v12 = vmax.f32 %v10304_v33, 0.0 }
 0x7a2   : > { %v11826_v54 = vpop.f32.mrf.mxu0 }
 0x7a3   : > { %v11866_v55 = vpop.f32.mrf.mxu1  ;;  %v11827_v14 = vadd.f32 %v11826_v54, %v11825_v9  ;;  %v10309_v60 = vadd.f32 %v11864_v2, %v10244_v57 }
 0x7a4   : > { %v11828_v22 = vpop.f32.mrf.mxu0  ;;  %v11867_v41 = vadd.f32 %v11866_v55, %v11865_v62 }
 0x7a5   : > { %v11868_v7 = vpop.f32.mrf.mxu1  ;;  %v10247_v3 = vadd.f32 %v11827_v14, %v9539_v28  ;;  %v10339_v19 = vmax.f32 %v10309_v60, 0.0  ;;  %v10362_v14 = vmul.f32 %v10336_v12, %v17788_v53 }
 0x7a6   : > { %v11829_v15 = vpop.f32.mrf.mxu0 }
 0x7a7   : > { %v11869_v38 = vpop.f32.mrf.mxu1  ;;  %v11830_v4 = vadd.f32 %v11829_v15, %v11828_v22  ;;  %v10312_v17 = vadd.f32 %v11867_v41, %v10247_v3  ;;  %v10367_v42 = vmul.f32 %v10339_v19, %v17793_v21 }
 0x7a8   : > { %v11831_v58 = vpop.f32.mrf.mxu0  ;;  %v11870_v39 = vadd.f32 %v11869_v38, %v11868_v7 }
 0x7a9   : > { %v11871_v32 = vpop.f32.mrf.mxu1  ;;  %v10252_v48 = vadd.f32 %v11830_v4, %v9539_v28  ;;  %v10342_v45 = vmax.f32 %v10312_v17, 0.0  ;;  %v10373_v54 = vadd.f32 %v10367_v42, %v10359_v59 }
 0x7aa   : > { %v11832_v47 = vpop.f32.mrf.mxu0 }
 0x7ab   : > { %v11872_v46 = vpop.f32.mrf.mxu1  ;;  %v10317_v24 = vadd.f32 %v11870_v39, %v10252_v48  ;;  %v11833_v0 = vadd.f32 %v11832_v47, %v11831_v58  ;;  %v10370_v55 = vmul.f32 %v10342_v45, %v17793_v21 }
 0x7ac   : > { %v11834_v35 = vpop.f32.mrf.mxu0  ;;  %v11873_v49 = vadd.f32 %v11872_v46, %v11871_v32 }
 0x7ad   : > { %v11874_v40 = vpop.f32.mrf.mxu1  ;;  %v10255_v36 = vadd.f32 %v11833_v0, %v9539_v28  ;;  %v10345_v27 = vmax.f32 %v10317_v24, 0.0  ;;  %v10376_v38 = vadd.f32 %v10370_v55, %v10362_v14 }
 0x7ae   : > { %v11835_v51 = vpop.f32.mrf.mxu0 }
 0x7af   : > { %v11875_v63 = vpop.f32.mrf.mxu1  ;;  %v10320_v10 = vadd.f32 %v11873_v49, %v10255_v36  ;;  %v11836_v23 = vadd.f32 %v11835_v51, %v11834_v35  ;;  %v10381_v1 = vmul.f32 %v10345_v27, %v17796_v30 }
 0x7b0   : > { %v11837_v16 = vpop.f32.mrf.mxu0  ;;  %v11876_v11 = vadd.f32 %v11875_v63, %v11874_v40 }
 0x7b1   : > { %v11877_v5 = vpop.f32.mrf.mxu1  ;;  %v10260_v52 = vadd.f32 %v11836_v23, %v9539_v28  ;;  %v10348_v9 = vmax.f32 %v10320_v10, 0.0  ;;  %v10387_v8 = vadd.f32 %v10381_v1, %v10373_v54 }
 0x7b2   : > { %v11838_v34 = vpop.f32.mrf.mxu0 }
 0x7b3   : > { %v11878_v29 = vpop.f32.mrf.mxu1  ;;  %v10325_v62 = vadd.f32 %v11876_v11, %v10260_v52  ;;  %v11839_v31 = vadd.f32 %v11838_v34, %v11837_v16  ;;  %v10384_v13 = vmul.f32 %v10348_v9, %v17796_v30 }
 0x7b4   : > { %v11879_v7 = vadd.f32 %v11878_v29, %v11877_v5 }
 0x7b5   : > { %v10351_v57 = vmax.f32 %v10325_v62, 0.0  ;;  %v10263_v22 = vadd.f32 %v11839_v31, %v9539_v28  ;;  %v10390_v60 = vadd.f32 %v10384_v13, %v10376_v38 }
 0x7b7   : > { %v10395_v2 = vmul.f32 %v10351_v57, %v17806_v20  ;;  %v10328_v15 = vadd.f32 %v11879_v7, %v10263_v22 }
 0x7b9   : > { %v10401_v4 = vadd.f32 %v10395_v2, %v10387_v8  ;;  %v10354_v56 = vmax.f32 %v10328_v15, 0.0 }
 0x7bb   : > { %v10407_v58 = vadd.f32 %v10401_v4, %v17802_v18  ;;  %v10398_v32 = vmul.f32 %v10354_v56, %v17806_v20  ;;  %10415 = sbr.rel (%p11695_p7) target bundleno = 1987 (0x7c3), region = 111 }
 0x7bd   : > { %v10404_v21 = vadd.f32 %v10398_v32, %v10390_v60 }
 0x7bf   : > { %v10410_v28 = vadd.f32 %v10404_v21, %v17802_v18 }
 0x7c0   : > { %10420 = vst [vmem:[%s10419_s15] sm:$0xff] %v17901_v61  ;;  %10421 = vst [vmem:[%s10419_s15 + $0x8] sm:$0xff] %v17906_v50 }
 0x7c1   : > { %10422 = vst [vmem:[%s10419_s15 + $0x10] sm:$0xff] %v10407_v58  ;;  %10423 = vst [vmem:[%s10419_s15 + $0x88] sm:$0xff] %v17909_v25 }
 0x7c2   : > { %10424 = vst [vmem:[%s10419_s15 + $0x90] sm:$0xff] %v17912_v44  ;;  %10425 = vst [vmem:[%s10419_s15 + $0x98] sm:$0xff] %v10410_v28 }
 0x7c3 PF: > { %p11697_p8 = scmp.ne.s32.totalorder %s13801_s13, 2 }
 0x7c4   : > { %s10430_s19 = sshra.s32 (!%p11697_p8), %s17709_s20, 7 }
 0x7c5   : > { %10429 = sbr.rel (%p11697_p8) target bundleno = 1996 (0x7cc), region = 115  ;;  %s11698_s27 = sshll.u32 (!%p11697_p8), %s10430_s19, 3 }
 0x7c6   : > { %s10433_s24 = scalar_lea.vmem (!%p11697_p8), [#allocation8], %s11698_s27 }
 0x7ca   : > { %vm10435_vm0 = vcmask 7168   ;;  %10434 = vst [vmem:[%s10433_s24] sm:$0xff] %v17901_v61  ;;  %10437 = vst [vmem:[%s10433_s24 + $0x88] sm:$0xff] %v17909_v25 }
 0x7cb   : > { %10436 = vst.msk [vmem:[%s10433_s24 + $0x8] sm:$0xff] %vm10435_vm0, %v17906_v50  ;;  %10438 = vst.msk [vmem:[%s10433_s24 + $0x90] sm:$0xff] %vm10435_vm0, %v17912_v44 }
 0x7cc PF: > { %p11896_p9 = scmp.eq.s32.totalorder %s13801_s13, 2  ;;  %s13704_s25 = smov [#allocation8]  }
 0x7cd   : > { %s10445_s22 = sshll.u32 %s13704_s25, 4  ;;  %s10446_s22 = int_to_ptr.vmem [resolvable:$true] %s10445_s22 }
 0x7ce   : > { %s13647_s17 = scalar_lea.vmem %s10446_s22, 4352  ;;  %p13654_p13 = scmp.lt.s32.totalorder %s10446_s22, %s10446_s22 }
 0x7cf   : > { %p13648_p10 = scmp.ne.s32.totalorder %s10446_s22, %s13647_s17  ;;  %p13655_p0 = scmp.lt.s32.totalorder %s13647_s17, %s13647_s17 }
 0x7d1   : > { %p13649_p11 = pnand %p13648_p10, %p11896_p9  ;;  %p13656_p1 = por %p13655_p0, %p13654_p13 }
 0x7d3   : > { %p13650_p12 = pneg %p13649_p11 }
 0x7d5   : > { %p13657_p2 = pnand %p13656_p1, %p13650_p12 }
 0x7d7   : > { %13660 = shalt.err (!%p13657_p2)
}
 0x7d8   : > { %s13705_s20 = smov 2176   ;;  %s13706_s26 = smov 136  }
 0x7d9   : > { %11887 = dma.vmem_to_hbm [thread:$0]  (%p11896_p9), %s10446_s22, 4352, %s17975_s14, [#allocation6], %s13705_s20, %s13705_s20, %s13706_s26  }
 0x7da   : > { %13688 = dma.done.wait (%p11896_p9), [#allocation6], 4352  }
 0x7db   : > { %13690 = vsyncadd (%p11896_p9), [#allocation6], 4294962944 }
 0x7dc PF: > { %p24_p3 = scmp.ge.s32.totalorder %s13804_s18, 5   ;;  %s17985_s15 = smov %s13697_s16 }
 0x7dd   : > { %s17986_s16 = smov %s13814_s21  ;;  %s17987_s17 = smov %s13804_s18 }
 0x7de   :  { %26 = sbr.rel (!%p24_p3) target bundleno = 5 (0x5), region = 154 }
 0x7e3   :  { %10461 = vsyncpa [#allocation6], 1 }
 0x7e4   :  { %10463 = vsyncpa [#allocation6 + $0x1], 1 }
 0x7e5   :  { %10464 = vsyncpa [#allocation7], 1 }
 0x7e6   :  { %10466 = vsyncpa [#allocation7 + $0x1], 1 }

</bundles_post_ra>
